<compile_context>
chip_gen: v6e
topology: v6e:2x2x1
jax: 0.10.0
libtpu: 0.0.40
codegen_flags: <defaults>
</compile_context>

<pallas_src>
import functools

import jax
import jax.numpy as jnp
from jax.experimental import pallas as pl
from jax.experimental.pallas import tpu as pltpu


# ----------------------------------------------------------------------------
# Fused Bottleneck kernel (pre-activation, expansion=2)
#   x block: (1, M, Cin) with M = H*W  ->  out: same shape (+ residual)
# ----------------------------------------------------------------------------
def _bottleneck_kernel(x_ref, lm_ref, rm_ref,
                       s1_ref, t1_ref, w1_ref, b1_ref,
                       s2_ref, t2_ref, w2_ref, b2_ref,
                       s3_ref, t3_ref, w3_ref, b3_ref,
                       o_ref, pad_ref, *, W, P):
    x = x_ref[0]                                            # (M, Cin) f32
    M = x.shape[0]
    bf = jnp.bfloat16

    # BN1(eval) + ReLU + 1x1 conv  (bf16 MXU operands, f32 accumulate)
    a1 = jnp.maximum(x * s1_ref[...] + t1_ref[...], 0.0)
    h1 = jnp.dot(a1.astype(bf), w1_ref[...].astype(bf),
                 preferred_element_type=jnp.float32) + b1_ref[...]      # (M, P)

    # BN2(eval) + ReLU
    a2 = jnp.maximum(h1 * s2_ref[...] + t2_ref[...], 0.0)               # (M, P)

    # 3x3 conv (padding=1) as 9 shifted matmuls.  The activation is written
    # into a zero-padded VMEM scratch; vertical (dy) out-of-image taps fall
    # into the zero pad, horizontal (dx) wrap-around rows are zeroed by the
    # precomputed left/right column masks.
    pad_ref[...] = jnp.zeros_like(pad_ref)                  # (M + 2W + 2, P)
    pad_ref[W + 1:W + 1 + M, :] = a2
    lm = lm_ref[...]                                        # (M, 1)
    rm = rm_ref[...]                                        # (M, 1)
    acc = jnp.zeros((M, P), jnp.float32)
    k = 0
    for dy in (-1, 0, 1):
        for dx in (-1, 0, 1):
            off = W + 1 + dy * W + dx
            sh = pad_ref[off:off + M, :]                    # (M, P)
            if dx == -1:
                sh = sh * lm
            elif dx == 1:
                sh = sh * rm
            acc = acc + jnp.dot(sh.astype(bf), w2_ref[k].astype(bf),
                                preferred_element_type=jnp.float32)
            k += 1
    h2 = acc + b2_ref[...]

    # BN3(eval) + ReLU + 1x1 conv + residual (fused epilogue add)
    a3 = jnp.maximum(h2 * s3_ref[...] + t3_ref[...], 0.0)
    h3 = jnp.dot(a3.astype(bf), w3_ref[...].astype(bf),
                 preferred_element_type=jnp.float32) + b3_ref[...]      # (M, Cin)
    o_ref[0] = h3 + x


def bottleneck_forward(x_flat, H, W, p):
    """x_flat: (N, H*W, Cin) f32; returns same shape."""
    N, M, Cin = x_flat.shape
    P = p["w1"].shape[1]

    # Column-validity masks for the dx = -1 / +1 taps of the 3x3 conv.
    w_idx = jnp.tile(jnp.arange(W, dtype=jnp.int32), H)                  # (M,)
    lmask = (w_idx >= 1).astype(jnp.float32).reshape(M, 1)
    rmask = (w_idx <= W - 2).astype(jnp.float32).reshape(M, 1)

    full2 = lambda i: (0, 0)
    full3 = lambda i: (0, 0, 0)
    img3 = lambda i: (i, 0, 0)

    flops = N * M * (4 * Cin * P + 18 * P * P)
    bytes_accessed = 4 * (2 * N * Cin * M + 2 * M + 2 * Cin * P + 9 * P * P
                          + 6 * P + 4 * Cin)

    return pl.pallas_call(
        functools.partial(_bottleneck_kernel, W=W, P=P),
        out_shape=jax.ShapeDtypeStruct((N, M, Cin), jnp.float32),
        grid=(N,),
        in_specs=[
            pl.BlockSpec((1, M, Cin), img3),      # x
            pl.BlockSpec((M, 1), full2),          # lmask
            pl.BlockSpec((M, 1), full2),          # rmask
            pl.BlockSpec((1, Cin), full2),        # s1
            pl.BlockSpec((1, Cin), full2),        # t1
            pl.BlockSpec((Cin, P), full2),        # w1
            pl.BlockSpec((1, P), full2),          # b1
            pl.BlockSpec((1, P), full2),          # s2
            pl.BlockSpec((1, P), full2),          # t2
            pl.BlockSpec((9, P, P), full3),       # w2 (tap, in, out)
            pl.BlockSpec((1, P), full2),          # b2
            pl.BlockSpec((1, P), full2),          # s3
            pl.BlockSpec((1, P), full2),          # t3
            pl.BlockSpec((P, Cin), full2),        # w3
            pl.BlockSpec((1, Cin), full2),        # b3
        ],
        out_specs=pl.BlockSpec((1, M, Cin), img3),
        scratch_shapes=[pltpu.VMEM((M + 2 * W + 2, P), jnp.float32)],
        compiler_params=pltpu.CompilerParams(dimension_semantics=("parallel",)),
        cost_estimate=pl.CostEstimate(flops=flops, transcendentals=0,
                                      bytes_accessed=bytes_accessed),
    )(x_flat, lmask, rmask,
      p["s1"], p["t1"], p["w1"], p["b1"],
      p["s2"], p["t2"], p["w2"], p["b2"],
      p["s3"], p["t3"], p["w3"], p["b3"])


def residual_seq(x_flat, H, W, blocks):
    for bp in blocks:
        x_flat = bottleneck_forward(x_flat, H, W, bp)
    return x_flat


# ----------------------------------------------------------------------------
# 2x2 ceil-mode max pool (stride 2), fully in-kernel
# ----------------------------------------------------------------------------
def _maxpool_kernel(x_ref, se_ref, so_ref, o_ref, *, H, W, Ho, Wo):
    # x_ref: (1, H*W, C); se/so: (Wo, W) exact 0/1 column selectors.
    se = se_ref[...]
    so = so_ref[...]
    hi = jax.lax.Precision.HIGHEST
    for r in range(Ho):
        ra = x_ref[0, 2 * r * W:(2 * r + 1) * W, :]                     # (W, C)
        rb_i = min(2 * r + 1, H - 1)                                    # ceil-mode
        rb = x_ref[0, rb_i * W:(rb_i + 1) * W, :]
        rm = jnp.maximum(ra, rb)
        pooled = jnp.maximum(
            jnp.dot(se, rm, precision=hi, preferred_element_type=jnp.float32),
            jnp.dot(so, rm, precision=hi, preferred_element_type=jnp.float32))
        o_ref[0, r * Wo:(r + 1) * Wo, :] = pooled                       # (Wo, C)


def maxpool2x2_ceil(x_flat, H, W):
    """F.max_pool2d(x, 2, stride=2, ceil_mode=True) on (N, H*W, C)."""
    N, M, C = x_flat.shape
    Ho, Wo = -(-H // 2), -(-W // 2)
    wr = jnp.arange(W)[None, :]
    co = jnp.arange(Wo)[:, None]
    se = (wr == 2 * co).astype(jnp.float32)                              # (Wo, W)
    so = (wr == jnp.minimum(2 * co + 1, W - 1)).astype(jnp.float32)      # (Wo, W)
    out = pl.pallas_call(
        functools.partial(_maxpool_kernel, H=H, W=W, Ho=Ho, Wo=Wo),
        out_shape=jax.ShapeDtypeStruct((N, Ho * Wo, C), jnp.float32),
        grid=(N,),
        in_specs=[pl.BlockSpec((1, M, C), lambda i: (i, 0, 0)),
                  pl.BlockSpec((Wo, W), lambda i: (0, 0)),
                  pl.BlockSpec((Wo, W), lambda i: (0, 0))],
        out_specs=pl.BlockSpec((1, Ho * Wo, C), lambda i: (i, 0, 0)),
        compiler_params=pltpu.CompilerParams(dimension_semantics=("parallel",)),
    )(x_flat, se, so)
    return out, Ho, Wo


# ----------------------------------------------------------------------------
# Fused nearest-neighbor 2x upsample (+ crop to HxW) + add of the up1 branch
# ----------------------------------------------------------------------------
def _upsample_add_kernel(up_ref, low_ref, e_ref, o_ref, *, H, W, Wl):
    # up_ref: (1, H*W, C); low_ref: (1, Hl*Wl, C); e_ref: (W, Wl) expansion
    # (E[w, wl] = 1 iff wl == w // 2).  Row duplication handled in-kernel.
    E = e_ref[...]
    hi = jax.lax.Precision.HIGHEST
    for t in range((H + 1) // 2):
        lr = low_ref[0, t * Wl:(t + 1) * Wl, :]                         # (Wl, C)
        u2 = jnp.dot(E, lr, precision=hi,
                     preferred_element_type=jnp.float32)                # (W, C)
        for rr in (2 * t, 2 * t + 1):
            if rr < H:
                o_ref[0, rr * W:(rr + 1) * W, :] = (
                    up_ref[0, rr * W:(rr + 1) * W, :] + u2)


def upsample_add(up1, low3, H, W, Hl, Wl):
    N, M, C = up1.shape
    E = (jnp.arange(Wl)[None, :] == jnp.arange(W)[:, None] // 2).astype(jnp.float32)
    return pl.pallas_call(
        functools.partial(_upsample_add_kernel, H=H, W=W, Wl=Wl),
        out_shape=jax.ShapeDtypeStruct((N, M, C), jnp.float32),
        grid=(N,),
        in_specs=[pl.BlockSpec((1, M, C), lambda i: (i, 0, 0)),
                  pl.BlockSpec((1, Hl * Wl, C), lambda i: (i, 0, 0)),
                  pl.BlockSpec((W, Wl), lambda i: (0, 0))],
        out_specs=pl.BlockSpec((1, M, C), lambda i: (i, 0, 0)),
        compiler_params=pltpu.CompilerParams(dimension_semantics=("parallel",)),
    )(up1, low3, E)


# ----------------------------------------------------------------------------
# Hourglass forward (recursion mirrors the PyTorch module)
# ----------------------------------------------------------------------------
def hourglass_forward(x_nchw, hg_params, depth):
    N, C, H, W = x_nchw.shape
    x = jnp.transpose(x_nchw, (0, 2, 3, 1)).astype(jnp.float32)
    x = x.reshape(N, H * W, C)                                # (N, M, C)

    def rec(nlvl, xf, h, w):
        up1 = residual_seq(xf, h, w, hg_params[nlvl - 1][0])
        low1, hl, wl = maxpool2x2_ceil(xf, h, w)
        low1 = residual_seq(low1, hl, wl, hg_params[nlvl - 1][1])
        if nlvl > 1:
            low2 = rec(nlvl - 1, low1, hl, wl)
        else:
            low2 = residual_seq(low1, hl, wl, hg_params[nlvl - 1][3])
        low3 = residual_seq(low2, hl, wl, hg_params[nlvl - 1][2])
        return upsample_add(up1, low3, h, w, hl, wl)          # up1 + crop(up(low3))

    y = rec(depth, x, H, W)
    y = y.reshape(N, H, W, C)
    return jnp.transpose(y, (0, 3, 1, 2))                     # back to NCHW


# ----------------------------------------------------------------------------
# Deterministic parameter initialization (inference-mode folded BatchNorm)
# ----------------------------------------------------------------------------
def _bn_affine(key, c, eps=1e-5):
    kg, kb, km, kv = jax.random.split(key, 4)
    gamma = 1.0 + 0.1 * jax.random.normal(kg, (c,), jnp.float32)
    beta = 0.1 * jax.random.normal(kb, (c,), jnp.float32)
    mean = 0.1 * jax.random.normal(km, (c,), jnp.float32)
    var = 1.0 + 0.1 * jax.random.uniform(kv, (c,), jnp.float32)
    s = gamma * jax.lax.rsqrt(var + eps)
    t = beta - mean * s
    return s.reshape(1, c), t.reshape(1, c)


def init_bottleneck(key, planes, expansion=2):
    cin = planes * expansion
    ks = jax.random.split(key, 9)
    s1, t1 = _bn_affine(ks[0], cin)
    w1 = 0.1 * jax.random.normal(ks[1], (cin, planes), jnp.float32)
    b1 = 0.1 * jax.random.normal(ks[2], (1, planes), jnp.float32)
    s2, t2 = _bn_affine(ks[3], planes)
    # 3x3 conv weight, tap-major: w2[(ky*3+kx)] is (planes_in, planes_out).
    w2 = 0.1 * jax.random.normal(ks[4], (9, planes, planes), jnp.float32)
    b2 = 0.1 * jax.random.normal(ks[5], (1, planes), jnp.float32)
    s3, t3 = _bn_affine(ks[6], planes)
    w3 = 0.1 * jax.random.normal(ks[7], (planes, cin), jnp.float32)
    b3 = 0.1 * jax.random.normal(ks[8], (1, cin), jnp.float32)
    return dict(s1=s1, t1=t1, w1=w1, b1=b1, s2=s2, t2=t2, w2=w2, b2=b2,
                s3=s3, t3=t3, w3=w3, b3=b3)


def init_hourglass(key, num_blocks, planes, depth, expansion=2):
    hg = []
    for i in range(depth):
        n_res = 4 if i == 0 else 3
        level = []
        for _ in range(n_res):
            blocks = []
            for _ in range(num_blocks):
                key, sub = jax.random.split(key)
                blocks.append(init_bottleneck(sub, planes, expansion))
            level.append(blocks)
        hg.append(level)
    return hg


# ----------------------------------------------------------------------------
if __name__ == "__main__":
    num_blocks, planes, depth, expansion = 1, 4, 2, 2
    key = jax.random.PRNGKey(0)
    kparam, kx = jax.random.split(key)

    params = init_hourglass(kparam, num_blocks, planes, depth, expansion)
    # Input channels must equal planes * expansion (same as the PyTorch module).
    x = jax.random.normal(kx, (2, planes * expansion, 16, 16), jnp.float32)  # NCHW

    fwd = jax.jit(functools.partial(hourglass_forward, depth=depth))
    y = fwd(x, params)
    jax.block_until_ready(y)
    assert y.shape == x.shape and y.dtype == jnp.float32
    print("KERNEL_OK")
</pallas_src>

<mosaic_0001>
module attributes {stable_mosaic.version = 11 : i64} {
  func.func @_bottleneck_kernel(%arg0: i32, %arg1: memref<1x256x8xf32, #tpu.memory_space<vmem>>, %arg2: memref<256x1xf32, #tpu.memory_space<vmem>>, %arg3: memref<256x1xf32, #tpu.memory_space<vmem>>, %arg4: memref<1x8xf32, #tpu.memory_space<vmem>>, %arg5: memref<1x8xf32, #tpu.memory_space<vmem>>, %arg6: memref<8x4xf32, #tpu.memory_space<vmem>>, %arg7: memref<1x4xf32, #tpu.memory_space<vmem>>, %arg8: memref<1x4xf32, #tpu.memory_space<vmem>>, %arg9: memref<1x4xf32, #tpu.memory_space<vmem>>, %arg10: memref<9x4x4xf32, #tpu.memory_space<vmem>>, %arg11: memref<1x4xf32, #tpu.memory_space<vmem>>, %arg12: memref<1x4xf32, #tpu.memory_space<vmem>>, %arg13: memref<1x4xf32, #tpu.memory_space<vmem>>, %arg14: memref<4x8xf32, #tpu.memory_space<vmem>>, %arg15: memref<1x8xf32, #tpu.memory_space<vmem>>, %arg16: memref<1x256x8xf32, #tpu.memory_space<vmem>>, %arg17: memref<290x4xf32, #tpu.memory_space<vmem>>) attributes {dimension_semantics = [#tpu.dimension_semantics<parallel>], iteration_bounds = array<i64: 2>, scalar_prefetch = 0 : i64, scratch_operands = 1 : i64, tpu.core_type = #tpu.core_type<tc>, window_params = [{transform_indices = @transform_0, window_bounds = array<i64: 1, 256, 8>}, {pipeline_mode = #tpu.pipeline_mode<synchronous>, transform_indices = @transform_1, window_bounds = array<i64: 256, 1>}, {pipeline_mode = #tpu.pipeline_mode<synchronous>, transform_indices = @transform_2, window_bounds = array<i64: 256, 1>}, {pipeline_mode = #tpu.pipeline_mode<synchronous>, transform_indices = @transform_3, window_bounds = array<i64: 1, 8>}, {pipeline_mode = #tpu.pipeline_mode<synchronous>, transform_indices = @transform_4, window_bounds = array<i64: 1, 8>}, {pipeline_mode = #tpu.pipeline_mode<synchronous>, transform_indices = @transform_5, window_bounds = array<i64: 8, 4>}, {pipeline_mode = #tpu.pipeline_mode<synchronous>, transform_indices = @transform_6, window_bounds = array<i64: 1, 4>}, {pipeline_mode = #tpu.pipeline_mode<synchronous>, transform_indices = @transform_7, window_bounds = array<i64: 1, 4>}, {pipeline_mode = #tpu.pipeline_mode<synchronous>, transform_indices = @transform_8, window_bounds = array<i64: 1, 4>}, {pipeline_mode = #tpu.pipeline_mode<synchronous>, transform_indices = @transform_9, window_bounds = array<i64: 9, 4, 4>}, {pipeline_mode = #tpu.pipeline_mode<synchronous>, transform_indices = @transform_10, window_bounds = array<i64: 1, 4>}, {pipeline_mode = #tpu.pipeline_mode<synchronous>, transform_indices = @transform_11, window_bounds = array<i64: 1, 4>}, {pipeline_mode = #tpu.pipeline_mode<synchronous>, transform_indices = @transform_12, window_bounds = array<i64: 1, 4>}, {pipeline_mode = #tpu.pipeline_mode<synchronous>, transform_indices = @transform_13, window_bounds = array<i64: 4, 8>}, {pipeline_mode = #tpu.pipeline_mode<synchronous>, transform_indices = @transform_14, window_bounds = array<i64: 1, 8>}, {transform_indices = @transform_15, window_bounds = array<i64: 1, 256, 8>}]} {
    %c0 = arith.constant 0 : index
    %c0_0 = arith.constant 0 : index
    %c0_1 = arith.constant 0 : index
    %0 = vector.load %arg1[%c0, %c0_0, %c0_1] : memref<1x256x8xf32, #tpu.memory_space<vmem>>, vector<1x256x8xf32>
    %1 = vector.shape_cast %0 : vector<1x256x8xf32> to vector<256x8xf32>
    %c0_2 = arith.constant 0 : index
    %c0_3 = arith.constant 0 : index
    %2 = vector.load %arg4[%c0_2, %c0_3] : memref<1x8xf32, #tpu.memory_space<vmem>>, vector<1x8xf32>
    %3 = vector.broadcast %2 : vector<1x8xf32> to vector<256x8xf32>
    %4 = arith.mulf %1, %3 : vector<256x8xf32>
    %c0_4 = arith.constant 0 : index
    %c0_5 = arith.constant 0 : index
    %5 = vector.load %arg5[%c0_4, %c0_5] : memref<1x8xf32, #tpu.memory_space<vmem>>, vector<1x8xf32>
    %6 = vector.broadcast %5 : vector<1x8xf32> to vector<256x8xf32>
    %7 = arith.addf %4, %6 : vector<256x8xf32>
    %cst = arith.constant 0.000000e+00 : f32
    %8 = vector.broadcast %cst : f32 to vector<256x8xf32>
    %9 = arith.maximumf %7, %8 : vector<256x8xf32>
    %10 = arith.truncf %9 : vector<256x8xf32> to vector<256x8xbf16>
    %c0_6 = arith.constant 0 : index
    %c0_7 = arith.constant 0 : index
    %11 = vector.load %arg6[%c0_6, %c0_7] : memref<8x4xf32, #tpu.memory_space<vmem>>, vector<8x4xf32>
    %12 = arith.truncf %11 : vector<8x4xf32> to vector<8x4xbf16>
    %cst_8 = arith.constant dense<0.000000e+00> : vector<256x4xf32>
    %13 = tpu.matmul %10, %12, %cst_8 {dimension_numbers = #tpu.dot_dimension_numbers<[1], [0], [0], [1], [0, 0, 1, 1], [], []>} : vector<256x8xbf16>, vector<8x4xbf16>, vector<256x4xf32> -> vector<256x4xf32>
    %c0_9 = arith.constant 0 : index
    %c0_10 = arith.constant 0 : index
    %14 = vector.load %arg7[%c0_9, %c0_10] : memref<1x4xf32, #tpu.memory_space<vmem>>, vector<1x4xf32>
    %15 = vector.broadcast %14 : vector<1x4xf32> to vector<256x4xf32>
    %16 = arith.addf %13, %15 : vector<256x4xf32>
    %c0_11 = arith.constant 0 : index
    %c0_12 = arith.constant 0 : index
    %17 = vector.load %arg8[%c0_11, %c0_12] : memref<1x4xf32, #tpu.memory_space<vmem>>, vector<1x4xf32>
    %18 = vector.broadcast %17 : vector<1x4xf32> to vector<256x4xf32>
    %19 = arith.mulf %16, %18 : vector<256x4xf32>
    %c0_13 = arith.constant 0 : index
    %c0_14 = arith.constant 0 : index
    %20 = vector.load %arg9[%c0_13, %c0_14] : memref<1x4xf32, #tpu.memory_space<vmem>>, vector<1x4xf32>
    %21 = vector.broadcast %20 : vector<1x4xf32> to vector<256x4xf32>
    %22 = arith.addf %19, %21 : vector<256x4xf32>
    %cst_15 = arith.constant 0.000000e+00 : f32
    %23 = vector.broadcast %cst_15 : f32 to vector<256x4xf32>
    %24 = arith.maximumf %22, %23 : vector<256x4xf32>
    %cst_16 = arith.constant 0.000000e+00 : f32
    %25 = vector.broadcast %cst_16 : f32 to vector<290x4xf32>
    %c0_17 = arith.constant 0 : index
    %c0_18 = arith.constant 0 : index
    %26 = vector.load %arg17[%c0_17, %c0_18] : memref<290x4xf32, #tpu.memory_space<vmem>>, vector<290x4xf32>
    tpu.vector_store %arg17[%c0_17, %c0_18], %25 {strides = array<i32>} : memref<290x4xf32, #tpu.memory_space<vmem>>, vector<290x4xf32>,
    %c17 = arith.constant 17 : index
    %c0_19 = arith.constant 0 : index
    %27 = vector.load %arg17[%c17, %c0_19] : memref<290x4xf32, #tpu.memory_space<vmem>>, vector<256x4xf32>
    tpu.vector_store %arg17[%c17, %c0_19], %24 {strides = array<i32>} : memref<290x4xf32, #tpu.memory_space<vmem>>, vector<256x4xf32>,
    %c0_20 = arith.constant 0 : index
    %c0_21 = arith.constant 0 : index
    %28 = vector.load %arg2[%c0_20, %c0_21] : memref<256x1xf32, #tpu.memory_space<vmem>>, vector<256x1xf32>
    %c0_22 = arith.constant 0 : index
    %c0_23 = arith.constant 0 : index
    %29 = vector.load %arg3[%c0_22, %c0_23] : memref<256x1xf32, #tpu.memory_space<vmem>>, vector<256x1xf32>
    %cst_24 = arith.constant 0.000000e+00 : f32
    %30 = vector.broadcast %cst_24 : f32 to vector<256x4xf32>
    %c0_25 = arith.constant 0 : index
    %c0_26 = arith.constant 0 : index
    %31 = vector.load %arg17[%c0_25, %c0_26] : memref<290x4xf32, #tpu.memory_space<vmem>>, vector<256x4xf32>
    %32 = vector.broadcast %28 : vector<256x1xf32> to vector<256x4xf32>
    %33 = arith.mulf %31, %32 : vector<256x4xf32>
    %34 = arith.truncf %33 : vector<256x4xf32> to vector<256x4xbf16>
    %c0_27 = arith.constant 0 : index
    %c0_28 = arith.constant 0 : index
    %c0_29 = arith.constant 0 : index
    %35 = vector.load %arg10[%c0_27, %c0_28, %c0_29] : memref<9x4x4xf32, #tpu.memory_space<vmem>>, vector<1x4x4xf32>
    %36 = vector.shape_cast %35 : vector<1x4x4xf32> to vector<4x4xf32>
    %37 = arith.truncf %36 : vector<4x4xf32> to vector<4x4xbf16>
    %cst_30 = arith.constant dense<0.000000e+00> : vector<256x4xf32>
    %38 = tpu.matmul %34, %37, %cst_30 {dimension_numbers = #tpu.dot_dimension_numbers<[1], [0], [0], [1], [0, 0, 1, 1], [], []>} : vector<256x4xbf16>, vector<4x4xbf16>, vector<256x4xf32> -> vector<256x4xf32>
    %39 = arith.addf %30, %38 : vector<256x4xf32>
    %c1 = arith.constant 1 : index
    %c0_31 = arith.constant 0 : index
    %40 = vector.load %arg17[%c1, %c0_31] : memref<290x4xf32, #tpu.memory_space<vmem>>, vector<256x4xf32>
    %41 = arith.truncf %40 : vector<256x4xf32> to vector<256x4xbf16>
    %c1_32 = arith.constant 1 : index
    %c0_33 = arith.constant 0 : index
    %c0_34 = arith.constant 0 : index
    %42 = vector.load %arg10[%c1_32, %c0_33, %c0_34] : memref<9x4x4xf32, #tpu.memory_space<vmem>>, vector<1x4x4xf32>
    %43 = vector.shape_cast %42 : vector<1x4x4xf32> to vector<4x4xf32>
    %44 = arith.truncf %43 : vector<4x4xf32> to vector<4x4xbf16>
    %cst_35 = arith.constant dense<0.000000e+00> : vector<256x4xf32>
    %45 = tpu.matmul %41, %44, %cst_35 {dimension_numbers = #tpu.dot_dimension_numbers<[1], [0], [0], [1], [0, 0, 1, 1], [], []>} : vector<256x4xbf16>, vector<4x4xbf16>, vector<256x4xf32> -> vector<256x4xf32>
    %46 = arith.addf %39, %45 : vector<256x4xf32>
    %c2 = arith.constant 2 : index
    %c0_36 = arith.constant 0 : index
    %47 = vector.load %arg17[%c2, %c0_36] : memref<290x4xf32, #tpu.memory_space<vmem>>, vector<256x4xf32>
    %48 = vector.broadcast %29 : vector<256x1xf32> to vector<256x4xf32>
    %49 = arith.mulf %47, %48 : vector<256x4xf32>
    %50 = arith.truncf %49 : vector<256x4xf32> to vector<256x4xbf16>
    %c2_37 = arith.constant 2 : index
    %c0_38 = arith.constant 0 : index
    %c0_39 = arith.constant 0 : index
    %51 = vector.load %arg10[%c2_37, %c0_38, %c0_39] : memref<9x4x4xf32, #tpu.memory_space<vmem>>, vector<1x4x4xf32>
    %52 = vector.shape_cast %51 : vector<1x4x4xf32> to vector<4x4xf32>
    %53 = arith.truncf %52 : vector<4x4xf32> to vector<4x4xbf16>
    %cst_40 = arith.constant dense<0.000000e+00> : vector<256x4xf32>
    %54 = tpu.matmul %50, %53, %cst_40 {dimension_numbers = #tpu.dot_dimension_numbers<[1], [0], [0], [1], [0, 0, 1, 1], [], []>} : vector<256x4xbf16>, vector<4x4xbf16>, vector<256x4xf32> -> vector<256x4xf32>
    %55 = arith.addf %46, %54 : vector<256x4xf32>
    %c16 = arith.constant 16 : index
    %c0_41 = arith.constant 0 : index
    %56 = vector.load %arg17[%c16, %c0_41] : memref<290x4xf32, #tpu.memory_space<vmem>>, vector<256x4xf32>
    %57 = vector.broadcast %28 : vector<256x1xf32> to vector<256x4xf32>
    %58 = arith.mulf %56, %57 : vector<256x4xf32>
    %59 = arith.truncf %58 : vector<256x4xf32> to vector<256x4xbf16>
    %c3 = arith.constant 3 : index
    %c0_42 = arith.constant 0 : index
    %c0_43 = arith.constant 0 : index
    %60 = vector.load %arg10[%c3, %c0_42, %c0_43] : memref<9x4x4xf32, #tpu.memory_space<vmem>>, vector<1x4x4xf32>
    %61 = vector.shape_cast %60 : vector<1x4x4xf32> to vector<4x4xf32>
    %62 = arith.truncf %61 : vector<4x4xf32> to vector<4x4xbf16>
    %cst_44 = arith.constant dense<0.000000e+00> : vector<256x4xf32>
    %63 = tpu.matmul %59, %62, %cst_44 {dimension_numbers = #tpu.dot_dimension_numbers<[1], [0], [0], [1], [0, 0, 1, 1], [], []>} : vector<256x4xbf16>, vector<4x4xbf16>, vector<256x4xf32> -> vector<256x4xf32>
    %64 = arith.addf %55, %63 : vector<256x4xf32>
    %c17_45 = arith.constant 17 : index
    %c0_46 = arith.constant 0 : index
    %65 = vector.load %arg17[%c17_45, %c0_46] : memref<290x4xf32, #tpu.memory_space<vmem>>, vector<256x4xf32>
    %66 = arith.truncf %65 : vector<256x4xf32> to vector<256x4xbf16>
    %c4 = arith.constant 4 : index
    %c0_47 = arith.constant 0 : index
    %c0_48 = arith.constant 0 : index
    %67 = vector.load %arg10[%c4, %c0_47, %c0_48] : memref<9x4x4xf32, #tpu.memory_space<vmem>>, vector<1x4x4xf32>
    %68 = vector.shape_cast %67 : vector<1x4x4xf32> to vector<4x4xf32>
    %69 = arith.truncf %68 : vector<4x4xf32> to vector<4x4xbf16>
    %cst_49 = arith.constant dense<0.000000e+00> : vector<256x4xf32>
    %70 = tpu.matmul %66, %69, %cst_49 {dimension_numbers = #tpu.dot_dimension_numbers<[1], [0], [0], [1], [0, 0, 1, 1], [], []>} : vector<256x4xbf16>, vector<4x4xbf16>, vector<256x4xf32> -> vector<256x4xf32>
    %71 = arith.addf %64, %70 : vector<256x4xf32>
    %c18 = arith.constant 18 : index
    %c0_50 = arith.constant 0 : index
    %72 = vector.load %arg17[%c18, %c0_50] : memref<290x4xf32, #tpu.memory_space<vmem>>, vector<256x4xf32>
    %73 = vector.broadcast %29 : vector<256x1xf32> to vector<256x4xf32>
    %74 = arith.mulf %72, %73 : vector<256x4xf32>
    %75 = arith.truncf %74 : vector<256x4xf32> to vector<256x4xbf16>
    %c5 = arith.constant 5 : index
    %c0_51 = arith.constant 0 : index
    %c0_52 = arith.constant 0 : index
    %76 = vector.load %arg10[%c5, %c0_51, %c0_52] : memref<9x4x4xf32, #tpu.memory_space<vmem>>, vector<1x4x4xf32>
    %77 = vector.shape_cast %76 : vector<1x4x4xf32> to vector<4x4xf32>
    %78 = arith.truncf %77 : vector<4x4xf32> to vector<4x4xbf16>
    %cst_53 = arith.constant dense<0.000000e+00> : vector<256x4xf32>
    %79 = tpu.matmul %75, %78, %cst_53 {dimension_numbers = #tpu.dot_dimension_numbers<[1], [0], [0], [1], [0, 0, 1, 1], [], []>} : vector<256x4xbf16>, vector<4x4xbf16>, vector<256x4xf32> -> vector<256x4xf32>
    %80 = arith.addf %71, %79 : vector<256x4xf32>
    %c32 = arith.constant 32 : index
    %c0_54 = arith.constant 0 : index
    %81 = vector.load %arg17[%c32, %c0_54] : memref<290x4xf32, #tpu.memory_space<vmem>>, vector<256x4xf32>
    %82 = vector.broadcast %28 : vector<256x1xf32> to vector<256x4xf32>
    %83 = arith.mulf %81, %82 : vector<256x4xf32>
    %84 = arith.truncf %83 : vector<256x4xf32> to vector<256x4xbf16>
    %c6 = arith.constant 6 : index
    %c0_55 = arith.constant 0 : index
    %c0_56 = arith.constant 0 : index
    %85 = vector.load %arg10[%c6, %c0_55, %c0_56] : memref<9x4x4xf32, #tpu.memory_space<vmem>>, vector<1x4x4xf32>
    %86 = vector.shape_cast %85 : vector<1x4x4xf32> to vector<4x4xf32>
    %87 = arith.truncf %86 : vector<4x4xf32> to vector<4x4xbf16>
    %cst_57 = arith.constant dense<0.000000e+00> : vector<256x4xf32>
    %88 = tpu.matmul %84, %87, %cst_57 {dimension_numbers = #tpu.dot_dimension_numbers<[1], [0], [0], [1], [0, 0, 1, 1], [], []>} : vector<256x4xbf16>, vector<4x4xbf16>, vector<256x4xf32> -> vector<256x4xf32>
    %89 = arith.addf %80, %88 : vector<256x4xf32>
    %c33 = arith.constant 33 : index
    %c0_58 = arith.constant 0 : index
    %90 = vector.load %arg17[%c33, %c0_58] : memref<290x4xf32, #tpu.memory_space<vmem>>, vector<256x4xf32>
    %91 = arith.truncf %90 : vector<256x4xf32> to vector<256x4xbf16>
    %c7 = arith.constant 7 : index
    %c0_59 = arith.constant 0 : index
    %c0_60 = arith.constant 0 : index
    %92 = vector.load %arg10[%c7, %c0_59, %c0_60] : memref<9x4x4xf32, #tpu.memory_space<vmem>>, vector<1x4x4xf32>
    %93 = vector.shape_cast %92 : vector<1x4x4xf32> to vector<4x4xf32>
    %94 = arith.truncf %93 : vector<4x4xf32> to vector<4x4xbf16>
    %cst_61 = arith.constant dense<0.000000e+00> : vector<256x4xf32>
    %95 = tpu.matmul %91, %94, %cst_61 {dimension_numbers = #tpu.dot_dimension_numbers<[1], [0], [0], [1], [0, 0, 1, 1], [], []>} : vector<256x4xbf16>, vector<4x4xbf16>, vector<256x4xf32> -> vector<256x4xf32>
    %96 = arith.addf %89, %95 : vector<256x4xf32>
    %c34 = arith.constant 34 : index
    %c0_62 = arith.constant 0 : index
    %97 = vector.load %arg17[%c34, %c0_62] : memref<290x4xf32, #tpu.memory_space<vmem>>, vector<256x4xf32>
    %98 = vector.broadcast %29 : vector<256x1xf32> to vector<256x4xf32>
    %99 = arith.mulf %97, %98 : vector<256x4xf32>
    %100 = arith.truncf %99 : vector<256x4xf32> to vector<256x4xbf16>
    %c8 = arith.constant 8 : index
    %c0_63 = arith.constant 0 : index
    %c0_64 = arith.constant 0 : index
    %101 = vector.load %arg10[%c8, %c0_63, %c0_64] : memref<9x4x4xf32, #tpu.memory_space<vmem>>, vector<1x4x4xf32>
    %102 = vector.shape_cast %101 : vector<1x4x4xf32> to vector<4x4xf32>
    %103 = arith.truncf %102 : vector<4x4xf32> to vector<4x4xbf16>
    %cst_65 = arith.constant dense<0.000000e+00> : vector<256x4xf32>
    %104 = tpu.matmul %100, %103, %cst_65 {dimension_numbers = #tpu.dot_dimension_numbers<[1], [0], [0], [1], [0, 0, 1, 1], [], []>} : vector<256x4xbf16>, vector<4x4xbf16>, vector<256x4xf32> -> vector<256x4xf32>
    %105 = arith.addf %96, %104 : vector<256x4xf32>
    %c0_66 = arith.constant 0 : index
    %c0_67 = arith.constant 0 : index
    %106 = vector.load %arg11[%c0_66, %c0_67] : memref<1x4xf32, #tpu.memory_space<vmem>>, vector<1x4xf32>
    %107 = vector.broadcast %106 : vector<1x4xf32> to vector<256x4xf32>
    %108 = arith.addf %105, %107 : vector<256x4xf32>
    %c0_68 = arith.constant 0 : index
    %c0_69 = arith.constant 0 : index
    %109 = vector.load %arg12[%c0_68, %c0_69] : memref<1x4xf32, #tpu.memory_space<vmem>>, vector<1x4xf32>
    %110 = vector.broadcast %109 : vector<1x4xf32> to vector<256x4xf32>
    %111 = arith.mulf %108, %110 : vector<256x4xf32>
    %c0_70 = arith.constant 0 : index
    %c0_71 = arith.constant 0 : index
    %112 = vector.load %arg13[%c0_70, %c0_71] : memref<1x4xf32, #tpu.memory_space<vmem>>, vector<1x4xf32>
    %113 = vector.broadcast %112 : vector<1x4xf32> to vector<256x4xf32>
    %114 = arith.addf %111, %113 : vector<256x4xf32>
    %cst_72 = arith.constant 0.000000e+00 : f32
    %115 = vector.broadcast %cst_72 : f32 to vector<256x4xf32>
    %116 = arith.maximumf %114, %115 : vector<256x4xf32>
    %117 = arith.truncf %116 : vector<256x4xf32> to vector<256x4xbf16>
    %c0_73 = arith.constant 0 : index
    %c0_74 = arith.constant 0 : index
    %118 = vector.load %arg14[%c0_73, %c0_74] : memref<4x8xf32, #tpu.memory_space<vmem>>, vector<4x8xf32>
    %119 = arith.truncf %118 : vector<4x8xf32> to vector<4x8xbf16>
    %cst_75 = arith.constant dense<0.000000e+00> : vector<256x8xf32>
    %120 = tpu.matmul %117, %119, %cst_75 {dimension_numbers = #tpu.dot_dimension_numbers<[1], [0], [0], [1], [0, 0, 1, 1], [], []>} : vector<256x4xbf16>, vector<4x8xbf16>, vector<256x8xf32> -> vector<256x8xf32>
    %c0_76 = arith.constant 0 : index
    %c0_77 = arith.constant 0 : index
    %121 = vector.load %arg15[%c0_76, %c0_77] : memref<1x8xf32, #tpu.memory_space<vmem>>, vector<1x8xf32>
    %122 = vector.broadcast %121 : vector<1x8xf32> to vector<256x8xf32>
    %123 = arith.addf %120, %122 : vector<256x8xf32>
    %124 = arith.addf %123, %1 : vector<256x8xf32>
    %c0_78 = arith.constant 0 : index
    %c0_79 = arith.constant 0 : index
    %c0_80 = arith.constant 0 : index
    %125 = vector.load %arg16[%c0_78, %c0_79, %c0_80] : memref<1x256x8xf32, #tpu.memory_space<vmem>>, vector<1x256x8xf32>
    %126 = vector.shape_cast %125 : vector<1x256x8xf32> to vector<256x8xf32>
    %127 = vector.shape_cast %124 : vector<256x8xf32> to vector<1x256x8xf32>
    tpu.vector_store %arg16[%c0_78, %c0_79, %c0_80], %127 {strides = array<i32>} : memref<1x256x8xf32, #tpu.memory_space<vmem>>, vector<1x256x8xf32>,
    return
  }
  func.func @transform_0(%arg0: i32) -> (i32, i32, i32) {
    %c0_i32 = arith.constant 0 : i32
    %c0_i32_0 = arith.constant 0 : i32
    %c0_i32_1 = arith.constant 0 : i32
    return %arg0, %c0_i32, %c0_i32_0 : i32, i32, i32
  }
  func.func @transform_1(%arg0: i32) -> (i32, i32) {
    %c0_i32 = arith.constant 0 : i32
    %c0_i32_0 = arith.constant 0 : i32
    %c0_i32_1 = arith.constant 0 : i32
    return %c0_i32, %c0_i32_0 : i32, i32
  }
  func.func @transform_2(%arg0: i32) -> (i32, i32) {
    %c0_i32 = arith.constant 0 : i32
    %c0_i32_0 = arith.constant 0 : i32
    %c0_i32_1 = arith.constant 0 : i32
    return %c0_i32, %c0_i32_0 : i32, i32
  }
  func.func @transform_3(%arg0: i32) -> (i32, i32) {
    %c0_i32 = arith.constant 0 : i32
    %c0_i32_0 = arith.constant 0 : i32
    %c0_i32_1 = arith.constant 0 : i32
    return %c0_i32, %c0_i32_0 : i32, i32
  }
  func.func @transform_4(%arg0: i32) -> (i32, i32) {
    %c0_i32 = arith.constant 0 : i32
    %c0_i32_0 = arith.constant 0 : i32
    %c0_i32_1 = arith.constant 0 : i32
    return %c0_i32, %c0_i32_0 : i32, i32
  }
  func.func @transform_5(%arg0: i32) -> (i32, i32) {
    %c0_i32 = arith.constant 0 : i32
    %c0_i32_0 = arith.constant 0 : i32
    %c0_i32_1 = arith.constant 0 : i32
    return %c0_i32, %c0_i32_0 : i32, i32
  }
  func.func @transform_6(%arg0: i32) -> (i32, i32) {
    %c0_i32 = arith.constant 0 : i32
    %c0_i32_0 = arith.constant 0 : i32
    %c0_i32_1 = arith.constant 0 : i32
    return %c0_i32, %c0_i32_0 : i32, i32
  }
  func.func @transform_7(%arg0: i32) -> (i32, i32) {
    %c0_i32 = arith.constant 0 : i32
    %c0_i32_0 = arith.constant 0 : i32
    %c0_i32_1 = arith.constant 0 : i32
    return %c0_i32, %c0_i32_0 : i32, i32
  }
  func.func @transform_8(%arg0: i32) -> (i32, i32) {
    %c0_i32 = arith.constant 0 : i32
    %c0_i32_0 = arith.constant 0 : i32
    %c0_i32_1 = arith.constant 0 : i32
    return %c0_i32, %c0_i32_0 : i32, i32
  }
  func.func @transform_9(%arg0: i32) -> (i32, i32, i32) {
    %c0_i32 = arith.constant 0 : i32
    %c0_i32_0 = arith.constant 0 : i32
    %c0_i32_1 = arith.constant 0 : i32
    %c0_i32_2 = arith.constant 0 : i32
    return %c0_i32, %c0_i32_0, %c0_i32_1 : i32, i32, i32
  }
  func.func @transform_10(%arg0: i32) -> (i32, i32) {
    %c0_i32 = arith.constant 0 : i32
    %c0_i32_0 = arith.constant 0 : i32
    %c0_i32_1 = arith.constant 0 : i32
    return %c0_i32, %c0_i32_0 : i32, i32
  }
  func.func @transform_11(%arg0: i32) -> (i32, i32) {
    %c0_i32 = arith.constant 0 : i32
    %c0_i32_0 = arith.constant 0 : i32
    %c0_i32_1 = arith.constant 0 : i32
    return %c0_i32, %c0_i32_0 : i32, i32
  }
  func.func @transform_12(%arg0: i32) -> (i32, i32) {
    %c0_i32 = arith.constant 0 : i32
    %c0_i32_0 = arith.constant 0 : i32
    %c0_i32_1 = arith.constant 0 : i32
    return %c0_i32, %c0_i32_0 : i32, i32
  }
  func.func @transform_13(%arg0: i32) -> (i32, i32) {
    %c0_i32 = arith.constant 0 : i32
    %c0_i32_0 = arith.constant 0 : i32
    %c0_i32_1 = arith.constant 0 : i32
    return %c0_i32, %c0_i32_0 : i32, i32
  }
  func.func @transform_14(%arg0: i32) -> (i32, i32) {
    %c0_i32 = arith.constant 0 : i32
    %c0_i32_0 = arith.constant 0 : i32
    %c0_i32_1 = arith.constant 0 : i32
    return %c0_i32, %c0_i32_0 : i32, i32
  }
  func.func @transform_15(%arg0: i32) -> (i32, i32, i32) {
    %c0_i32 = arith.constant 0 : i32
    %c0_i32_0 = arith.constant 0 : i32
    %c0_i32_1 = arith.constant 0 : i32
    return %arg0, %c0_i32, %c0_i32_0 : i32, i32, i32
  }
}

module attributes {stable_mosaic.version = 11 : i64} {
  func.func @_maxpool_kernel(%arg0: i32, %arg1: memref<1x256x8xf32, #tpu.memory_space<vmem>>, %arg2: memref<8x16xf32, #tpu.memory_space<vmem>>, %arg3: memref<8x16xf32, #tpu.memory_space<vmem>>, %arg4: memref<1x64x8xf32, #tpu.memory_space<vmem>>) attributes {dimension_semantics = [#tpu.dimension_semantics<parallel>], iteration_bounds = array<i64: 2>, scalar_prefetch = 0 : i64, scratch_operands = 0 : i64, tpu.core_type = #tpu.core_type<tc>, window_params = [{transform_indices = @transform_0, window_bounds = array<i64: 1, 256, 8>}, {pipeline_mode = #tpu.pipeline_mode<synchronous>, transform_indices = @transform_1, window_bounds = array<i64: 8, 16>}, {pipeline_mode = #tpu.pipeline_mode<synchronous>, transform_indices = @transform_2, window_bounds = array<i64: 8, 16>}, {transform_indices = @transform_3, window_bounds = array<i64: 1, 64, 8>}]} {
    %c0 = arith.constant 0 : index
    %c0_0 = arith.constant 0 : index
    %0 = vector.load %arg2[%c0, %c0_0] : memref<8x16xf32, #tpu.memory_space<vmem>>, vector<8x16xf32>
    %c0_1 = arith.constant 0 : index
    %c0_2 = arith.constant 0 : index
    %1 = vector.load %arg3[%c0_1, %c0_2] : memref<8x16xf32, #tpu.memory_space<vmem>>, vector<8x16xf32>
    %c0_3 = arith.constant 0 : index
    %c0_4 = arith.constant 0 : index
    %c0_5 = arith.constant 0 : index
    %2 = vector.load %arg1[%c0_3, %c0_4, %c0_5] : memref<1x256x8xf32, #tpu.memory_space<vmem>>, vector<1x16x8xf32>
    %3 = vector.shape_cast %2 : vector<1x16x8xf32> to vector<16x8xf32>
    %c0_6 = arith.constant 0 : index
    %c16 = arith.constant 16 : index
    %c0_7 = arith.constant 0 : index
    %4 = vector.load %arg1[%c0_6, %c16, %c0_7] : memref<1x256x8xf32, #tpu.memory_space<vmem>>, vector<1x16x8xf32>
    %5 = vector.shape_cast %4 : vector<1x16x8xf32> to vector<16x8xf32>
    %6 = arith.maximumf %3, %5 : vector<16x8xf32>
    %cst = arith.constant dense<0.000000e+00> : vector<8x8xf32>
    %7 = tpu.matmul %0, %6, %cst {dimension_numbers = #tpu.dot_dimension_numbers<[1], [0], [0], [1], [0, 0, 1, 1], [], []>, precision = #tpu.contract_precision<fp32>} : vector<8x16xf32>, vector<16x8xf32>, vector<8x8xf32> -> vector<8x8xf32>
    %cst_8 = arith.constant dense<0.000000e+00> : vector<8x8xf32>
    %8 = tpu.matmul %1, %6, %cst_8 {dimension_numbers = #tpu.dot_dimension_numbers<[1], [0], [0], [1], [0, 0, 1, 1], [], []>, precision = #tpu.contract_precision<fp32>} : vector<8x16xf32>, vector<16x8xf32>, vector<8x8xf32> -> vector<8x8xf32>
    %9 = arith.maximumf %7, %8 : vector<8x8xf32>
    %c0_9 = arith.constant 0 : index
    %c0_10 = arith.constant 0 : index
    %c0_11 = arith.constant 0 : index
    %10 = vector.load %arg4[%c0_9, %c0_10, %c0_11] : memref<1x64x8xf32, #tpu.memory_space<vmem>>, vector<1x8x8xf32>
    %11 = vector.shape_cast %10 : vector<1x8x8xf32> to vector<8x8xf32>
    %12 = vector.shape_cast %9 : vector<8x8xf32> to vector<1x8x8xf32>
    tpu.vector_store %arg4[%c0_9, %c0_10, %c0_11], %12 {strides = array<i32>} : memref<1x64x8xf32, #tpu.memory_space<vmem>>, vector<1x8x8xf32>,
    %c0_12 = arith.constant 0 : index
    %c32 = arith.constant 32 : index
    %c0_13 = arith.constant 0 : index
    %13 = vector.load %arg1[%c0_12, %c32, %c0_13] : memref<1x256x8xf32, #tpu.memory_space<vmem>>, vector<1x16x8xf32>
    %14 = vector.shape_cast %13 : vector<1x16x8xf32> to vector<16x8xf32>
    %c0_14 = arith.constant 0 : index
    %c48 = arith.constant 48 : index
    %c0_15 = arith.constant 0 : index
    %15 = vector.load %arg1[%c0_14, %c48, %c0_15] : memref<1x256x8xf32, #tpu.memory_space<vmem>>, vector<1x16x8xf32>
    %16 = vector.shape_cast %15 : vector<1x16x8xf32> to vector<16x8xf32>
    %17 = arith.maximumf %14, %16 : vector<16x8xf32>
    %cst_16 = arith.constant dense<0.000000e+00> : vector<8x8xf32>
    %18 = tpu.matmul %0, %17, %cst_16 {dimension_numbers = #tpu.dot_dimension_numbers<[1], [0], [0], [1], [0, 0, 1, 1], [], []>, precision = #tpu.contract_precision<fp32>} : vector<8x16xf32>, vector<16x8xf32>, vector<8x8xf32> -> vector<8x8xf32>
    %cst_17 = arith.constant dense<0.000000e+00> : vector<8x8xf32>
    %19 = tpu.matmul %1, %17, %cst_17 {dimension_numbers = #tpu.dot_dimension_numbers<[1], [0], [0], [1], [0, 0, 1, 1], [], []>, precision = #tpu.contract_precision<fp32>} : vector<8x16xf32>, vector<16x8xf32>, vector<8x8xf32> -> vector<8x8xf32>
    %20 = arith.maximumf %18, %19 : vector<8x8xf32>
    %c0_18 = arith.constant 0 : index
    %c8 = arith.constant 8 : index
    %c0_19 = arith.constant 0 : index
    %21 = vector.load %arg4[%c0_18, %c8, %c0_19] : memref<1x64x8xf32, #tpu.memory_space<vmem>>, vector<1x8x8xf32>
    %22 = vector.shape_cast %21 : vector<1x8x8xf32> to vector<8x8xf32>
    %23 = vector.shape_cast %20 : vector<8x8xf32> to vector<1x8x8xf32>
    tpu.vector_store %arg4[%c0_18, %c8, %c0_19], %23 {strides = array<i32>} : memref<1x64x8xf32, #tpu.memory_space<vmem>>, vector<1x8x8xf32>,
    %c0_20 = arith.constant 0 : index
    %c64 = arith.constant 64 : index
    %c0_21 = arith.constant 0 : index
    %24 = vector.load %arg1[%c0_20, %c64, %c0_21] : memref<1x256x8xf32, #tpu.memory_space<vmem>>, vector<1x16x8xf32>
    %25 = vector.shape_cast %24 : vector<1x16x8xf32> to vector<16x8xf32>
    %c0_22 = arith.constant 0 : index
    %c80 = arith.constant 80 : index
    %c0_23 = arith.constant 0 : index
    %26 = vector.load %arg1[%c0_22, %c80, %c0_23] : memref<1x256x8xf32, #tpu.memory_space<vmem>>, vector<1x16x8xf32>
    %27 = vector.shape_cast %26 : vector<1x16x8xf32> to vector<16x8xf32>
    %28 = arith.maximumf %25, %27 : vector<16x8xf32>
    %cst_24 = arith.constant dense<0.000000e+00> : vector<8x8xf32>
    %29 = tpu.matmul %0, %28, %cst_24 {dimension_numbers = #tpu.dot_dimension_numbers<[1], [0], [0], [1], [0, 0, 1, 1], [], []>, precision = #tpu.contract_precision<fp32>} : vector<8x16xf32>, vector<16x8xf32>, vector<8x8xf32> -> vector<8x8xf32>
    %cst_25 = arith.constant dense<0.000000e+00> : vector<8x8xf32>
    %30 = tpu.matmul %1, %28, %cst_25 {dimension_numbers = #tpu.dot_dimension_numbers<[1], [0], [0], [1], [0, 0, 1, 1], [], []>, precision = #tpu.contract_precision<fp32>} : vector<8x16xf32>, vector<16x8xf32>, vector<8x8xf32> -> vector<8x8xf32>
    %31 = arith.maximumf %29, %30 : vector<8x8xf32>
    %c0_26 = arith.constant 0 : index
    %c16_27 = arith.constant 16 : index
    %c0_28 = arith.constant 0 : index
    %32 = vector.load %arg4[%c0_26, %c16_27, %c0_28] : memref<1x64x8xf32, #tpu.memory_space<vmem>>, vector<1x8x8xf32>
    %33 = vector.shape_cast %32 : vector<1x8x8xf32> to vector<8x8xf32>
    %34 = vector.shape_cast %31 : vector<8x8xf32> to vector<1x8x8xf32>
    tpu.vector_store %arg4[%c0_26, %c16_27, %c0_28], %34 {strides = array<i32>} : memref<1x64x8xf32, #tpu.memory_space<vmem>>, vector<1x8x8xf32>,
    %c0_29 = arith.constant 0 : index
    %c96 = arith.constant 96 : index
    %c0_30 = arith.constant 0 : index
    %35 = vector.load %arg1[%c0_29, %c96, %c0_30] : memref<1x256x8xf32, #tpu.memory_space<vmem>>, vector<1x16x8xf32>
    %36 = vector.shape_cast %35 : vector<1x16x8xf32> to vector<16x8xf32>
    %c0_31 = arith.constant 0 : index
    %c112 = arith.constant 112 : index
    %c0_32 = arith.constant 0 : index
    %37 = vector.load %arg1[%c0_31, %c112, %c0_32] : memref<1x256x8xf32, #tpu.memory_space<vmem>>, vector<1x16x8xf32>
    %38 = vector.shape_cast %37 : vector<1x16x8xf32> to vector<16x8xf32>
    %39 = arith.maximumf %36, %38 : vector<16x8xf32>
    %cst_33 = arith.constant dense<0.000000e+00> : vector<8x8xf32>
    %40 = tpu.matmul %0, %39, %cst_33 {dimension_numbers = #tpu.dot_dimension_numbers<[1], [0], [0], [1], [0, 0, 1, 1], [], []>, precision = #tpu.contract_precision<fp32>} : vector<8x16xf32>, vector<16x8xf32>, vector<8x8xf32> -> vector<8x8xf32>
    %cst_34 = arith.constant dense<0.000000e+00> : vector<8x8xf32>
    %41 = tpu.matmul %1, %39, %cst_34 {dimension_numbers = #tpu.dot_dimension_numbers<[1], [0], [0], [1], [0, 0, 1, 1], [], []>, precision = #tpu.contract_precision<fp32>} : vector<8x16xf32>, vector<16x8xf32>, vector<8x8xf32> -> vector<8x8xf32>
    %42 = arith.maximumf %40, %41 : vector<8x8xf32>
    %c0_35 = arith.constant 0 : index
    %c24 = arith.constant 24 : index
    %c0_36 = arith.constant 0 : index
    %43 = vector.load %arg4[%c0_35, %c24, %c0_36] : memref<1x64x8xf32, #tpu.memory_space<vmem>>, vector<1x8x8xf32>
    %44 = vector.shape_cast %43 : vector<1x8x8xf32> to vector<8x8xf32>
    %45 = vector.shape_cast %42 : vector<8x8xf32> to vector<1x8x8xf32>
    tpu.vector_store %arg4[%c0_35, %c24, %c0_36], %45 {strides = array<i32>} : memref<1x64x8xf32, #tpu.memory_space<vmem>>, vector<1x8x8xf32>,
    %c0_37 = arith.constant 0 : index
    %c128 = arith.constant 128 : index
    %c0_38 = arith.constant 0 : index
    %46 = vector.load %arg1[%c0_37, %c128, %c0_38] : memref<1x256x8xf32, #tpu.memory_space<vmem>>, vector<1x16x8xf32>
    %47 = vector.shape_cast %46 : vector<1x16x8xf32> to vector<16x8xf32>
    %c0_39 = arith.constant 0 : index
    %c144 = arith.constant 144 : index
    %c0_40 = arith.constant 0 : index
    %48 = vector.load %arg1[%c0_39, %c144, %c0_40] : memref<1x256x8xf32, #tpu.memory_space<vmem>>, vector<1x16x8xf32>
    %49 = vector.shape_cast %48 : vector<1x16x8xf32> to vector<16x8xf32>
    %50 = arith.maximumf %47, %49 : vector<16x8xf32>
    %cst_41 = arith.constant dense<0.000000e+00> : vector<8x8xf32>
    %51 = tpu.matmul %0, %50, %cst_41 {dimension_numbers = #tpu.dot_dimension_numbers<[1], [0], [0], [1], [0, 0, 1, 1], [], []>, precision = #tpu.contract_precision<fp32>} : vector<8x16xf32>, vector<16x8xf32>, vector<8x8xf32> -> vector<8x8xf32>
    %cst_42 = arith.constant dense<0.000000e+00> : vector<8x8xf32>
    %52 = tpu.matmul %1, %50, %cst_42 {dimension_numbers = #tpu.dot_dimension_numbers<[1], [0], [0], [1], [0, 0, 1, 1], [], []>, precision = #tpu.contract_precision<fp32>} : vector<8x16xf32>, vector<16x8xf32>, vector<8x8xf32> -> vector<8x8xf32>
    %53 = arith.maximumf %51, %52 : vector<8x8xf32>
    %c0_43 = arith.constant 0 : index
    %c32_44 = arith.constant 32 : index
    %c0_45 = arith.constant 0 : index
    %54 = vector.load %arg4[%c0_43, %c32_44, %c0_45] : memref<1x64x8xf32, #tpu.memory_space<vmem>>, vector<1x8x8xf32>
    %55 = vector.shape_cast %54 : vector<1x8x8xf32> to vector<8x8xf32>
    %56 = vector.shape_cast %53 : vector<8x8xf32> to vector<1x8x8xf32>
    tpu.vector_store %arg4[%c0_43, %c32_44, %c0_45], %56 {strides = array<i32>} : memref<1x64x8xf32, #tpu.memory_space<vmem>>, vector<1x8x8xf32>,
    %c0_46 = arith.constant 0 : index
    %c160 = arith.constant 160 : index
    %c0_47 = arith.constant 0 : index
    %57 = vector.load %arg1[%c0_46, %c160, %c0_47] : memref<1x256x8xf32, #tpu.memory_space<vmem>>, vector<1x16x8xf32>
    %58 = vector.shape_cast %57 : vector<1x16x8xf32> to vector<16x8xf32>
    %c0_48 = arith.constant 0 : index
    %c176 = arith.constant 176 : index
    %c0_49 = arith.constant 0 : index
    %59 = vector.load %arg1[%c0_48, %c176, %c0_49] : memref<1x256x8xf32, #tpu.memory_space<vmem>>, vector<1x16x8xf32>
    %60 = vector.shape_cast %59 : vector<1x16x8xf32> to vector<16x8xf32>
    %61 = arith.maximumf %58, %60 : vector<16x8xf32>
    %cst_50 = arith.constant dense<0.000000e+00> : vector<8x8xf32>
    %62 = tpu.matmul %0, %61, %cst_50 {dimension_numbers = #tpu.dot_dimension_numbers<[1], [0], [0], [1], [0, 0, 1, 1], [], []>, precision = #tpu.contract_precision<fp32>} : vector<8x16xf32>, vector<16x8xf32>, vector<8x8xf32> -> vector<8x8xf32>
    %cst_51 = arith.constant dense<0.000000e+00> : vector<8x8xf32>
    %63 = tpu.matmul %1, %61, %cst_51 {dimension_numbers = #tpu.dot_dimension_numbers<[1], [0], [0], [1], [0, 0, 1, 1], [], []>, precision = #tpu.contract_precision<fp32>} : vector<8x16xf32>, vector<16x8xf32>, vector<8x8xf32> -> vector<8x8xf32>
    %64 = arith.maximumf %62, %63 : vector<8x8xf32>
    %c0_52 = arith.constant 0 : index
    %c40 = arith.constant 40 : index
    %c0_53 = arith.constant 0 : index
    %65 = vector.load %arg4[%c0_52, %c40, %c0_53] : memref<1x64x8xf32, #tpu.memory_space<vmem>>, vector<1x8x8xf32>
    %66 = vector.shape_cast %65 : vector<1x8x8xf32> to vector<8x8xf32>
    %67 = vector.shape_cast %64 : vector<8x8xf32> to vector<1x8x8xf32>
    tpu.vector_store %arg4[%c0_52, %c40, %c0_53], %67 {strides = array<i32>} : memref<1x64x8xf32, #tpu.memory_space<vmem>>, vector<1x8x8xf32>,
    %c0_54 = arith.constant 0 : index
    %c192 = arith.constant 192 : index
    %c0_55 = arith.constant 0 : index
    %68 = vector.load %arg1[%c0_54, %c192, %c0_55] : memref<1x256x8xf32, #tpu.memory_space<vmem>>, vector<1x16x8xf32>
    %69 = vector.shape_cast %68 : vector<1x16x8xf32> to vector<16x8xf32>
    %c0_56 = arith.constant 0 : index
    %c208 = arith.constant 208 : index
    %c0_57 = arith.constant 0 : index
    %70 = vector.load %arg1[%c0_56, %c208, %c0_57] : memref<1x256x8xf32, #tpu.memory_space<vmem>>, vector<1x16x8xf32>
    %71 = vector.shape_cast %70 : vector<1x16x8xf32> to vector<16x8xf32>
    %72 = arith.maximumf %69, %71 : vector<16x8xf32>
    %cst_58 = arith.constant dense<0.000000e+00> : vector<8x8xf32>
    %73 = tpu.matmul %0, %72, %cst_58 {dimension_numbers = #tpu.dot_dimension_numbers<[1], [0], [0], [1], [0, 0, 1, 1], [], []>, precision = #tpu.contract_precision<fp32>} : vector<8x16xf32>, vector<16x8xf32>, vector<8x8xf32> -> vector<8x8xf32>
    %cst_59 = arith.constant dense<0.000000e+00> : vector<8x8xf32>
    %74 = tpu.matmul %1, %72, %cst_59 {dimension_numbers = #tpu.dot_dimension_numbers<[1], [0], [0], [1], [0, 0, 1, 1], [], []>, precision = #tpu.contract_precision<fp32>} : vector<8x16xf32>, vector<16x8xf32>, vector<8x8xf32> -> vector<8x8xf32>
    %75 = arith.maximumf %73, %74 : vector<8x8xf32>
    %c0_60 = arith.constant 0 : index
    %c48_61 = arith.constant 48 : index
    %c0_62 = arith.constant 0 : index
    %76 = vector.load %arg4[%c0_60, %c48_61, %c0_62] : memref<1x64x8xf32, #tpu.memory_space<vmem>>, vector<1x8x8xf32>
    %77 = vector.shape_cast %76 : vector<1x8x8xf32> to vector<8x8xf32>
    %78 = vector.shape_cast %75 : vector<8x8xf32> to vector<1x8x8xf32>
    tpu.vector_store %arg4[%c0_60, %c48_61, %c0_62], %78 {strides = array<i32>} : memref<1x64x8xf32, #tpu.memory_space<vmem>>, vector<1x8x8xf32>,
    %c0_63 = arith.constant 0 : index
    %c224 = arith.constant 224 : index
    %c0_64 = arith.constant 0 : index
    %79 = vector.load %arg1[%c0_63, %c224, %c0_64] : memref<1x256x8xf32, #tpu.memory_space<vmem>>, vector<1x16x8xf32>
    %80 = vector.shape_cast %79 : vector<1x16x8xf32> to vector<16x8xf32>
    %c0_65 = arith.constant 0 : index
    %c240 = arith.constant 240 : index
    %c0_66 = arith.constant 0 : index
    %81 = vector.load %arg1[%c0_65, %c240, %c0_66] : memref<1x256x8xf32, #tpu.memory_space<vmem>>, vector<1x16x8xf32>
    %82 = vector.shape_cast %81 : vector<1x16x8xf32> to vector<16x8xf32>
    %83 = arith.maximumf %80, %82 : vector<16x8xf32>
    %cst_67 = arith.constant dense<0.000000e+00> : vector<8x8xf32>
    %84 = tpu.matmul %0, %83, %cst_67 {dimension_numbers = #tpu.dot_dimension_numbers<[1], [0], [0], [1], [0, 0, 1, 1], [], []>, precision = #tpu.contract_precision<fp32>} : vector<8x16xf32>, vector<16x8xf32>, vector<8x8xf32> -> vector<8x8xf32>
    %cst_68 = arith.constant dense<0.000000e+00> : vector<8x8xf32>
    %85 = tpu.matmul %1, %83, %cst_68 {dimension_numbers = #tpu.dot_dimension_numbers<[1], [0], [0], [1], [0, 0, 1, 1], [], []>, precision = #tpu.contract_precision<fp32>} : vector<8x16xf32>, vector<16x8xf32>, vector<8x8xf32> -> vector<8x8xf32>
    %86 = arith.maximumf %84, %85 : vector<8x8xf32>
    %c0_69 = arith.constant 0 : index
    %c56 = arith.constant 56 : index
    %c0_70 = arith.constant 0 : index
    %87 = vector.load %arg4[%c0_69, %c56, %c0_70] : memref<1x64x8xf32, #tpu.memory_space<vmem>>, vector<1x8x8xf32>
    %88 = vector.shape_cast %87 : vector<1x8x8xf32> to vector<8x8xf32>
    %89 = vector.shape_cast %86 : vector<8x8xf32> to vector<1x8x8xf32>
    tpu.vector_store %arg4[%c0_69, %c56, %c0_70], %89 {strides = array<i32>} : memref<1x64x8xf32, #tpu.memory_space<vmem>>, vector<1x8x8xf32>,
    return
  }
  func.func @transform_0(%arg0: i32) -> (i32, i32, i32) {
    %c0_i32 = arith.constant 0 : i32
    %c0_i32_0 = arith.constant 0 : i32
    %c0_i32_1 = arith.constant 0 : i32
    return %arg0, %c0_i32, %c0_i32_0 : i32, i32, i32
  }
  func.func @transform_1(%arg0: i32) -> (i32, i32) {
    %c0_i32 = arith.constant 0 : i32
    %c0_i32_0 = arith.constant 0 : i32
    %c0_i32_1 = arith.constant 0 : i32
    return %c0_i32, %c0_i32_0 : i32, i32
  }
  func.func @transform_2(%arg0: i32) -> (i32, i32) {
    %c0_i32 = arith.constant 0 : i32
    %c0_i32_0 = arith.constant 0 : i32
    %c0_i32_1 = arith.constant 0 : i32
    return %c0_i32, %c0_i32_0 : i32, i32
  }
  func.func @transform_3(%arg0: i32) -> (i32, i32, i32) {
    %c0_i32 = arith.constant 0 : i32
    %c0_i32_0 = arith.constant 0 : i32
    %c0_i32_1 = arith.constant 0 : i32
    return %arg0, %c0_i32, %c0_i32_0 : i32, i32, i32
  }
}

module attributes {stable_mosaic.version = 11 : i64} {
  func.func @_bottleneck_kernel(%arg0: i32, %arg1: memref<1x64x8xf32, #tpu.memory_space<vmem>>, %arg2: memref<64x1xf32, #tpu.memory_space<vmem>>, %arg3: memref<64x1xf32, #tpu.memory_space<vmem>>, %arg4: memref<1x8xf32, #tpu.memory_space<vmem>>, %arg5: memref<1x8xf32, #tpu.memory_space<vmem>>, %arg6: memref<8x4xf32, #tpu.memory_space<vmem>>, %arg7: memref<1x4xf32, #tpu.memory_space<vmem>>, %arg8: memref<1x4xf32, #tpu.memory_space<vmem>>, %arg9: memref<1x4xf32, #tpu.memory_space<vmem>>, %arg10: memref<9x4x4xf32, #tpu.memory_space<vmem>>, %arg11: memref<1x4xf32, #tpu.memory_space<vmem>>, %arg12: memref<1x4xf32, #tpu.memory_space<vmem>>, %arg13: memref<1x4xf32, #tpu.memory_space<vmem>>, %arg14: memref<4x8xf32, #tpu.memory_space<vmem>>, %arg15: memref<1x8xf32, #tpu.memory_space<vmem>>, %arg16: memref<1x64x8xf32, #tpu.memory_space<vmem>>, %arg17: memref<82x4xf32, #tpu.memory_space<vmem>>) attributes {dimension_semantics = [#tpu.dimension_semantics<parallel>], iteration_bounds = array<i64: 2>, scalar_prefetch = 0 : i64, scratch_operands = 1 : i64, tpu.core_type = #tpu.core_type<tc>, window_params = [{transform_indices = @transform_0, window_bounds = array<i64: 1, 64, 8>}, {pipeline_mode = #tpu.pipeline_mode<synchronous>, transform_indices = @transform_1, window_bounds = array<i64: 64, 1>}, {pipeline_mode = #tpu.pipeline_mode<synchronous>, transform_indices = @transform_2, window_bounds = array<i64: 64, 1>}, {pipeline_mode = #tpu.pipeline_mode<synchronous>, transform_indices = @transform_3, window_bounds = array<i64: 1, 8>}, {pipeline_mode = #tpu.pipeline_mode<synchronous>, transform_indices = @transform_4, window_bounds = array<i64: 1, 8>}, {pipeline_mode = #tpu.pipeline_mode<synchronous>, transform_indices = @transform_5, window_bounds = array<i64: 8, 4>}, {pipeline_mode = #tpu.pipeline_mode<synchronous>, transform_indices = @transform_6, window_bounds = array<i64: 1, 4>}, {pipeline_mode = #tpu.pipeline_mode<synchronous>, transform_indices = @transform_7, window_bounds = array<i64: 1, 4>}, {pipeline_mode = #tpu.pipeline_mode<synchronous>, transform_indices = @transform_8, window_bounds = array<i64: 1, 4>}, {pipeline_mode = #tpu.pipeline_mode<synchronous>, transform_indices = @transform_9, window_bounds = array<i64: 9, 4, 4>}, {pipeline_mode = #tpu.pipeline_mode<synchronous>, transform_indices = @transform_10, window_bounds = array<i64: 1, 4>}, {pipeline_mode = #tpu.pipeline_mode<synchronous>, transform_indices = @transform_11, window_bounds = array<i64: 1, 4>}, {pipeline_mode = #tpu.pipeline_mode<synchronous>, transform_indices = @transform_12, window_bounds = array<i64: 1, 4>}, {pipeline_mode = #tpu.pipeline_mode<synchronous>, transform_indices = @transform_13, window_bounds = array<i64: 4, 8>}, {pipeline_mode = #tpu.pipeline_mode<synchronous>, transform_indices = @transform_14, window_bounds = array<i64: 1, 8>}, {transform_indices = @transform_15, window_bounds = array<i64: 1, 64, 8>}]} {
    %c0 = arith.constant 0 : index
    %c0_0 = arith.constant 0 : index
    %c0_1 = arith.constant 0 : index
    %0 = vector.load %arg1[%c0, %c0_0, %c0_1] : memref<1x64x8xf32, #tpu.memory_space<vmem>>, vector<1x64x8xf32>
    %1 = vector.shape_cast %0 : vector<1x64x8xf32> to vector<64x8xf32>
    %c0_2 = arith.constant 0 : index
    %c0_3 = arith.constant 0 : index
    %2 = vector.load %arg4[%c0_2, %c0_3] : memref<1x8xf32, #tpu.memory_space<vmem>>, vector<1x8xf32>
    %3 = vector.broadcast %2 : vector<1x8xf32> to vector<64x8xf32>
    %4 = arith.mulf %1, %3 : vector<64x8xf32>
    %c0_4 = arith.constant 0 : index
    %c0_5 = arith.constant 0 : index
    %5 = vector.load %arg5[%c0_4, %c0_5] : memref<1x8xf32, #tpu.memory_space<vmem>>, vector<1x8xf32>
    %6 = vector.broadcast %5 : vector<1x8xf32> to vector<64x8xf32>
    %7 = arith.addf %4, %6 : vector<64x8xf32>
    %cst = arith.constant 0.000000e+00 : f32
    %8 = vector.broadcast %cst : f32 to vector<64x8xf32>
    %9 = arith.maximumf %7, %8 : vector<64x8xf32>
    %10 = arith.truncf %9 : vector<64x8xf32> to vector<64x8xbf16>
    %c0_6 = arith.constant 0 : index
    %c0_7 = arith.constant 0 : index
    %11 = vector.load %arg6[%c0_6, %c0_7] : memref<8x4xf32, #tpu.memory_space<vmem>>, vector<8x4xf32>
    %12 = arith.truncf %11 : vector<8x4xf32> to vector<8x4xbf16>
    %cst_8 = arith.constant dense<0.000000e+00> : vector<64x4xf32>
    %13 = tpu.matmul %10, %12, %cst_8 {dimension_numbers = #tpu.dot_dimension_numbers<[1], [0], [0], [1], [0, 0, 1, 1], [], []>} : vector<64x8xbf16>, vector<8x4xbf16>, vector<64x4xf32> -> vector<64x4xf32>
    %c0_9 = arith.constant 0 : index
    %c0_10 = arith.constant 0 : index
    %14 = vector.load %arg7[%c0_9, %c0_10] : memref<1x4xf32, #tpu.memory_space<vmem>>, vector<1x4xf32>
    %15 = vector.broadcast %14 : vector<1x4xf32> to vector<64x4xf32>
    %16 = arith.addf %13, %15 : vector<64x4xf32>
    %c0_11 = arith.constant 0 : index
    %c0_12 = arith.constant 0 : index
    %17 = vector.load %arg8[%c0_11, %c0_12] : memref<1x4xf32, #tpu.memory_space<vmem>>, vector<1x4xf32>
    %18 = vector.broadcast %17 : vector<1x4xf32> to vector<64x4xf32>
    %19 = arith.mulf %16, %18 : vector<64x4xf32>
    %c0_13 = arith.constant 0 : index
    %c0_14 = arith.constant 0 : index
    %20 = vector.load %arg9[%c0_13, %c0_14] : memref<1x4xf32, #tpu.memory_space<vmem>>, vector<1x4xf32>
    %21 = vector.broadcast %20 : vector<1x4xf32> to vector<64x4xf32>
    %22 = arith.addf %19, %21 : vector<64x4xf32>
    %cst_15 = arith.constant 0.000000e+00 : f32
    %23 = vector.broadcast %cst_15 : f32 to vector<64x4xf32>
    %24 = arith.maximumf %22, %23 : vector<64x4xf32>
    %cst_16 = arith.constant 0.000000e+00 : f32
    %25 = vector.broadcast %cst_16 : f32 to vector<82x4xf32>
    %c0_17 = arith.constant 0 : index
    %c0_18 = arith.constant 0 : index
    %26 = vector.load %arg17[%c0_17, %c0_18] : memref<82x4xf32, #tpu.memory_space<vmem>>, vector<82x4xf32>
    tpu.vector_store %arg17[%c0_17, %c0_18], %25 {strides = array<i32>} : memref<82x4xf32, #tpu.memory_space<vmem>>, vector<82x4xf32>,
    %c9 = arith.constant 9 : index
    %c0_19 = arith.constant 0 : index
    %27 = vector.load %arg17[%c9, %c0_19] : memref<82x4xf32, #tpu.memory_space<vmem>>, vector<64x4xf32>
    tpu.vector_store %arg17[%c9, %c0_19], %24 {strides = array<i32>} : memref<82x4xf32, #tpu.memory_space<vmem>>, vector<64x4xf32>,
    %c0_20 = arith.constant 0 : index
    %c0_21 = arith.constant 0 : index
    %28 = vector.load %arg2[%c0_20, %c0_21] : memref<64x1xf32, #tpu.memory_space<vmem>>, vector<64x1xf32>
    %c0_22 = arith.constant 0 : index
    %c0_23 = arith.constant 0 : index
    %29 = vector.load %arg3[%c0_22, %c0_23] : memref<64x1xf32, #tpu.memory_space<vmem>>, vector<64x1xf32>
    %cst_24 = arith.constant 0.000000e+00 : f32
    %30 = vector.broadcast %cst_24 : f32 to vector<64x4xf32>
    %c0_25 = arith.constant 0 : index
    %c0_26 = arith.constant 0 : index
    %31 = vector.load %arg17[%c0_25, %c0_26] : memref<82x4xf32, #tpu.memory_space<vmem>>, vector<64x4xf32>
    %32 = vector.broadcast %28 : vector<64x1xf32> to vector<64x4xf32>
    %33 = arith.mulf %31, %32 : vector<64x4xf32>
    %34 = arith.truncf %33 : vector<64x4xf32> to vector<64x4xbf16>
    %c0_27 = arith.constant 0 : index
    %c0_28 = arith.constant 0 : index
    %c0_29 = arith.constant 0 : index
    %35 = vector.load %arg10[%c0_27, %c0_28, %c0_29] : memref<9x4x4xf32, #tpu.memory_space<vmem>>, vector<1x4x4xf32>
    %36 = vector.shape_cast %35 : vector<1x4x4xf32> to vector<4x4xf32>
    %37 = arith.truncf %36 : vector<4x4xf32> to vector<4x4xbf16>
    %cst_30 = arith.constant dense<0.000000e+00> : vector<64x4xf32>
    %38 = tpu.matmul %34, %37, %cst_30 {dimension_numbers = #tpu.dot_dimension_numbers<[1], [0], [0], [1], [0, 0, 1, 1], [], []>} : vector<64x4xbf16>, vector<4x4xbf16>, vector<64x4xf32> -> vector<64x4xf32>
    %39 = arith.addf %30, %38 : vector<64x4xf32>
    %c1 = arith.constant 1 : index
    %c0_31 = arith.constant 0 : index
    %40 = vector.load %arg17[%c1, %c0_31] : memref<82x4xf32, #tpu.memory_space<vmem>>, vector<64x4xf32>
    %41 = arith.truncf %40 : vector<64x4xf32> to vector<64x4xbf16>
    %c1_32 = arith.constant 1 : index
    %c0_33 = arith.constant 0 : index
    %c0_34 = arith.constant 0 : index
    %42 = vector.load %arg10[%c1_32, %c0_33, %c0_34] : memref<9x4x4xf32, #tpu.memory_space<vmem>>, vector<1x4x4xf32>
    %43 = vector.shape_cast %42 : vector<1x4x4xf32> to vector<4x4xf32>
    %44 = arith.truncf %43 : vector<4x4xf32> to vector<4x4xbf16>
    %cst_35 = arith.constant dense<0.000000e+00> : vector<64x4xf32>
    %45 = tpu.matmul %41, %44, %cst_35 {dimension_numbers = #tpu.dot_dimension_numbers<[1], [0], [0], [1], [0, 0, 1, 1], [], []>} : vector<64x4xbf16>, vector<4x4xbf16>, vector<64x4xf32> -> vector<64x4xf32>
    %46 = arith.addf %39, %45 : vector<64x4xf32>
    %c2 = arith.constant 2 : index
    %c0_36 = arith.constant 0 : index
    %47 = vector.load %arg17[%c2, %c0_36] : memref<82x4xf32, #tpu.memory_space<vmem>>, vector<64x4xf32>
    %48 = vector.broadcast %29 : vector<64x1xf32> to vector<64x4xf32>
    %49 = arith.mulf %47, %48 : vector<64x4xf32>
    %50 = arith.truncf %49 : vector<64x4xf32> to vector<64x4xbf16>
    %c2_37 = arith.constant 2 : index
    %c0_38 = arith.constant 0 : index
    %c0_39 = arith.constant 0 : index
    %51 = vector.load %arg10[%c2_37, %c0_38, %c0_39] : memref<9x4x4xf32, #tpu.memory_space<vmem>>, vector<1x4x4xf32>
    %52 = vector.shape_cast %51 : vector<1x4x4xf32> to vector<4x4xf32>
    %53 = arith.truncf %52 : vector<4x4xf32> to vector<4x4xbf16>
    %cst_40 = arith.constant dense<0.000000e+00> : vector<64x4xf32>
    %54 = tpu.matmul %50, %53, %cst_40 {dimension_numbers = #tpu.dot_dimension_numbers<[1], [0], [0], [1], [0, 0, 1, 1], [], []>} : vector<64x4xbf16>, vector<4x4xbf16>, vector<64x4xf32> -> vector<64x4xf32>
    %55 = arith.addf %46, %54 : vector<64x4xf32>
    %c8 = arith.constant 8 : index
    %c0_41 = arith.constant 0 : index
    %56 = vector.load %arg17[%c8, %c0_41] : memref<82x4xf32, #tpu.memory_space<vmem>>, vector<64x4xf32>
    %57 = vector.broadcast %28 : vector<64x1xf32> to vector<64x4xf32>
    %58 = arith.mulf %56, %57 : vector<64x4xf32>
    %59 = arith.truncf %58 : vector<64x4xf32> to vector<64x4xbf16>
    %c3 = arith.constant 3 : index
    %c0_42 = arith.constant 0 : index
    %c0_43 = arith.constant 0 : index
    %60 = vector.load %arg10[%c3, %c0_42, %c0_43] : memref<9x4x4xf32, #tpu.memory_space<vmem>>, vector<1x4x4xf32>
    %61 = vector.shape_cast %60 : vector<1x4x4xf32> to vector<4x4xf32>
    %62 = arith.truncf %61 : vector<4x4xf32> to vector<4x4xbf16>
    %cst_44 = arith.constant dense<0.000000e+00> : vector<64x4xf32>
    %63 = tpu.matmul %59, %62, %cst_44 {dimension_numbers = #tpu.dot_dimension_numbers<[1], [0], [0], [1], [0, 0, 1, 1], [], []>} : vector<64x4xbf16>, vector<4x4xbf16>, vector<64x4xf32> -> vector<64x4xf32>
    %64 = arith.addf %55, %63 : vector<64x4xf32>
    %c9_45 = arith.constant 9 : index
    %c0_46 = arith.constant 0 : index
    %65 = vector.load %arg17[%c9_45, %c0_46] : memref<82x4xf32, #tpu.memory_space<vmem>>, vector<64x4xf32>
    %66 = arith.truncf %65 : vector<64x4xf32> to vector<64x4xbf16>
    %c4 = arith.constant 4 : index
    %c0_47 = arith.constant 0 : index
    %c0_48 = arith.constant 0 : index
    %67 = vector.load %arg10[%c4, %c0_47, %c0_48] : memref<9x4x4xf32, #tpu.memory_space<vmem>>, vector<1x4x4xf32>
    %68 = vector.shape_cast %67 : vector<1x4x4xf32> to vector<4x4xf32>
    %69 = arith.truncf %68 : vector<4x4xf32> to vector<4x4xbf16>
    %cst_49 = arith.constant dense<0.000000e+00> : vector<64x4xf32>
    %70 = tpu.matmul %66, %69, %cst_49 {dimension_numbers = #tpu.dot_dimension_numbers<[1], [0], [0], [1], [0, 0, 1, 1], [], []>} : vector<64x4xbf16>, vector<4x4xbf16>, vector<64x4xf32> -> vector<64x4xf32>
    %71 = arith.addf %64, %70 : vector<64x4xf32>
    %c10 = arith.constant 10 : index
    %c0_50 = arith.constant 0 : index
    %72 = vector.load %arg17[%c10, %c0_50] : memref<82x4xf32, #tpu.memory_space<vmem>>, vector<64x4xf32>
    %73 = vector.broadcast %29 : vector<64x1xf32> to vector<64x4xf32>
    %74 = arith.mulf %72, %73 : vector<64x4xf32>
    %75 = arith.truncf %74 : vector<64x4xf32> to vector<64x4xbf16>
    %c5 = arith.constant 5 : index
    %c0_51 = arith.constant 0 : index
    %c0_52 = arith.constant 0 : index
    %76 = vector.load %arg10[%c5, %c0_51, %c0_52] : memref<9x4x4xf32, #tpu.memory_space<vmem>>, vector<1x4x4xf32>
    %77 = vector.shape_cast %76 : vector<1x4x4xf32> to vector<4x4xf32>
    %78 = arith.truncf %77 : vector<4x4xf32> to vector<4x4xbf16>
    %cst_53 = arith.constant dense<0.000000e+00> : vector<64x4xf32>
    %79 = tpu.matmul %75, %78, %cst_53 {dimension_numbers = #tpu.dot_dimension_numbers<[1], [0], [0], [1], [0, 0, 1, 1], [], []>} : vector<64x4xbf16>, vector<4x4xbf16>, vector<64x4xf32> -> vector<64x4xf32>
    %80 = arith.addf %71, %79 : vector<64x4xf32>
    %c16 = arith.constant 16 : index
    %c0_54 = arith.constant 0 : index
    %81 = vector.load %arg17[%c16, %c0_54] : memref<82x4xf32, #tpu.memory_space<vmem>>, vector<64x4xf32>
    %82 = vector.broadcast %28 : vector<64x1xf32> to vector<64x4xf32>
    %83 = arith.mulf %81, %82 : vector<64x4xf32>
    %84 = arith.truncf %83 : vector<64x4xf32> to vector<64x4xbf16>
    %c6 = arith.constant 6 : index
    %c0_55 = arith.constant 0 : index
    %c0_56 = arith.constant 0 : index
    %85 = vector.load %arg10[%c6, %c0_55, %c0_56] : memref<9x4x4xf32, #tpu.memory_space<vmem>>, vector<1x4x4xf32>
    %86 = vector.shape_cast %85 : vector<1x4x4xf32> to vector<4x4xf32>
    %87 = arith.truncf %86 : vector<4x4xf32> to vector<4x4xbf16>
    %cst_57 = arith.constant dense<0.000000e+00> : vector<64x4xf32>
    %88 = tpu.matmul %84, %87, %cst_57 {dimension_numbers = #tpu.dot_dimension_numbers<[1], [0], [0], [1], [0, 0, 1, 1], [], []>} : vector<64x4xbf16>, vector<4x4xbf16>, vector<64x4xf32> -> vector<64x4xf32>
    %89 = arith.addf %80, %88 : vector<64x4xf32>
    %c17 = arith.constant 17 : index
    %c0_58 = arith.constant 0 : index
    %90 = vector.load %arg17[%c17, %c0_58] : memref<82x4xf32, #tpu.memory_space<vmem>>, vector<64x4xf32>
    %91 = arith.truncf %90 : vector<64x4xf32> to vector<64x4xbf16>
    %c7 = arith.constant 7 : index
    %c0_59 = arith.constant 0 : index
    %c0_60 = arith.constant 0 : index
    %92 = vector.load %arg10[%c7, %c0_59, %c0_60] : memref<9x4x4xf32, #tpu.memory_space<vmem>>, vector<1x4x4xf32>
    %93 = vector.shape_cast %92 : vector<1x4x4xf32> to vector<4x4xf32>
    %94 = arith.truncf %93 : vector<4x4xf32> to vector<4x4xbf16>
    %cst_61 = arith.constant dense<0.000000e+00> : vector<64x4xf32>
    %95 = tpu.matmul %91, %94, %cst_61 {dimension_numbers = #tpu.dot_dimension_numbers<[1], [0], [0], [1], [0, 0, 1, 1], [], []>} : vector<64x4xbf16>, vector<4x4xbf16>, vector<64x4xf32> -> vector<64x4xf32>
    %96 = arith.addf %89, %95 : vector<64x4xf32>
    %c18 = arith.constant 18 : index
    %c0_62 = arith.constant 0 : index
    %97 = vector.load %arg17[%c18, %c0_62] : memref<82x4xf32, #tpu.memory_space<vmem>>, vector<64x4xf32>
    %98 = vector.broadcast %29 : vector<64x1xf32> to vector<64x4xf32>
    %99 = arith.mulf %97, %98 : vector<64x4xf32>
    %100 = arith.truncf %99 : vector<64x4xf32> to vector<64x4xbf16>
    %c8_63 = arith.constant 8 : index
    %c0_64 = arith.constant 0 : index
    %c0_65 = arith.constant 0 : index
    %101 = vector.load %arg10[%c8_63, %c0_64, %c0_65] : memref<9x4x4xf32, #tpu.memory_space<vmem>>, vector<1x4x4xf32>
    %102 = vector.shape_cast %101 : vector<1x4x4xf32> to vector<4x4xf32>
    %103 = arith.truncf %102 : vector<4x4xf32> to vector<4x4xbf16>
    %cst_66 = arith.constant dense<0.000000e+00> : vector<64x4xf32>
    %104 = tpu.matmul %100, %103, %cst_66 {dimension_numbers = #tpu.dot_dimension_numbers<[1], [0], [0], [1], [0, 0, 1, 1], [], []>} : vector<64x4xbf16>, vector<4x4xbf16>, vector<64x4xf32> -> vector<64x4xf32>
    %105 = arith.addf %96, %104 : vector<64x4xf32>
    %c0_67 = arith.constant 0 : index
    %c0_68 = arith.constant 0 : index
    %106 = vector.load %arg11[%c0_67, %c0_68] : memref<1x4xf32, #tpu.memory_space<vmem>>, vector<1x4xf32>
    %107 = vector.broadcast %106 : vector<1x4xf32> to vector<64x4xf32>
    %108 = arith.addf %105, %107 : vector<64x4xf32>
    %c0_69 = arith.constant 0 : index
    %c0_70 = arith.constant 0 : index
    %109 = vector.load %arg12[%c0_69, %c0_70] : memref<1x4xf32, #tpu.memory_space<vmem>>, vector<1x4xf32>
    %110 = vector.broadcast %109 : vector<1x4xf32> to vector<64x4xf32>
    %111 = arith.mulf %108, %110 : vector<64x4xf32>
    %c0_71 = arith.constant 0 : index
    %c0_72 = arith.constant 0 : index
    %112 = vector.load %arg13[%c0_71, %c0_72] : memref<1x4xf32, #tpu.memory_space<vmem>>, vector<1x4xf32>
    %113 = vector.broadcast %112 : vector<1x4xf32> to vector<64x4xf32>
    %114 = arith.addf %111, %113 : vector<64x4xf32>
    %cst_73 = arith.constant 0.000000e+00 : f32
    %115 = vector.broadcast %cst_73 : f32 to vector<64x4xf32>
    %116 = arith.maximumf %114, %115 : vector<64x4xf32>
    %117 = arith.truncf %116 : vector<64x4xf32> to vector<64x4xbf16>
    %c0_74 = arith.constant 0 : index
    %c0_75 = arith.constant 0 : index
    %118 = vector.load %arg14[%c0_74, %c0_75] : memref<4x8xf32, #tpu.memory_space<vmem>>, vector<4x8xf32>
    %119 = arith.truncf %118 : vector<4x8xf32> to vector<4x8xbf16>
    %cst_76 = arith.constant dense<0.000000e+00> : vector<64x8xf32>
    %120 = tpu.matmul %117, %119, %cst_76 {dimension_numbers = #tpu.dot_dimension_numbers<[1], [0], [0], [1], [0, 0, 1, 1], [], []>} : vector<64x4xbf16>, vector<4x8xbf16>, vector<64x8xf32> -> vector<64x8xf32>
    %c0_77 = arith.constant 0 : index
    %c0_78 = arith.constant 0 : index
    %121 = vector.load %arg15[%c0_77, %c0_78] : memref<1x8xf32, #tpu.memory_space<vmem>>, vector<1x8xf32>
    %122 = vector.broadcast %121 : vector<1x8xf32> to vector<64x8xf32>
    %123 = arith.addf %120, %122 : vector<64x8xf32>
    %124 = arith.addf %123, %1 : vector<64x8xf32>
    %c0_79 = arith.constant 0 : index
    %c0_80 = arith.constant 0 : index
    %c0_81 = arith.constant 0 : index
    %125 = vector.load %arg16[%c0_79, %c0_80, %c0_81] : memref<1x64x8xf32, #tpu.memory_space<vmem>>, vector<1x64x8xf32>
    %126 = vector.shape_cast %125 : vector<1x64x8xf32> to vector<64x8xf32>
    %127 = vector.shape_cast %124 : vector<64x8xf32> to vector<1x64x8xf32>
    tpu.vector_store %arg16[%c0_79, %c0_80, %c0_81], %127 {strides = array<i32>} : memref<1x64x8xf32, #tpu.memory_space<vmem>>, vector<1x64x8xf32>,
    return
  }
  func.func @transform_0(%arg0: i32) -> (i32, i32, i32) {
    %c0_i32 = arith.constant 0 : i32
    %c0_i32_0 = arith.constant 0 : i32
    %c0_i32_1 = arith.constant 0 : i32
    return %arg0, %c0_i32, %c0_i32_0 : i32, i32, i32
  }
  func.func @transform_1(%arg0: i32) -> (i32, i32) {
    %c0_i32 = arith.constant 0 : i32
    %c0_i32_0 = arith.constant 0 : i32
    %c0_i32_1 = arith.constant 0 : i32
    return %c0_i32, %c0_i32_0 : i32, i32
  }
  func.func @transform_2(%arg0: i32) -> (i32, i32) {
    %c0_i32 = arith.constant 0 : i32
    %c0_i32_0 = arith.constant 0 : i32
    %c0_i32_1 = arith.constant 0 : i32
    return %c0_i32, %c0_i32_0 : i32, i32
  }
  func.func @transform_3(%arg0: i32) -> (i32, i32) {
    %c0_i32 = arith.constant 0 : i32
    %c0_i32_0 = arith.constant 0 : i32
    %c0_i32_1 = arith.constant 0 : i32
    return %c0_i32, %c0_i32_0 : i32, i32
  }
  func.func @transform_4(%arg0: i32) -> (i32, i32) {
    %c0_i32 = arith.constant 0 : i32
    %c0_i32_0 = arith.constant 0 : i32
    %c0_i32_1 = arith.constant 0 : i32
    return %c0_i32, %c0_i32_0 : i32, i32
  }
  func.func @transform_5(%arg0: i32) -> (i32, i32) {
    %c0_i32 = arith.constant 0 : i32
    %c0_i32_0 = arith.constant 0 : i32
    %c0_i32_1 = arith.constant 0 : i32
    return %c0_i32, %c0_i32_0 : i32, i32
  }
  func.func @transform_6(%arg0: i32) -> (i32, i32) {
    %c0_i32 = arith.constant 0 : i32
    %c0_i32_0 = arith.constant 0 : i32
    %c0_i32_1 = arith.constant 0 : i32
    return %c0_i32, %c0_i32_0 : i32, i32
  }
  func.func @transform_7(%arg0: i32) -> (i32, i32) {
    %c0_i32 = arith.constant 0 : i32
    %c0_i32_0 = arith.constant 0 : i32
    %c0_i32_1 = arith.constant 0 : i32
    return %c0_i32, %c0_i32_0 : i32, i32
  }
  func.func @transform_8(%arg0: i32) -> (i32, i32) {
    %c0_i32 = arith.constant 0 : i32
    %c0_i32_0 = arith.constant 0 : i32
    %c0_i32_1 = arith.constant 0 : i32
    return %c0_i32, %c0_i32_0 : i32, i32
  }
  func.func @transform_9(%arg0: i32) -> (i32, i32, i32) {
    %c0_i32 = arith.constant 0 : i32
    %c0_i32_0 = arith.constant 0 : i32
    %c0_i32_1 = arith.constant 0 : i32
    %c0_i32_2 = arith.constant 0 : i32
    return %c0_i32, %c0_i32_0, %c0_i32_1 : i32, i32, i32
  }
  func.func @transform_10(%arg0: i32) -> (i32, i32) {
    %c0_i32 = arith.constant 0 : i32
    %c0_i32_0 = arith.constant 0 : i32
    %c0_i32_1 = arith.constant 0 : i32
    return %c0_i32, %c0_i32_0 : i32, i32
  }
  func.func @transform_11(%arg0: i32) -> (i32, i32) {
    %c0_i32 = arith.constant 0 : i32
    %c0_i32_0 = arith.constant 0 : i32
    %c0_i32_1 = arith.constant 0 : i32
    return %c0_i32, %c0_i32_0 : i32, i32
  }
  func.func @transform_12(%arg0: i32) -> (i32, i32) {
    %c0_i32 = arith.constant 0 : i32
    %c0_i32_0 = arith.constant 0 : i32
    %c0_i32_1 = arith.constant 0 : i32
    return %c0_i32, %c0_i32_0 : i32, i32
  }
  func.func @transform_13(%arg0: i32) -> (i32, i32) {
    %c0_i32 = arith.constant 0 : i32
    %c0_i32_0 = arith.constant 0 : i32
    %c0_i32_1 = arith.constant 0 : i32
    return %c0_i32, %c0_i32_0 : i32, i32
  }
  func.func @transform_14(%arg0: i32) -> (i32, i32) {
    %c0_i32 = arith.constant 0 : i32
    %c0_i32_0 = arith.constant 0 : i32
    %c0_i32_1 = arith.constant 0 : i32
    return %c0_i32, %c0_i32_0 : i32, i32
  }
  func.func @transform_15(%arg0: i32) -> (i32, i32, i32) {
    %c0_i32 = arith.constant 0 : i32
    %c0_i32_0 = arith.constant 0 : i32
    %c0_i32_1 = arith.constant 0 : i32
    return %arg0, %c0_i32, %c0_i32_0 : i32, i32, i32
  }
}

module attributes {stable_mosaic.version = 11 : i64} {
  func.func @_maxpool_kernel(%arg0: i32, %arg1: memref<1x64x8xf32, #tpu.memory_space<vmem>>, %arg2: memref<4x8xf32, #tpu.memory_space<vmem>>, %arg3: memref<4x8xf32, #tpu.memory_space<vmem>>, %arg4: memref<1x16x8xf32, #tpu.memory_space<vmem>>) attributes {dimension_semantics = [#tpu.dimension_semantics<parallel>], iteration_bounds = array<i64: 2>, scalar_prefetch = 0 : i64, scratch_operands = 0 : i64, tpu.core_type = #tpu.core_type<tc>, window_params = [{transform_indices = @transform_0, window_bounds = array<i64: 1, 64, 8>}, {pipeline_mode = #tpu.pipeline_mode<synchronous>, transform_indices = @transform_1, window_bounds = array<i64: 4, 8>}, {pipeline_mode = #tpu.pipeline_mode<synchronous>, transform_indices = @transform_2, window_bounds = array<i64: 4, 8>}, {transform_indices = @transform_3, window_bounds = array<i64: 1, 16, 8>}]} {
    %c0 = arith.constant 0 : index
    %c0_0 = arith.constant 0 : index
    %0 = vector.load %arg2[%c0, %c0_0] : memref<4x8xf32, #tpu.memory_space<vmem>>, vector<4x8xf32>
    %c0_1 = arith.constant 0 : index
    %c0_2 = arith.constant 0 : index
    %1 = vector.load %arg3[%c0_1, %c0_2] : memref<4x8xf32, #tpu.memory_space<vmem>>, vector<4x8xf32>
    %c0_3 = arith.constant 0 : index
    %c0_4 = arith.constant 0 : index
    %c0_5 = arith.constant 0 : index
    %2 = vector.load %arg1[%c0_3, %c0_4, %c0_5] : memref<1x64x8xf32, #tpu.memory_space<vmem>>, vector<1x8x8xf32>
    %3 = vector.shape_cast %2 : vector<1x8x8xf32> to vector<8x8xf32>
    %c0_6 = arith.constant 0 : index
    %c8 = arith.constant 8 : index
    %c0_7 = arith.constant 0 : index
    %4 = vector.load %arg1[%c0_6, %c8, %c0_7] : memref<1x64x8xf32, #tpu.memory_space<vmem>>, vector<1x8x8xf32>
    %5 = vector.shape_cast %4 : vector<1x8x8xf32> to vector<8x8xf32>
    %6 = arith.maximumf %3, %5 : vector<8x8xf32>
    %cst = arith.constant dense<0.000000e+00> : vector<4x8xf32>
    %7 = tpu.matmul %0, %6, %cst {dimension_numbers = #tpu.dot_dimension_numbers<[1], [0], [0], [1], [0, 0, 1, 1], [], []>, precision = #tpu.contract_precision<fp32>} : vector<4x8xf32>, vector<8x8xf32>, vector<4x8xf32> -> vector<4x8xf32>
    %cst_8 = arith.constant dense<0.000000e+00> : vector<4x8xf32>
    %8 = tpu.matmul %1, %6, %cst_8 {dimension_numbers = #tpu.dot_dimension_numbers<[1], [0], [0], [1], [0, 0, 1, 1], [], []>, precision = #tpu.contract_precision<fp32>} : vector<4x8xf32>, vector<8x8xf32>, vector<4x8xf32> -> vector<4x8xf32>
    %9 = arith.maximumf %7, %8 : vector<4x8xf32>
    %c0_9 = arith.constant 0 : index
    %c0_10 = arith.constant 0 : index
    %c0_11 = arith.constant 0 : index
    %10 = vector.load %arg4[%c0_9, %c0_10, %c0_11] : memref<1x16x8xf32, #tpu.memory_space<vmem>>, vector<1x4x8xf32>
    %11 = vector.shape_cast %10 : vector<1x4x8xf32> to vector<4x8xf32>
    %12 = vector.shape_cast %9 : vector<4x8xf32> to vector<1x4x8xf32>
    tpu.vector_store %arg4[%c0_9, %c0_10, %c0_11], %12 {strides = array<i32>} : memref<1x16x8xf32, #tpu.memory_space<vmem>>, vector<1x4x8xf32>,
    %c0_12 = arith.constant 0 : index
    %c16 = arith.constant 16 : index
    %c0_13 = arith.constant 0 : index
    %13 = vector.load %arg1[%c0_12, %c16, %c0_13] : memref<1x64x8xf32, #tpu.memory_space<vmem>>, vector<1x8x8xf32>
    %14 = vector.shape_cast %13 : vector<1x8x8xf32> to vector<8x8xf32>
    %c0_14 = arith.constant 0 : index
    %c24 = arith.constant 24 : index
    %c0_15 = arith.constant 0 : index
    %15 = vector.load %arg1[%c0_14, %c24, %c0_15] : memref<1x64x8xf32, #tpu.memory_space<vmem>>, vector<1x8x8xf32>
    %16 = vector.shape_cast %15 : vector<1x8x8xf32> to vector<8x8xf32>
    %17 = arith.maximumf %14, %16 : vector<8x8xf32>
    %cst_16 = arith.constant dense<0.000000e+00> : vector<4x8xf32>
    %18 = tpu.matmul %0, %17, %cst_16 {dimension_numbers = #tpu.dot_dimension_numbers<[1], [0], [0], [1], [0, 0, 1, 1], [], []>, precision = #tpu.contract_precision<fp32>} : vector<4x8xf32>, vector<8x8xf32>, vector<4x8xf32> -> vector<4x8xf32>
    %cst_17 = arith.constant dense<0.000000e+00> : vector<4x8xf32>
    %19 = tpu.matmul %1, %17, %cst_17 {dimension_numbers = #tpu.dot_dimension_numbers<[1], [0], [0], [1], [0, 0, 1, 1], [], []>, precision = #tpu.contract_precision<fp32>} : vector<4x8xf32>, vector<8x8xf32>, vector<4x8xf32> -> vector<4x8xf32>
    %20 = arith.maximumf %18, %19 : vector<4x8xf32>
    %c0_18 = arith.constant 0 : index
    %c4 = arith.constant 4 : index
    %c0_19 = arith.constant 0 : index
    %21 = vector.load %arg4[%c0_18, %c4, %c0_19] : memref<1x16x8xf32, #tpu.memory_space<vmem>>, vector<1x4x8xf32>
    %22 = vector.shape_cast %21 : vector<1x4x8xf32> to vector<4x8xf32>
    %23 = vector.shape_cast %20 : vector<4x8xf32> to vector<1x4x8xf32>
    tpu.vector_store %arg4[%c0_18, %c4, %c0_19], %23 {strides = array<i32>} : memref<1x16x8xf32, #tpu.memory_space<vmem>>, vector<1x4x8xf32>,
    %c0_20 = arith.constant 0 : index
    %c32 = arith.constant 32 : index
    %c0_21 = arith.constant 0 : index
    %24 = vector.load %arg1[%c0_20, %c32, %c0_21] : memref<1x64x8xf32, #tpu.memory_space<vmem>>, vector<1x8x8xf32>
    %25 = vector.shape_cast %24 : vector<1x8x8xf32> to vector<8x8xf32>
    %c0_22 = arith.constant 0 : index
    %c40 = arith.constant 40 : index
    %c0_23 = arith.constant 0 : index
    %26 = vector.load %arg1[%c0_22, %c40, %c0_23] : memref<1x64x8xf32, #tpu.memory_space<vmem>>, vector<1x8x8xf32>
    %27 = vector.shape_cast %26 : vector<1x8x8xf32> to vector<8x8xf32>
    %28 = arith.maximumf %25, %27 : vector<8x8xf32>
    %cst_24 = arith.constant dense<0.000000e+00> : vector<4x8xf32>
    %29 = tpu.matmul %0, %28, %cst_24 {dimension_numbers = #tpu.dot_dimension_numbers<[1], [0], [0], [1], [0, 0, 1, 1], [], []>, precision = #tpu.contract_precision<fp32>} : vector<4x8xf32>, vector<8x8xf32>, vector<4x8xf32> -> vector<4x8xf32>
    %cst_25 = arith.constant dense<0.000000e+00> : vector<4x8xf32>
    %30 = tpu.matmul %1, %28, %cst_25 {dimension_numbers = #tpu.dot_dimension_numbers<[1], [0], [0], [1], [0, 0, 1, 1], [], []>, precision = #tpu.contract_precision<fp32>} : vector<4x8xf32>, vector<8x8xf32>, vector<4x8xf32> -> vector<4x8xf32>
    %31 = arith.maximumf %29, %30 : vector<4x8xf32>
    %c0_26 = arith.constant 0 : index
    %c8_27 = arith.constant 8 : index
    %c0_28 = arith.constant 0 : index
    %32 = vector.load %arg4[%c0_26, %c8_27, %c0_28] : memref<1x16x8xf32, #tpu.memory_space<vmem>>, vector<1x4x8xf32>
    %33 = vector.shape_cast %32 : vector<1x4x8xf32> to vector<4x8xf32>
    %34 = vector.shape_cast %31 : vector<4x8xf32> to vector<1x4x8xf32>
    tpu.vector_store %arg4[%c0_26, %c8_27, %c0_28], %34 {strides = array<i32>} : memref<1x16x8xf32, #tpu.memory_space<vmem>>, vector<1x4x8xf32>,
    %c0_29 = arith.constant 0 : index
    %c48 = arith.constant 48 : index
    %c0_30 = arith.constant 0 : index
    %35 = vector.load %arg1[%c0_29, %c48, %c0_30] : memref<1x64x8xf32, #tpu.memory_space<vmem>>, vector<1x8x8xf32>
    %36 = vector.shape_cast %35 : vector<1x8x8xf32> to vector<8x8xf32>
    %c0_31 = arith.constant 0 : index
    %c56 = arith.constant 56 : index
    %c0_32 = arith.constant 0 : index
    %37 = vector.load %arg1[%c0_31, %c56, %c0_32] : memref<1x64x8xf32, #tpu.memory_space<vmem>>, vector<1x8x8xf32>
    %38 = vector.shape_cast %37 : vector<1x8x8xf32> to vector<8x8xf32>
    %39 = arith.maximumf %36, %38 : vector<8x8xf32>
    %cst_33 = arith.constant dense<0.000000e+00> : vector<4x8xf32>
    %40 = tpu.matmul %0, %39, %cst_33 {dimension_numbers = #tpu.dot_dimension_numbers<[1], [0], [0], [1], [0, 0, 1, 1], [], []>, precision = #tpu.contract_precision<fp32>} : vector<4x8xf32>, vector<8x8xf32>, vector<4x8xf32> -> vector<4x8xf32>
    %cst_34 = arith.constant dense<0.000000e+00> : vector<4x8xf32>
    %41 = tpu.matmul %1, %39, %cst_34 {dimension_numbers = #tpu.dot_dimension_numbers<[1], [0], [0], [1], [0, 0, 1, 1], [], []>, precision = #tpu.contract_precision<fp32>} : vector<4x8xf32>, vector<8x8xf32>, vector<4x8xf32> -> vector<4x8xf32>
    %42 = arith.maximumf %40, %41 : vector<4x8xf32>
    %c0_35 = arith.constant 0 : index
    %c12 = arith.constant 12 : index
    %c0_36 = arith.constant 0 : index
    %43 = vector.load %arg4[%c0_35, %c12, %c0_36] : memref<1x16x8xf32, #tpu.memory_space<vmem>>, vector<1x4x8xf32>
    %44 = vector.shape_cast %43 : vector<1x4x8xf32> to vector<4x8xf32>
    %45 = vector.shape_cast %42 : vector<4x8xf32> to vector<1x4x8xf32>
    tpu.vector_store %arg4[%c0_35, %c12, %c0_36], %45 {strides = array<i32>} : memref<1x16x8xf32, #tpu.memory_space<vmem>>, vector<1x4x8xf32>,
    return
  }
  func.func @transform_0(%arg0: i32) -> (i32, i32, i32) {
    %c0_i32 = arith.constant 0 : i32
    %c0_i32_0 = arith.constant 0 : i32
    %c0_i32_1 = arith.constant 0 : i32
    return %arg0, %c0_i32, %c0_i32_0 : i32, i32, i32
  }
  func.func @transform_1(%arg0: i32) -> (i32, i32) {
    %c0_i32 = arith.constant 0 : i32
    %c0_i32_0 = arith.constant 0 : i32
    %c0_i32_1 = arith.constant 0 : i32
    return %c0_i32, %c0_i32_0 : i32, i32
  }
  func.func @transform_2(%arg0: i32) -> (i32, i32) {
    %c0_i32 = arith.constant 0 : i32
    %c0_i32_0 = arith.constant 0 : i32
    %c0_i32_1 = arith.constant 0 : i32
    return %c0_i32, %c0_i32_0 : i32, i32
  }
  func.func @transform_3(%arg0: i32) -> (i32, i32, i32) {
    %c0_i32 = arith.constant 0 : i32
    %c0_i32_0 = arith.constant 0 : i32
    %c0_i32_1 = arith.constant 0 : i32
    return %arg0, %c0_i32, %c0_i32_0 : i32, i32, i32
  }
}

module attributes {stable_mosaic.version = 11 : i64} {
  func.func @_bottleneck_kernel(%arg0: i32, %arg1: memref<1x16x8xf32, #tpu.memory_space<vmem>>, %arg2: memref<16x1xf32, #tpu.memory_space<vmem>>, %arg3: memref<16x1xf32, #tpu.memory_space<vmem>>, %arg4: memref<1x8xf32, #tpu.memory_space<vmem>>, %arg5: memref<1x8xf32, #tpu.memory_space<vmem>>, %arg6: memref<8x4xf32, #tpu.memory_space<vmem>>, %arg7: memref<1x4xf32, #tpu.memory_space<vmem>>, %arg8: memref<1x4xf32, #tpu.memory_space<vmem>>, %arg9: memref<1x4xf32, #tpu.memory_space<vmem>>, %arg10: memref<9x4x4xf32, #tpu.memory_space<vmem>>, %arg11: memref<1x4xf32, #tpu.memory_space<vmem>>, %arg12: memref<1x4xf32, #tpu.memory_space<vmem>>, %arg13: memref<1x4xf32, #tpu.memory_space<vmem>>, %arg14: memref<4x8xf32, #tpu.memory_space<vmem>>, %arg15: memref<1x8xf32, #tpu.memory_space<vmem>>, %arg16: memref<1x16x8xf32, #tpu.memory_space<vmem>>, %arg17: memref<26x4xf32, #tpu.memory_space<vmem>>) attributes {dimension_semantics = [#tpu.dimension_semantics<parallel>], iteration_bounds = array<i64: 2>, scalar_prefetch = 0 : i64, scratch_operands = 1 : i64, tpu.core_type = #tpu.core_type<tc>, window_params = [{transform_indices = @transform_0, window_bounds = array<i64: 1, 16, 8>}, {pipeline_mode = #tpu.pipeline_mode<synchronous>, transform_indices = @transform_1, window_bounds = array<i64: 16, 1>}, {pipeline_mode = #tpu.pipeline_mode<synchronous>, transform_indices = @transform_2, window_bounds = array<i64: 16, 1>}, {pipeline_mode = #tpu.pipeline_mode<synchronous>, transform_indices = @transform_3, window_bounds = array<i64: 1, 8>}, {pipeline_mode = #tpu.pipeline_mode<synchronous>, transform_indices = @transform_4, window_bounds = array<i64: 1, 8>}, {pipeline_mode = #tpu.pipeline_mode<synchronous>, transform_indices = @transform_5, window_bounds = array<i64: 8, 4>}, {pipeline_mode = #tpu.pipeline_mode<synchronous>, transform_indices = @transform_6, window_bounds = array<i64: 1, 4>}, {pipeline_mode = #tpu.pipeline_mode<synchronous>, transform_indices = @transform_7, window_bounds = array<i64: 1, 4>}, {pipeline_mode = #tpu.pipeline_mode<synchronous>, transform_indices = @transform_8, window_bounds = array<i64: 1, 4>}, {pipeline_mode = #tpu.pipeline_mode<synchronous>, transform_indices = @transform_9, window_bounds = array<i64: 9, 4, 4>}, {pipeline_mode = #tpu.pipeline_mode<synchronous>, transform_indices = @transform_10, window_bounds = array<i64: 1, 4>}, {pipeline_mode = #tpu.pipeline_mode<synchronous>, transform_indices = @transform_11, window_bounds = array<i64: 1, 4>}, {pipeline_mode = #tpu.pipeline_mode<synchronous>, transform_indices = @transform_12, window_bounds = array<i64: 1, 4>}, {pipeline_mode = #tpu.pipeline_mode<synchronous>, transform_indices = @transform_13, window_bounds = array<i64: 4, 8>}, {pipeline_mode = #tpu.pipeline_mode<synchronous>, transform_indices = @transform_14, window_bounds = array<i64: 1, 8>}, {transform_indices = @transform_15, window_bounds = array<i64: 1, 16, 8>}]} {
    %c0 = arith.constant 0 : index
    %c0_0 = arith.constant 0 : index
    %c0_1 = arith.constant 0 : index
    %0 = vector.load %arg1[%c0, %c0_0, %c0_1] : memref<1x16x8xf32, #tpu.memory_space<vmem>>, vector<1x16x8xf32>
    %1 = vector.shape_cast %0 : vector<1x16x8xf32> to vector<16x8xf32>
    %c0_2 = arith.constant 0 : index
    %c0_3 = arith.constant 0 : index
    %2 = vector.load %arg4[%c0_2, %c0_3] : memref<1x8xf32, #tpu.memory_space<vmem>>, vector<1x8xf32>
    %3 = vector.broadcast %2 : vector<1x8xf32> to vector<16x8xf32>
    %4 = arith.mulf %1, %3 : vector<16x8xf32>
    %c0_4 = arith.constant 0 : index
    %c0_5 = arith.constant 0 : index
    %5 = vector.load %arg5[%c0_4, %c0_5] : memref<1x8xf32, #tpu.memory_space<vmem>>, vector<1x8xf32>
    %6 = vector.broadcast %5 : vector<1x8xf32> to vector<16x8xf32>
    %7 = arith.addf %4, %6 : vector<16x8xf32>
    %cst = arith.constant 0.000000e+00 : f32
    %8 = vector.broadcast %cst : f32 to vector<16x8xf32>
    %9 = arith.maximumf %7, %8 : vector<16x8xf32>
    %10 = arith.truncf %9 : vector<16x8xf32> to vector<16x8xbf16>
    %c0_6 = arith.constant 0 : index
    %c0_7 = arith.constant 0 : index
    %11 = vector.load %arg6[%c0_6, %c0_7] : memref<8x4xf32, #tpu.memory_space<vmem>>, vector<8x4xf32>
    %12 = arith.truncf %11 : vector<8x4xf32> to vector<8x4xbf16>
    %cst_8 = arith.constant dense<0.000000e+00> : vector<16x4xf32>
    %13 = tpu.matmul %10, %12, %cst_8 {dimension_numbers = #tpu.dot_dimension_numbers<[1], [0], [0], [1], [0, 0, 1, 1], [], []>} : vector<16x8xbf16>, vector<8x4xbf16>, vector<16x4xf32> -> vector<16x4xf32>
    %c0_9 = arith.constant 0 : index
    %c0_10 = arith.constant 0 : index
    %14 = vector.load %arg7[%c0_9, %c0_10] : memref<1x4xf32, #tpu.memory_space<vmem>>, vector<1x4xf32>
    %15 = vector.broadcast %14 : vector<1x4xf32> to vector<16x4xf32>
    %16 = arith.addf %13, %15 : vector<16x4xf32>
    %c0_11 = arith.constant 0 : index
    %c0_12 = arith.constant 0 : index
    %17 = vector.load %arg8[%c0_11, %c0_12] : memref<1x4xf32, #tpu.memory_space<vmem>>, vector<1x4xf32>
    %18 = vector.broadcast %17 : vector<1x4xf32> to vector<16x4xf32>
    %19 = arith.mulf %16, %18 : vector<16x4xf32>
    %c0_13 = arith.constant 0 : index
    %c0_14 = arith.constant 0 : index
    %20 = vector.load %arg9[%c0_13, %c0_14] : memref<1x4xf32, #tpu.memory_space<vmem>>, vector<1x4xf32>
    %21 = vector.broadcast %20 : vector<1x4xf32> to vector<16x4xf32>
    %22 = arith.addf %19, %21 : vector<16x4xf32>
    %cst_15 = arith.constant 0.000000e+00 : f32
    %23 = vector.broadcast %cst_15 : f32 to vector<16x4xf32>
    %24 = arith.maximumf %22, %23 : vector<16x4xf32>
    %cst_16 = arith.constant 0.000000e+00 : f32
    %25 = vector.broadcast %cst_16 : f32 to vector<26x4xf32>
    %c0_17 = arith.constant 0 : index
    %c0_18 = arith.constant 0 : index
    %26 = vector.load %arg17[%c0_17, %c0_18] : memref<26x4xf32, #tpu.memory_space<vmem>>, vector<26x4xf32>
    tpu.vector_store %arg17[%c0_17, %c0_18], %25 {strides = array<i32>} : memref<26x4xf32, #tpu.memory_space<vmem>>, vector<26x4xf32>,
    %c5 = arith.constant 5 : index
    %c0_19 = arith.constant 0 : index
    %27 = vector.load %arg17[%c5, %c0_19] : memref<26x4xf32, #tpu.memory_space<vmem>>, vector<16x4xf32>
    tpu.vector_store %arg17[%c5, %c0_19], %24 {strides = array<i32>} : memref<26x4xf32, #tpu.memory_space<vmem>>, vector<16x4xf32>,
    %c0_20 = arith.constant 0 : index
    %c0_21 = arith.constant 0 : index
    %28 = vector.load %arg2[%c0_20, %c0_21] : memref<16x1xf32, #tpu.memory_space<vmem>>, vector<16x1xf32>
    %c0_22 = arith.constant 0 : index
    %c0_23 = arith.constant 0 : index
    %29 = vector.load %arg3[%c0_22, %c0_23] : memref<16x1xf32, #tpu.memory_space<vmem>>, vector<16x1xf32>
    %cst_24 = arith.constant 0.000000e+00 : f32
    %30 = vector.broadcast %cst_24 : f32 to vector<16x4xf32>
    %c0_25 = arith.constant 0 : index
    %c0_26 = arith.constant 0 : index
    %31 = vector.load %arg17[%c0_25, %c0_26] : memref<26x4xf32, #tpu.memory_space<vmem>>, vector<16x4xf32>
    %32 = vector.broadcast %28 : vector<16x1xf32> to vector<16x4xf32>
    %33 = arith.mulf %31, %32 : vector<16x4xf32>
    %34 = arith.truncf %33 : vector<16x4xf32> to vector<16x4xbf16>
    %c0_27 = arith.constant 0 : index
    %c0_28 = arith.constant 0 : index
    %c0_29 = arith.constant 0 : index
    %35 = vector.load %arg10[%c0_27, %c0_28, %c0_29] : memref<9x4x4xf32, #tpu.memory_space<vmem>>, vector<1x4x4xf32>
    %36 = vector.shape_cast %35 : vector<1x4x4xf32> to vector<4x4xf32>
    %37 = arith.truncf %36 : vector<4x4xf32> to vector<4x4xbf16>
    %cst_30 = arith.constant dense<0.000000e+00> : vector<16x4xf32>
    %38 = tpu.matmul %34, %37, %cst_30 {dimension_numbers = #tpu.dot_dimension_numbers<[1], [0], [0], [1], [0, 0, 1, 1], [], []>} : vector<16x4xbf16>, vector<4x4xbf16>, vector<16x4xf32> -> vector<16x4xf32>
    %39 = arith.addf %30, %38 : vector<16x4xf32>
    %c1 = arith.constant 1 : index
    %c0_31 = arith.constant 0 : index
    %40 = vector.load %arg17[%c1, %c0_31] : memref<26x4xf32, #tpu.memory_space<vmem>>, vector<16x4xf32>
    %41 = arith.truncf %40 : vector<16x4xf32> to vector<16x4xbf16>
    %c1_32 = arith.constant 1 : index
    %c0_33 = arith.constant 0 : index
    %c0_34 = arith.constant 0 : index
    %42 = vector.load %arg10[%c1_32, %c0_33, %c0_34] : memref<9x4x4xf32, #tpu.memory_space<vmem>>, vector<1x4x4xf32>
    %43 = vector.shape_cast %42 : vector<1x4x4xf32> to vector<4x4xf32>
    %44 = arith.truncf %43 : vector<4x4xf32> to vector<4x4xbf16>
    %cst_35 = arith.constant dense<0.000000e+00> : vector<16x4xf32>
    %45 = tpu.matmul %41, %44, %cst_35 {dimension_numbers = #tpu.dot_dimension_numbers<[1], [0], [0], [1], [0, 0, 1, 1], [], []>} : vector<16x4xbf16>, vector<4x4xbf16>, vector<16x4xf32> -> vector<16x4xf32>
    %46 = arith.addf %39, %45 : vector<16x4xf32>
    %c2 = arith.constant 2 : index
    %c0_36 = arith.constant 0 : index
    %47 = vector.load %arg17[%c2, %c0_36] : memref<26x4xf32, #tpu.memory_space<vmem>>, vector<16x4xf32>
    %48 = vector.broadcast %29 : vector<16x1xf32> to vector<16x4xf32>
    %49 = arith.mulf %47, %48 : vector<16x4xf32>
    %50 = arith.truncf %49 : vector<16x4xf32> to vector<16x4xbf16>
    %c2_37 = arith.constant 2 : index
    %c0_38 = arith.constant 0 : index
    %c0_39 = arith.constant 0 : index
    %51 = vector.load %arg10[%c2_37, %c0_38, %c0_39] : memref<9x4x4xf32, #tpu.memory_space<vmem>>, vector<1x4x4xf32>
    %52 = vector.shape_cast %51 : vector<1x4x4xf32> to vector<4x4xf32>
    %53 = arith.truncf %52 : vector<4x4xf32> to vector<4x4xbf16>
    %cst_40 = arith.constant dense<0.000000e+00> : vector<16x4xf32>
    %54 = tpu.matmul %50, %53, %cst_40 {dimension_numbers = #tpu.dot_dimension_numbers<[1], [0], [0], [1], [0, 0, 1, 1], [], []>} : vector<16x4xbf16>, vector<4x4xbf16>, vector<16x4xf32> -> vector<16x4xf32>
    %55 = arith.addf %46, %54 : vector<16x4xf32>
    %c4 = arith.constant 4 : index
    %c0_41 = arith.constant 0 : index
    %56 = vector.load %arg17[%c4, %c0_41] : memref<26x4xf32, #tpu.memory_space<vmem>>, vector<16x4xf32>
    %57 = vector.broadcast %28 : vector<16x1xf32> to vector<16x4xf32>
    %58 = arith.mulf %56, %57 : vector<16x4xf32>
    %59 = arith.truncf %58 : vector<16x4xf32> to vector<16x4xbf16>
    %c3 = arith.constant 3 : index
    %c0_42 = arith.constant 0 : index
    %c0_43 = arith.constant 0 : index
    %60 = vector.load %arg10[%c3, %c0_42, %c0_43] : memref<9x4x4xf32, #tpu.memory_space<vmem>>, vector<1x4x4xf32>
    %61 = vector.shape_cast %60 : vector<1x4x4xf32> to vector<4x4xf32>
    %62 = arith.truncf %61 : vector<4x4xf32> to vector<4x4xbf16>
    %cst_44 = arith.constant dense<0.000000e+00> : vector<16x4xf32>
    %63 = tpu.matmul %59, %62, %cst_44 {dimension_numbers = #tpu.dot_dimension_numbers<[1], [0], [0], [1], [0, 0, 1, 1], [], []>} : vector<16x4xbf16>, vector<4x4xbf16>, vector<16x4xf32> -> vector<16x4xf32>
    %64 = arith.addf %55, %63 : vector<16x4xf32>
    %c5_45 = arith.constant 5 : index
    %c0_46 = arith.constant 0 : index
    %65 = vector.load %arg17[%c5_45, %c0_46] : memref<26x4xf32, #tpu.memory_space<vmem>>, vector<16x4xf32>
    %66 = arith.truncf %65 : vector<16x4xf32> to vector<16x4xbf16>
    %c4_47 = arith.constant 4 : index
    %c0_48 = arith.constant 0 : index
    %c0_49 = arith.constant 0 : index
    %67 = vector.load %arg10[%c4_47, %c0_48, %c0_49] : memref<9x4x4xf32, #tpu.memory_space<vmem>>, vector<1x4x4xf32>
    %68 = vector.shape_cast %67 : vector<1x4x4xf32> to vector<4x4xf32>
    %69 = arith.truncf %68 : vector<4x4xf32> to vector<4x4xbf16>
    %cst_50 = arith.constant dense<0.000000e+00> : vector<16x4xf32>
    %70 = tpu.matmul %66, %69, %cst_50 {dimension_numbers = #tpu.dot_dimension_numbers<[1], [0], [0], [1], [0, 0, 1, 1], [], []>} : vector<16x4xbf16>, vector<4x4xbf16>, vector<16x4xf32> -> vector<16x4xf32>
    %71 = arith.addf %64, %70 : vector<16x4xf32>
    %c6 = arith.constant 6 : index
    %c0_51 = arith.constant 0 : index
    %72 = vector.load %arg17[%c6, %c0_51] : memref<26x4xf32, #tpu.memory_space<vmem>>, vector<16x4xf32>
    %73 = vector.broadcast %29 : vector<16x1xf32> to vector<16x4xf32>
    %74 = arith.mulf %72, %73 : vector<16x4xf32>
    %75 = arith.truncf %74 : vector<16x4xf32> to vector<16x4xbf16>
    %c5_52 = arith.constant 5 : index
    %c0_53 = arith.constant 0 : index
    %c0_54 = arith.constant 0 : index
    %76 = vector.load %arg10[%c5_52, %c0_53, %c0_54] : memref<9x4x4xf32, #tpu.memory_space<vmem>>, vector<1x4x4xf32>
    %77 = vector.shape_cast %76 : vector<1x4x4xf32> to vector<4x4xf32>
    %78 = arith.truncf %77 : vector<4x4xf32> to vector<4x4xbf16>
    %cst_55 = arith.constant dense<0.000000e+00> : vector<16x4xf32>
    %79 = tpu.matmul %75, %78, %cst_55 {dimension_numbers = #tpu.dot_dimension_numbers<[1], [0], [0], [1], [0, 0, 1, 1], [], []>} : vector<16x4xbf16>, vector<4x4xbf16>, vector<16x4xf32> -> vector<16x4xf32>
    %80 = arith.addf %71, %79 : vector<16x4xf32>
    %c8 = arith.constant 8 : index
    %c0_56 = arith.constant 0 : index
    %81 = vector.load %arg17[%c8, %c0_56] : memref<26x4xf32, #tpu.memory_space<vmem>>, vector<16x4xf32>
    %82 = vector.broadcast %28 : vector<16x1xf32> to vector<16x4xf32>
    %83 = arith.mulf %81, %82 : vector<16x4xf32>
    %84 = arith.truncf %83 : vector<16x4xf32> to vector<16x4xbf16>
    %c6_57 = arith.constant 6 : index
    %c0_58 = arith.constant 0 : index
    %c0_59 = arith.constant 0 : index
    %85 = vector.load %arg10[%c6_57, %c0_58, %c0_59] : memref<9x4x4xf32, #tpu.memory_space<vmem>>, vector<1x4x4xf32>
    %86 = vector.shape_cast %85 : vector<1x4x4xf32> to vector<4x4xf32>
    %87 = arith.truncf %86 : vector<4x4xf32> to vector<4x4xbf16>
    %cst_60 = arith.constant dense<0.000000e+00> : vector<16x4xf32>
    %88 = tpu.matmul %84, %87, %cst_60 {dimension_numbers = #tpu.dot_dimension_numbers<[1], [0], [0], [1], [0, 0, 1, 1], [], []>} : vector<16x4xbf16>, vector<4x4xbf16>, vector<16x4xf32> -> vector<16x4xf32>
    %89 = arith.addf %80, %88 : vector<16x4xf32>
    %c9 = arith.constant 9 : index
    %c0_61 = arith.constant 0 : index
    %90 = vector.load %arg17[%c9, %c0_61] : memref<26x4xf32, #tpu.memory_space<vmem>>, vector<16x4xf32>
    %91 = arith.truncf %90 : vector<16x4xf32> to vector<16x4xbf16>
    %c7 = arith.constant 7 : index
    %c0_62 = arith.constant 0 : index
    %c0_63 = arith.constant 0 : index
    %92 = vector.load %arg10[%c7, %c0_62, %c0_63] : memref<9x4x4xf32, #tpu.memory_space<vmem>>, vector<1x4x4xf32>
    %93 = vector.shape_cast %92 : vector<1x4x4xf32> to vector<4x4xf32>
    %94 = arith.truncf %93 : vector<4x4xf32> to vector<4x4xbf16>
    %cst_64 = arith.constant dense<0.000000e+00> : vector<16x4xf32>
    %95 = tpu.matmul %91, %94, %cst_64 {dimension_numbers = #tpu.dot_dimension_numbers<[1], [0], [0], [1], [0, 0, 1, 1], [], []>} : vector<16x4xbf16>, vector<4x4xbf16>, vector<16x4xf32> -> vector<16x4xf32>
    %96 = arith.addf %89, %95 : vector<16x4xf32>
    %c10 = arith.constant 10 : index
    %c0_65 = arith.constant 0 : index
    %97 = vector.load %arg17[%c10, %c0_65] : memref<26x4xf32, #tpu.memory_space<vmem>>, vector<16x4xf32>
    %98 = vector.broadcast %29 : vector<16x1xf32> to vector<16x4xf32>
    %99 = arith.mulf %97, %98 : vector<16x4xf32>
    %100 = arith.truncf %99 : vector<16x4xf32> to vector<16x4xbf16>
    %c8_66 = arith.constant 8 : index
    %c0_67 = arith.constant 0 : index
    %c0_68 = arith.constant 0 : index
    %101 = vector.load %arg10[%c8_66, %c0_67, %c0_68] : memref<9x4x4xf32, #tpu.memory_space<vmem>>, vector<1x4x4xf32>
    %102 = vector.shape_cast %101 : vector<1x4x4xf32> to vector<4x4xf32>
    %103 = arith.truncf %102 : vector<4x4xf32> to vector<4x4xbf16>
    %cst_69 = arith.constant dense<0.000000e+00> : vector<16x4xf32>
    %104 = tpu.matmul %100, %103, %cst_69 {dimension_numbers = #tpu.dot_dimension_numbers<[1], [0], [0], [1], [0, 0, 1, 1], [], []>} : vector<16x4xbf16>, vector<4x4xbf16>, vector<16x4xf32> -> vector<16x4xf32>
    %105 = arith.addf %96, %104 : vector<16x4xf32>
    %c0_70 = arith.constant 0 : index
    %c0_71 = arith.constant 0 : index
    %106 = vector.load %arg11[%c0_70, %c0_71] : memref<1x4xf32, #tpu.memory_space<vmem>>, vector<1x4xf32>
    %107 = vector.broadcast %106 : vector<1x4xf32> to vector<16x4xf32>
    %108 = arith.addf %105, %107 : vector<16x4xf32>
    %c0_72 = arith.constant 0 : index
    %c0_73 = arith.constant 0 : index
    %109 = vector.load %arg12[%c0_72, %c0_73] : memref<1x4xf32, #tpu.memory_space<vmem>>, vector<1x4xf32>
    %110 = vector.broadcast %109 : vector<1x4xf32> to vector<16x4xf32>
    %111 = arith.mulf %108, %110 : vector<16x4xf32>
    %c0_74 = arith.constant 0 : index
    %c0_75 = arith.constant 0 : index
    %112 = vector.load %arg13[%c0_74, %c0_75] : memref<1x4xf32, #tpu.memory_space<vmem>>, vector<1x4xf32>
    %113 = vector.broadcast %112 : vector<1x4xf32> to vector<16x4xf32>
    %114 = arith.addf %111, %113 : vector<16x4xf32>
    %cst_76 = arith.constant 0.000000e+00 : f32
    %115 = vector.broadcast %cst_76 : f32 to vector<16x4xf32>
    %116 = arith.maximumf %114, %115 : vector<16x4xf32>
    %117 = arith.truncf %116 : vector<16x4xf32> to vector<16x4xbf16>
    %c0_77 = arith.constant 0 : index
    %c0_78 = arith.constant 0 : index
    %118 = vector.load %arg14[%c0_77, %c0_78] : memref<4x8xf32, #tpu.memory_space<vmem>>, vector<4x8xf32>
    %119 = arith.truncf %118 : vector<4x8xf32> to vector<4x8xbf16>
    %cst_79 = arith.constant dense<0.000000e+00> : vector<16x8xf32>
    %120 = tpu.matmul %117, %119, %cst_79 {dimension_numbers = #tpu.dot_dimension_numbers<[1], [0], [0], [1], [0, 0, 1, 1], [], []>} : vector<16x4xbf16>, vector<4x8xbf16>, vector<16x8xf32> -> vector<16x8xf32>
    %c0_80 = arith.constant 0 : index
    %c0_81 = arith.constant 0 : index
    %121 = vector.load %arg15[%c0_80, %c0_81] : memref<1x8xf32, #tpu.memory_space<vmem>>, vector<1x8xf32>
    %122 = vector.broadcast %121 : vector<1x8xf32> to vector<16x8xf32>
    %123 = arith.addf %120, %122 : vector<16x8xf32>
    %124 = arith.addf %123, %1 : vector<16x8xf32>
    %c0_82 = arith.constant 0 : index
    %c0_83 = arith.constant 0 : index
    %c0_84 = arith.constant 0 : index
    %125 = vector.load %arg16[%c0_82, %c0_83, %c0_84] : memref<1x16x8xf32, #tpu.memory_space<vmem>>, vector<1x16x8xf32>
    %126 = vector.shape_cast %125 : vector<1x16x8xf32> to vector<16x8xf32>
    %127 = vector.shape_cast %124 : vector<16x8xf32> to vector<1x16x8xf32>
    tpu.vector_store %arg16[%c0_82, %c0_83, %c0_84], %127 {strides = array<i32>} : memref<1x16x8xf32, #tpu.memory_space<vmem>>, vector<1x16x8xf32>,
    return
  }
  func.func @transform_0(%arg0: i32) -> (i32, i32, i32) {
    %c0_i32 = arith.constant 0 : i32
    %c0_i32_0 = arith.constant 0 : i32
    %c0_i32_1 = arith.constant 0 : i32
    return %arg0, %c0_i32, %c0_i32_0 : i32, i32, i32
  }
  func.func @transform_1(%arg0: i32) -> (i32, i32) {
    %c0_i32 = arith.constant 0 : i32
    %c0_i32_0 = arith.constant 0 : i32
    %c0_i32_1 = arith.constant 0 : i32
    return %c0_i32, %c0_i32_0 : i32, i32
  }
  func.func @transform_2(%arg0: i32) -> (i32, i32) {
    %c0_i32 = arith.constant 0 : i32
    %c0_i32_0 = arith.constant 0 : i32
    %c0_i32_1 = arith.constant 0 : i32
    return %c0_i32, %c0_i32_0 : i32, i32
  }
  func.func @transform_3(%arg0: i32) -> (i32, i32) {
    %c0_i32 = arith.constant 0 : i32
    %c0_i32_0 = arith.constant 0 : i32
    %c0_i32_1 = arith.constant 0 : i32
    return %c0_i32, %c0_i32_0 : i32, i32
  }
  func.func @transform_4(%arg0: i32) -> (i32, i32) {
    %c0_i32 = arith.constant 0 : i32
    %c0_i32_0 = arith.constant 0 : i32
    %c0_i32_1 = arith.constant 0 : i32
    return %c0_i32, %c0_i32_0 : i32, i32
  }
  func.func @transform_5(%arg0: i32) -> (i32, i32) {
    %c0_i32 = arith.constant 0 : i32
    %c0_i32_0 = arith.constant 0 : i32
    %c0_i32_1 = arith.constant 0 : i32
    return %c0_i32, %c0_i32_0 : i32, i32
  }
  func.func @transform_6(%arg0: i32) -> (i32, i32) {
    %c0_i32 = arith.constant 0 : i32
    %c0_i32_0 = arith.constant 0 : i32
    %c0_i32_1 = arith.constant 0 : i32
    return %c0_i32, %c0_i32_0 : i32, i32
  }
  func.func @transform_7(%arg0: i32) -> (i32, i32) {
    %c0_i32 = arith.constant 0 : i32
    %c0_i32_0 = arith.constant 0 : i32
    %c0_i32_1 = arith.constant 0 : i32
    return %c0_i32, %c0_i32_0 : i32, i32
  }
  func.func @transform_8(%arg0: i32) -> (i32, i32) {
    %c0_i32 = arith.constant 0 : i32
    %c0_i32_0 = arith.constant 0 : i32
    %c0_i32_1 = arith.constant 0 : i32
    return %c0_i32, %c0_i32_0 : i32, i32
  }
  func.func @transform_9(%arg0: i32) -> (i32, i32, i32) {
    %c0_i32 = arith.constant 0 : i32
    %c0_i32_0 = arith.constant 0 : i32
    %c0_i32_1 = arith.constant 0 : i32
    %c0_i32_2 = arith.constant 0 : i32
    return %c0_i32, %c0_i32_0, %c0_i32_1 : i32, i32, i32
  }
  func.func @transform_10(%arg0: i32) -> (i32, i32) {
    %c0_i32 = arith.constant 0 : i32
    %c0_i32_0 = arith.constant 0 : i32
    %c0_i32_1 = arith.constant 0 : i32
    return %c0_i32, %c0_i32_0 : i32, i32
  }
  func.func @transform_11(%arg0: i32) -> (i32, i32) {
    %c0_i32 = arith.constant 0 : i32
    %c0_i32_0 = arith.constant 0 : i32
    %c0_i32_1 = arith.constant 0 : i32
    return %c0_i32, %c0_i32_0 : i32, i32
  }
  func.func @transform_12(%arg0: i32) -> (i32, i32) {
    %c0_i32 = arith.constant 0 : i32
    %c0_i32_0 = arith.constant 0 : i32
    %c0_i32_1 = arith.constant 0 : i32
    return %c0_i32, %c0_i32_0 : i32, i32
  }
  func.func @transform_13(%arg0: i32) -> (i32, i32) {
    %c0_i32 = arith.constant 0 : i32
    %c0_i32_0 = arith.constant 0 : i32
    %c0_i32_1 = arith.constant 0 : i32
    return %c0_i32, %c0_i32_0 : i32, i32
  }
  func.func @transform_14(%arg0: i32) -> (i32, i32) {
    %c0_i32 = arith.constant 0 : i32
    %c0_i32_0 = arith.constant 0 : i32
    %c0_i32_1 = arith.constant 0 : i32
    return %c0_i32, %c0_i32_0 : i32, i32
  }
  func.func @transform_15(%arg0: i32) -> (i32, i32, i32) {
    %c0_i32 = arith.constant 0 : i32
    %c0_i32_0 = arith.constant 0 : i32
    %c0_i32_1 = arith.constant 0 : i32
    return %arg0, %c0_i32, %c0_i32_0 : i32, i32, i32
  }
}

module attributes {stable_mosaic.version = 11 : i64} {
  func.func @_upsample_add_kernel(%arg0: i32, %arg1: memref<1x64x8xf32, #tpu.memory_space<vmem>>, %arg2: memref<1x16x8xf32, #tpu.memory_space<vmem>>, %arg3: memref<8x4xf32, #tpu.memory_space<vmem>>, %arg4: memref<1x64x8xf32, #tpu.memory_space<vmem>>) attributes {dimension_semantics = [#tpu.dimension_semantics<parallel>], iteration_bounds = array<i64: 2>, scalar_prefetch = 0 : i64, scratch_operands = 0 : i64, tpu.core_type = #tpu.core_type<tc>, window_params = [{transform_indices = @transform_0, window_bounds = array<i64: 1, 64, 8>}, {transform_indices = @transform_1, window_bounds = array<i64: 1, 16, 8>}, {pipeline_mode = #tpu.pipeline_mode<synchronous>, transform_indices = @transform_2, window_bounds = array<i64: 8, 4>}, {transform_indices = @transform_3, window_bounds = array<i64: 1, 64, 8>}]} {
    %c0 = arith.constant 0 : index
    %c0_0 = arith.constant 0 : index
    %0 = vector.load %arg3[%c0, %c0_0] : memref<8x4xf32, #tpu.memory_space<vmem>>, vector<8x4xf32>
    %c0_1 = arith.constant 0 : index
    %c0_2 = arith.constant 0 : index
    %c0_3 = arith.constant 0 : index
    %1 = vector.load %arg2[%c0_1, %c0_2, %c0_3] : memref<1x16x8xf32, #tpu.memory_space<vmem>>, vector<1x4x8xf32>
    %2 = vector.shape_cast %1 : vector<1x4x8xf32> to vector<4x8xf32>
    %cst = arith.constant dense<0.000000e+00> : vector<8x8xf32>
    %3 = tpu.matmul %0, %2, %cst {dimension_numbers = #tpu.dot_dimension_numbers<[1], [0], [0], [1], [0, 0, 1, 1], [], []>, precision = #tpu.contract_precision<fp32>} : vector<8x4xf32>, vector<4x8xf32>, vector<8x8xf32> -> vector<8x8xf32>
    %c0_4 = arith.constant 0 : index
    %c0_5 = arith.constant 0 : index
    %c0_6 = arith.constant 0 : index
    %4 = vector.load %arg1[%c0_4, %c0_5, %c0_6] : memref<1x64x8xf32, #tpu.memory_space<vmem>>, vector<1x8x8xf32>
    %5 = vector.shape_cast %4 : vector<1x8x8xf32> to vector<8x8xf32>
    %6 = arith.addf %5, %3 : vector<8x8xf32>
    %c0_7 = arith.constant 0 : index
    %c0_8 = arith.constant 0 : index
    %c0_9 = arith.constant 0 : index
    %7 = vector.load %arg4[%c0_7, %c0_8, %c0_9] : memref<1x64x8xf32, #tpu.memory_space<vmem>>, vector<1x8x8xf32>
    %8 = vector.shape_cast %7 : vector<1x8x8xf32> to vector<8x8xf32>
    %9 = vector.shape_cast %6 : vector<8x8xf32> to vector<1x8x8xf32>
    tpu.vector_store %arg4[%c0_7, %c0_8, %c0_9], %9 {strides = array<i32>} : memref<1x64x8xf32, #tpu.memory_space<vmem>>, vector<1x8x8xf32>,
    %c0_10 = arith.constant 0 : index
    %c8 = arith.constant 8 : index
    %c0_11 = arith.constant 0 : index
    %10 = vector.load %arg1[%c0_10, %c8, %c0_11] : memref<1x64x8xf32, #tpu.memory_space<vmem>>, vector<1x8x8xf32>
    %11 = vector.shape_cast %10 : vector<1x8x8xf32> to vector<8x8xf32>
    %12 = arith.addf %11, %3 : vector<8x8xf32>
    %c0_12 = arith.constant 0 : index
    %c8_13 = arith.constant 8 : index
    %c0_14 = arith.constant 0 : index
    %13 = vector.load %arg4[%c0_12, %c8_13, %c0_14] : memref<1x64x8xf32, #tpu.memory_space<vmem>>, vector<1x8x8xf32>
    %14 = vector.shape_cast %13 : vector<1x8x8xf32> to vector<8x8xf32>
    %15 = vector.shape_cast %12 : vector<8x8xf32> to vector<1x8x8xf32>
    tpu.vector_store %arg4[%c0_12, %c8_13, %c0_14], %15 {strides = array<i32>} : memref<1x64x8xf32, #tpu.memory_space<vmem>>, vector<1x8x8xf32>,
    %c0_15 = arith.constant 0 : index
    %c4 = arith.constant 4 : index
    %c0_16 = arith.constant 0 : index
    %16 = vector.load %arg2[%c0_15, %c4, %c0_16] : memref<1x16x8xf32, #tpu.memory_space<vmem>>, vector<1x4x8xf32>
    %17 = vector.shape_cast %16 : vector<1x4x8xf32> to vector<4x8xf32>
    %cst_17 = arith.constant dense<0.000000e+00> : vector<8x8xf32>
    %18 = tpu.matmul %0, %17, %cst_17 {dimension_numbers = #tpu.dot_dimension_numbers<[1], [0], [0], [1], [0, 0, 1, 1], [], []>, precision = #tpu.contract_precision<fp32>} : vector<8x4xf32>, vector<4x8xf32>, vector<8x8xf32> -> vector<8x8xf32>
    %c0_18 = arith.constant 0 : index
    %c16 = arith.constant 16 : index
    %c0_19 = arith.constant 0 : index
    %19 = vector.load %arg1[%c0_18, %c16, %c0_19] : memref<1x64x8xf32, #tpu.memory_space<vmem>>, vector<1x8x8xf32>
    %20 = vector.shape_cast %19 : vector<1x8x8xf32> to vector<8x8xf32>
    %21 = arith.addf %20, %18 : vector<8x8xf32>
    %c0_20 = arith.constant 0 : index
    %c16_21 = arith.constant 16 : index
    %c0_22 = arith.constant 0 : index
    %22 = vector.load %arg4[%c0_20, %c16_21, %c0_22] : memref<1x64x8xf32, #tpu.memory_space<vmem>>, vector<1x8x8xf32>
    %23 = vector.shape_cast %22 : vector<1x8x8xf32> to vector<8x8xf32>
    %24 = vector.shape_cast %21 : vector<8x8xf32> to vector<1x8x8xf32>
    tpu.vector_store %arg4[%c0_20, %c16_21, %c0_22], %24 {strides = array<i32>} : memref<1x64x8xf32, #tpu.memory_space<vmem>>, vector<1x8x8xf32>,
    %c0_23 = arith.constant 0 : index
    %c24 = arith.constant 24 : index
    %c0_24 = arith.constant 0 : index
    %25 = vector.load %arg1[%c0_23, %c24, %c0_24] : memref<1x64x8xf32, #tpu.memory_space<vmem>>, vector<1x8x8xf32>
    %26 = vector.shape_cast %25 : vector<1x8x8xf32> to vector<8x8xf32>
    %27 = arith.addf %26, %18 : vector<8x8xf32>
    %c0_25 = arith.constant 0 : index
    %c24_26 = arith.constant 24 : index
    %c0_27 = arith.constant 0 : index
    %28 = vector.load %arg4[%c0_25, %c24_26, %c0_27] : memref<1x64x8xf32, #tpu.memory_space<vmem>>, vector<1x8x8xf32>
    %29 = vector.shape_cast %28 : vector<1x8x8xf32> to vector<8x8xf32>
    %30 = vector.shape_cast %27 : vector<8x8xf32> to vector<1x8x8xf32>
    tpu.vector_store %arg4[%c0_25, %c24_26, %c0_27], %30 {strides = array<i32>} : memref<1x64x8xf32, #tpu.memory_space<vmem>>, vector<1x8x8xf32>,
    %c0_28 = arith.constant 0 : index
    %c8_29 = arith.constant 8 : index
    %c0_30 = arith.constant 0 : index
    %31 = vector.load %arg2[%c0_28, %c8_29, %c0_30] : memref<1x16x8xf32, #tpu.memory_space<vmem>>, vector<1x4x8xf32>
    %32 = vector.shape_cast %31 : vector<1x4x8xf32> to vector<4x8xf32>
    %cst_31 = arith.constant dense<0.000000e+00> : vector<8x8xf32>
    %33 = tpu.matmul %0, %32, %cst_31 {dimension_numbers = #tpu.dot_dimension_numbers<[1], [0], [0], [1], [0, 0, 1, 1], [], []>, precision = #tpu.contract_precision<fp32>} : vector<8x4xf32>, vector<4x8xf32>, vector<8x8xf32> -> vector<8x8xf32>
    %c0_32 = arith.constant 0 : index
    %c32 = arith.constant 32 : index
    %c0_33 = arith.constant 0 : index
    %34 = vector.load %arg1[%c0_32, %c32, %c0_33] : memref<1x64x8xf32, #tpu.memory_space<vmem>>, vector<1x8x8xf32>
    %35 = vector.shape_cast %34 : vector<1x8x8xf32> to vector<8x8xf32>
    %36 = arith.addf %35, %33 : vector<8x8xf32>
    %c0_34 = arith.constant 0 : index
    %c32_35 = arith.constant 32 : index
    %c0_36 = arith.constant 0 : index
    %37 = vector.load %arg4[%c0_34, %c32_35, %c0_36] : memref<1x64x8xf32, #tpu.memory_space<vmem>>, vector<1x8x8xf32>
    %38 = vector.shape_cast %37 : vector<1x8x8xf32> to vector<8x8xf32>
    %39 = vector.shape_cast %36 : vector<8x8xf32> to vector<1x8x8xf32>
    tpu.vector_store %arg4[%c0_34, %c32_35, %c0_36], %39 {strides = array<i32>} : memref<1x64x8xf32, #tpu.memory_space<vmem>>, vector<1x8x8xf32>,
    %c0_37 = arith.constant 0 : index
    %c40 = arith.constant 40 : index
    %c0_38 = arith.constant 0 : index
    %40 = vector.load %arg1[%c0_37, %c40, %c0_38] : memref<1x64x8xf32, #tpu.memory_space<vmem>>, vector<1x8x8xf32>
    %41 = vector.shape_cast %40 : vector<1x8x8xf32> to vector<8x8xf32>
    %42 = arith.addf %41, %33 : vector<8x8xf32>
    %c0_39 = arith.constant 0 : index
    %c40_40 = arith.constant 40 : index
    %c0_41 = arith.constant 0 : index
    %43 = vector.load %arg4[%c0_39, %c40_40, %c0_41] : memref<1x64x8xf32, #tpu.memory_space<vmem>>, vector<1x8x8xf32>
    %44 = vector.shape_cast %43 : vector<1x8x8xf32> to vector<8x8xf32>
    %45 = vector.shape_cast %42 : vector<8x8xf32> to vector<1x8x8xf32>
    tpu.vector_store %arg4[%c0_39, %c40_40, %c0_41], %45 {strides = array<i32>} : memref<1x64x8xf32, #tpu.memory_space<vmem>>, vector<1x8x8xf32>,
    %c0_42 = arith.constant 0 : index
    %c12 = arith.constant 12 : index
    %c0_43 = arith.constant 0 : index
    %46 = vector.load %arg2[%c0_42, %c12, %c0_43] : memref<1x16x8xf32, #tpu.memory_space<vmem>>, vector<1x4x8xf32>
    %47 = vector.shape_cast %46 : vector<1x4x8xf32> to vector<4x8xf32>
    %cst_44 = arith.constant dense<0.000000e+00> : vector<8x8xf32>
    %48 = tpu.matmul %0, %47, %cst_44 {dimension_numbers = #tpu.dot_dimension_numbers<[1], [0], [0], [1], [0, 0, 1, 1], [], []>, precision = #tpu.contract_precision<fp32>} : vector<8x4xf32>, vector<4x8xf32>, vector<8x8xf32> -> vector<8x8xf32>
    %c0_45 = arith.constant 0 : index
    %c48 = arith.constant 48 : index
    %c0_46 = arith.constant 0 : index
    %49 = vector.load %arg1[%c0_45, %c48, %c0_46] : memref<1x64x8xf32, #tpu.memory_space<vmem>>, vector<1x8x8xf32>
    %50 = vector.shape_cast %49 : vector<1x8x8xf32> to vector<8x8xf32>
    %51 = arith.addf %50, %48 : vector<8x8xf32>
    %c0_47 = arith.constant 0 : index
    %c48_48 = arith.constant 48 : index
    %c0_49 = arith.constant 0 : index
    %52 = vector.load %arg4[%c0_47, %c48_48, %c0_49] : memref<1x64x8xf32, #tpu.memory_space<vmem>>, vector<1x8x8xf32>
    %53 = vector.shape_cast %52 : vector<1x8x8xf32> to vector<8x8xf32>
    %54 = vector.shape_cast %51 : vector<8x8xf32> to vector<1x8x8xf32>
    tpu.vector_store %arg4[%c0_47, %c48_48, %c0_49], %54 {strides = array<i32>} : memref<1x64x8xf32, #tpu.memory_space<vmem>>, vector<1x8x8xf32>,
    %c0_50 = arith.constant 0 : index
    %c56 = arith.constant 56 : index
    %c0_51 = arith.constant 0 : index
    %55 = vector.load %arg1[%c0_50, %c56, %c0_51] : memref<1x64x8xf32, #tpu.memory_space<vmem>>, vector<1x8x8xf32>
    %56 = vector.shape_cast %55 : vector<1x8x8xf32> to vector<8x8xf32>
    %57 = arith.addf %56, %48 : vector<8x8xf32>
    %c0_52 = arith.constant 0 : index
    %c56_53 = arith.constant 56 : index
    %c0_54 = arith.constant 0 : index
    %58 = vector.load %arg4[%c0_52, %c56_53, %c0_54] : memref<1x64x8xf32, #tpu.memory_space<vmem>>, vector<1x8x8xf32>
    %59 = vector.shape_cast %58 : vector<1x8x8xf32> to vector<8x8xf32>
    %60 = vector.shape_cast %57 : vector<8x8xf32> to vector<1x8x8xf32>
    tpu.vector_store %arg4[%c0_52, %c56_53, %c0_54], %60 {strides = array<i32>} : memref<1x64x8xf32, #tpu.memory_space<vmem>>, vector<1x8x8xf32>,
    return
  }
  func.func @transform_0(%arg0: i32) -> (i32, i32, i32) {
    %c0_i32 = arith.constant 0 : i32
    %c0_i32_0 = arith.constant 0 : i32
    %c0_i32_1 = arith.constant 0 : i32
    return %arg0, %c0_i32, %c0_i32_0 : i32, i32, i32
  }
  func.func @transform_1(%arg0: i32) -> (i32, i32, i32) {
    %c0_i32 = arith.constant 0 : i32
    %c0_i32_0 = arith.constant 0 : i32
    %c0_i32_1 = arith.constant 0 : i32
    return %arg0, %c0_i32, %c0_i32_0 : i32, i32, i32
  }
  func.func @transform_2(%arg0: i32) -> (i32, i32) {
    %c0_i32 = arith.constant 0 : i32
    %c0_i32_0 = arith.constant 0 : i32
    %c0_i32_1 = arith.constant 0 : i32
    return %c0_i32, %c0_i32_0 : i32, i32
  }
  func.func @transform_3(%arg0: i32) -> (i32, i32, i32) {
    %c0_i32 = arith.constant 0 : i32
    %c0_i32_0 = arith.constant 0 : i32
    %c0_i32_1 = arith.constant 0 : i32
    return %arg0, %c0_i32, %c0_i32_0 : i32, i32, i32
  }
}

module attributes {stable_mosaic.version = 11 : i64} {
  func.func @_upsample_add_kernel(%arg0: i32, %arg1: memref<1x256x8xf32, #tpu.memory_space<vmem>>, %arg2: memref<1x64x8xf32, #tpu.memory_space<vmem>>, %arg3: memref<16x8xf32, #tpu.memory_space<vmem>>, %arg4: memref<1x256x8xf32, #tpu.memory_space<vmem>>) attributes {dimension_semantics = [#tpu.dimension_semantics<parallel>], iteration_bounds = array<i64: 2>, scalar_prefetch = 0 : i64, scratch_operands = 0 : i64, tpu.core_type = #tpu.core_type<tc>, window_params = [{transform_indices = @transform_0, window_bounds = array<i64: 1, 256, 8>}, {transform_indices = @transform_1, window_bounds = array<i64: 1, 64, 8>}, {pipeline_mode = #tpu.pipeline_mode<synchronous>, transform_indices = @transform_2, window_bounds = array<i64: 16, 8>}, {transform_indices = @transform_3, window_bounds = array<i64: 1, 256, 8>}]} {
    %c0 = arith.constant 0 : index
    %c0_0 = arith.constant 0 : index
    %0 = vector.load %arg3[%c0, %c0_0] : memref<16x8xf32, #tpu.memory_space<vmem>>, vector<16x8xf32>
    %c0_1 = arith.constant 0 : index
    %c0_2 = arith.constant 0 : index
    %c0_3 = arith.constant 0 : index
    %1 = vector.load %arg2[%c0_1, %c0_2, %c0_3] : memref<1x64x8xf32, #tpu.memory_space<vmem>>, vector<1x8x8xf32>
    %2 = vector.shape_cast %1 : vector<1x8x8xf32> to vector<8x8xf32>
    %cst = arith.constant dense<0.000000e+00> : vector<16x8xf32>
    %3 = tpu.matmul %0, %2, %cst {dimension_numbers = #tpu.dot_dimension_numbers<[1], [0], [0], [1], [0, 0, 1, 1], [], []>, precision = #tpu.contract_precision<fp32>} : vector<16x8xf32>, vector<8x8xf32>, vector<16x8xf32> -> vector<16x8xf32>
    %c0_4 = arith.constant 0 : index
    %c0_5 = arith.constant 0 : index
    %c0_6 = arith.constant 0 : index
    %4 = vector.load %arg1[%c0_4, %c0_5, %c0_6] : memref<1x256x8xf32, #tpu.memory_space<vmem>>, vector<1x16x8xf32>
    %5 = vector.shape_cast %4 : vector<1x16x8xf32> to vector<16x8xf32>
    %6 = arith.addf %5, %3 : vector<16x8xf32>
    %c0_7 = arith.constant 0 : index
    %c0_8 = arith.constant 0 : index
    %c0_9 = arith.constant 0 : index
    %7 = vector.load %arg4[%c0_7, %c0_8, %c0_9] : memref<1x256x8xf32, #tpu.memory_space<vmem>>, vector<1x16x8xf32>
    %8 = vector.shape_cast %7 : vector<1x16x8xf32> to vector<16x8xf32>
    %9 = vector.shape_cast %6 : vector<16x8xf32> to vector<1x16x8xf32>
    tpu.vector_store %arg4[%c0_7, %c0_8, %c0_9], %9 {strides = array<i32>} : memref<1x256x8xf32, #tpu.memory_space<vmem>>, vector<1x16x8xf32>,
    %c0_10 = arith.constant 0 : index
    %c16 = arith.constant 16 : index
    %c0_11 = arith.constant 0 : index
    %10 = vector.load %arg1[%c0_10, %c16, %c0_11] : memref<1x256x8xf32, #tpu.memory_space<vmem>>, vector<1x16x8xf32>
    %11 = vector.shape_cast %10 : vector<1x16x8xf32> to vector<16x8xf32>
    %12 = arith.addf %11, %3 : vector<16x8xf32>
    %c0_12 = arith.constant 0 : index
    %c16_13 = arith.constant 16 : index
    %c0_14 = arith.constant 0 : index
    %13 = vector.load %arg4[%c0_12, %c16_13, %c0_14] : memref<1x256x8xf32, #tpu.memory_space<vmem>>, vector<1x16x8xf32>
    %14 = vector.shape_cast %13 : vector<1x16x8xf32> to vector<16x8xf32>
    %15 = vector.shape_cast %12 : vector<16x8xf32> to vector<1x16x8xf32>
    tpu.vector_store %arg4[%c0_12, %c16_13, %c0_14], %15 {strides = array<i32>} : memref<1x256x8xf32, #tpu.memory_space<vmem>>, vector<1x16x8xf32>,
    %c0_15 = arith.constant 0 : index
    %c8 = arith.constant 8 : index
    %c0_16 = arith.constant 0 : index
    %16 = vector.load %arg2[%c0_15, %c8, %c0_16] : memref<1x64x8xf32, #tpu.memory_space<vmem>>, vector<1x8x8xf32>
    %17 = vector.shape_cast %16 : vector<1x8x8xf32> to vector<8x8xf32>
    %cst_17 = arith.constant dense<0.000000e+00> : vector<16x8xf32>
    %18 = tpu.matmul %0, %17, %cst_17 {dimension_numbers = #tpu.dot_dimension_numbers<[1], [0], [0], [1], [0, 0, 1, 1], [], []>, precision = #tpu.contract_precision<fp32>} : vector<16x8xf32>, vector<8x8xf32>, vector<16x8xf32> -> vector<16x8xf32>
    %c0_18 = arith.constant 0 : index
    %c32 = arith.constant 32 : index
    %c0_19 = arith.constant 0 : index
    %19 = vector.load %arg1[%c0_18, %c32, %c0_19] : memref<1x256x8xf32, #tpu.memory_space<vmem>>, vector<1x16x8xf32>
    %20 = vector.shape_cast %19 : vector<1x16x8xf32> to vector<16x8xf32>
    %21 = arith.addf %20, %18 : vector<16x8xf32>
    %c0_20 = arith.constant 0 : index
    %c32_21 = arith.constant 32 : index
    %c0_22 = arith.constant 0 : index
    %22 = vector.load %arg4[%c0_20, %c32_21, %c0_22] : memref<1x256x8xf32, #tpu.memory_space<vmem>>, vector<1x16x8xf32>
    %23 = vector.shape_cast %22 : vector<1x16x8xf32> to vector<16x8xf32>
    %24 = vector.shape_cast %21 : vector<16x8xf32> to vector<1x16x8xf32>
    tpu.vector_store %arg4[%c0_20, %c32_21, %c0_22], %24 {strides = array<i32>} : memref<1x256x8xf32, #tpu.memory_space<vmem>>, vector<1x16x8xf32>,
    %c0_23 = arith.constant 0 : index
    %c48 = arith.constant 48 : index
    %c0_24 = arith.constant 0 : index
    %25 = vector.load %arg1[%c0_23, %c48, %c0_24] : memref<1x256x8xf32, #tpu.memory_space<vmem>>, vector<1x16x8xf32>
    %26 = vector.shape_cast %25 : vector<1x16x8xf32> to vector<16x8xf32>
    %27 = arith.addf %26, %18 : vector<16x8xf32>
    %c0_25 = arith.constant 0 : index
    %c48_26 = arith.constant 48 : index
    %c0_27 = arith.constant 0 : index
    %28 = vector.load %arg4[%c0_25, %c48_26, %c0_27] : memref<1x256x8xf32, #tpu.memory_space<vmem>>, vector<1x16x8xf32>
    %29 = vector.shape_cast %28 : vector<1x16x8xf32> to vector<16x8xf32>
    %30 = vector.shape_cast %27 : vector<16x8xf32> to vector<1x16x8xf32>
    tpu.vector_store %arg4[%c0_25, %c48_26, %c0_27], %30 {strides = array<i32>} : memref<1x256x8xf32, #tpu.memory_space<vmem>>, vector<1x16x8xf32>,
    %c0_28 = arith.constant 0 : index
    %c16_29 = arith.constant 16 : index
    %c0_30 = arith.constant 0 : index
    %31 = vector.load %arg2[%c0_28, %c16_29, %c0_30] : memref<1x64x8xf32, #tpu.memory_space<vmem>>, vector<1x8x8xf32>
    %32 = vector.shape_cast %31 : vector<1x8x8xf32> to vector<8x8xf32>
    %cst_31 = arith.constant dense<0.000000e+00> : vector<16x8xf32>
    %33 = tpu.matmul %0, %32, %cst_31 {dimension_numbers = #tpu.dot_dimension_numbers<[1], [0], [0], [1], [0, 0, 1, 1], [], []>, precision = #tpu.contract_precision<fp32>} : vector<16x8xf32>, vector<8x8xf32>, vector<16x8xf32> -> vector<16x8xf32>
    %c0_32 = arith.constant 0 : index
    %c64 = arith.constant 64 : index
    %c0_33 = arith.constant 0 : index
    %34 = vector.load %arg1[%c0_32, %c64, %c0_33] : memref<1x256x8xf32, #tpu.memory_space<vmem>>, vector<1x16x8xf32>
    %35 = vector.shape_cast %34 : vector<1x16x8xf32> to vector<16x8xf32>
    %36 = arith.addf %35, %33 : vector<16x8xf32>
    %c0_34 = arith.constant 0 : index
    %c64_35 = arith.constant 64 : index
    %c0_36 = arith.constant 0 : index
    %37 = vector.load %arg4[%c0_34, %c64_35, %c0_36] : memref<1x256x8xf32, #tpu.memory_space<vmem>>, vector<1x16x8xf32>
    %38 = vector.shape_cast %37 : vector<1x16x8xf32> to vector<16x8xf32>
    %39 = vector.shape_cast %36 : vector<16x8xf32> to vector<1x16x8xf32>
    tpu.vector_store %arg4[%c0_34, %c64_35, %c0_36], %39 {strides = array<i32>} : memref<1x256x8xf32, #tpu.memory_space<vmem>>, vector<1x16x8xf32>,
    %c0_37 = arith.constant 0 : index
    %c80 = arith.constant 80 : index
    %c0_38 = arith.constant 0 : index
    %40 = vector.load %arg1[%c0_37, %c80, %c0_38] : memref<1x256x8xf32, #tpu.memory_space<vmem>>, vector<1x16x8xf32>
    %41 = vector.shape_cast %40 : vector<1x16x8xf32> to vector<16x8xf32>
    %42 = arith.addf %41, %33 : vector<16x8xf32>
    %c0_39 = arith.constant 0 : index
    %c80_40 = arith.constant 80 : index
    %c0_41 = arith.constant 0 : index
    %43 = vector.load %arg4[%c0_39, %c80_40, %c0_41] : memref<1x256x8xf32, #tpu.memory_space<vmem>>, vector<1x16x8xf32>
    %44 = vector.shape_cast %43 : vector<1x16x8xf32> to vector<16x8xf32>
    %45 = vector.shape_cast %42 : vector<16x8xf32> to vector<1x16x8xf32>
    tpu.vector_store %arg4[%c0_39, %c80_40, %c0_41], %45 {strides = array<i32>} : memref<1x256x8xf32, #tpu.memory_space<vmem>>, vector<1x16x8xf32>,
    %c0_42 = arith.constant 0 : index
    %c24 = arith.constant 24 : index
    %c0_43 = arith.constant 0 : index
    %46 = vector.load %arg2[%c0_42, %c24, %c0_43] : memref<1x64x8xf32, #tpu.memory_space<vmem>>, vector<1x8x8xf32>
    %47 = vector.shape_cast %46 : vector<1x8x8xf32> to vector<8x8xf32>
    %cst_44 = arith.constant dense<0.000000e+00> : vector<16x8xf32>
    %48 = tpu.matmul %0, %47, %cst_44 {dimension_numbers = #tpu.dot_dimension_numbers<[1], [0], [0], [1], [0, 0, 1, 1], [], []>, precision = #tpu.contract_precision<fp32>} : vector<16x8xf32>, vector<8x8xf32>, vector<16x8xf32> -> vector<16x8xf32>
    %c0_45 = arith.constant 0 : index
    %c96 = arith.constant 96 : index
    %c0_46 = arith.constant 0 : index
    %49 = vector.load %arg1[%c0_45, %c96, %c0_46] : memref<1x256x8xf32, #tpu.memory_space<vmem>>, vector<1x16x8xf32>
    %50 = vector.shape_cast %49 : vector<1x16x8xf32> to vector<16x8xf32>
    %51 = arith.addf %50, %48 : vector<16x8xf32>
    %c0_47 = arith.constant 0 : index
    %c96_48 = arith.constant 96 : index
    %c0_49 = arith.constant 0 : index
    %52 = vector.load %arg4[%c0_47, %c96_48, %c0_49] : memref<1x256x8xf32, #tpu.memory_space<vmem>>, vector<1x16x8xf32>
    %53 = vector.shape_cast %52 : vector<1x16x8xf32> to vector<16x8xf32>
    %54 = vector.shape_cast %51 : vector<16x8xf32> to vector<1x16x8xf32>
    tpu.vector_store %arg4[%c0_47, %c96_48, %c0_49], %54 {strides = array<i32>} : memref<1x256x8xf32, #tpu.memory_space<vmem>>, vector<1x16x8xf32>,
    %c0_50 = arith.constant 0 : index
    %c112 = arith.constant 112 : index
    %c0_51 = arith.constant 0 : index
    %55 = vector.load %arg1[%c0_50, %c112, %c0_51] : memref<1x256x8xf32, #tpu.memory_space<vmem>>, vector<1x16x8xf32>
    %56 = vector.shape_cast %55 : vector<1x16x8xf32> to vector<16x8xf32>
    %57 = arith.addf %56, %48 : vector<16x8xf32>
    %c0_52 = arith.constant 0 : index
    %c112_53 = arith.constant 112 : index
    %c0_54 = arith.constant 0 : index
    %58 = vector.load %arg4[%c0_52, %c112_53, %c0_54] : memref<1x256x8xf32, #tpu.memory_space<vmem>>, vector<1x16x8xf32>
    %59 = vector.shape_cast %58 : vector<1x16x8xf32> to vector<16x8xf32>
    %60 = vector.shape_cast %57 : vector<16x8xf32> to vector<1x16x8xf32>
    tpu.vector_store %arg4[%c0_52, %c112_53, %c0_54], %60 {strides = array<i32>} : memref<1x256x8xf32, #tpu.memory_space<vmem>>, vector<1x16x8xf32>,
    %c0_55 = arith.constant 0 : index
    %c32_56 = arith.constant 32 : index
    %c0_57 = arith.constant 0 : index
    %61 = vector.load %arg2[%c0_55, %c32_56, %c0_57] : memref<1x64x8xf32, #tpu.memory_space<vmem>>, vector<1x8x8xf32>
    %62 = vector.shape_cast %61 : vector<1x8x8xf32> to vector<8x8xf32>
    %cst_58 = arith.constant dense<0.000000e+00> : vector<16x8xf32>
    %63 = tpu.matmul %0, %62, %cst_58 {dimension_numbers = #tpu.dot_dimension_numbers<[1], [0], [0], [1], [0, 0, 1, 1], [], []>, precision = #tpu.contract_precision<fp32>} : vector<16x8xf32>, vector<8x8xf32>, vector<16x8xf32> -> vector<16x8xf32>
    %c0_59 = arith.constant 0 : index
    %c128 = arith.constant 128 : index
    %c0_60 = arith.constant 0 : index
    %64 = vector.load %arg1[%c0_59, %c128, %c0_60] : memref<1x256x8xf32, #tpu.memory_space<vmem>>, vector<1x16x8xf32>
    %65 = vector.shape_cast %64 : vector<1x16x8xf32> to vector<16x8xf32>
    %66 = arith.addf %65, %63 : vector<16x8xf32>
    %c0_61 = arith.constant 0 : index
    %c128_62 = arith.constant 128 : index
    %c0_63 = arith.constant 0 : index
    %67 = vector.load %arg4[%c0_61, %c128_62, %c0_63] : memref<1x256x8xf32, #tpu.memory_space<vmem>>, vector<1x16x8xf32>
    %68 = vector.shape_cast %67 : vector<1x16x8xf32> to vector<16x8xf32>
    %69 = vector.shape_cast %66 : vector<16x8xf32> to vector<1x16x8xf32>
    tpu.vector_store %arg4[%c0_61, %c128_62, %c0_63], %69 {strides = array<i32>} : memref<1x256x8xf32, #tpu.memory_space<vmem>>, vector<1x16x8xf32>,
    %c0_64 = arith.constant 0 : index
    %c144 = arith.constant 144 : index
    %c0_65 = arith.constant 0 : index
    %70 = vector.load %arg1[%c0_64, %c144, %c0_65] : memref<1x256x8xf32, #tpu.memory_space<vmem>>, vector<1x16x8xf32>
    %71 = vector.shape_cast %70 : vector<1x16x8xf32> to vector<16x8xf32>
    %72 = arith.addf %71, %63 : vector<16x8xf32>
    %c0_66 = arith.constant 0 : index
    %c144_67 = arith.constant 144 : index
    %c0_68 = arith.constant 0 : index
    %73 = vector.load %arg4[%c0_66, %c144_67, %c0_68] : memref<1x256x8xf32, #tpu.memory_space<vmem>>, vector<1x16x8xf32>
    %74 = vector.shape_cast %73 : vector<1x16x8xf32> to vector<16x8xf32>
    %75 = vector.shape_cast %72 : vector<16x8xf32> to vector<1x16x8xf32>
    tpu.vector_store %arg4[%c0_66, %c144_67, %c0_68], %75 {strides = array<i32>} : memref<1x256x8xf32, #tpu.memory_space<vmem>>, vector<1x16x8xf32>,
    %c0_69 = arith.constant 0 : index
    %c40 = arith.constant 40 : index
    %c0_70 = arith.constant 0 : index
    %76 = vector.load %arg2[%c0_69, %c40, %c0_70] : memref<1x64x8xf32, #tpu.memory_space<vmem>>, vector<1x8x8xf32>
    %77 = vector.shape_cast %76 : vector<1x8x8xf32> to vector<8x8xf32>
    %cst_71 = arith.constant dense<0.000000e+00> : vector<16x8xf32>
    %78 = tpu.matmul %0, %77, %cst_71 {dimension_numbers = #tpu.dot_dimension_numbers<[1], [0], [0], [1], [0, 0, 1, 1], [], []>, precision = #tpu.contract_precision<fp32>} : vector<16x8xf32>, vector<8x8xf32>, vector<16x8xf32> -> vector<16x8xf32>
    %c0_72 = arith.constant 0 : index
    %c160 = arith.constant 160 : index
    %c0_73 = arith.constant 0 : index
    %79 = vector.load %arg1[%c0_72, %c160, %c0_73] : memref<1x256x8xf32, #tpu.memory_space<vmem>>, vector<1x16x8xf32>
    %80 = vector.shape_cast %79 : vector<1x16x8xf32> to vector<16x8xf32>
    %81 = arith.addf %80, %78 : vector<16x8xf32>
    %c0_74 = arith.constant 0 : index
    %c160_75 = arith.constant 160 : index
    %c0_76 = arith.constant 0 : index
    %82 = vector.load %arg4[%c0_74, %c160_75, %c0_76] : memref<1x256x8xf32, #tpu.memory_space<vmem>>, vector<1x16x8xf32>
    %83 = vector.shape_cast %82 : vector<1x16x8xf32> to vector<16x8xf32>
    %84 = vector.shape_cast %81 : vector<16x8xf32> to vector<1x16x8xf32>
    tpu.vector_store %arg4[%c0_74, %c160_75, %c0_76], %84 {strides = array<i32>} : memref<1x256x8xf32, #tpu.memory_space<vmem>>, vector<1x16x8xf32>,
    %c0_77 = arith.constant 0 : index
    %c176 = arith.constant 176 : index
    %c0_78 = arith.constant 0 : index
    %85 = vector.load %arg1[%c0_77, %c176, %c0_78] : memref<1x256x8xf32, #tpu.memory_space<vmem>>, vector<1x16x8xf32>
    %86 = vector.shape_cast %85 : vector<1x16x8xf32> to vector<16x8xf32>
    %87 = arith.addf %86, %78 : vector<16x8xf32>
    %c0_79 = arith.constant 0 : index
    %c176_80 = arith.constant 176 : index
    %c0_81 = arith.constant 0 : index
    %88 = vector.load %arg4[%c0_79, %c176_80, %c0_81] : memref<1x256x8xf32, #tpu.memory_space<vmem>>, vector<1x16x8xf32>
    %89 = vector.shape_cast %88 : vector<1x16x8xf32> to vector<16x8xf32>
    %90 = vector.shape_cast %87 : vector<16x8xf32> to vector<1x16x8xf32>
    tpu.vector_store %arg4[%c0_79, %c176_80, %c0_81], %90 {strides = array<i32>} : memref<1x256x8xf32, #tpu.memory_space<vmem>>, vector<1x16x8xf32>,
    %c0_82 = arith.constant 0 : index
    %c48_83 = arith.constant 48 : index
    %c0_84 = arith.constant 0 : index
    %91 = vector.load %arg2[%c0_82, %c48_83, %c0_84] : memref<1x64x8xf32, #tpu.memory_space<vmem>>, vector<1x8x8xf32>
    %92 = vector.shape_cast %91 : vector<1x8x8xf32> to vector<8x8xf32>
    %cst_85 = arith.constant dense<0.000000e+00> : vector<16x8xf32>
    %93 = tpu.matmul %0, %92, %cst_85 {dimension_numbers = #tpu.dot_dimension_numbers<[1], [0], [0], [1], [0, 0, 1, 1], [], []>, precision = #tpu.contract_precision<fp32>} : vector<16x8xf32>, vector<8x8xf32>, vector<16x8xf32> -> vector<16x8xf32>
    %c0_86 = arith.constant 0 : index
    %c192 = arith.constant 192 : index
    %c0_87 = arith.constant 0 : index
    %94 = vector.load %arg1[%c0_86, %c192, %c0_87] : memref<1x256x8xf32, #tpu.memory_space<vmem>>, vector<1x16x8xf32>
    %95 = vector.shape_cast %94 : vector<1x16x8xf32> to vector<16x8xf32>
    %96 = arith.addf %95, %93 : vector<16x8xf32>
    %c0_88 = arith.constant 0 : index
    %c192_89 = arith.constant 192 : index
    %c0_90 = arith.constant 0 : index
    %97 = vector.load %arg4[%c0_88, %c192_89, %c0_90] : memref<1x256x8xf32, #tpu.memory_space<vmem>>, vector<1x16x8xf32>
    %98 = vector.shape_cast %97 : vector<1x16x8xf32> to vector<16x8xf32>
    %99 = vector.shape_cast %96 : vector<16x8xf32> to vector<1x16x8xf32>
    tpu.vector_store %arg4[%c0_88, %c192_89, %c0_90], %99 {strides = array<i32>} : memref<1x256x8xf32, #tpu.memory_space<vmem>>, vector<1x16x8xf32>,
    %c0_91 = arith.constant 0 : index
    %c208 = arith.constant 208 : index
    %c0_92 = arith.constant 0 : index
    %100 = vector.load %arg1[%c0_91, %c208, %c0_92] : memref<1x256x8xf32, #tpu.memory_space<vmem>>, vector<1x16x8xf32>
    %101 = vector.shape_cast %100 : vector<1x16x8xf32> to vector<16x8xf32>
    %102 = arith.addf %101, %93 : vector<16x8xf32>
    %c0_93 = arith.constant 0 : index
    %c208_94 = arith.constant 208 : index
    %c0_95 = arith.constant 0 : index
    %103 = vector.load %arg4[%c0_93, %c208_94, %c0_95] : memref<1x256x8xf32, #tpu.memory_space<vmem>>, vector<1x16x8xf32>
    %104 = vector.shape_cast %103 : vector<1x16x8xf32> to vector<16x8xf32>
    %105 = vector.shape_cast %102 : vector<16x8xf32> to vector<1x16x8xf32>
    tpu.vector_store %arg4[%c0_93, %c208_94, %c0_95], %105 {strides = array<i32>} : memref<1x256x8xf32, #tpu.memory_space<vmem>>, vector<1x16x8xf32>,
    %c0_96 = arith.constant 0 : index
    %c56 = arith.constant 56 : index
    %c0_97 = arith.constant 0 : index
    %106 = vector.load %arg2[%c0_96, %c56, %c0_97] : memref<1x64x8xf32, #tpu.memory_space<vmem>>, vector<1x8x8xf32>
    %107 = vector.shape_cast %106 : vector<1x8x8xf32> to vector<8x8xf32>
    %cst_98 = arith.constant dense<0.000000e+00> : vector<16x8xf32>
    %108 = tpu.matmul %0, %107, %cst_98 {dimension_numbers = #tpu.dot_dimension_numbers<[1], [0], [0], [1], [0, 0, 1, 1], [], []>, precision = #tpu.contract_precision<fp32>} : vector<16x8xf32>, vector<8x8xf32>, vector<16x8xf32> -> vector<16x8xf32>
    %c0_99 = arith.constant 0 : index
    %c224 = arith.constant 224 : index
    %c0_100 = arith.constant 0 : index
    %109 = vector.load %arg1[%c0_99, %c224, %c0_100] : memref<1x256x8xf32, #tpu.memory_space<vmem>>, vector<1x16x8xf32>
    %110 = vector.shape_cast %109 : vector<1x16x8xf32> to vector<16x8xf32>
    %111 = arith.addf %110, %108 : vector<16x8xf32>
    %c0_101 = arith.constant 0 : index
    %c224_102 = arith.constant 224 : index
    %c0_103 = arith.constant 0 : index
    %112 = vector.load %arg4[%c0_101, %c224_102, %c0_103] : memref<1x256x8xf32, #tpu.memory_space<vmem>>, vector<1x16x8xf32>
    %113 = vector.shape_cast %112 : vector<1x16x8xf32> to vector<16x8xf32>
    %114 = vector.shape_cast %111 : vector<16x8xf32> to vector<1x16x8xf32>
    tpu.vector_store %arg4[%c0_101, %c224_102, %c0_103], %114 {strides = array<i32>} : memref<1x256x8xf32, #tpu.memory_space<vmem>>, vector<1x16x8xf32>,
    %c0_104 = arith.constant 0 : index
    %c240 = arith.constant 240 : index
    %c0_105 = arith.constant 0 : index
    %115 = vector.load %arg1[%c0_104, %c240, %c0_105] : memref<1x256x8xf32, #tpu.memory_space<vmem>>, vector<1x16x8xf32>
    %116 = vector.shape_cast %115 : vector<1x16x8xf32> to vector<16x8xf32>
    %117 = arith.addf %116, %108 : vector<16x8xf32>
    %c0_106 = arith.constant 0 : index
    %c240_107 = arith.constant 240 : index
    %c0_108 = arith.constant 0 : index
    %118 = vector.load %arg4[%c0_106, %c240_107, %c0_108] : memref<1x256x8xf32, #tpu.memory_space<vmem>>, vector<1x16x8xf32>
    %119 = vector.shape_cast %118 : vector<1x16x8xf32> to vector<16x8xf32>
    %120 = vector.shape_cast %117 : vector<16x8xf32> to vector<1x16x8xf32>
    tpu.vector_store %arg4[%c0_106, %c240_107, %c0_108], %120 {strides = array<i32>} : memref<1x256x8xf32, #tpu.memory_space<vmem>>, vector<1x16x8xf32>,
    return
  }
  func.func @transform_0(%arg0: i32) -> (i32, i32, i32) {
    %c0_i32 = arith.constant 0 : i32
    %c0_i32_0 = arith.constant 0 : i32
    %c0_i32_1 = arith.constant 0 : i32
    return %arg0, %c0_i32, %c0_i32_0 : i32, i32, i32
  }
  func.func @transform_1(%arg0: i32) -> (i32, i32, i32) {
    %c0_i32 = arith.constant 0 : i32
    %c0_i32_0 = arith.constant 0 : i32
    %c0_i32_1 = arith.constant 0 : i32
    return %arg0, %c0_i32, %c0_i32_0 : i32, i32, i32
  }
  func.func @transform_2(%arg0: i32) -> (i32, i32) {
    %c0_i32 = arith.constant 0 : i32
    %c0_i32_0 = arith.constant 0 : i32
    %c0_i32_1 = arith.constant 0 : i32
    return %c0_i32, %c0_i32_0 : i32, i32
  }
  func.func @transform_3(%arg0: i32) -> (i32, i32, i32) {
    %c0_i32 = arith.constant 0 : i32
    %c0_i32_0 = arith.constant 0 : i32
    %c0_i32_1 = arith.constant 0 : i32
    return %arg0, %c0_i32, %c0_i32_0 : i32, i32, i32
  }
}

</mosaic_0001>

<bundles_post_ra>
// kernel: hourglass_forward.15
= control target key start
LH: loop header
LB: loop body
LE: loop exit
PB: predicated region body
PF: predicated region fallthrough
CT: control target
= control target key end

     0   :  { %s4213_s12 = smov 0   ;;  %s4503_s0 = inlined_call_operand.vmem [shape: f32[2,64,8], index: 0, kind: input, shape index: {}]   ;;  %s4504_s1 = inlined_call_operand.vmem [shape: f32[4,8], index: 1, kind: input, shape index: {}]   ;;  %s4505_s2 = inlined_call_operand.vmem [shape: f32[4,8], index: 2, kind: input, shape index: {}]   ;;  %s4506_s3 = inlined_call_operand.vmem [shape: f32[2,16,8], index: 3, kind: output, shape index: {}]  }
   0x1 LB: > { %s3824_s13 = sadd.s32 4294967295, %s4189_s12   ;;  %p3828_p0 = scmp.ge.s32.totalorder %s4189_s12, 1  ;;  %s4189_s12 = sphi %s4213_s12, %s13_s12  }
   0x2   : > { %p137_p1 = scmp.lt.s32.totalorder %s4189_s12, 3 }
   0x4   : > { %p138_p2 = pnand %p3828_p0, %p137_p1 }
   0x5   : > { %p161_p3 = scmp.lt.s32.totalorder (!%p138_p2), %s3824_s13, 1 }
   0x6   : > { %141 = sbr.rel (%p138_p2) target bundleno = 320 (0x140), region = 32 }
   0xb   : > { %v171_v0 = vld [vmem:[%s4504_s1] sm:$0xf]  ;;  %vm176_vm0 = vcmask 64512   ;;  %v4191_v1 = vmov 0.0   ;;  %vm4192_vm1 = vmmov 0   ;;  %s4508_s13 = smov (!%p161_p3, %s3824_s13), 1 }
   0xc   : > { %3933 = vmatprep.subr.mxu0 %v4191_v1  ;;  %3935 = vmatprep.mubr.msk.f32.mxu0 %vm4192_vm1, %v4191_v1  ;;  %v178_v2 = vsel %vm176_vm0, %v171_v0, 0  ;;  %v172_v3 = vld [vmem:[%s4505_s2] sm:$0xf]  ;;  %s3835_s18 = sshll.u32 %s4508_s13, 6  ;;  %s3836_s22 = sshll.u32 %s4508_s13, 4  ;;  %vm1076_vm2 = vcmask 60416  }
   0xd   : > { %v4232_v4 = vand.u32 4294901760, %v178_v2  ;;  %3938 = vmatprep.subr.mxu1 %v4191_v1  ;;  %3940 = vmatprep.mubr.msk.f32.mxu1 %vm4192_vm1, %v4191_v1  ;;  %v627_v5 = vsel %vm176_vm0, %v172_v3, 0  ;;  %s4244_s21 = scalar_lea.vmem %s4503_s0, %s3835_s18  ;;  %s4490_s25 = scalar_lea.vmem %s4506_s3, %s3836_s22 }
   0xe   : > { %v173_v7 = vld [vmem:[%s4244_s21] sm:$0xff]  ;;  %v174_v8 = vld [vmem:[%s4244_s21 + $0x8] sm:$0xff]  ;;  %v4251_v10 = vand.u32 4294901760, %v627_v5  ;;  %v1078_v19 = vld [vmem:[%s4244_s21 + $0x10] sm:$0xff] }
   0xf   : > { %v4239_v6 = vsub.f32 %v178_v2, %v4232_v4  ;;  %v175_v11 = vmax.f32 %v173_v7, %v174_v8  ;;  %v1079_v20 = vld [vmem:[%s4244_s21 + $0x18] sm:$0xff]  ;;  %v1975_v31 = vld [vmem:[%s4244_s21 + $0x20] sm:$0xff]  ;;  %v1976_v32 = vld [vmem:[%s4244_s21 + $0x28] sm:$0xff] }
  0x10   : > { %v4258_v15 = vsub.f32 %v627_v5, %v4251_v10  ;;  %v1080_v23 = vmax.f32 %v1078_v19, %v1079_v20  ;;  %v1977_v33 = vmax.f32 %v1975_v31, %v1976_v32  ;;  %v2872_v39 = vld [vmem:[%s4244_s21 + $0x30] sm:$0xff]  ;;  %v2873_v40 = vld [vmem:[%s4244_s21 + $0x38] sm:$0xff] }
  0x11   : > { %v4249_v9 = vand.u32 4294901760, %v4239_v6  ;;  %v211_v13 = vand.u32 4294901760, %v175_v11  ;;  %v2874_v41 = vmax.f32 %v2872_v39, %v2873_v40 }
  0x12   : > { %v4266_v18 = vand.u32 4294901760, %v4258_v15  ;;  %v4280_v25 = vand.u32 4294901760, %v1080_v23  ;;  %v4337_v34 = vand.u32 4294901760, %v1977_v33 }
  0x13   : > { %v249_v12 = vsub.f32 %v4239_v6, %v4249_v9  ;;  %3934 = vmatpush3.msra.mxu0 %v211_v13  ;;  %v288_v16 = vsub.f32 %v175_v11, %v211_v13  ;;  %v4396_v42 = vand.u32 4294901760, %v2874_v41 }
  0x14   : > { %3943 = vmatprep.subr.mxu0 %v4191_v1  ;;  %v698_v24 = vsub.f32 %v4258_v15, %v4266_v18  ;;  %v1189_v27 = vsub.f32 %v1080_v23, %v4280_v25  ;;  %v2086_v35 = vsub.f32 %v1977_v33, %v4337_v34 }
  0x15   : > { %v4255_v14 = vand.u32 4294901760, %v249_v12  ;;  %v289_v17 = vand.u32 4294901760, %v288_v16  ;;  %v2983_v43 = vsub.f32 %v2874_v41, %v4396_v42 }
  0x16   : > { %v4284_v26 = vand.u32 4294901760, %v698_v24  ;;  %v1190_v28 = vand.u32 4294901760, %v1189_v27  ;;  %v2087_v36 = vand.u32 4294901760, %v2086_v35 }
  0x17   : > { %3936 = vmatmul.mubr.f32.vlgmr.msra.gmra.mxu0 %v4255_v14  ;;  %v290_v21 = vsub.f32 %v288_v16, %v289_v17  ;;  %v2984_v44 = vand.u32 4294901760, %v2983_v43 }
  0x18   : > { %3944 = vmatpush3.msra.mxu0 %v288_v16  ;;  %3945 = vmatprep.mubr.msk.f32.mxu0 %vm4192_vm1, %v4191_v1  ;;  %v1191_v29 = vsub.f32 %v1189_v27, %v1190_v28  ;;  %v2088_v37 = vsub.f32 %v2086_v35, %v2087_v36 }
  0x19   : > { %3953 = vmatprep.subr.mxu0 %v4191_v1  ;;  %v291_v22 = vand.u32 4294901760, %v290_v21  ;;  %v2985_v45 = vsub.f32 %v2983_v43, %v2984_v44 }
  0x1a   : > { %v1192_v30 = vand.u32 4294901760, %v1191_v29  ;;  %v2089_v38 = vand.u32 4294901760, %v2088_v37 }
  0x1b   : > { %3946 = vmatmul.mubr.f32.vlgmr.msra.gmra.mxu0 %v4239_v6  ;;  %3939 = vmatpush3.msra.mxu1 %v291_v22  ;;  %v2986_v46 = vand.u32 4294901760, %v2985_v45 }
  0x1c   : > { %3954 = vmatpush3.msra.mxu0 %v289_v17  ;;  %3955 = vmatprep.mubr.msk.f32.mxu0 %vm4192_vm1, %v4191_v1 }
  0x1d   : > { %3963 = vmatprep.subr.mxu0 %v4191_v1  ;;  %3941 = vmatmul.mubr.f32.vlgmr.msra.gmra.mxu1 %v4232_v4 }
  0x1e   : > { %3948 = vmatprep.subr.mxu1 %v4191_v1  ;;  %3950 = vmatprep.mubr.msk.f32.mxu1 %vm4192_vm1, %v4191_v1 }
  0x1f   : > { %3949 = vmatpush3.msra.mxu1 %v211_v13  ;;  %3956 = vmatmul.mubr.f32.vlgmr.msra.gmra.mxu0 %v4232_v4 }
  0x20   : > { %3958 = vmatprep.subr.mxu1 %v4191_v1  ;;  %3964 = vmatpush3.msra.mxu0 %v211_v13 }
  0x21   : > { %3965 = vmatprep.mubr.msk.f32.mxu0 %vm4192_vm1, %v4191_v1  ;;  %3951 = vmatmul.mubr.f32.vlgmr.msra.gmra.mxu1 %v4249_v9 }
  0x22   : > { %3973 = vmatprep.subr.mxu0 %v4191_v1  ;;  %3959 = vmatpush3.msra.mxu1 %v211_v13 }
  0x23   : > { %3960 = vmatprep.mubr.msk.f32.mxu1 %vm4192_vm1, %v4191_v1  ;;  %3968 = vmatprep.subr.mxu1 %v4191_v1 }
  0x24   : > { %3966 = vmatmul.mubr.f32.vlgmr.msra.gmra.mxu0 %v4284_v26 }
  0x25   : > { %3974 = vmatpush3.msra.mxu0 %v288_v16  ;;  %3975 = vmatprep.mubr.msk.f32.mxu0 %vm4192_vm1, %v4191_v1 }
  0x26   : > { %3961 = vmatmul.mubr.f32.vlgmr.msra.gmra.mxu1 %v4232_v4  ;;  %3983 = vmatprep.subr.mxu0 %v4191_v1 }
  0x27   : > { %3969 = vmatpush3.msra.mxu1 %v291_v22  ;;  %3970 = vmatprep.mubr.msk.f32.mxu1 %vm4192_vm1, %v4191_v1 }
  0x28   : > { %3978 = vmatprep.subr.mxu1 %v4191_v1  ;;  %3976 = vmatmul.mubr.f32.vlgmr.msra.gmra.mxu0 %v4258_v15 }
  0x29   : > { %3984 = vmatpush3.msra.mxu0 %v289_v17  ;;  %3985 = vmatprep.mubr.msk.f32.mxu0 %vm4192_vm1, %v4191_v1 }
  0x2a   : > { %3971 = vmatmul.mubr.f32.vlgmr.msra.gmra.mxu1 %v4251_v10  ;;  %3993 = vmatprep.subr.mxu0 %v4191_v1 }
  0x2b   : > { %3979 = vmatpush3.msra.mxu1 %v211_v13  ;;  %3980 = vmatprep.mubr.msk.f32.mxu1 %vm4192_vm1, %v4191_v1 }
  0x2c   : > { %3988 = vmatprep.subr.mxu1 %v4191_v1  ;;  %3986 = vmatmul.mubr.f32.vlgmr.msra.gmra.mxu0 %v4251_v10 }
  0x2d   : > { %3994 = vmatpush3.msra.mxu0 %v4280_v25  ;;  %3995 = vmatprep.mubr.msk.f32.mxu0 %vm4192_vm1, %v4191_v1 }
  0x2e   : > { %3981 = vmatmul.mubr.f32.vlgmr.msra.gmra.mxu1 %v4266_v18  ;;  %4003 = vmatprep.subr.mxu0 %v4191_v1 }
  0x2f   : > { %3989 = vmatpush3.msra.mxu1 %v211_v13  ;;  %3990 = vmatprep.mubr.msk.f32.mxu1 %vm4192_vm1, %v4191_v1 }
  0x30   : > { %3998 = vmatprep.subr.mxu1 %v4191_v1  ;;  %3996 = vmatmul.mubr.f32.vlgmr.msra.gmra.mxu0 %v4255_v14 }
  0x31   : > { %4004 = vmatpush3.msra.mxu0 %v1189_v27  ;;  %4005 = vmatprep.mubr.msk.f32.mxu0 %vm4192_vm1, %v4191_v1 }
  0x32   : > { %3991 = vmatmul.mubr.f32.vlgmr.msra.gmra.mxu1 %v4251_v10  ;;  %4013 = vmatprep.subr.mxu0 %v4191_v1 }
  0x33   : > { %3999 = vmatpush3.msra.mxu1 %v1192_v30  ;;  %4000 = vmatprep.mubr.msk.f32.mxu1 %vm4192_vm1, %v4191_v1 }
  0x34   : > { %4008 = vmatprep.subr.mxu1 %v4191_v1  ;;  %4006 = vmatmul.mubr.f32.vlgmr.msra.gmra.mxu0 %v4239_v6 }
  0x35   : > { %4014 = vmatpush3.msra.mxu0 %v1190_v28  ;;  %4015 = vmatprep.mubr.msk.f32.mxu0 %vm4192_vm1, %v4191_v1 }
  0x36   : > { %4001 = vmatmul.mubr.f32.vlgmr.msra.gmra.mxu1 %v4232_v4  ;;  %4023 = vmatprep.subr.mxu0 %v4191_v1 }
  0x37   : > { %4009 = vmatpush3.msra.mxu1 %v4280_v25  ;;  %4010 = vmatprep.mubr.msk.f32.mxu1 %vm4192_vm1, %v4191_v1 }
  0x38   : > { %4018 = vmatprep.subr.mxu1 %v4191_v1  ;;  %4016 = vmatmul.mubr.f32.vlgmr.msra.gmra.mxu0 %v4232_v4 }
  0x39   : > { %4024 = vmatpush3.msra.mxu0 %v4280_v25  ;;  %4025 = vmatprep.mubr.msk.f32.mxu0 %vm4192_vm1, %v4191_v1 }
  0x3a   : > { %4011 = vmatmul.mubr.f32.vlgmr.msra.gmra.mxu1 %v4249_v9  ;;  %4033 = vmatprep.subr.mxu0 %v4191_v1 }
  0x3b   : > { %4019 = vmatpush3.msra.mxu1 %v4280_v25  ;;  %4020 = vmatprep.mubr.msk.f32.mxu1 %vm4192_vm1, %v4191_v1 }
  0x3c   : > { %4028 = vmatprep.subr.mxu1 %v4191_v1  ;;  %4026 = vmatmul.mubr.f32.vlgmr.msra.gmra.mxu0 %v4284_v26 }
  0x3d   : > { %4034 = vmatpush3.msra.mxu0 %v1189_v27  ;;  %4035 = vmatprep.mubr.msk.f32.mxu0 %vm4192_vm1, %v4191_v1 }
  0x3e   : > { %4021 = vmatmul.mubr.f32.vlgmr.msra.gmra.mxu1 %v4232_v4  ;;  %4043 = vmatprep.subr.mxu0 %v4191_v1 }
  0x3f   : > { %4029 = vmatpush3.msra.mxu1 %v1192_v30  ;;  %4030 = vmatprep.mubr.msk.f32.mxu1 %vm4192_vm1, %v4191_v1 }
  0x40   : > { %4038 = vmatprep.subr.mxu1 %v4191_v1  ;;  %4036 = vmatmul.mubr.f32.vlgmr.msra.gmra.mxu0 %v4258_v15 }
  0x41   : > { %4044 = vmatpush3.msra.mxu0 %v1190_v28  ;;  %4045 = vmatprep.mubr.msk.f32.mxu0 %vm4192_vm1, %v4191_v1 }
  0x42   : > { %4031 = vmatmul.mubr.f32.vlgmr.msra.gmra.mxu1 %v4251_v10  ;;  %4053 = vmatprep.subr.mxu0 %v4191_v1 }
  0x43   : > { %4039 = vmatpush3.msra.mxu1 %v4280_v25  ;;  %4040 = vmatprep.mubr.msk.f32.mxu1 %vm4192_vm1, %v4191_v1 }
  0x44   : > { %4048 = vmatprep.subr.mxu1 %v4191_v1  ;;  %4046 = vmatmul.mubr.f32.vlgmr.msra.gmra.mxu0 %v4251_v10 }
  0x45   : > { %4054 = vmatpush3.msra.mxu0 %v4337_v34  ;;  %4055 = vmatprep.mubr.msk.f32.mxu0 %vm4192_vm1, %v4191_v1 }
  0x46   : > { %4041 = vmatmul.mubr.f32.vlgmr.msra.gmra.mxu1 %v4266_v18  ;;  %4063 = vmatprep.subr.mxu0 %v4191_v1 }
  0x47   : > { %4049 = vmatpush3.msra.mxu1 %v4280_v25  ;;  %4050 = vmatprep.mubr.msk.f32.mxu1 %vm4192_vm1, %v4191_v1 }
  0x48   : > { %4058 = vmatprep.subr.mxu1 %v4191_v1  ;;  %4056 = vmatmul.mubr.f32.vlgmr.msra.gmra.mxu0 %v4255_v14 }
  0x49   : > { %4064 = vmatpush3.msra.mxu0 %v2086_v35  ;;  %4065 = vmatprep.mubr.msk.f32.mxu0 %vm4192_vm1, %v4191_v1 }
  0x4a   : > { %4051 = vmatmul.mubr.f32.vlgmr.msra.gmra.mxu1 %v4251_v10  ;;  %4073 = vmatprep.subr.mxu0 %v4191_v1 }
  0x4b   : > { %4059 = vmatpush3.msra.mxu1 %v2089_v38  ;;  %4060 = vmatprep.mubr.msk.f32.mxu1 %vm4192_vm1, %v4191_v1 }
  0x4c   : > { %4068 = vmatprep.subr.mxu1 %v4191_v1  ;;  %4066 = vmatmul.mubr.f32.vlgmr.msra.gmra.mxu0 %v4239_v6 }
  0x4d   : > { %4074 = vmatpush3.msra.mxu0 %v2087_v36  ;;  %4075 = vmatprep.mubr.msk.f32.mxu0 %vm4192_vm1, %v4191_v1 }
  0x4e   : > { %4061 = vmatmul.mubr.f32.vlgmr.msra.gmra.mxu1 %v4232_v4  ;;  %4083 = vmatprep.subr.mxu0 %v4191_v1 }
  0x4f   : > { %4069 = vmatpush3.msra.mxu1 %v4337_v34  ;;  %4070 = vmatprep.mubr.msk.f32.mxu1 %vm4192_vm1, %v4191_v1 }
  0x50   : > { %4078 = vmatprep.subr.mxu1 %v4191_v1  ;;  %4076 = vmatmul.mubr.f32.vlgmr.msra.gmra.mxu0 %v4232_v4 }
  0x51   : > { %4084 = vmatpush3.msra.mxu0 %v4337_v34  ;;  %4085 = vmatprep.mubr.msk.f32.mxu0 %vm4192_vm1, %v4191_v1 }
  0x52   : > { %4071 = vmatmul.mubr.f32.vlgmr.msra.gmra.mxu1 %v4249_v9  ;;  %4093 = vmatprep.subr.mxu0 %v4191_v1 }
  0x53   : > { %4079 = vmatpush3.msra.mxu1 %v4337_v34  ;;  %4080 = vmatprep.mubr.msk.f32.mxu1 %vm4192_vm1, %v4191_v1 }
  0x54   : > { %4088 = vmatprep.subr.mxu1 %v4191_v1  ;;  %4086 = vmatmul.mubr.f32.vlgmr.msra.gmra.mxu0 %v4284_v26 }
  0x55   : > { %4094 = vmatpush3.msra.mxu0 %v2086_v35  ;;  %4095 = vmatprep.mubr.msk.f32.mxu0 %vm4192_vm1, %v4191_v1 }
  0x56   : > { %4081 = vmatmul.mubr.f32.vlgmr.msra.gmra.mxu1 %v4232_v4  ;;  %4103 = vmatprep.subr.mxu0 %v4191_v1 }
  0x57   : > { %4089 = vmatpush3.msra.mxu1 %v2089_v38  ;;  %4090 = vmatprep.mubr.msk.f32.mxu1 %vm4192_vm1, %v4191_v1 }
  0x58   : > { %4098 = vmatprep.subr.mxu1 %v4191_v1  ;;  %4096 = vmatmul.mubr.f32.vlgmr.msra.gmra.mxu0 %v4258_v15 }
  0x59   : > { %4104 = vmatpush3.msra.mxu0 %v2087_v36  ;;  %4105 = vmatprep.mubr.msk.f32.mxu0 %vm4192_vm1, %v4191_v1 }
  0x5a   : > { %4091 = vmatmul.mubr.f32.vlgmr.msra.gmra.mxu1 %v4251_v10  ;;  %4113 = vmatprep.subr.mxu0 %v4191_v1 }
  0x5b   : > { %4099 = vmatpush3.msra.mxu1 %v4337_v34  ;;  %4100 = vmatprep.mubr.msk.f32.mxu1 %vm4192_vm1, %v4191_v1 }
  0x5c   : > { %4108 = vmatprep.subr.mxu1 %v4191_v1  ;;  %4106 = vmatmul.mubr.f32.vlgmr.msra.gmra.mxu0 %v4251_v10 }
  0x5d   : > { %4114 = vmatpush3.msra.mxu0 %v4396_v42  ;;  %4115 = vmatprep.mubr.msk.f32.mxu0 %vm4192_vm1, %v4191_v1 }
  0x5e   : > { %4101 = vmatmul.mubr.f32.vlgmr.msra.gmra.mxu1 %v4266_v18  ;;  %4123 = vmatprep.subr.mxu0 %v4191_v1 }
  0x5f   : > { %4109 = vmatpush3.msra.mxu1 %v4337_v34  ;;  %4110 = vmatprep.mubr.msk.f32.mxu1 %vm4192_vm1, %v4191_v1 }
  0x60   : > { %4118 = vmatprep.subr.mxu1 %v4191_v1  ;;  %4116 = vmatmul.mubr.f32.vlgmr.msra.gmra.mxu0 %v4255_v14 }
  0x61   : > { %4124 = vmatpush3.msra.mxu0 %v2983_v43  ;;  %4125 = vmatprep.mubr.msk.f32.mxu0 %vm4192_vm1, %v4191_v1 }
  0x62   : > { %4111 = vmatmul.mubr.f32.vlgmr.msra.gmra.mxu1 %v4251_v10  ;;  %4133 = vmatprep.subr.mxu0 %v4191_v1 }
  0x63   : > { %4119 = vmatpush3.msra.mxu1 %v2986_v46  ;;  %4120 = vmatprep.mubr.msk.f32.mxu1 %vm4192_vm1, %v4191_v1 }
  0x64   : > { %4128 = vmatprep.subr.mxu1 %v4191_v1  ;;  %4126 = vmatmul.mubr.f32.vlgmr.msra.gmra.mxu0 %v4239_v6 }
  0x65   : > { %4134 = vmatpush3.msra.mxu0 %v2984_v44  ;;  %4135 = vmatprep.mubr.msk.f32.mxu0 %vm4192_vm1, %v4191_v1 }
  0x66   : > { %4121 = vmatmul.mubr.f32.vlgmr.msra.gmra.mxu1 %v4232_v4  ;;  %4143 = vmatprep.subr.mxu0 %v4191_v1 }
  0x67   : > { %4129 = vmatpush3.msra.mxu1 %v4396_v42  ;;  %4130 = vmatprep.mubr.msk.f32.mxu1 %vm4192_vm1, %v4191_v1 }
  0x68   : > { %4138 = vmatprep.subr.mxu1 %v4191_v1  ;;  %4136 = vmatmul.mubr.f32.vlgmr.msra.gmra.mxu0 %v4232_v4 }
  0x69   : > { %4144 = vmatpush3.msra.mxu0 %v4396_v42  ;;  %4145 = vmatprep.mubr.msk.f32.mxu0 %vm4192_vm1, %v4191_v1 }
  0x6a   : > { %4131 = vmatmul.mubr.f32.vlgmr.msra.gmra.mxu1 %v4249_v9  ;;  %4153 = vmatprep.subr.mxu0 %v4191_v1 }
  0x6b   : > { %4139 = vmatpush3.msra.mxu1 %v4396_v42  ;;  %4140 = vmatprep.mubr.msk.f32.mxu1 %vm4192_vm1, %v4191_v1 }
  0x6c   : > { %4148 = vmatprep.subr.mxu1 %v4191_v1  ;;  %4146 = vmatmul.mubr.f32.vlgmr.msra.gmra.mxu0 %v4284_v26 }
  0x6d   : > { %4154 = vmatpush3.msra.mxu0 %v2983_v43  ;;  %4155 = vmatprep.mubr.msk.f32.mxu0 %vm4192_vm1, %v4191_v1 }
  0x6e   : > { %4141 = vmatmul.mubr.f32.vlgmr.msra.gmra.mxu1 %v4232_v4  ;;  %4163 = vmatprep.subr.mxu0 %v4191_v1 }
  0x6f   : > { %4149 = vmatpush3.msra.mxu1 %v2986_v46  ;;  %4150 = vmatprep.mubr.msk.f32.mxu1 %vm4192_vm1, %v4191_v1 }
  0x70   : > { %4158 = vmatprep.subr.mxu1 %v4191_v1  ;;  %4156 = vmatmul.mubr.f32.vlgmr.msra.gmra.mxu0 %v4258_v15 }
  0x71   : > { %4164 = vmatpush3.msra.mxu0 %v2984_v44  ;;  %4165 = vmatprep.mubr.msk.f32.mxu0 %vm4192_vm1, %v4191_v1 }
  0x72   : > { %4151 = vmatmul.mubr.f32.vlgmr.msra.gmra.mxu1 %v4251_v10 }
  0x73   : > { %4159 = vmatpush3.msra.mxu1 %v4396_v42  ;;  %4160 = vmatprep.mubr.msk.f32.mxu1 %vm4192_vm1, %v4191_v1 }
  0x74   : > { %4168 = vmatprep.subr.mxu1 %v4191_v1  ;;  %4166 = vmatmul.mubr.f32.vlgmr.msra.gmra.mxu0 %v4251_v10 }
  0x76   : > { %4161 = vmatmul.mubr.f32.vlgmr.msra.gmra.mxu1 %v4266_v18 }
  0x77   : > { %4169 = vmatpush3.msra.mxu1 %v4396_v42  ;;  %4170 = vmatprep.mubr.msk.f32.mxu1 %vm4192_vm1, %v4191_v1 }
  0x7a   : > { %4171 = vmatmul.mubr.f32.vlgmr.msra.gmra.mxu1 %v4251_v10 }
  0xd7   : > { %v252_v47 = vpop.f32.mrf.mxu0 }
  0xd9   : > { %v3937_v48 = vpop.f32.mrf.mxu0 }
  0xdb   : > { %v402_v49 = vpop.f32.mrf.mxu0 }
  0xdd   : > { %v3947_v50 = vpop.f32.mrf.mxu0  ;;  %v328_v51 = vpop.f32.mrf.mxu1 }
  0xde   : > { %v329_v56 = vadd.f32 %v328_v51, %v252_v47 }
  0xdf   : > { %v3942_v52 = vpop.f32.mrf.mxu1  ;;  %v550_v53 = vpop.f32.mrf.mxu0 }
  0xe0   : > { %v403_v61 = vadd.f32 %v402_v49, %v329_v56 }
  0xe1   : > { %v476_v54 = vpop.f32.mrf.mxu1  ;;  %v3957_v55 = vpop.f32.mrf.mxu0 }
  0xe2   : > { %v477_v2 = vadd.f32 %v476_v54, %v403_v61 }
  0xe3   : > { %v3952_v57 = vpop.f32.mrf.mxu1 }
  0xe4   : > { %v701_v58 = vpop.f32.mrf.mxu0  ;;  %v551_v9 = vadd.f32 %v550_v53, %v477_v2 }
  0xe6   : > { %v622_v59 = vpop.f32.mrf.mxu1  ;;  %v3967_v60 = vpop.f32.mrf.mxu0 }
  0xe7   : > { %v623_v16 = vadd.f32 %v622_v59, %v551_v9 }
  0xe8   : > { %v3962_v62 = vpop.f32.mrf.mxu1  ;;  %v851_v63 = vpop.f32.mrf.mxu0 }
  0xea   : > { %v777_v0 = vpop.f32.mrf.mxu1  ;;  %v3977_v1 = vpop.f32.mrf.mxu0 }
  0xeb   : > { %v778_v3 = vadd.f32 %v777_v0, %v701_v58 }
  0xec   : > { %v3972_v4 = vpop.f32.mrf.mxu1  ;;  %v999_v5 = vpop.f32.mrf.mxu0 }
  0xed   : > { %v852_v6 = vadd.f32 %v851_v63, %v778_v3 }
  0xee   : > { %v925_v7 = vpop.f32.mrf.mxu1  ;;  %v3987_v8 = vpop.f32.mrf.mxu0 }
  0xef   : > { %v926_v10 = vadd.f32 %v925_v7, %v852_v6 }
  0xf0   : > { %v3982_v11 = vpop.f32.mrf.mxu1  ;;  %v1153_v12 = vpop.f32.mrf.mxu0 }
  0xf1   : > { %v1000_v13 = vadd.f32 %v999_v5, %v926_v10 }
  0xf2   : > { %v1071_v14 = vpop.f32.mrf.mxu1  ;;  %v3997_v15 = vpop.f32.mrf.mxu0 }
  0xf3   : > { %v1072_v17 = vadd.f32 %v1071_v14, %v1000_v13 }
  0xf4   : > { %v3992_v18 = vpop.f32.mrf.mxu1  ;;  %v1303_v19 = vpop.f32.mrf.mxu0 }
  0xf5   : > { %v1075_v20 = vmax.f32 %v623_v16, %v1072_v17 }
  0xf6   : > { %v1229_v21 = vpop.f32.mrf.mxu1  ;;  %v4007_v22 = vpop.f32.mrf.mxu0 }
  0xf7   : > { %1077 = vst.msk [vmem:[%s4490_s25] sm:$0xf] %vm1076_vm2, %v1075_v20  ;;  %v1230_v27 = vadd.f32 %v1229_v21, %v1153_v12 }
  0xf8   : > { %v4002_v23 = vpop.f32.mrf.mxu1  ;;  %v1451_v24 = vpop.f32.mrf.mxu0 }
  0xf9   : > { %v1304_v32 = vadd.f32 %v1303_v19, %v1230_v27 }
  0xfa   : > { %v1377_v25 = vpop.f32.mrf.mxu1  ;;  %v4017_v26 = vpop.f32.mrf.mxu0 }
  0xfb   : > { %v1378_v37 = vadd.f32 %v1377_v25, %v1304_v32 }
  0xfc   : > { %v4012_v28 = vpop.f32.mrf.mxu1  ;;  %v1599_v29 = vpop.f32.mrf.mxu0 }
  0xfd   : > { %v1452_v44 = vadd.f32 %v1451_v24, %v1378_v37 }
  0xfe   : > { %v1523_v30 = vpop.f32.mrf.mxu1  ;;  %v4027_v31 = vpop.f32.mrf.mxu0 }
  0xff   : > { %v1524_v51 = vadd.f32 %v1523_v30, %v1452_v44 }
 0x100   : > { %v4022_v33 = vpop.f32.mrf.mxu1  ;;  %v1749_v34 = vpop.f32.mrf.mxu0 }
 0x102   : > { %v1675_v35 = vpop.f32.mrf.mxu1  ;;  %v4037_v36 = vpop.f32.mrf.mxu0 }
 0x103   : > { %v1676_v38 = vadd.f32 %v1675_v35, %v1599_v29 }
 0x104   : > { %v4032_v39 = vpop.f32.mrf.mxu1  ;;  %v1897_v40 = vpop.f32.mrf.mxu0 }
 0x105   : > { %v1750_v41 = vadd.f32 %v1749_v34, %v1676_v38 }
 0x106   : > { %v1823_v42 = vpop.f32.mrf.mxu1  ;;  %v4047_v43 = vpop.f32.mrf.mxu0 }
 0x107   : > { %v1824_v45 = vadd.f32 %v1823_v42, %v1750_v41 }
 0x108   : > { %v4042_v46 = vpop.f32.mrf.mxu1  ;;  %v2050_v47 = vpop.f32.mrf.mxu0 }
 0x109   : > { %v1898_v48 = vadd.f32 %v1897_v40, %v1824_v45 }
 0x10a   : > { %v1969_v49 = vpop.f32.mrf.mxu1  ;;  %v4057_v50 = vpop.f32.mrf.mxu0 }
 0x10b   : > { %v1970_v52 = vadd.f32 %v1969_v49, %v1898_v48 }
 0x10c   : > { %v4052_v53 = vpop.f32.mrf.mxu1  ;;  %v2200_v54 = vpop.f32.mrf.mxu0 }
 0x10d   : > { %v1973_v55 = vmax.f32 %v1524_v51, %v1970_v52 }
 0x10e   : > { %v2126_v56 = vpop.f32.mrf.mxu1  ;;  %v4067_v57 = vpop.f32.mrf.mxu0 }
 0x10f   : > { %1974 = vst.msk [vmem:[%s4490_s25 + $0x4] sm:$0xf] %vm1076_vm2, %v1973_v55  ;;  %v2127_v62 = vadd.f32 %v2126_v56, %v2050_v47 }
 0x110   : > { %v4062_v58 = vpop.f32.mrf.mxu1  ;;  %v2348_v59 = vpop.f32.mrf.mxu0 }
 0x111   : > { %v2201_v3 = vadd.f32 %v2200_v54, %v2127_v62 }
 0x112   : > { %v2274_v60 = vpop.f32.mrf.mxu1  ;;  %v4077_v61 = vpop.f32.mrf.mxu0 }
 0x113   : > { %v2275_v8 = vadd.f32 %v2274_v60, %v2201_v3 }
 0x114   : > { %v4072_v63 = vpop.f32.mrf.mxu1  ;;  %v2496_v0 = vpop.f32.mrf.mxu0 }
 0x115   : > { %v2349_v15 = vadd.f32 %v2348_v59, %v2275_v8 }
 0x116   : > { %v2420_v1 = vpop.f32.mrf.mxu1  ;;  %v4087_v2 = vpop.f32.mrf.mxu0 }
 0x117   : > { %v2421_v22 = vadd.f32 %v2420_v1, %v2349_v15 }
 0x118   : > { %v4082_v4 = vpop.f32.mrf.mxu1  ;;  %v2646_v5 = vpop.f32.mrf.mxu0 }
 0x11a   : > { %v2572_v6 = vpop.f32.mrf.mxu1  ;;  %v4097_v7 = vpop.f32.mrf.mxu0 }
 0x11b   : > { %v2573_v9 = vadd.f32 %v2572_v6, %v2496_v0 }
 0x11c   : > { %v4092_v10 = vpop.f32.mrf.mxu1  ;;  %v2794_v11 = vpop.f32.mrf.mxu0 }
 0x11d   : > { %v2647_v12 = vadd.f32 %v2646_v5, %v2573_v9 }
 0x11e   : > { %v2720_v13 = vpop.f32.mrf.mxu1  ;;  %v4107_v14 = vpop.f32.mrf.mxu0 }
 0x11f   : > { %v2721_v16 = vadd.f32 %v2720_v13, %v2647_v12 }
 0x120   : > { %v4102_v17 = vpop.f32.mrf.mxu1  ;;  %v2947_v18 = vpop.f32.mrf.mxu0 }
 0x121   : > { %v2795_v19 = vadd.f32 %v2794_v11, %v2721_v16 }
 0x122   : > { %v2866_v20 = vpop.f32.mrf.mxu1  ;;  %v4117_v21 = vpop.f32.mrf.mxu0 }
 0x123   : > { %v2867_v23 = vadd.f32 %v2866_v20, %v2795_v19 }
 0x124   : > { %v4112_v24 = vpop.f32.mrf.mxu1  ;;  %v3097_v25 = vpop.f32.mrf.mxu0 }
 0x125   : > { %v2870_v26 = vmax.f32 %v2421_v22, %v2867_v23 }
 0x126   : > { %v3023_v27 = vpop.f32.mrf.mxu1  ;;  %v4127_v28 = vpop.f32.mrf.mxu0 }
 0x127   : > { %2871 = vst.msk [vmem:[%s4490_s25 + $0x8] sm:$0xf] %vm1076_vm2, %v2870_v26  ;;  %v3024_v33 = vadd.f32 %v3023_v27, %v2947_v18 }
 0x128   : > { %v4122_v29 = vpop.f32.mrf.mxu1  ;;  %v3245_v30 = vpop.f32.mrf.mxu0 }
 0x129   : > { %v3098_v38 = vadd.f32 %v3097_v25, %v3024_v33 }
 0x12a   : > { %v3171_v31 = vpop.f32.mrf.mxu1  ;;  %v4137_v32 = vpop.f32.mrf.mxu0 }
 0x12b   : > { %v3172_v43 = vadd.f32 %v3171_v31, %v3098_v38 }
 0x12c   : > { %v4132_v34 = vpop.f32.mrf.mxu1  ;;  %v3393_v35 = vpop.f32.mrf.mxu0 }
 0x12d   : > { %v3246_v50 = vadd.f32 %v3245_v30, %v3172_v43 }
 0x12e   : > { %v3317_v36 = vpop.f32.mrf.mxu1  ;;  %v4147_v37 = vpop.f32.mrf.mxu0 }
 0x12f   : > { %v3318_v55 = vadd.f32 %v3317_v36, %v3246_v50 }
 0x130   : > { %v4142_v39 = vpop.f32.mrf.mxu1  ;;  %v3543_v40 = vpop.f32.mrf.mxu0 }
 0x132   : > { %v3469_v41 = vpop.f32.mrf.mxu1  ;;  %v4157_v42 = vpop.f32.mrf.mxu0 }
 0x133   : > { %v3470_v44 = vadd.f32 %v3469_v41, %v3393_v35 }
 0x134   : > { %v4152_v45 = vpop.f32.mrf.mxu1  ;;  %v3691_v46 = vpop.f32.mrf.mxu0 }
 0x135   : > { %v3544_v47 = vadd.f32 %v3543_v40, %v3470_v44 }
 0x136   : > { %v3617_v48 = vpop.f32.mrf.mxu1  ;;  %v4167_v49 = vpop.f32.mrf.mxu0 }
 0x137   : > { %v3618_v51 = vadd.f32 %v3617_v48, %v3544_v47 }
 0x138   : > { %v4162_v52 = vpop.f32.mrf.mxu1 }
 0x139   : > { %v3692_v53 = vadd.f32 %v3691_v46, %v3618_v51 }
 0x13a   : > { %v3763_v54 = vpop.f32.mrf.mxu1 }
 0x13b   : > { %v3764_v56 = vadd.f32 %v3763_v54, %v3692_v53 }
 0x13c   : > { %v4172_v57 = vpop.f32.mrf.mxu1 }
 0x13d   : > { %v3767_v58 = vmax.f32 %v3318_v55, %v3764_v56 }
 0x13f   : > { %3768 = vst.msk [vmem:[%s4490_s25 + $0xc] sm:$0xf] %vm1076_vm2, %v3767_v58 }
 0x140 PF: > { %s13_s12 = sadd.s32 1, %s4189_s12  }
 0x141   : > { %p10_p4 = scmp.ge.s32.totalorder %s13_s12, 4  }
 0x143   :  { %12 = sbr.rel (!%p10_p4) target bundleno = 1 (0x1), region = 62 }

// kernel: hourglass_forward.13
= control target key start
LH: loop header
LB: loop body
LE: loop exit
PB: predicated region body
PF: predicated region fallthrough
CT: control target
= control target key end

     0   :  { %s2330_s18 = smov 0   ;;  %s2816_s0 = inlined_call_operand.vmem [shape: f32[2,64,8], index: 0, kind: input, shape index: {}]   ;;  %s2817_s1 = inlined_call_operand.vmem [shape: f32[64,1], index: 1, kind: input, shape index: {}]   ;;  %s2818_s2 = inlined_call_operand.vmem [shape: f32[64,1], index: 2, kind: input, shape index: {}]   ;;  %s2819_s3 = inlined_call_operand.vmem [shape: f32[1,8], index: 3, kind: input, shape index: {}]   ;;  %s2820_s4 = inlined_call_operand.vmem [shape: f32[1,8], index: 4, kind: input, shape index: {}]   ;;  %s2821_s5 = inlined_call_operand.vmem [shape: f32[8,4], index: 5, kind: input, shape index: {}]   ;;  %s2822_s6 = inlined_call_operand.vmem [shape: f32[1,4], index: 6, kind: input, shape index: {}]   ;;  %s2823_s7 = inlined_call_operand.vmem [shape: f32[1,4], index: 7, kind: input, shape index: {}]   ;;  %s2824_s8 = inlined_call_operand.vmem [shape: f32[1,4], index: 8, kind: input, shape index: {}]   ;;  %s2825_s9 = inlined_call_operand.vmem [shape: f32[9,4,4], index: 9, kind: input, shape index: {}]   ;;  %s2826_s10 = inlined_call_operand.vmem [shape: f32[1,4], index: 10, kind: input, shape index: {}]   ;;  %s2827_s11 = inlined_call_operand.vmem [shape: f32[1,4], index: 11, kind: input, shape index: {}]   ;;  %s2828_s12 = inlined_call_operand.vmem [shape: f32[1,4], index: 12, kind: input, shape index: {}]   ;;  %s2829_s13 = inlined_call_operand.vmem [shape: f32[4,8], index: 13, kind: input, shape index: {}]   ;;  %s2830_s14 = inlined_call_operand.vmem [shape: f32[1,8], index: 14, kind: input, shape index: {}]   ;;  %s2831_s15 = inlined_call_operand.vmem [shape: f32[2,64,8], index: 15, kind: output, shape index: {}]  }
   0x1 LB: > { %s1968_s19 = sadd.s32 4294967295, %s2246_s18   ;;  %p1972_p0 = scmp.ge.s32.totalorder %s2246_s18, 1  ;;  %s2246_s18 = sphi %s2330_s18, %s25_s18  }
   0x2   : > { %p437_p1 = scmp.lt.s32.totalorder %s2246_s18, 3 }
   0x4   : > { %p438_p2 = pnand %p1972_p0, %p437_p1 }
   0x6   : > { %441 = sbr.rel (%p438_p2) target bundleno = 732 (0x2dc), region = 80 }
   0xb   : > { %v546_v0 = vld [vmem:[%s2821_s5] sm:$0xff]  ;;  %vm568_vm0 = vcmask 1043456   ;;  %p485_p3 = scmp.lt.s32.totalorder %s1968_s19, 1  ;;  %vm675_vm1 = vcmask 31744   ;;  %v2248_v2 = vmov 0   ;;  %v698_v3 = vld [vmem:[%s2817_s1 + $0x10] sm:$0xff] }
   0xc   : > { %v547_v1 = vpack.c.bf16 %v546_v0, %v546_v0  ;;  %2232 = vset.pattern.permute.xlu1 %v2248_v2  ;;  %2231 = vset.pattern.permute.xlu0 %v2248_v2  ;;  %v696_v4 = vld [vmem:[%s2817_s1] sm:$0xff]  ;;  %v2249_v6 = vmov 0.0   ;;  %v699_v9 = vld [vmem:[%s2817_s1 + $0x18] sm:$0xff]  ;;  %v697_v10 = vld [vmem:[%s2817_s1 + $0x8] sm:$0xff]  ;;  %vm555_vm2 = vcmask 64512   ;;  %vm686_vm3 = vcmask 25600  }
   0xd   : > { %s2838_s19 = smov (!%p485_p3, %s1968_s19), 1  ;;  %676 = vst.msk [vmem:[#allocation2] sm:$0xff] %vm675_vm1, %v2249_v6  ;;  %677 = vst.msk [vmem:[#allocation2 + $0x8] sm:$0xff] %vm675_vm1, %v2249_v6  ;;  %v1977_v7 = vld [vmem:[%s2819_s3] ss:$0 sm:$0xff]  ;;  %732 = vperm.xlu1 %2232, %v698_v3   ;;  %722 = vperm.xlu0 %2231, %v696_v4   ;;  %v705_v33 = vld [vmem:[%s2818_s2 + $0x8] sm:$0xff] }
   0xe   : > { %2209 = vmatprep.subr.msk.bf16.mxu0 %vm568_vm0, %v547_v1  ;;  %2210 = vmatprep.subr.msk.bf16.mxu1 %vm568_vm0, %v547_v1  ;;  %v570_v5 = vsel %vm568_vm0, %v547_v1, 0  ;;  %678 = vst.msk [vmem:[#allocation2 + $0x10] sm:$0xff] %vm675_vm1, %v2249_v6  ;;  %679 = vst.msk [vmem:[#allocation2 + $0x18] sm:$0xff] %vm675_vm1, %v2249_v6  ;;  %s2040_s26 = sshll.u32 %s2838_s19, 6  ;;  %v1978_v8 = vld [vmem:[%s2820_s4] ss:$0 sm:$0xff] }
   0xf   : > { %680 = vst.msk [vmem:[#allocation2 + $0x20] sm:$0xff] %vm675_vm1, %v2249_v6  ;;  %681 = vst.msk [vmem:[#allocation2 + $0x28] sm:$0xff] %vm675_vm1, %v2249_v6  ;;  %2098 = vmatpush3.bf16.msra.mxu0 %v570_v5  ;;  %2208 = vmatpush3.bf16.msra.mxu1 %v570_v5  ;;  %s2378_s16 = scalar_lea.vmem %s2816_s0, %s2040_s26  ;;  %v704_v38 = vld [vmem:[%s2818_s2] sm:$0xff]  ;;  %v707_v48 = vld [vmem:[%s2818_s2 + $0x18] sm:$0xff]  ;;  %vm801_vm4 = vcmask 1041408   ;;  %s2787_s17 = scalar_lea.vmem %s2831_s15, %s2040_s26 }
  0x10   : > { %682 = vst.msk [vmem:[#allocation2 + $0x30] sm:$0xff] %vm675_vm1, %v2249_v6  ;;  %683 = vst.msk [vmem:[#allocation2 + $0x38] sm:$0xff] %vm675_vm1, %v2249_v6  ;;  %v496_v11 = vld [vmem:[%s2378_s16] sm:$0xff]  ;;  %v497_v12 = vld [vmem:[%s2378_s16 + $0x8] sm:$0xff] }
  0x11   : > { %684 = vst.msk [vmem:[#allocation2 + $0x40] sm:$0xff] %vm675_vm1, %v2249_v6  ;;  %685 = vst.msk [vmem:[#allocation2 + $0x48] sm:$0xff] %vm675_vm1, %v2249_v6  ;;  %v500_v13 = vld [vmem:[%s2378_s16 + $0x20] sm:$0xff]  ;;  %v511_v14 = vmul.f32 %v1977_v7, %v496_v11  ;;  %v512_v15 = vmul.f32 %v1977_v7, %v497_v12  ;;  %v501_v16 = vld [vmem:[%s2378_s16 + $0x28] sm:$0xff]  ;;  %737 = vperm.xlu1 %2232, %v699_v9   ;;  %727 = vperm.xlu0 %2231, %v697_v10  }
  0x12   : > { %v515_v17 = vmul.f32 %v1977_v7, %v500_v13  ;;  %v2394_v18 = vld [vmem:[%s2378_s16 + $0x10] sm:$0xff]  ;;  %v499_v19 = vld [vmem:[%s2378_s16 + $0x18] sm:$0xff]  ;;  %v516_v20 = vmul.f32 %v1977_v7, %v501_v16  ;;  %v701_v51 = vld [vmem:[%s2817_s1 + $0x28] sm:$0xff]  ;;  %687 = vst.msk [vmem:[#allocation2 + $0x50] sm:$0x3] %vm686_vm3, %v2249_v6 }
  0x13   : > { %2833 = vst [vmem:[#allocation3_spill] sm:$0xff] %v2394_v18  ;;  %v513_v21 = vmul.f32 %v1977_v7, %v2394_v18  ;;  %v514_v22 = vmul.f32 %v1977_v7, %v499_v19  ;;  %v502_v23 = vld [vmem:[%s2378_s16 + $0x30] sm:$0xff]  ;;  %v503_v24 = vld [vmem:[%s2378_s16 + $0x38] sm:$0xff]  ;;  %v526_v25 = vadd.f32 %v1978_v8, %v511_v14  ;;  %v527_v26 = vadd.f32 %v1978_v8, %v512_v15  ;;  %v700_v52 = vld [vmem:[%s2817_s1 + $0x20] sm:$0xff] }
  0x14   : > { %v530_v27 = vadd.f32 %v1978_v8, %v515_v17  ;;  %v517_v28 = vmul.f32 %v1977_v7, %v502_v23  ;;  %v531_v29 = vadd.f32 %v1978_v8, %v516_v20  ;;  %v518_v32 = vmul.f32 %v1977_v7, %v503_v24  ;;  %v706_v49 = vld [vmem:[%s2818_s2 + $0x10] sm:$0xff]  ;;  %v703_v53 = vld [vmem:[%s2817_s1 + $0x38] sm:$0xff]  ;;  %v709_v55 = vld [vmem:[%s2818_s2 + $0x28] sm:$0xff] }
  0x15   : > { %v528_v30 = vadd.f32 %v1978_v8, %v513_v21  ;;  %v529_v31 = vadd.f32 %v1978_v8, %v514_v22  ;;  %v534_v34 = vmax.f32 %v526_v25, 0.0  ;;  %v535_v35 = vmax.f32 %v527_v26, 0.0  ;;  %965 = vperm.xlu1 %2232, %v705_v33   ;;  %960 = vperm.xlu0 %2231, %v704_v38   ;;  %v702_v54 = vld [vmem:[%s2817_s1 + $0x30] sm:$0xff]  ;;  %v708_v56 = vld [vmem:[%s2818_s2 + $0x20] sm:$0xff]  ;;  %v711_v57 = vld [vmem:[%s2818_s2 + $0x38] sm:$0xff] }
  0x16   : > { %v538_v36 = vmax.f32 %v530_v27, 0.0  ;;  %v532_v37 = vadd.f32 %v1978_v8, %v517_v28  ;;  %v539_v39 = vmax.f32 %v531_v29, 0.0  ;;  %v533_v42 = vadd.f32 %v1978_v8, %v518_v32  ;;  %v710_v58 = vld [vmem:[%s2818_s2 + $0x30] sm:$0xff]  ;;  %v1986_v59 = vld [vmem:[%s2825_s9 + $0x4] sm:$0xf] }
  0x17   : > { %v536_v40 = vmax.f32 %v528_v30, 0.0  ;;  %v537_v41 = vmax.f32 %v529_v31, 0.0  ;;  %v542_v43 = vpack.c.bf16 %v535_v35, %v534_v34  ;;  %v788_v60 = vpack.c.bf16 %v1986_v59, %v1986_v59  ;;  %v772_v61 = vld [vmem:[%s2825_s9] sm:$0xf]  ;;  %v1995_v1 = vld [vmem:[%s2825_s9 + $0x8] sm:$0xf] }
  0x18   : > { %v540_v44 = vmax.f32 %v532_v37, 0.0  ;;  %v544_v45 = vpack.c.bf16 %v539_v39, %v538_v36  ;;  %v541_v47 = vmax.f32 %v533_v42, 0.0  ;;  %v773_v63 = vpack.c.bf16 %v772_v61, %v772_v61  ;;  %v2000_v3 = vld [vmem:[%s2825_s9 + $0xc] sm:$0xf]  ;;  %v1979_v5 = vld [vmem:[%s2822_s6] ss:$0 sm:$0xff] }
  0x19   : > { %v543_v46 = vpack.c.bf16 %v537_v41, %v536_v40  ;;  %2099 = vmatprep.mubr.msk.bf16.mxu0 %vm555_vm2, %v542_v43  ;;  %975 = vperm.xlu1 %2232, %v707_v48   ;;  %v803_v62 = vsel %vm801_vm4, %v788_v60, 0  ;;  %v2454_v2 = vpack.c.bf16 %v1995_v1, %v1995_v1  ;;  %v2461_v4 = vpack.c.bf16 %v2000_v3, %v2000_v3  ;;  %v1984_v7 = vld [vmem:[%s2823_s7] ss:$0 sm:$0xff]  ;;  %v2005_v3 = vld [vmem:[%s2825_s9 + $0x10] sm:$0xf] }
  0x1a   : > { %2103 = vmatprep.mubr.msk.bf16.mxu1 %vm555_vm2, %v544_v45  ;;  %v545_v50 = vpack.c.bf16 %v541_v47, %v540_v44  ;;  %970 = vperm.xlu0 %2231, %v706_v49   ;;  %v883_v0 = vsel %vm801_vm4, %v773_v63, 0  ;;  %v1985_v9 = vld [vmem:[%s2824_s8] ss:$0 sm:$0xff] }
  0x1b   : > { %2100 = vmatmul.mubr.msk.bf16.vlgmr.msra.gmra.mxu0 %vm555_vm2, %v543_v46  ;;  %2211 = vmatprep.subr.msk.bf16.mxu1 %vm801_vm4, %v788_v60 }
  0x1c   : > { %2104 = vmatmul.mubr.msk.bf16.vlgmr.msra.gmra.mxu1 %vm555_vm2, %v545_v50  ;;  %2212 = vmatprep.subr.msk.bf16.mxu0 %vm801_vm4, %v773_v63 }
  0x1d   : > { %747 = vperm.xlu1 %2232, %v701_v51   ;;  %2108 = vmatpush3.bf16.msra.mxu1 %v803_v62 }
  0x1e   : > { %742 = vperm.xlu0 %2231, %v700_v52   ;;  %2118 = vmatpush3.bf16.msra.mxu0 %v883_v0 }
  0x1f   : > { %2213 = vmatprep.subr.msk.bf16.mxu1 %vm801_vm4, %v2454_v2  ;;  %2214 = vmatprep.subr.msk.bf16.mxu0 %vm801_vm4, %v2461_v4 }
  0x21   : > { %757 = vperm.xlu1 %2232, %v703_v53   ;;  %v712_v53 = vld [vmem:[#allocation2] sm:$0xff] }
  0x22   : > { %752 = vperm.xlu0 %2231, %v702_v54  }
  0x25   : > { %985 = vperm.xlu1 %2232, %v709_v55  }
  0x26   : > { %980 = vperm.xlu0 %2231, %v708_v56   ;;  %v774_v56 = vld [vmem:[#allocation2 + $0x1] sm:$0xff] }
  0x29   : > { %995 = vperm.xlu1 %2232, %v711_v57  }
  0x2a   : > { %990 = vperm.xlu0 %2231, %v710_v58  }
  0x88   : > { %v2474_v12 = vpop.permute.xlu1 %732  ;;  %v2476_v13 = vpop.permute.xlu0 %722 }
  0x89   : > { %v760_v59 = vmul.f32 %v2476_v13, %v712_v53 }
  0x8c   : > { %v2479_v39 = vpop.permute.xlu1 %737  ;;  %v2481_v40 = vpop.permute.xlu0 %727 }
  0x90   : > { %v2487_v54 = vpop.permute.xlu1 %965  ;;  %v2489_v55 = vpop.permute.xlu0 %960 }
  0x94   : > { %v2500_v63 = vpop.permute.xlu1 %975 }
  0x95   : > { %v2502_v0 = vpop.permute.xlu0 %970 }
  0xdb   : > { %v2101_v6 = vpop.f32.mrf.mxu0 }
  0xdc   : > { %v615_v8 = vadd.f32 %v2101_v6, %v1979_v5  ;;  %v2105_v10 = vpop.f32.mrf.mxu1 }
  0xdd   : > { %v606_v11 = vpop.f32.mrf.mxu0  ;;  %v631_v15 = vadd.f32 %v2105_v10, %v1979_v5 }
  0xde   : > { %v646_v14 = vmul.f32 %v1984_v7, %v615_v8  ;;  %v607_v16 = vadd.f32 %v1979_v5, %v606_v11  ;;  %v622_v17 = vpop.f32.mrf.mxu1  ;;  %v2522_v11 = vpop.permute.xlu1 %747 }
  0xdf   : > { %v2102_v19 = vpop.f32.mrf.mxu0  ;;  %v650_v21 = vmul.f32 %v1984_v7, %v631_v15  ;;  %v623_v23 = vadd.f32 %v1979_v5, %v622_v17  ;;  %v1226_v17 = vpack.c.bf16 %v2005_v3, %v2005_v3 }
  0xe0   : > { %v661_v20 = vadd.f32 %v1985_v9, %v646_v14  ;;  %v644_v22 = vmul.f32 %v1984_v7, %v607_v16  ;;  %v618_v24 = vadd.f32 %v2102_v19, %v1979_v5  ;;  %v2106_v25 = vpop.f32.mrf.mxu1  ;;  %v2524_v14 = vpop.permute.xlu0 %742  ;;  %v1026_v16 = vsel %vm801_vm4, %v2454_v2, 0 }
  0xe1   : > { %v609_v26 = vpop.f32.mrf.mxu0  ;;  %v665_v28 = vadd.f32 %v1985_v9, %v650_v21  ;;  %v648_v30 = vmul.f32 %v1984_v7, %v623_v23  ;;  %v634_v32 = vadd.f32 %v2106_v25, %v1979_v5  ;;  %v2010_v23 = vld [vmem:[%s2825_s9 + $0x14] sm:$0xf] }
  0xe2   : > { %v669_v27 = vmax.f32 %v661_v20, 0.0  ;;  %v659_v29 = vadd.f32 %v1985_v9, %v644_v22  ;;  %v647_v31 = vmul.f32 %v1984_v7, %v618_v24  ;;  %v610_v33 = vadd.f32 %v1979_v5, %v609_v26  ;;  %v625_v34 = vpop.f32.mrf.mxu1 }
  0xe3   : > { %v673_v35 = vmax.f32 %v665_v28, 0.0  ;;  %v663_v37 = vadd.f32 %v1985_v9, %v648_v30  ;;  %v626_v38 = vadd.f32 %v1979_v5, %v625_v34  ;;  %v651_v42 = vmul.f32 %v1984_v7, %v634_v32 }
  0xe4   : > { %690 = vst.msk [vmem:[#allocation2 + $0x19] sm:$0xff] %vm675_vm1, %v669_v27  ;;  %v667_v36 = vmax.f32 %v659_v29, 0.0  ;;  %v662_v41 = vadd.f32 %v1985_v9, %v647_v31  ;;  %v645_v43 = vmul.f32 %v1984_v7, %v610_v33  ;;  %v1137_v27 = vsel %vm801_vm4, %v2461_v4, 0  ;;  %v2571_v4 = vpop.permute.xlu0 %752 }
  0xe5   : > { %694 = vst.msk [vmem:[#allocation2 + $0x39] sm:$0xff] %vm675_vm1, %v673_v35  ;;  %v671_v44 = vmax.f32 %v663_v37, 0.0  ;;  %v649_v45 = vmul.f32 %v1984_v7, %v626_v38  ;;  %v666_v47 = vadd.f32 %v1985_v9, %v651_v42  ;;  %v1337_v28 = vpack.c.bf16 %v2010_v23, %v2010_v23 }
  0xe6   : > { %688 = vst.msk [vmem:[#allocation2 + $0x9] sm:$0xff] %vm675_vm1, %v667_v36  ;;  %v670_v46 = vmax.f32 %v662_v41, 0.0  ;;  %v660_v48 = vadd.f32 %v1985_v9, %v645_v43  ;;  %v2569_v36 = vpop.permute.xlu1 %757 }
  0xe7   : > { %692 = vst.msk [vmem:[#allocation2 + $0x29] sm:$0xff] %vm675_vm1, %v671_v44  ;;  %v664_v49 = vadd.f32 %v1985_v9, %v649_v45  ;;  %v674_v50 = vmax.f32 %v666_v47, 0.0 }
  0xe8   : > { %691 = vst.msk [vmem:[#allocation2 + $0x21] sm:$0xff] %vm675_vm1, %v670_v46  ;;  %v668_v51 = vmax.f32 %v660_v48, 0.0 }
  0xe9   : > { %v672_v52 = vmax.f32 %v664_v49, 0.0  ;;  %695 = vst.msk [vmem:[#allocation2 + $0x41] sm:$0xff] %vm675_vm1, %v674_v50 }
  0xea   : > { %689 = vst.msk [vmem:[#allocation2 + $0x11] sm:$0xff] %vm675_vm1, %v668_v51  ;;  %v2606_v53 = vpop.permute.xlu1 %985 }
  0xeb   : > { %693 = vst.msk [vmem:[#allocation2 + $0x31] sm:$0xff] %vm675_vm1, %v672_v52  ;;  %v2526_v15 = vld [vmem:[#allocation2 + $0x19] sm:$0xff] }
  0xec   : > { %v2565_v34 = vld [vmem:[#allocation2 + $0x39] sm:$0xff] }
  0xed   : > { %v2494_v57 = vld [vmem:[#allocation2 + $0x9] sm:$0xff] }
  0xee   : > { %v713_v58 = vld [vmem:[#allocation2 + $0x8] sm:$0xff]  ;;  %v782_v60 = vpack.c.bf16 %v2494_v57, %v774_v56 }
  0xef   : > { %v761_v61 = vmul.f32 %v2481_v40, %v713_v58  ;;  %v2505_v1 = vld [vmem:[#allocation2 + $0x20] sm:$0xff]  ;;  %v2514_v7 = vld [vmem:[#allocation2 + $0x28] sm:$0xff]  ;;  %v1109_v48 = vmul.f32 %v2476_v13, %v713_v58 }
  0xf0   : > { %2109 = vmatprep.mubr.msk.bf16.mxu1 %vm675_vm1, %v782_v60  ;;  %v2516_v8 = vld [vmem:[#allocation2 + $0x21] sm:$0xff]  ;;  %v2518_v9 = vld [vmem:[#allocation2 + $0x29] sm:$0xff]  ;;  %v764_v21 = vmul.f32 %v2524_v14, %v2505_v1  ;;  %v765_v22 = vmul.f32 %v2522_v11, %v2514_v7  ;;  %v2612_v60 = vpop.permute.xlu0 %980 }
  0xf1   : > { %v768_v62 = vpack.c.bf16 %v761_v61, %v760_v59  ;;  %v2510_v5 = vld [vmem:[#allocation2 + $0x11] sm:$0xff]  ;;  %v2545_v2 = vpack.c.bf16 %v2518_v9, %v2516_v8  ;;  %v950_v32 = vld [vmem:[#allocation2 + $0x2] sm:$0xff]  ;;  %v2596_v50 = vld [vmem:[#allocation2 + $0x1a] sm:$0xff] }
  0xf2   : > { %v2512_v6 = vld [vmem:[#allocation2 + $0x10] sm:$0xff]  ;;  %v2520_v10 = vld [vmem:[#allocation2 + $0x18] sm:$0xff]  ;;  %v2532_v19 = vpack.c.bf16 %v2526_v15, %v2510_v5  ;;  %v770_v31 = vpack.c.bf16 %v765_v22, %v764_v21  ;;  %v998_v41 = vmul.f32 %v2489_v55, %v950_v32  ;;  %v2582_v43 = vld [vmem:[#allocation2 + $0x22] sm:$0xff]  ;;  %v1001_v3 = vmul.f32 %v2500_v63, %v2596_v50 }
  0xf3   : > { %2119 = vmatprep.mubr.msk.bf16.mxu0 %vm675_vm1, %v768_v62  ;;  %v762_v20 = vmul.f32 %v2474_v12, %v2512_v6  ;;  %v763_v24 = vmul.f32 %v2479_v39, %v2520_v10  ;;  %v2551_v25 = vld [vmem:[#allocation2 + $0xa] sm:$0xff]  ;;  %v2557_v29 = vld [vmem:[#allocation2 + $0x38] sm:$0xff]  ;;  %v1110_v45 = vmul.f32 %v2481_v40, %v2512_v6  ;;  %v2600_v51 = vmul.f32 %v2502_v0, %v2582_v43 }
  0xf4   : > { %2110 = vmatmul.mubr.msk.bf16.vlgmr.msra.gmra.mxu1 %vm675_vm1, %v2532_v19  ;;  %v2559_v30 = vld [vmem:[#allocation2 + $0x30] sm:$0xff]  ;;  %v999_v35 = vmul.f32 %v2487_v54, %v2551_v25  ;;  %v767_v37 = vmul.f32 %v2569_v36, %v2557_v29  ;;  %v2015_v61 = vld [vmem:[%s2825_s9 + $0x18] sm:$0xf]  ;;  %v1240_v22 = vsel %vm801_vm4, %v1226_v17, 0  ;;  %v1112_v32 = vmul.f32 %v2479_v39, %v2505_v1 }
  0xf5   : > { %2128 = vmatpush3.bf16.msra.mxu1 %v1026_v16  ;;  %2113 = vmatprep.mubr.msk.bf16.mxu1 %vm675_vm1, %v2545_v2  ;;  %v769_v26 = vpack.c.bf16 %v763_v24, %v762_v20  ;;  %v2563_v33 = vld [vmem:[#allocation2 + $0x31] sm:$0xff]  ;;  %v766_v38 = vmul.f32 %v2571_v4, %v2559_v30  ;;  %v1117_v56 = vpack.c.bf16 %v1110_v45, %v1109_v48 }
  0xf6   : > { %2215 = vmatprep.subr.msk.bf16.mxu1 %vm801_vm4, %v1226_v17  ;;  %v2580_v42 = vld [vmem:[#allocation2 + $0x2a] sm:$0xff]  ;;  %v2586_v44 = vpack.c.bf16 %v2565_v34, %v2563_v33  ;;  %v1006_v46 = vpack.c.bf16 %v999_v35, %v998_v41  ;;  %v2590_v47 = vld [vmem:[#allocation2 + $0x12] sm:$0xff]  ;;  %v1002_v16 = vmul.f32 %v2612_v60, %v2582_v43  ;;  %v1111_v20 = vmul.f32 %v2474_v12, %v2520_v10  ;;  %v2640_v17 = vld [vmem:[#allocation2 + $0x3a] sm:$0xff] }
  0xf7   : > { %2120 = vmatmul.mubr.msk.bf16.vlgmr.msra.gmra.mxu0 %vm675_vm1, %v769_v26  ;;  %v771_v49 = vpack.c.bf16 %v767_v37, %v766_v38  ;;  %v2604_v52 = vmul.f32 %v2500_v63, %v2580_v42  ;;  %v1000_v59 = vmul.f32 %v2502_v0, %v2590_v47  ;;  %v1003_v58 = vmul.f32 %v2606_v53, %v2580_v42  ;;  %v2020_v26 = vld [vmem:[%s2825_s9 + $0x1c] sm:$0xf]  ;;  %v2642_v37 = vpop.permute.xlu0 %990 }
  0xf8   : > { %2123 = vmatprep.mubr.msk.bf16.mxu0 %vm675_vm1, %v770_v31  ;;  %2138 = vmatpush3.bf16.msra.mxu0 %v1137_v27  ;;  %v1114_v23 = vmul.f32 %v2522_v11, %v2559_v30  ;;  %v1448_v24 = vpack.c.bf16 %v2015_v61, %v2015_v61  ;;  %v2633_v27 = vld [vmem:[#allocation2 + $0x32] sm:$0xff]  ;;  %v1113_v35 = vmul.f32 %v2524_v14, %v2514_v7  ;;  %v1351_v41 = vsel %vm801_vm4, %v1337_v28, 0 }
  0xf9   : > { %2216 = vmatprep.subr.msk.bf16.mxu0 %vm801_vm4, %v1337_v28  ;;  %v1657_v62 = vpack.c.bf16 %v2604_v52, %v2600_v51  ;;  %v1007_v21 = vpack.c.bf16 %v1001_v3, %v1000_v59  ;;  %v1008_v31 = vpack.c.bf16 %v1003_v58, %v1002_v16  ;;  %v1118_v38 = vpack.c.bf16 %v1112_v32, %v1111_v20 }
  0xfa   : > { %v1551_v45 = vpack.c.bf16 %v2020_v26, %v2020_v26  ;;  %v1119_v48 = vpack.c.bf16 %v1114_v23, %v1113_v35  ;;  %v1115_v28 = vmul.f32 %v2571_v4, %v2557_v29  ;;  %v1323_v61 = vmul.f32 %v2489_v55, %v2551_v25  ;;  %v2025_v25 = vld [vmem:[%s2825_s9 + $0x20] sm:$0xf] }
  0xfb   : > { %v1324_v3 = vmul.f32 %v2487_v54, %v2590_v47  ;;  %v1220_v20 = vpack.c.bf16 %v2510_v5, %v2494_v57  ;;  %v1462_v23 = vsel %vm801_vm4, %v1448_v24, 0  ;;  %v1325_v26 = vmul.f32 %v2502_v0, %v2596_v50 }
  0xfc   : > { %2114 = vmatmul.mubr.msk.bf16.gmra.mxu1 %vm675_vm1, %v2586_v44  ;;  %v1326_v57 = vmul.f32 %v2500_v63, %v2582_v43  ;;  %v1328_v5 = vmul.f32 %v2633_v27, %v2606_v53  ;;  %v1221_v32 = vpack.c.bf16 %v2516_v8, %v2526_v15  ;;  %v1662_v35 = vpack.c.bf16 %v2025_v25, %v2025_v25 }
  0xfd   : > { %2129 = vmatprep.mubr.msk.bf16.mxu1 %vm675_vm1, %v1006_v46  ;;  %v1004_v46 = vmul.f32 %v2633_v27, %v2642_v37  ;;  %v1565_v63 = vsel %vm801_vm4, %v1551_v45, 0  ;;  %v1434_v8 = vmul.f32 %v2476_v13, %v2512_v6  ;;  %v1436_v13 = vmul.f32 %v2474_v12, %v2505_v1 }
  0xfe   : > { %v1332_v0 = vpack.c.bf16 %v1326_v57, %v1325_v26  ;;  %v1438_v6 = vmul.f32 %v2524_v14, %v2559_v30  ;;  %v1648_v1 = vmul.f32 %v2489_v55, %v2590_v47  ;;  %v1544_v14 = vld [vmem:[#allocation2 + $0x49] sm:$0xff]  ;;  %v1653_v55 = vmul.f32 %v2640_v17, %v2606_v53  ;;  %v1808_v47 = vld [vmem:[%s2829_s13] sm:$0xf] }
  0xff   : > { %2124 = vmatmul.mubr.msk.bf16.gmra.mxu0 %vm675_vm1, %v771_v49  ;;  %v2649_v49 = vpop.permute.xlu1 %995 }
 0x100   : > { %2139 = vmatprep.mubr.msk.bf16.mxu0 %vm675_vm1, %v1117_v56  ;;  %v1108_v56 = vld [vmem:[#allocation2 + $0x40] sm:$0xff]  ;;  %v1005_v59 = vmul.f32 %v2640_v17, %v2649_v49 }
 0x101   : > { %v1116_v16 = vmul.f32 %v1108_v56, %v2569_v36 }
 0x102   : > { %v1009_v58 = vpack.c.bf16 %v1005_v59, %v1004_v46  ;;  %v1433_v59 = vld [vmem:[#allocation2 + $0x48] sm:$0xff] }
 0x103   : > { %v1441_v12 = vmul.f32 %v1433_v59, %v2569_v36 }
 0x104   : > { %2130 = vmatmul.mubr.msk.bf16.vlgmr.msra.gmra.mxu1 %vm675_vm1, %v1007_v21  ;;  %v1120_v21 = vpack.c.bf16 %v1116_v16, %v1115_v28 }
 0x105   : > { %2148 = vmatpush3.bf16.msra.mxu1 %v1240_v22  ;;  %2133 = vmatprep.mubr.msk.bf16.mxu1 %vm675_vm1, %v1008_v31  ;;  %v1331_v22 = vpack.c.bf16 %v1324_v3, %v1323_v61  ;;  %v1327_v31 = vmul.f32 %v2612_v60, %v2580_v42  ;;  %v1219_v42 = vld [vmem:[#allocation2 + $0x41] sm:$0xff] }
 0x106   : > { %2217 = vmatprep.subr.msk.bf16.mxu1 %vm801_vm4, %v1448_v24  ;;  %v1322_v24 = vld [vmem:[#allocation2 + $0x42] sm:$0xff] }
 0x107   : > { %2140 = vmatmul.mubr.msk.bf16.vlgmr.msra.gmra.mxu0 %vm675_vm1, %v1118_v38  ;;  %v1222_v38 = vpack.c.bf16 %v2563_v33, %v2518_v9  ;;  %v1333_v43 = vpack.c.bf16 %v1328_v5, %v1327_v31  ;;  %v1435_v9 = vmul.f32 %v2481_v40, %v2520_v10  ;;  %v1330_v15 = vmul.f32 %v1322_v24, %v2649_v49 }
 0x108   : > { %2143 = vmatprep.mubr.msk.bf16.mxu0 %vm675_vm1, %v1119_v48  ;;  %2158 = vmatpush3.bf16.msra.mxu0 %v1351_v41  ;;  %v1329_v33 = vmul.f32 %v2640_v17, %v2642_v37  ;;  %v1223_v41 = vpack.c.bf16 %v1219_v42, %v2565_v34  ;;  %v1437_v40 = vmul.f32 %v2479_v39, %v2514_v7  ;;  %v1676_v48 = vsel %vm801_vm4, %v1662_v35, 0 }
 0x109   : > { %2218 = vmatprep.subr.msk.bf16.mxu0 %vm801_vm4, %v1551_v45  ;;  %v1442_v45 = vpack.c.bf16 %v1435_v9, %v1434_v8  ;;  %v1439_v10 = vmul.f32 %v2522_v11, %v2557_v29  ;;  %v1440_v39 = vmul.f32 %v1108_v56, %v2571_v4  ;;  %v1649_v7 = vmul.f32 %v2487_v54, %v2596_v50  ;;  %v1647_v54 = vld [vmem:[#allocation2 + $0x4a] sm:$0xff] }
 0x10a   : > { %v1334_v46 = vpack.c.bf16 %v1330_v15, %v1329_v33  ;;  %v1443_v34 = vpack.c.bf16 %v1437_v40, %v1436_v13  ;;  %v1548_v29 = vpack.c.bf16 %v1544_v14, %v1219_v42  ;;  %v1654_v36 = vmul.f32 %v1322_v24, %v2642_v37 }
 0x10b   : > { %v1444_v28 = vpack.c.bf16 %v1439_v10, %v1438_v6  ;;  %v1445_v11 = vpack.c.bf16 %v1441_v12, %v1440_v39  ;;  %v1655_v4 = vmul.f32 %v1647_v54, %v2649_v49  ;;  %v1809_v50 = vpack.c.bf16 %v1808_v47, %v1808_v47 }
 0x10c   : > { %2134 = vmatmul.mubr.msk.bf16.gmra.mxu1 %vm675_vm1, %v1009_v58 }
 0x10d   : > { %2149 = vmatprep.mubr.msk.bf16.mxu1 %vm675_vm1, %v1220_v20  ;;  %v1830_v51 = vsel %vm801_vm4, %v1809_v50, 0 }
 0x10f   : > { %2144 = vmatmul.mubr.msk.bf16.gmra.mxu0 %vm675_vm1, %v1120_v21 }
 0x110   : > { %2159 = vmatprep.mubr.msk.bf16.mxu0 %vm675_vm1, %v1331_v22 }
 0x114   : > { %2150 = vmatmul.mubr.msk.bf16.vlgmr.msra.gmra.mxu1 %vm675_vm1, %v1221_v32 }
 0x115   : > { %2168 = vmatpush3.bf16.msra.mxu1 %v1462_v23  ;;  %2153 = vmatprep.mubr.msk.bf16.mxu1 %vm675_vm1, %v1222_v38 }
 0x116   : > { %2219 = vmatprep.subr.msk.bf16.mxu1 %vm801_vm4, %v1662_v35 }
 0x117   : > { %2160 = vmatmul.mubr.msk.bf16.vlgmr.msra.gmra.mxu0 %vm675_vm1, %v1332_v0 }
 0x118   : > { %2163 = vmatprep.mubr.msk.bf16.mxu0 %vm675_vm1, %v1333_v43  ;;  %2178 = vmatpush3.bf16.msra.mxu0 %v1565_v63 }
 0x119   : > { %2220 = vmatprep.subr.msk.bf16.mxu0 %vm801_vm4, %v1809_v50 }
 0x11c   : > { %2154 = vmatmul.mubr.msk.bf16.gmra.mxu1 %vm675_vm1, %v1223_v41 }
 0x11d   : > { %2169 = vmatprep.mubr.msk.bf16.mxu1 %vm675_vm1, %v1442_v45 }
 0x11f   : > { %2164 = vmatmul.mubr.msk.bf16.gmra.mxu0 %vm675_vm1, %v1334_v46 }
 0x120   : > { %2179 = vmatprep.mubr.msk.bf16.mxu0 %vm675_vm1, %v2532_v19  ;;  %v1656_v19 = vpack.c.bf16 %v1649_v7, %v1648_v1 }
 0x124   : > { %2170 = vmatmul.mubr.msk.bf16.vlgmr.msra.gmra.mxu1 %vm675_vm1, %v1443_v34 }
 0x125   : > { %2188 = vmatpush3.bf16.msra.mxu1 %v1676_v48  ;;  %2173 = vmatprep.mubr.msk.bf16.mxu1 %vm675_vm1, %v1444_v28 }
 0x127   : > { %2180 = vmatmul.mubr.msk.bf16.vlgmr.msra.gmra.mxu0 %vm675_vm1, %v2545_v2  ;;  %v1652_v2 = vmul.f32 %v2633_v27, %v2612_v60 }
 0x128   : > { %2183 = vmatprep.mubr.msk.bf16.mxu0 %vm675_vm1, %v2586_v44  ;;  %v1659_v44 = vpack.c.bf16 %v1655_v4, %v1654_v36  ;;  %2198 = vmatpush3.bf16.msra.mxu0 %v1830_v51 }
 0x129   : > { %v1658_v30 = vpack.c.bf16 %v1653_v55, %v1652_v2 }
 0x12c   : > { %2174 = vmatmul.mubr.msk.bf16.gmra.mxu1 %vm675_vm1, %v1445_v11 }
 0x12d   : > { %2189 = vmatprep.mubr.msk.bf16.mxu1 %vm675_vm1, %v1656_v19 }
 0x12f   : > { %2184 = vmatmul.mubr.msk.bf16.gmra.mxu0 %vm675_vm1, %v1548_v29 }
 0x134   : > { %2190 = vmatmul.mubr.msk.bf16.vlgmr.msra.gmra.mxu1 %vm675_vm1, %v1657_v62 }
 0x135   : > { %2193 = vmatprep.mubr.msk.bf16.mxu1 %vm675_vm1, %v1658_v30 }
 0x13c   : > { %2194 = vmatmul.mubr.msk.bf16.gmra.mxu1 %vm675_vm1, %v1659_v44 }
 0x1b4   : > { %v2111_v52 = vpop.f32.mrf.mxu1 }
 0x1b6   : > { %v839_v53 = vpop.f32.mrf.mxu1 }
 0x1b7   : > { %v2121_v60 = vpop.f32.mrf.mxu0 }
 0x1b8   : > { %v2112_v62 = vpop.f32.mrf.mxu1  ;;  %v928_v28 = vadd.f32 %v2121_v60, %v2111_v52 }
 0x1b9   : > { %v919_v27 = vpop.f32.mrf.mxu0 }
 0x1ba   : > { %v842_v17 = vpop.f32.mrf.mxu1  ;;  %v920_v1 = vadd.f32 %v919_v27, %v839_v53 }
 0x1bb   : > { %v2122_v37 = vpop.f32.mrf.mxu0 }
 0x1bc   : > { %v2115_v49 = vpop.f32.mrf.mxu1  ;;  %v931_v19 = vadd.f32 %v2122_v37, %v2112_v62 }
 0x1bd   : > { %v922_v56 = vpop.f32.mrf.mxu0 }
 0x1be   : > { %v855_v58 = vpop.f32.mrf.mxu1  ;;  %v923_v30 = vadd.f32 %v922_v56, %v842_v17 }
 0x1bf   : > { %v2125_v61 = vpop.f32.mrf.mxu0 }
 0x1c0   : > { %v2116_v3 = vpop.f32.mrf.mxu1  ;;  %v944_v60 = vadd.f32 %v2125_v61, %v2115_v49 }
 0x1c1   : > { %v935_v16 = vpop.f32.mrf.mxu0 }
 0x1c2   : > { %v2745_v20 = vpop.f32.mrf.mxu1  ;;  %v936_v27 = vadd.f32 %v935_v16, %v855_v58 }
 0x1c3   : > { %v2126_v21 = vpop.f32.mrf.mxu0 }
 0x1c4   : > { %v2131_v22 = vpop.f32.mrf.mxu1  ;;  %v947_v62 = vadd.f32 %v2126_v21, %v2116_v3 }
 0x1c5   : > { %v2747_v25 = vpop.f32.mrf.mxu0  ;;  %v1095_v7 = vadd.f32 %v2131_v22, %v928_v28 }
 0x1c6   : > { %v1062_v23 = vpop.f32.mrf.mxu1  ;;  %v939_v49 = vadd.f32 %v2747_v25, %v2745_v20  ;;  %v2030_v20 = vld [vmem:[%s2826_s10] ss:$0 sm:$0xff] }
 0x1c7   : > { %v2141_v26 = vpop.f32.mrf.mxu0  ;;  %v1093_v29 = vadd.f32 %v1062_v23, %v920_v1 }
 0x1c8   : > { %v2132_v57 = vpop.f32.mrf.mxu1  ;;  %v1206_v54 = vadd.f32 %v2141_v26, %v1095_v7 }
 0x1c9   : > { %v1173_v5 = vpop.f32.mrf.mxu0  ;;  %v1096_v36 = vadd.f32 %v2132_v57, %v931_v19 }
 0x1ca   : > { %v1065_v31 = vpop.f32.mrf.mxu1  ;;  %v1204_v47 = vadd.f32 %v1173_v5, %v1093_v29 }
 0x1cb   : > { %v2142_v32 = vpop.f32.mrf.mxu0  ;;  %v1094_v50 = vadd.f32 %v1065_v31, %v923_v30 }
 0x1cc   : > { %v2135_v35 = vpop.f32.mrf.mxu1  ;;  %v1207_v22 = vadd.f32 %v2142_v32, %v1096_v36 }
 0x1cd   : > { %v1176_v38 = vpop.f32.mrf.mxu0  ;;  %v1099_v37 = vadd.f32 %v2135_v35, %v944_v60 }
 0x1ce   : > { %v1078_v0 = vpop.f32.mrf.mxu1  ;;  %v1205_v1 = vadd.f32 %v1176_v38, %v1094_v50 }
 0x1cf   : > { %v2145_v63 = vpop.f32.mrf.mxu0 }
 0x1d0   : > { %v2136_v43 = vpop.f32.mrf.mxu1  ;;  %v1210_v58 = vadd.f32 %v2145_v63, %v1099_v37 }
 0x1d1   : > { %v1189_v24 = vpop.f32.mrf.mxu0  ;;  %v1100_v26 = vadd.f32 %v2136_v43, %v947_v62 }
 0x1d2   : > { %v1081_v42 = vpop.f32.mrf.mxu1 }
 0x1d3   : > { %v2146_v8 = vpop.f32.mrf.mxu0  ;;  %v1098_v21 = vadd.f32 %v1081_v42, %v939_v49 }
 0x1d4   : > { %v2151_v9 = vpop.f32.mrf.mxu1  ;;  %v1211_v35 = vadd.f32 %v2146_v8, %v1100_v26 }
 0x1d5   : > { %v2749_v15 = vpop.f32.mrf.mxu0  ;;  %v1309_v51 = vadd.f32 %v2151_v9, %v1206_v54 }
 0x1d6   : > { %v1276_v33 = vpop.f32.mrf.mxu1  ;;  %v1209_v25 = vadd.f32 %v2749_v15, %v1098_v21  ;;  %v2031_v15 = vld [vmem:[%s2827_s11] ss:$0 sm:$0xff] }
 0x1d7   : > { %v2161_v41 = vpop.f32.mrf.mxu0  ;;  %v1307_v28 = vadd.f32 %v1276_v33, %v1204_v47 }
 0x1d8   : > { %v2152_v45 = vpop.f32.mrf.mxu1  ;;  %v1420_v17 = vadd.f32 %v2161_v41, %v1309_v51 }
 0x1d9   : > { %v1387_v46 = vpop.f32.mrf.mxu0  ;;  %v1310_v56 = vadd.f32 %v2152_v45, %v1207_v22  ;;  %v2032_v22 = vld [vmem:[%s2828_s12] ss:$0 sm:$0xff] }
 0x1da   : > { %v1279_v13 = vpop.f32.mrf.mxu1  ;;  %v1418_v7 = vadd.f32 %v1387_v46, %v1307_v28 }
 0x1db   : > { %v2162_v40 = vpop.f32.mrf.mxu0  ;;  %v1308_v5 = vadd.f32 %v1279_v13, %v1205_v1 }
 0x1dc   : > { %v2155_v6 = vpop.f32.mrf.mxu1  ;;  %v1421_v32 = vadd.f32 %v2162_v40, %v1310_v56 }
 0x1dd   : > { %v1390_v10 = vpop.f32.mrf.mxu0  ;;  %v1313_v38 = vadd.f32 %v2155_v6, %v1210_v58 }
 0x1de   : > { %v1292_v34 = vpop.f32.mrf.mxu1  ;;  %v1419_v33 = vadd.f32 %v1390_v10, %v1308_v5 }
 0x1df   : > { %v2751_v48 = vpop.f32.mrf.mxu0 }
 0x1e0   : > { %v2156_v59 = vpop.f32.mrf.mxu1  ;;  %v1424_v63 = vadd.f32 %v2751_v48, %v1313_v38 }
 0x1e1   : > { %v1403_v12 = vpop.f32.mrf.mxu0  ;;  %v1314_v13 = vadd.f32 %v2156_v59, %v1211_v35 }
 0x1e2   : > { %v2753_v39 = vpop.f32.mrf.mxu1 }
 0x1e3   : > { %v2755_v11 = vpop.f32.mrf.mxu0  ;;  %v1312_v10 = vadd.f32 %v2753_v39, %v1209_v25 }
 0x1e4   : > { %v2171_v14 = vpop.f32.mrf.mxu1 }
 0x1e5   : > { %v2757_v2 = vpop.f32.mrf.mxu0  ;;  %v1531_v31 = vadd.f32 %v2171_v14, %v1420_v17 }
 0x1e6   : > { %2834 = vst [vmem:[#allocation4_spill] sm:$0xff] %v2757_v2  ;;  %v1498_v55 = vpop.f32.mrf.mxu1  ;;  %v1097_v2 = vadd.f32 %v1078_v0, %v936_v27 }
 0x1e7   : > { %v2181_v4 = vpop.f32.mrf.mxu0  ;;  %v1529_v3 = vadd.f32 %v1498_v55, %v1418_v7 }
 0x1e8   : > { %v2172_v44 = vpop.f32.mrf.mxu1  ;;  %v1208_v16 = vadd.f32 %v1189_v24, %v1097_v2  ;;  %v1634_v43 = vadd.f32 %v2181_v4, %v1531_v31 }
 0x1e9   : > { %v1601_v52 = vpop.f32.mrf.mxu0  ;;  %v1532_v45 = vadd.f32 %v2172_v44, %v1421_v32 }
 0x1ea   : > { %v1501_v53 = vpop.f32.mrf.mxu1  ;;  %v1311_v41 = vadd.f32 %v1292_v34, %v1208_v16  ;;  %v1632_v19 = vadd.f32 %v1601_v52, %v1529_v3  ;;  %v1425_v34 = vadd.f32 %v2755_v11, %v1314_v13 }
 0x1eb   : > { %v2182_v18 = vpop.f32.mrf.mxu0  ;;  %v1530_v29 = vadd.f32 %v1501_v53, %v1419_v33 }
 0x1ec   : > { %v2175_v23 = vpop.f32.mrf.mxu1  ;;  %v1422_v42 = vadd.f32 %v1403_v12, %v1311_v41  ;;  %v1635_v8 = vadd.f32 %v2182_v18, %v1532_v45 }
 0x1ed   : > { %v1604_v9 = vpop.f32.mrf.mxu0  ;;  %v1535_v59 = vadd.f32 %v2175_v23, %v1424_v63  ;;  %v2835_v39 = vld [vmem:[#allocation4_spill] sm:$0xff] }
 0x1ee   : > { %v1514_v57 = vpop.f32.mrf.mxu1  ;;  %v1633_v54 = vadd.f32 %v1604_v9, %v1530_v29  ;;  %v1423_v52 = vadd.f32 %v2835_v39, %v1312_v10  ;;  %v2235_v39 = vld [vmem:[%s2378_s16 + $0x8] sm:$0xff] }
 0x1ef   : > { %v2185_v46 = vpop.f32.mrf.mxu0  ;;  %v1533_v36 = vadd.f32 %v1514_v57, %v1422_v42 }
 0x1f0   : > { %v2176_v61 = vpop.f32.mrf.mxu1  ;;  %v1638_v11 = vadd.f32 %v2185_v46, %v1535_v59 }
 0x1f1   : > { %v1617_v40 = vpop.f32.mrf.mxu0  ;;  %v1536_v44 = vadd.f32 %v2176_v61, %v1425_v34 }
 0x1f2   : > { %v1517_v0 = vpop.f32.mrf.mxu1  ;;  %v1636_v27 = vadd.f32 %v1617_v40, %v1533_v36 }
 0x1f3   : > { %v2186_v18 = vpop.f32.mrf.mxu0  ;;  %v1534_v37 = vadd.f32 %v1517_v0, %v1423_v52 }
 0x1f4   : > { %v2191_v14 = vpop.f32.mrf.mxu1  ;;  %v1639_v23 = vadd.f32 %v2186_v18, %v1536_v44 }
 0x1f5   : > { %v1745_v30 = vadd.f32 %v2191_v14, %v1634_v43  ;;  %v1620_v56 = vpop.f32.mrf.mxu0 }
 0x1f6   : > { %v1712_v24 = vpop.f32.mrf.mxu1  ;;  %v1637_v32 = vadd.f32 %v1620_v56, %v1534_v37  ;;  %v2237_v37 = vld [vmem:[%s2378_s16 + $0x20] sm:$0xff]  ;;  %v2238_v56 = vld [vmem:[%s2378_s16 + $0x38] sm:$0xff] }
 0x1f7   : > { %v1743_v6 = vadd.f32 %v1712_v24, %v1632_v19  ;;  %v1760_v2 = vadd.f32 %v2030_v20, %v1745_v30 }
 0x1f8   : > { %v2192_v55 = vpop.f32.mrf.mxu1 }
 0x1f9   : > { %v1758_v4 = vadd.f32 %v2030_v20, %v1743_v6  ;;  %v1746_v48 = vadd.f32 %v2192_v55, %v1635_v8  ;;  %v1775_v60 = vmul.f32 %v2031_v15, %v1760_v2 }
 0x1fa   : > { %v1715_v12 = vpop.f32.mrf.mxu1 }
 0x1fb   : > { %v1773_v47 = vmul.f32 %v2031_v15, %v1758_v4  ;;  %v1761_v50 = vadd.f32 %v2030_v20, %v1746_v48  ;;  %v1744_v51 = vadd.f32 %v1715_v12, %v1633_v54  ;;  %v1790_v31 = vadd.f32 %v2032_v22, %v1775_v60  ;;  %v2836_v54 = vld [vmem:[#allocation3_spill] sm:$0xff]  ;;  %v2233_v48 = vld [vmem:[%s2378_s16] sm:$0xff] }
 0x1fc   : > { %v2195_v53 = vpop.f32.mrf.mxu1 }
 0x1fd   : > { %v1776_v28 = vmul.f32 %v2031_v15, %v1761_v50  ;;  %v1759_v62 = vadd.f32 %v2030_v20, %v1744_v51  ;;  %v1749_v1 = vadd.f32 %v2195_v53, %v1638_v11  ;;  %v1788_v26 = vadd.f32 %v2032_v22, %v1773_v47  ;;  %v2234_v47 = vld [vmem:[%s2378_s16 + $0x18] sm:$0xff] }
 0x1fe   : > { %v1728_v17 = vpop.f32.mrf.mxu1  ;;  %v1798_v33 = vmax.f32 %v1790_v31, 0.0 }
 0x1ff   : > { %v1791_v57 = vadd.f32 %v2032_v22, %v1776_v28  ;;  %v1774_v7 = vmul.f32 %v2031_v15, %v1759_v62  ;;  %v1747_v5 = vadd.f32 %v1728_v17, %v1636_v27  ;;  %v1764_v58 = vadd.f32 %v2030_v20, %v1749_v1  ;;  %v2236_v27 = vld [vmem:[%s2378_s16 + $0x30] sm:$0xff] }
 0x200   : > { %v2196_v9 = vpop.f32.mrf.mxu1  ;;  %v1796_v35 = vmax.f32 %v1788_v26, 0.0 }
 0x201   : > { %v1789_v49 = vadd.f32 %v2032_v22, %v1774_v7  ;;  %v1762_v61 = vadd.f32 %v2030_v20, %v1747_v5  ;;  %v1750_v16 = vadd.f32 %v2196_v9, %v1639_v23  ;;  %v1799_v3 = vmax.f32 %v1791_v57, 0.0  ;;  %v2239_v7 = vld [vmem:[%s2378_s16 + $0x28] sm:$0xff] }
 0x202   : > { %v1731_v21 = vpop.f32.mrf.mxu1  ;;  %v1779_v45 = vmul.f32 %v2031_v15, %v1764_v58 }
 0x203   : > { %v1797_v38 = vmax.f32 %v1789_v49, 0.0  ;;  %v1765_v0 = vadd.f32 %v2030_v20, %v1750_v16  ;;  %v1777_v41 = vmul.f32 %v2031_v15, %v1762_v61  ;;  %v1748_v43 = vadd.f32 %v1731_v21, %v1637_v32 }
 0x204   : > { %v1805_v14 = vpack.c.bf16 %v1799_v3, %v1798_v33  ;;  %v1794_v63 = vadd.f32 %v2032_v22, %v1779_v45 }
 0x205   : > { %v1780_v46 = vmul.f32 %v2031_v15, %v1765_v0  ;;  %v1804_v13 = vpack.c.bf16 %v1797_v38, %v1796_v35  ;;  %v1763_v19 = vadd.f32 %v2030_v20, %v1748_v43  ;;  %v1792_v30 = vadd.f32 %v2032_v22, %v1777_v41  ;;  %v2033_v20 = vld [vmem:[%s2830_s14] ss:$0 sm:$0xff] }
 0x206   : > { %v1802_v6 = vmax.f32 %v1794_v63, 0.0 }
 0x207   : > { %v1795_v29 = vadd.f32 %v2032_v22, %v1780_v46  ;;  %2199 = vmatprep.mubr.msk.bf16.mxu0 %vm675_vm1, %v1804_v13  ;;  %v1778_v25 = vmul.f32 %v2031_v15, %v1763_v19  ;;  %v1800_v8 = vmax.f32 %v1792_v30, 0.0 }
 0x208   : > { %2200 = vmatmul.mubr.msk.bf16.vlgmr.msra.gmra.mxu0 %vm675_vm1, %v1805_v14 }
 0x209   : > { %v1793_v24 = vadd.f32 %v2032_v22, %v1778_v25  ;;  %v1803_v42 = vmax.f32 %v1795_v29, 0.0 }
 0x20b   : > { %v1801_v40 = vmax.f32 %v1793_v24, 0.0  ;;  %v1807_v34 = vpack.c.bf16 %v1803_v42, %v1802_v6 }
 0x20d   : > { %v1806_v10 = vpack.c.bf16 %v1801_v40, %v1800_v8 }
 0x20f   : > { %2203 = vmatprep.mubr.msk.bf16.mxu0 %vm675_vm1, %v1806_v10 }
 0x210   : > { %2204 = vmatmul.mubr.msk.bf16.gmra.mxu0 %vm675_vm1, %v1807_v34 }
 0x2c8   : > { %v2201_v59 = vpop.f32.mrf.mxu0 }
 0x2c9   : > { %v1875_v2 = vadd.f32 %v2201_v59, %v2033_v20 }
 0x2ca   : > { %v1866_v55 = vpop.f32.mrf.mxu0 }
 0x2cb   : > { %v1899_v36 = vadd.f32 %v1875_v2, %v2836_v54  ;;  %v1867_v15 = vadd.f32 %v2033_v20, %v1866_v55 }
 0x2cc   : > { %v2202_v4 = vpop.f32.mrf.mxu0 }
 0x2cd   : > { %1907 = vst.msk [vmem:[%s2787_s17 + $0x10] sm:$0xff] %vm555_vm2, %v1899_v36  ;;  %v1897_v44 = vadd.f32 %v2233_v48, %v1867_v15  ;;  %v1878_v12 = vadd.f32 %v2202_v4, %v2033_v20 }
 0x2ce   : > { %v1869_v18 = vpop.f32.mrf.mxu0 }
 0x2cf   : > { %1905 = vst.msk [vmem:[%s2787_s17] sm:$0xff] %vm555_vm2, %v1897_v44  ;;  %v1900_v50 = vadd.f32 %v2234_v47, %v1878_v12  ;;  %v1870_v51 = vadd.f32 %v2033_v20, %v1869_v18 }
 0x2d0   : > { %v2205_v11 = vpop.f32.mrf.mxu0 }
 0x2d1   : > { %1908 = vst.msk [vmem:[%s2787_s17 + $0x18] sm:$0xff] %vm555_vm2, %v1900_v50  ;;  %v1898_v52 = vadd.f32 %v2235_v39, %v1870_v51  ;;  %v1891_v60 = vadd.f32 %v2205_v11, %v2033_v20 }
 0x2d2   : > { %v1882_v53 = vpop.f32.mrf.mxu0 }
 0x2d3   : > { %1906 = vst.msk [vmem:[%s2787_s17 + $0x8] sm:$0xff] %vm555_vm2, %v1898_v52  ;;  %v1903_v22 = vadd.f32 %v2236_v27, %v1891_v60  ;;  %v1883_v28 = vadd.f32 %v2033_v20, %v1882_v53 }
 0x2d4   : > { %v2206_v62 = vpop.f32.mrf.mxu0 }
 0x2d5   : > { %1911 = vst.msk [vmem:[%s2787_s17 + $0x30] sm:$0xff] %vm555_vm2, %v1903_v22  ;;  %v1901_v23 = vadd.f32 %v2237_v37, %v1883_v28  ;;  %v1894_v1 = vadd.f32 %v2206_v62, %v2033_v20 }
 0x2d6   : > { %v1885_v17 = vpop.f32.mrf.mxu0 }
 0x2d7   : > { %1909 = vst.msk [vmem:[%s2787_s17 + $0x20] sm:$0xff] %vm555_vm2, %v1901_v23  ;;  %v1904_v26 = vadd.f32 %v2238_v56, %v1894_v1  ;;  %v1886_v57 = vadd.f32 %v2033_v20, %v1885_v17 }
 0x2d9   : > { %1912 = vst.msk [vmem:[%s2787_s17 + $0x38] sm:$0xff] %vm555_vm2, %v1904_v26  ;;  %v1902_v5 = vadd.f32 %v2239_v7, %v1886_v57 }
 0x2db   : > { %1910 = vst.msk [vmem:[%s2787_s17 + $0x28] sm:$0xff] %vm555_vm2, %v1902_v5 }
 0x2dc PF: > { %s25_s18 = sadd.s32 1, %s2246_s18  }
 0x2dd   : > { %p22_p4 = scmp.ge.s32.totalorder %s25_s18, 4  }
 0x2df   :  { %24 = sbr.rel (!%p22_p4) target bundleno = 1 (0x1), region = 118 }

// kernel: hourglass_forward.11
= control target key start
LH: loop header
LB: loop body
LE: loop exit
PB: predicated region body
PF: predicated region fallthrough
CT: control target
= control target key end

     0   :  { %s5645_s18 = smov 0   ;;  %s8051_s0 = inlined_call_operand.vmem [shape: f32[2,256,8], index: 0, kind: input, shape index: {}]   ;;  %s8052_s1 = inlined_call_operand.vmem [shape: f32[256,1], index: 1, kind: input, shape index: {}]   ;;  %s8053_s2 = inlined_call_operand.vmem [shape: f32[256,1], index: 2, kind: input, shape index: {}]   ;;  %s8054_s3 = inlined_call_operand.vmem [shape: f32[1,8], index: 3, kind: input, shape index: {}]   ;;  %s8055_s4 = inlined_call_operand.vmem [shape: f32[1,8], index: 4, kind: input, shape index: {}]   ;;  %s8056_s5 = inlined_call_operand.vmem [shape: f32[8,4], index: 5, kind: input, shape index: {}]   ;;  %s8057_s6 = inlined_call_operand.vmem [shape: f32[1,4], index: 6, kind: input, shape index: {}]   ;;  %s8058_s7 = inlined_call_operand.vmem [shape: f32[1,4], index: 7, kind: input, shape index: {}]   ;;  %s8059_s8 = inlined_call_operand.vmem [shape: f32[1,4], index: 8, kind: input, shape index: {}]   ;;  %s8060_s9 = inlined_call_operand.vmem [shape: f32[9,4,4], index: 9, kind: input, shape index: {}]   ;;  %s8061_s10 = inlined_call_operand.vmem [shape: f32[1,4], index: 10, kind: input, shape index: {}]   ;;  %s8062_s11 = inlined_call_operand.vmem [shape: f32[1,4], index: 11, kind: input, shape index: {}]   ;;  %s8063_s12 = inlined_call_operand.vmem [shape: f32[1,4], index: 12, kind: input, shape index: {}]   ;;  %s8064_s13 = inlined_call_operand.vmem [shape: f32[4,8], index: 13, kind: input, shape index: {}]   ;;  %s8065_s14 = inlined_call_operand.vmem [shape: f32[1,8], index: 14, kind: input, shape index: {}]   ;;  %s8066_s15 = inlined_call_operand.vmem [shape: f32[2,256,8], index: 15, kind: output, shape index: {}]  }
   0x1 LB: > { %s4730_s19 = sadd.s32 4294967295, %s5561_s18   ;;  %p4734_p0 = scmp.ge.s32.totalorder %s5561_s18, 1  ;;  %s5561_s18 = sphi %s5645_s18, %s25_s18  }
   0x2   : > { %p437_p1 = scmp.lt.s32.totalorder %s5561_s18, 3 }
   0x4   : > { %p438_p2 = pnand %p4734_p0, %p437_p1 }
   0x6   : > { %441 = sbr.rel (%p438_p2) target bundleno = 980 (0x3d4), region = 80 }
   0xb   : > { %v1060_v0 = vld [vmem:[%s8052_s1 + $0x10] sm:$0xff]  ;;  %v1058_v1 = vld [vmem:[%s8052_s1] sm:$0xff]  ;;  %p485_p3 = scmp.lt.s32.totalorder %s4730_s19, 1  ;;  %v5563_v2 = vmov 0   ;;  %vm987_vm0 = vcmask 31744   ;;  %vm712_vm1 = vcmask 1043456  }
   0xc   : > { %5522 = vset.pattern.permute.xlu1 %v5563_v2  ;;  %5521 = vset.pattern.permute.xlu0 %v5563_v2  ;;  %v654_v3 = vld [vmem:[%s8056_s5] sm:$0xff]  ;;  %v5564_v4 = vmov 0.0   ;;  %v1061_v5 = vld [vmem:[%s8052_s1 + $0x18] sm:$0xff]  ;;  %v1059_v6 = vld [vmem:[%s8052_s1 + $0x8] sm:$0xff]  ;;  %vm663_vm2 = vcmask 64512   ;;  %vm1463_vm3 = vcmask 1041408  }
   0xd   : > { %1166 = vperm.xlu1 %5522, %v1060_v0   ;;  %1156 = vperm.xlu0 %5521, %v1058_v1   ;;  %s8542_s19 = smov (!%p485_p3, %s4730_s19), 1  ;;  %988 = vst.msk [vmem:[#allocation2] sm:$0xff] %vm987_vm0, %v5564_v4  ;;  %989 = vst.msk [vmem:[#allocation2 + $0x8] sm:$0xff] %vm987_vm0, %v5564_v4  ;;  %v655_v7 = vpack.c.bf16 %v654_v3, %v654_v3  ;;  %v5746_v8 = vld [vmem:[%s8054_s3] ss:$0 sm:$0xff]  ;;  %v1091_v9 = vld [vmem:[%s8053_s2 + $0x8] sm:$0xff] }
   0xe   : > { %990 = vst.msk [vmem:[#allocation2 + $0x10] sm:$0xff] %vm987_vm0, %v5564_v4  ;;  %991 = vst.msk [vmem:[#allocation2 + $0x18] sm:$0xff] %vm987_vm0, %v5564_v4  ;;  %s4934_s30 = sshll.u32 %s8542_s19, 8  ;;  %v1090_v10 = vld [vmem:[%s8053_s2] sm:$0xff]  ;;  %v1093_v36 = vld [vmem:[%s8053_s2 + $0x18] sm:$0xff]  ;;  %vm1024_vm4 = vcmask 25600  }
   0xf   : > { %992 = vst.msk [vmem:[#allocation2 + $0x20] sm:$0xff] %vm987_vm0, %v5564_v4  ;;  %993 = vst.msk [vmem:[#allocation2 + $0x28] sm:$0xff] %vm987_vm0, %v5564_v4  ;;  %5499 = vmatprep.subr.msk.bf16.mxu0 %vm712_vm1, %v655_v7  ;;  %5500 = vmatprep.subr.msk.bf16.mxu1 %vm712_vm1, %v655_v7  ;;  %v714_v11 = vsel %vm712_vm1, %v655_v7, 0  ;;  %s5762_s26 = scalar_lea.vmem %s8051_s0, %s4934_s30  ;;  %v5767_v12 = vld [vmem:[%s8055_s4] ss:$0 sm:$0xff]  ;;  %v1092_v37 = vld [vmem:[%s8053_s2 + $0x10] sm:$0xff]  ;;  %s7919_s27 = scalar_lea.vmem %s8066_s15, %s4934_s30 }
  0x10   : > { %994 = vst.msk [vmem:[#allocation2 + $0x30] sm:$0xff] %vm987_vm0, %v5564_v4  ;;  %995 = vst.msk [vmem:[#allocation2 + $0x38] sm:$0xff] %vm987_vm0, %v5564_v4  ;;  %v496_v13 = vld [vmem:[%s5762_s26] sm:$0xff]  ;;  %v497_v14 = vld [vmem:[%s5762_s26 + $0x8] sm:$0xff]  ;;  %5124 = vmatpush3.bf16.msra.mxu0 %v714_v11  ;;  %5498 = vmatpush3.bf16.msra.mxu1 %v714_v11 }
  0x11   : > { %996 = vst.msk [vmem:[#allocation2 + $0x40] sm:$0xff] %vm987_vm0, %v5564_v4  ;;  %997 = vst.msk [vmem:[#allocation2 + $0x48] sm:$0xff] %vm987_vm0, %v5564_v4  ;;  %1171 = vperm.xlu1 %5522, %v1061_v5   ;;  %1161 = vperm.xlu0 %5521, %v1059_v6   ;;  %v512_v15 = vld [vmem:[%s5762_s26 + $0x80] sm:$0xff]  ;;  %v535_v16 = vmul.f32 %v5746_v8, %v496_v13  ;;  %v536_v17 = vmul.f32 %v5746_v8, %v497_v14  ;;  %v513_v18 = vld [vmem:[%s5762_s26 + $0x88] sm:$0xff] }
  0x12   : > { %998 = vst.msk [vmem:[#allocation2 + $0x50] sm:$0xff] %vm987_vm0, %v5564_v4  ;;  %999 = vst.msk [vmem:[#allocation2 + $0x58] sm:$0xff] %vm987_vm0, %v5564_v4  ;;  %v551_v19 = vmul.f32 %v5746_v8, %v512_v15  ;;  %v498_v20 = vld [vmem:[%s5762_s26 + $0x10] sm:$0xff]  ;;  %v499_v21 = vld [vmem:[%s5762_s26 + $0x18] sm:$0xff]  ;;  %v552_v22 = vmul.f32 %v5746_v8, %v513_v18 }
  0x13   : > { %1000 = vst.msk [vmem:[#allocation2 + $0x60] sm:$0xff] %vm987_vm0, %v5564_v4  ;;  %1001 = vst.msk [vmem:[#allocation2 + $0x68] sm:$0xff] %vm987_vm0, %v5564_v4  ;;  %v537_v23 = vmul.f32 %v5746_v8, %v498_v20  ;;  %v538_v24 = vmul.f32 %v5746_v8, %v499_v21  ;;  %v514_v25 = vld [vmem:[%s5762_s26 + $0x90] sm:$0xff]  ;;  %v515_v26 = vld [vmem:[%s5762_s26 + $0x98] sm:$0xff]  ;;  %v574_v27 = vadd.f32 %v5767_v12, %v535_v16 }
  0x14   : > { %1002 = vst.msk [vmem:[#allocation2 + $0x70] sm:$0xff] %vm987_vm0, %v5564_v4  ;;  %1003 = vst.msk [vmem:[#allocation2 + $0x78] sm:$0xff] %vm987_vm0, %v5564_v4  ;;  %v575_v28 = vadd.f32 %v5767_v12, %v536_v17  ;;  %v590_v29 = vadd.f32 %v5767_v12, %v551_v19  ;;  %v553_v30 = vmul.f32 %v5746_v8, %v514_v25  ;;  %v500_v34 = vld [vmem:[%s5762_s26 + $0x20] sm:$0xff]  ;;  %v501_v35 = vld [vmem:[%s5762_s26 + $0x28] sm:$0xff] }
  0x15   : > { %1004 = vst.msk [vmem:[#allocation2 + $0x80] sm:$0xff] %vm987_vm0, %v5564_v4  ;;  %1005 = vst.msk [vmem:[#allocation2 + $0x88] sm:$0xff] %vm987_vm0, %v5564_v4  ;;  %1879 = vperm.xlu1 %5522, %v1091_v9   ;;  %1874 = vperm.xlu0 %5521, %v1090_v10   ;;  %v591_v31 = vadd.f32 %v5767_v12, %v552_v22  ;;  %v576_v32 = vadd.f32 %v5767_v12, %v537_v23  ;;  %v606_v38 = vmax.f32 %v574_v27, 0.0  ;;  %v516_v42 = vld [vmem:[%s5762_s26 + $0xa0] sm:$0xff]  ;;  %v517_v47 = vld [vmem:[%s5762_s26 + $0xa8] sm:$0xff] }
  0x16   : > { %1006 = vst.msk [vmem:[#allocation2 + $0x90] sm:$0xff] %vm987_vm0, %v5564_v4  ;;  %1007 = vst.msk [vmem:[#allocation2 + $0x98] sm:$0xff] %vm987_vm0, %v5564_v4  ;;  %v577_v33 = vadd.f32 %v5767_v12, %v538_v24  ;;  %v607_v39 = vmax.f32 %v575_v28, 0.0  ;;  %v622_v40 = vmax.f32 %v590_v29, 0.0  ;;  %v554_v41 = vmul.f32 %v5746_v8, %v515_v26  ;;  %v502_v52 = vld [vmem:[%s5762_s26 + $0x30] sm:$0xff]  ;;  %v503_v53 = vld [vmem:[%s5762_s26 + $0x38] sm:$0xff] }
  0x17   : > { %1008 = vst.msk [vmem:[#allocation2 + $0xa0] sm:$0xff] %vm987_vm0, %v5564_v4  ;;  %1009 = vst.msk [vmem:[#allocation2 + $0xa8] sm:$0xff] %vm987_vm0, %v5564_v4  ;;  %v623_v43 = vmax.f32 %v591_v31, 0.0  ;;  %v608_v44 = vmax.f32 %v576_v32, 0.0  ;;  %v592_v46 = vadd.f32 %v5767_v12, %v553_v30  ;;  %v539_v50 = vmul.f32 %v5746_v8, %v500_v34  ;;  %v1063_v59 = vld [vmem:[%s8052_s1 + $0x28] sm:$0xff]  ;;  %v1062_v60 = vld [vmem:[%s8052_s1 + $0x20] sm:$0xff] }
  0x18   : > { %1010 = vst.msk [vmem:[#allocation2 + $0xb0] sm:$0xff] %vm987_vm0, %v5564_v4  ;;  %1011 = vst.msk [vmem:[#allocation2 + $0xb8] sm:$0xff] %vm987_vm0, %v5564_v4  ;;  %v609_v45 = vmax.f32 %v577_v33, 0.0  ;;  %v638_v48 = vpack.c.bf16 %v607_v39, %v606_v38  ;;  %v593_v49 = vadd.f32 %v5767_v12, %v554_v41  ;;  %v540_v51 = vmul.f32 %v5746_v8, %v501_v35  ;;  %v518_v0 = vld [vmem:[%s5762_s26 + $0xb0] sm:$0xff]  ;;  %v519_v5 = vld [vmem:[%s5762_s26 + $0xb8] sm:$0xff] }
  0x19   : > { %1012 = vst.msk [vmem:[#allocation2 + $0xc0] sm:$0xff] %vm987_vm0, %v5564_v4  ;;  %1013 = vst.msk [vmem:[#allocation2 + $0xc8] sm:$0xff] %vm987_vm0, %v5564_v4  ;;  %1889 = vperm.xlu1 %5522, %v1093_v36   ;;  %1884 = vperm.xlu0 %5521, %v1092_v37   ;;  %v646_v54 = vpack.c.bf16 %v623_v43, %v622_v40  ;;  %v624_v56 = vmax.f32 %v592_v46, 0.0  ;;  %v555_v57 = vmul.f32 %v5746_v8, %v516_v42  ;;  %v504_v6 = vld [vmem:[%s5762_s26 + $0x40] sm:$0xff]  ;;  %v505_v13 = vld [vmem:[%s5762_s26 + $0x48] sm:$0xff] }
  0x1a   : > { %1014 = vst.msk [vmem:[#allocation2 + $0xd0] sm:$0xff] %vm987_vm0, %v5564_v4  ;;  %1015 = vst.msk [vmem:[#allocation2 + $0xd8] sm:$0xff] %vm987_vm0, %v5564_v4  ;;  %v639_v55 = vpack.c.bf16 %v609_v45, %v608_v44  ;;  %5125 = vmatprep.mubr.msk.bf16.mxu0 %vm663_vm2, %v638_v48  ;;  %v625_v58 = vmax.f32 %v593_v49, 0.0  ;;  %v578_v61 = vadd.f32 %v5767_v12, %v539_v50  ;;  %v520_v18 = vld [vmem:[%s5762_s26 + $0xc0] sm:$0xff]  ;;  %v1065_v19 = vld [vmem:[%s8052_s1 + $0x38] sm:$0xff] }
  0x1b   : > { %1016 = vst.msk [vmem:[#allocation2 + $0xe0] sm:$0xff] %vm987_vm0, %v5564_v4  ;;  %1017 = vst.msk [vmem:[#allocation2 + $0xe8] sm:$0xff] %vm987_vm0, %v5564_v4  ;;  %v579_v62 = vadd.f32 %v5767_v12, %v540_v51  ;;  %v556_v63 = vmul.f32 %v5746_v8, %v517_v47  ;;  %5141 = vmatprep.mubr.msk.bf16.mxu1 %vm663_vm2, %v646_v54  ;;  %v594_v1 = vadd.f32 %v5767_v12, %v555_v57  ;;  %v1064_v20 = vld [vmem:[%s8052_s1 + $0x30] sm:$0xff]  ;;  %v521_v25 = vld [vmem:[%s5762_s26 + $0xc8] sm:$0xff] }
  0x1c   : > { %1018 = vst.msk [vmem:[#allocation2 + $0xf0] sm:$0xff] %vm987_vm0, %v5564_v4  ;;  %1019 = vst.msk [vmem:[#allocation2 + $0xf8] sm:$0xff] %vm987_vm0, %v5564_v4  ;;  %5126 = vmatmul.mubr.msk.bf16.vlgmr.msra.gmra.mxu0 %vm663_vm2, %v639_v55  ;;  %v541_v2 = vmul.f32 %v5746_v8, %v502_v52  ;;  %v542_v3 = vmul.f32 %v5746_v8, %v503_v53  ;;  %v647_v7 = vpack.c.bf16 %v625_v58, %v624_v56  ;;  %v506_v30 = vld [vmem:[%s5762_s26 + $0x50] sm:$0xff]  ;;  %v507_v35 = vld [vmem:[%s5762_s26 + $0x58] sm:$0xff] }
  0x1d   : > { %1020 = vst.msk [vmem:[#allocation2 + $0x100] sm:$0xff] %vm987_vm0, %v5564_v4  ;;  %1021 = vst.msk [vmem:[#allocation2 + $0x108] sm:$0xff] %vm987_vm0, %v5564_v4  ;;  %v610_v9 = vmax.f32 %v578_v61, 0.0  ;;  %v611_v10 = vmax.f32 %v579_v62, 0.0  ;;  %v595_v11 = vadd.f32 %v5767_v12, %v556_v63  ;;  %1181 = vperm.xlu1 %5522, %v1063_v59   ;;  %1176 = vperm.xlu0 %5521, %v1062_v60   ;;  %v626_v14 = vmax.f32 %v594_v1, 0.0  ;;  %v522_v36 = vld [vmem:[%s5762_s26 + $0xd0] sm:$0xff] }
  0x1e   : > { %1022 = vst.msk [vmem:[#allocation2 + $0x110] sm:$0xff] %vm987_vm0, %v5564_v4  ;;  %1023 = vst.msk [vmem:[#allocation2 + $0x118] sm:$0xff] %vm987_vm0, %v5564_v4  ;;  %v580_v15 = vadd.f32 %v5767_v12, %v541_v2  ;;  %v581_v16 = vadd.f32 %v5767_v12, %v542_v3  ;;  %v557_v17 = vmul.f32 %v5746_v8, %v518_v0  ;;  %5142 = vmatmul.mubr.msk.bf16.vlgmr.msra.gmra.mxu1 %vm663_vm2, %v647_v7  ;;  %v523_v41 = vld [vmem:[%s5762_s26 + $0xd8] sm:$0xff]  ;;  %v1095_v43 = vld [vmem:[%s8053_s2 + $0x28] sm:$0xff] }
  0x1f   : > { %v640_v21 = vpack.c.bf16 %v611_v10, %v610_v9  ;;  %v627_v22 = vmax.f32 %v595_v11, 0.0  ;;  %v558_v23 = vmul.f32 %v5746_v8, %v519_v5  ;;  %v543_v24 = vmul.f32 %v5746_v8, %v504_v6  ;;  %v1094_v44 = vld [vmem:[%s8053_s2 + $0x20] sm:$0xff]  ;;  %v509_v53 = vld [vmem:[%s5762_s26 + $0x68] sm:$0xff]  ;;  %v1097_v0 = vld [vmem:[%s8053_s2 + $0x38] sm:$0xff]  ;;  %1025 = vst.msk [vmem:[#allocation2 + $0x120] sm:$0x3] %vm1024_vm4, %v5564_v4 }
  0x20   : > { %v612_v26 = vmax.f32 %v580_v15, 0.0  ;;  %v613_v27 = vmax.f32 %v581_v16, 0.0  ;;  %v596_v28 = vadd.f32 %v5767_v12, %v557_v17  ;;  %v544_v29 = vmul.f32 %v5746_v8, %v505_v13  ;;  %v508_v52 = vld [vmem:[%s5762_s26 + $0x60] sm:$0xff]  ;;  %v525_v63 = vld [vmem:[%s5762_s26 + $0xe8] sm:$0xff]  ;;  %v1096_v1 = vld [vmem:[%s8053_s2 + $0x30] sm:$0xff] }
  0x21   : > { %5129 = vmatprep.mubr.msk.bf16.mxu0 %vm663_vm2, %v640_v21  ;;  %v648_v31 = vpack.c.bf16 %v627_v22, %v626_v14  ;;  %v597_v32 = vadd.f32 %v5767_v12, %v558_v23  ;;  %v582_v33 = vadd.f32 %v5767_v12, %v543_v24  ;;  %v559_v34 = vmul.f32 %v5746_v8, %v520_v18  ;;  %v524_v58 = vld [vmem:[%s5762_s26 + $0xe0] sm:$0xff]  ;;  %v510_v7 = vld [vmem:[%s5762_s26 + $0x70] sm:$0xff]  ;;  %v511_v18 = vld [vmem:[%s5762_s26 + $0x78] sm:$0xff] }
  0x22   : > { %1191 = vperm.xlu1 %5522, %v1065_v19   ;;  %1186 = vperm.xlu0 %5521, %v1064_v20   ;;  %v641_v37 = vpack.c.bf16 %v613_v27, %v612_v26  ;;  %v628_v38 = vmax.f32 %v596_v28, 0.0  ;;  %v583_v39 = vadd.f32 %v5767_v12, %v544_v29  ;;  %v560_v40 = vmul.f32 %v5746_v8, %v521_v25  ;;  %v526_v19 = vld [vmem:[%s5762_s26 + $0xf0] sm:$0xff]  ;;  %v527_v23 = vld [vmem:[%s5762_s26 + $0xf8] sm:$0xff]  ;;  %v1067_v25 = vld [vmem:[%s8052_s1 + $0x48] sm:$0xff] }
  0x23   : > { %5145 = vmatprep.mubr.msk.bf16.mxu1 %vm663_vm2, %v648_v31  ;;  %v629_v42 = vmax.f32 %v597_v32, 0.0  ;;  %v614_v45 = vmax.f32 %v582_v33, 0.0  ;;  %v598_v46 = vadd.f32 %v5767_v12, %v559_v34  ;;  %v545_v47 = vmul.f32 %v5746_v8, %v506_v30  ;;  %v1066_v26 = vld [vmem:[%s8052_s1 + $0x40] sm:$0xff] }
  0x24   : > { %5130 = vmatmul.mubr.msk.bf16.gmra.mxu0 %vm663_vm2, %v641_v37  ;;  %v615_v48 = vmax.f32 %v583_v39, 0.0  ;;  %v599_v49 = vadd.f32 %v5767_v12, %v560_v40  ;;  %v546_v50 = vmul.f32 %v5746_v8, %v507_v35  ;;  %v561_v51 = vmul.f32 %v5746_v8, %v522_v36  ;;  %v1069_v40 = vld [vmem:[%s8052_s1 + $0x58] sm:$0xff] }
  0x25   : > { %v649_v54 = vpack.c.bf16 %v629_v42, %v628_v38  ;;  %v630_v55 = vmax.f32 %v598_v46, 0.0  ;;  %v584_v56 = vadd.f32 %v5767_v12, %v545_v47  ;;  %v562_v57 = vmul.f32 %v5746_v8, %v523_v41  ;;  %v1068_v41 = vld [vmem:[%s8052_s1 + $0x50] sm:$0xff] }
  0x26   : > { %1899 = vperm.xlu1 %5522, %v1095_v43   ;;  %1894 = vperm.xlu0 %5521, %v1094_v44   ;;  %v642_v59 = vpack.c.bf16 %v615_v48, %v614_v45  ;;  %v631_v60 = vmax.f32 %v599_v49, 0.0  ;;  %v585_v61 = vadd.f32 %v5767_v12, %v546_v50  ;;  %v600_v62 = vadd.f32 %v5767_v12, %v561_v51  ;;  %v1099_v48 = vld [vmem:[%s8053_s2 + $0x48] sm:$0xff]  ;;  %v1098_v49 = vld [vmem:[%s8053_s2 + $0x40] sm:$0xff]  ;;  %v1100_v50 = vld [vmem:[%s8053_s2 + $0x50] sm:$0xff] }
  0x27   : > { %5146 = vmatmul.mubr.msk.bf16.gmra.mxu1 %vm663_vm2, %v649_v54  ;;  %v616_v2 = vmax.f32 %v584_v56, 0.0  ;;  %v601_v3 = vadd.f32 %v5767_v12, %v562_v57  ;;  %v547_v5 = vmul.f32 %v5746_v8, %v508_v52  ;;  %v548_v6 = vmul.f32 %v5746_v8, %v509_v53  ;;  %v1071_v51 = vld [vmem:[%s8052_s1 + $0x68] sm:$0xff]  ;;  %v1070_v52 = vld [vmem:[%s8052_s1 + $0x60] sm:$0xff]  ;;  %v1073_v53 = vld [vmem:[%s8052_s1 + $0x78] sm:$0xff] }
  0x28   : > { %5133 = vmatprep.mubr.msk.bf16.mxu0 %vm663_vm2, %v642_v59  ;;  %v650_v9 = vpack.c.bf16 %v631_v60, %v630_v55  ;;  %v617_v10 = vmax.f32 %v585_v61, 0.0  ;;  %v632_v11 = vmax.f32 %v600_v62, 0.0  ;;  %v563_v13 = vmul.f32 %v5746_v8, %v524_v58  ;;  %v1072_v54 = vld [vmem:[%s8052_s1 + $0x70] sm:$0xff]  ;;  %v1103_v55 = vld [vmem:[%s8053_s2 + $0x68] sm:$0xff]  ;;  %v1102_v56 = vld [vmem:[%s8053_s2 + $0x60] sm:$0xff] }
  0x29   : > { %v633_v14 = vmax.f32 %v601_v3, 0.0  ;;  %v586_v15 = vadd.f32 %v5767_v12, %v547_v5  ;;  %v587_v16 = vadd.f32 %v5767_v12, %v548_v6  ;;  %v564_v17 = vmul.f32 %v5746_v8, %v525_v63  ;;  %v1105_v57 = vld [vmem:[%s8053_s2 + $0x78] sm:$0xff]  ;;  %v1104_v58 = vld [vmem:[%s8053_s2 + $0x70] sm:$0xff]  ;;  %v1075_v59 = vld [vmem:[%s8052_s1 + $0x88] sm:$0xff] }
  0x2a   : > { %1909 = vperm.xlu1 %5522, %v1097_v0   ;;  %1904 = vperm.xlu0 %5521, %v1096_v1   ;;  %v643_v20 = vpack.c.bf16 %v617_v10, %v616_v2  ;;  %v602_v21 = vadd.f32 %v5767_v12, %v563_v13  ;;  %v549_v22 = vmul.f32 %v5746_v8, %v510_v7  ;;  %v1074_v60 = vld [vmem:[%s8052_s1 + $0x80] sm:$0xff]  ;;  %v1077_v61 = vld [vmem:[%s8052_s1 + $0x98] sm:$0xff]  ;;  %v1076_v62 = vld [vmem:[%s8052_s1 + $0x90] sm:$0xff] }
  0x2b   : > { %5149 = vmatprep.mubr.msk.bf16.mxu1 %vm663_vm2, %v650_v9  ;;  %v651_v24 = vpack.c.bf16 %v633_v14, %v632_v11  ;;  %v618_v27 = vmax.f32 %v586_v15, 0.0  ;;  %v619_v28 = vmax.f32 %v587_v16, 0.0  ;;  %v603_v29 = vadd.f32 %v5767_v12, %v564_v17  ;;  %v4760_v63 = vld [vmem:[%s8060_s9 + $0x4] sm:$0xf]  ;;  %v1107_v1 = vld [vmem:[%s8053_s2 + $0x88] sm:$0xff]  ;;  %v1109_v5 = vld [vmem:[%s8053_s2 + $0x98] sm:$0xff] }
  0x2c   : > { %5134 = vmatmul.mubr.msk.bf16.gmra.mxu0 %vm663_vm2, %v643_v20  ;;  %v634_v30 = vmax.f32 %v602_v21, 0.0  ;;  %v550_v31 = vmul.f32 %v5746_v8, %v511_v18  ;;  %v588_v32 = vadd.f32 %v5767_v12, %v549_v22  ;;  %v565_v33 = vmul.f32 %v5746_v8, %v526_v19  ;;  %v1106_v2 = vld [vmem:[%s8053_s2 + $0x80] sm:$0xff]  ;;  %v1108_v6 = vld [vmem:[%s8053_s2 + $0x90] sm:$0xff]  ;;  %v1079_v7 = vld [vmem:[%s8052_s1 + $0xa8] sm:$0xff] }
  0x2d   : > { %v644_v34 = vpack.c.bf16 %v619_v28, %v618_v27  ;;  %v635_v35 = vmax.f32 %v603_v29, 0.0  ;;  %v566_v36 = vmul.f32 %v5746_v8, %v527_v23  ;;  %v1414_v0 = vpack.c.bf16 %v4760_v63, %v4760_v63  ;;  %v1078_v9 = vld [vmem:[%s8052_s1 + $0xa0] sm:$0xff]  ;;  %v1081_v10 = vld [vmem:[%s8052_s1 + $0xb8] sm:$0xff]  ;;  %v1080_v11 = vld [vmem:[%s8052_s1 + $0xb0] sm:$0xff] }
  0x2e   : > { %1201 = vperm.xlu1 %5522, %v1067_v25   ;;  %1196 = vperm.xlu0 %5521, %v1066_v26   ;;  %v589_v37 = vadd.f32 %v5767_v12, %v550_v31  ;;  %v620_v38 = vmax.f32 %v588_v32, 0.0  ;;  %v604_v39 = vadd.f32 %v5767_v12, %v565_v33  ;;  %v1111_v13 = vld [vmem:[%s8053_s2 + $0xa8] sm:$0xff]  ;;  %v1110_v14 = vld [vmem:[%s8053_s2 + $0xa0] sm:$0xff]  ;;  %v1113_v15 = vld [vmem:[%s8053_s2 + $0xb8] sm:$0xff] }
  0x2f   : > { %5150 = vmatmul.mubr.msk.bf16.gmra.mxu1 %vm663_vm2, %v651_v24  ;;  %5137 = vmatprep.mubr.msk.bf16.mxu0 %vm663_vm2, %v644_v34  ;;  %v652_v8 = vpack.c.bf16 %v635_v35, %v634_v30  ;;  %v605_v42 = vadd.f32 %v5767_v12, %v566_v36  ;;  %v1101_v12 = vld [vmem:[%s8053_s2 + $0x58] sm:$0xff]  ;;  %v1465_v3 = vsel %vm1463_vm3, %v1414_v0, 0  ;;  %v1112_v16 = vld [vmem:[%s8053_s2 + $0xb0] sm:$0xff]  ;;  %v1083_v17 = vld [vmem:[%s8052_s1 + $0xc8] sm:$0xff] }
  0x30   : > { %v621_v43 = vmax.f32 %v589_v37, 0.0  ;;  %v636_v44 = vmax.f32 %v604_v39, 0.0  ;;  %5501 = vmatprep.subr.msk.bf16.mxu1 %vm1463_vm3, %v1414_v0  ;;  %v1082_v18 = vld [vmem:[%s8052_s1 + $0xc0] sm:$0xff]  ;;  %v1085_v19 = vld [vmem:[%s8052_s1 + $0xd8] sm:$0xff]  ;;  %v1084_v20 = vld [vmem:[%s8052_s1 + $0xd0] sm:$0xff] }
  0x31   : > { %5153 = vmatprep.mubr.msk.bf16.mxu1 %vm663_vm2, %v652_v8  ;;  %v637_v45 = vmax.f32 %v605_v42, 0.0  ;;  %5158 = vmatpush3.bf16.msra.mxu1 %v1465_v3  ;;  %v1115_v21 = vld [vmem:[%s8053_s2 + $0xc8] sm:$0xff]  ;;  %v1114_v22 = vld [vmem:[%s8053_s2 + $0xc0] sm:$0xff]  ;;  %v1117_v28 = vld [vmem:[%s8053_s2 + $0xd8] sm:$0xff] }
  0x32   : > { %1211 = vperm.xlu1 %5522, %v1069_v40   ;;  %1206 = vperm.xlu0 %5521, %v1068_v41   ;;  %v645_v46 = vpack.c.bf16 %v621_v43, %v620_v38  ;;  %v1362_v23 = vld [vmem:[%s8060_s9] sm:$0xf]  ;;  %v1365_v26 = vld [vmem:[#allocation2 + $0x9] sm:$0xff]  ;;  %v1089_v33 = vld [vmem:[%s8052_s1 + $0xf8] sm:$0xff] }
  0x33   : > { %v653_v47 = vpack.c.bf16 %v637_v45, %v636_v44  ;;  %v1363_v24 = vpack.c.bf16 %v1362_v23, %v1362_v23  ;;  %v1364_v25 = vld [vmem:[#allocation2 + $0x1] sm:$0xff]  ;;  %v1116_v29 = vld [vmem:[%s8053_s2 + $0xd0] sm:$0xff]  ;;  %v1121_v39 = vld [vmem:[%s8053_s2 + $0xf8] sm:$0xff] }
  0x34   : > { %5138 = vmatmul.mubr.msk.bf16.gmra.mxu0 %vm663_vm2, %v645_v46  ;;  %v1396_v27 = vpack.c.bf16 %v1365_v26, %v1364_v25  ;;  %v1087_v31 = vld [vmem:[%s8052_s1 + $0xe8] sm:$0xff]  ;;  %v1086_v32 = vld [vmem:[%s8052_s1 + $0xe0] sm:$0xff]  ;;  %v1088_v34 = vld [vmem:[%s8052_s1 + $0xf0] sm:$0xff] }
  0x35   : > { %5502 = vmatprep.subr.msk.bf16.mxu0 %vm1463_vm3, %v1363_v24  ;;  %v1677_v30 = vsel %vm1463_vm3, %v1363_v24, 0  ;;  %v1119_v35 = vld [vmem:[%s8053_s2 + $0xe8] sm:$0xff]  ;;  %v1118_v36 = vld [vmem:[%s8053_s2 + $0xe0] sm:$0xff]  ;;  %v1120_v40 = vld [vmem:[%s8053_s2 + $0xf0] sm:$0xff] }
  0x36   : > { %1919 = vperm.xlu1 %5522, %v1099_v48   ;;  %1914 = vperm.xlu0 %5521, %v1098_v49   ;;  %v4793_v37 = vld [vmem:[%s8060_s9 + $0x8] sm:$0xf]  ;;  %v1122_v42 = vld [vmem:[#allocation2] sm:$0xff] }
  0x37   : > { %5154 = vmatmul.mubr.msk.bf16.gmra.mxu1 %vm663_vm2, %v653_v47  ;;  %5192 = vmatpush3.bf16.msra.mxu0 %v1677_v30  ;;  %v6063_v38 = vpack.c.bf16 %v4793_v37, %v4793_v37  ;;  %v1123_v43 = vld [vmem:[#allocation2 + $0x8] sm:$0xff]  ;;  %v6171_v26 = vld [vmem:[%s8057_s6] ss:$0 sm:$0xff] }
  0x38   : > { %5159 = vmatprep.mubr.msk.bf16.mxu1 %vm987_vm0, %v1396_v27 }
  0x39   : > { %5503 = vmatprep.subr.msk.bf16.mxu1 %vm1463_vm3, %v6063_v38 }
  0x3a   : > { %1929 = vperm.xlu1 %5522, %v1101_v12   ;;  %1924 = vperm.xlu0 %5521, %v1100_v50  }
  0x3e   : > { %1221 = vperm.xlu1 %5522, %v1071_v51   ;;  %1216 = vperm.xlu0 %5521, %v1070_v52  }
  0x42   : > { %1231 = vperm.xlu1 %5522, %v1073_v53   ;;  %1226 = vperm.xlu0 %5521, %v1072_v54  }
  0x46   : > { %1939 = vperm.xlu1 %5522, %v1103_v55   ;;  %1934 = vperm.xlu0 %5521, %v1102_v56  }
  0x4a   : > { %1949 = vperm.xlu1 %5522, %v1105_v57   ;;  %1944 = vperm.xlu0 %5521, %v1104_v58  }
  0x4e   : > { %1241 = vperm.xlu1 %5522, %v1075_v59   ;;  %1236 = vperm.xlu0 %5521, %v1074_v60  }
  0x52   : > { %1251 = vperm.xlu1 %5522, %v1077_v61   ;;  %1246 = vperm.xlu0 %5521, %v1076_v62  }
  0x56   : > { %1959 = vperm.xlu1 %5522, %v1107_v1   ;;  %1954 = vperm.xlu0 %5521, %v1106_v2  }
  0x5a   : > { %1969 = vperm.xlu1 %5522, %v1109_v5   ;;  %1964 = vperm.xlu0 %5521, %v1108_v6   ;;  %v4810_v6 = vld [vmem:[%s8060_s9 + $0xc] sm:$0xf] }
  0x5e   : > { %1261 = vperm.xlu1 %5522, %v1079_v7   ;;  %1256 = vperm.xlu0 %5521, %v1078_v9   ;;  %v6132_v7 = vpack.c.bf16 %v4810_v6, %v4810_v6 }
  0x60   : > { %5504 = vmatprep.subr.msk.bf16.mxu0 %vm1463_vm3, %v6132_v7 }
  0x62   : > { %1271 = vperm.xlu1 %5522, %v1081_v10   ;;  %1266 = vperm.xlu0 %5521, %v1080_v11  }
  0x66   : > { %1979 = vperm.xlu1 %5522, %v1111_v13   ;;  %1974 = vperm.xlu0 %5521, %v1110_v14  }
  0x6a   : > { %1989 = vperm.xlu1 %5522, %v1113_v15   ;;  %1984 = vperm.xlu0 %5521, %v1112_v16  }
  0x6e   : > { %1281 = vperm.xlu1 %5522, %v1083_v17   ;;  %1276 = vperm.xlu0 %5521, %v1082_v18  }
  0x72   : > { %1291 = vperm.xlu1 %5522, %v1085_v19   ;;  %1286 = vperm.xlu0 %5521, %v1084_v20  }
  0x76   : > { %1999 = vperm.xlu1 %5522, %v1115_v21   ;;  %1994 = vperm.xlu0 %5521, %v1114_v22  }
  0x7a   : > { %2009 = vperm.xlu1 %5522, %v1117_v28   ;;  %2004 = vperm.xlu0 %5521, %v1116_v29   ;;  %v6176_v28 = vld [vmem:[%s8058_s7] ss:$0 sm:$0xff] }
  0x7e   : > { %1301 = vperm.xlu1 %5522, %v1087_v31   ;;  %1296 = vperm.xlu0 %5521, %v1086_v32   ;;  %v6186_v32 = vld [vmem:[%s8059_s8] ss:$0 sm:$0xff] }
  0x82   : > { %1311 = vperm.xlu1 %5522, %v1089_v33   ;;  %1306 = vperm.xlu0 %5521, %v1088_v34  }
  0x86   : > { %2019 = vperm.xlu1 %5522, %v1119_v35   ;;  %2014 = vperm.xlu0 %5521, %v1118_v36  }
  0x88   : > { %v6073_v41 = vpop.permute.xlu1 %1166  ;;  %v6075_v8 = vpop.permute.xlu0 %1156 }
  0x89   : > { %8227 = vst [vmem:[#allocation3_spill] sm:$0xff] %v6073_v41  ;;  %8228 = vst [vmem:[#allocation4_spill] sm:$0xff] %v6075_v8  ;;  %v1314_v44 = vmul.f32 %v6075_v8, %v1122_v42 }
  0x8a   : > { %2029 = vperm.xlu1 %5522, %v1121_v39   ;;  %2024 = vperm.xlu0 %5521, %v1120_v40  }
  0x8c   : > { %v6079_v45 = vpop.permute.xlu1 %1171  ;;  %v6081_v46 = vpop.permute.xlu0 %1161 }
  0x8d   : > { %8229 = vst [vmem:[#allocation5_spill] sm:$0xff] %v6079_v45  ;;  %8230 = vst [vmem:[#allocation6_spill] sm:$0xff] %v6081_v46  ;;  %v1315_v47 = vmul.f32 %v6081_v46, %v1123_v43 }
  0x8f   : > { %v1346_v48 = vpack.c.bf16 %v1315_v47, %v1314_v44 }
  0x90   : > { %v6084_v49 = vpop.permute.xlu1 %1879  ;;  %v6086_v12 = vpop.permute.xlu0 %1874 }
  0x91   : > { %8231 = vst [vmem:[#allocation7_spill] sm:$0xff] %v6084_v49  ;;  %8232 = vst [vmem:[#allocation8_spill] sm:$0xff] %v6086_v12  ;;  %5193 = vmatprep.mubr.msk.bf16.mxu0 %vm987_vm0, %v1346_v48 }
  0x94   : > { %v6089_v50 = vpop.permute.xlu1 %1889  ;;  %v6091_v51 = vpop.permute.xlu0 %1884 }
  0x95   : > { %8233 = vst [vmem:[#allocation9_spill] sm:$0xff] %v6089_v50  ;;  %8234 = vst [vmem:[#allocation10_spill] sm:$0xff] %v6091_v51 }
  0x98   : > { %v6093_v52 = vpop.permute.xlu1 %1181  ;;  %v6095_v4 = vpop.permute.xlu0 %1176 }
  0x99   : > { %8235 = vst [vmem:[#allocation11_spill] sm:$0xff] %v6093_v52  ;;  %8236 = vst [vmem:[#allocation12_spill] sm:$0xff] %v6095_v4 }
  0x9d   : > { %v6097_v53 = vpop.permute.xlu1 %1191  ;;  %v6099_v54 = vpop.permute.xlu0 %1186 }
  0xa1   : > { %v6101_v55 = vpop.permute.xlu1 %1899  ;;  %v6103_v56 = vpop.permute.xlu0 %1894 }
  0xa2   : > { %8237 = vst [vmem:[#allocation13_spill] sm:$0xff] %v6101_v55  ;;  %8238 = vst [vmem:[#allocation14_spill] sm:$0xff] %v6103_v56 }
  0xa5   : > { %v6105_v57 = vpop.permute.xlu1 %1909  ;;  %v6107_v58 = vpop.permute.xlu0 %1904 }
  0xa6   : > { %8239 = vst [vmem:[#allocation15_spill] sm:$0xff] %v6105_v57  ;;  %8240 = vst [vmem:[#allocation16_spill] sm:$0xff] %v6107_v58 }
  0xa9   : > { %v6109_v59 = vpop.permute.xlu1 %1201  ;;  %v6111_v60 = vpop.permute.xlu0 %1196 }
  0xaa   : > { %8241 = vst [vmem:[#allocation17_spill] sm:$0xff] %v6109_v59  ;;  %8242 = vst [vmem:[#allocation18_spill] sm:$0xff] %v6111_v60 }
  0xad   : > { %v6113_v61 = vpop.permute.xlu1 %1211  ;;  %v6115_v62 = vpop.permute.xlu0 %1206 }
  0xae   : > { %8243 = vst [vmem:[#allocation19_spill] sm:$0xff] %v6113_v61  ;;  %8244 = vst [vmem:[#allocation20_spill] sm:$0xff] %v6115_v62 }
  0xb1   : > { %v6117_v63 = vpop.permute.xlu1 %1919  ;;  %v6119_v0 = vpop.permute.xlu0 %1914 }
  0xb2   : > { %8245 = vst [vmem:[#allocation21_spill] sm:$0xff] %v6117_v63  ;;  %8246 = vst [vmem:[#allocation22_spill] sm:$0xff] %v6119_v0 }
  0xb5   : > { %v6121_v1 = vpop.permute.xlu1 %1929  ;;  %v6123_v2 = vpop.permute.xlu0 %1924 }
  0xb6   : > { %8247 = vst [vmem:[#allocation23_spill] sm:$0xff] %v6121_v1  ;;  %8248 = vst [vmem:[#allocation24_spill] sm:$0xff] %v6123_v2 }
  0xb9   : > { %v6125_v3 = vpop.permute.xlu1 %1221  ;;  %v6127_v5 = vpop.permute.xlu0 %1216 }
  0xba   : > { %8249 = vst [vmem:[#allocation25_spill] sm:$0xff] %v6125_v3  ;;  %8250 = vst [vmem:[#allocation26_spill] sm:$0xff] %v6127_v5 }
  0xbd   : > { %v6134_v9 = vpop.permute.xlu1 %1231  ;;  %v6136_v10 = vpop.permute.xlu0 %1226 }
  0xc1   : > { %v6140_v11 = vpop.permute.xlu1 %1939  ;;  %v6142_v13 = vpop.permute.xlu0 %1934 }
  0xc2   : > { %8251 = vst [vmem:[#allocation27_spill] sm:$0xff] %v6140_v11  ;;  %8252 = vst [vmem:[#allocation28_spill] sm:$0xff] %v6142_v13 }
  0xc5   : > { %v6144_v14 = vpop.permute.xlu1 %1949  ;;  %v6146_v15 = vpop.permute.xlu0 %1944 }
  0xc6   : > { %8253 = vst [vmem:[#allocation29_spill] sm:$0xff] %v6144_v14  ;;  %8254 = vst [vmem:[#allocation30_spill] sm:$0xff] %v6146_v15 }
  0xc9   : > { %v6148_v16 = vpop.permute.xlu1 %1241  ;;  %v6150_v17 = vpop.permute.xlu0 %1236 }
  0xcd   : > { %v6152_v18 = vpop.permute.xlu1 %1251  ;;  %v6154_v19 = vpop.permute.xlu0 %1246 }
  0xd1   : > { %v6156_v20 = vpop.permute.xlu1 %1959  ;;  %v6158_v21 = vpop.permute.xlu0 %1954 }
  0xd2   : > { %8255 = vst [vmem:[#allocation31_spill] sm:$0xff] %v6156_v20  ;;  %8256 = vst [vmem:[#allocation32_spill] sm:$0xff] %v6158_v21 }
  0xd5   : > { %v6160_v22 = vpop.permute.xlu1 %1969  ;;  %v6162_v23 = vpop.permute.xlu0 %1964 }
  0xd6   : > { %8257 = vst [vmem:[#allocation33_spill] sm:$0xff] %v6160_v22  ;;  %8258 = vst [vmem:[#allocation34_spill] sm:$0xff] %v6162_v23 }
  0xd9   : > { %v6164_v24 = vpop.permute.xlu1 %1261  ;;  %v6166_v25 = vpop.permute.xlu0 %1256 }
  0xda   : > { %8259 = vst [vmem:[#allocation35_spill] sm:$0xff] %v6164_v24  ;;  %8260 = vst [vmem:[#allocation36_spill] sm:$0xff] %v6166_v25 }
  0xdc   : > { %v5127_v27 = vpop.f32.mrf.mxu0 }
  0xdd   : > { %v759_v29 = vadd.f32 %v5127_v27, %v6171_v26  ;;  %v6179_v30 = vpop.permute.xlu1 %1271  ;;  %v6181_v31 = vpop.permute.xlu0 %1266 }
  0xde   : > { %8261 = vst [vmem:[#allocation37_spill] sm:$0xff] %v6179_v30  ;;  %8262 = vst [vmem:[#allocation38_spill] sm:$0xff] %v6181_v31  ;;  %v750_v33 = vpop.f32.mrf.mxu0  ;;  %v5143_v35 = vpop.f32.mrf.mxu1 }
  0xdf   : > { %v886_v34 = vmul.f32 %v6176_v28, %v759_v29  ;;  %v751_v36 = vadd.f32 %v6171_v26, %v750_v33  ;;  %v823_v37 = vadd.f32 %v5143_v35, %v6171_v26 }
  0xe0   : > { %v5128_v39 = vpop.f32.mrf.mxu0  ;;  %v814_v43 = vpop.f32.mrf.mxu1 }
  0xe1   : > { %v925_v40 = vadd.f32 %v6186_v32, %v886_v34  ;;  %v884_v42 = vmul.f32 %v6176_v28, %v751_v36  ;;  %v762_v44 = vadd.f32 %v5128_v39, %v6171_v26  ;;  %v6194_v47 = vpop.permute.xlu1 %1979  ;;  %v902_v48 = vmul.f32 %v6176_v28, %v823_v37  ;;  %v6198_v27 = vpop.permute.xlu0 %1974 }
  0xe2   : > { %8263 = vst [vmem:[#allocation39_spill] sm:$0xff] %v6194_v47  ;;  %v815_v6 = vadd.f32 %v6171_v26, %v814_v43  ;;  %8264 = vst [vmem:[#allocation40_spill] sm:$0xff] %v6198_v27  ;;  %v753_v29 = vpop.f32.mrf.mxu0  ;;  %v5144_v34 = vpop.f32.mrf.mxu1  ;;  %v6208_v43 = vsel %vm1463_vm3, %v6063_v38, 0 }
  0xe3   : > { %v957_v33 = vmax.f32 %v925_v40, 0.0  ;;  %v923_v35 = vadd.f32 %v6186_v32, %v884_v42  ;;  %v887_v22 = vmul.f32 %v6176_v28, %v762_v44  ;;  %v754_v36 = vadd.f32 %v6171_v26, %v753_v29 }
  0xe4   : > { %v941_v23 = vadd.f32 %v6186_v32, %v902_v48  ;;  %v900_v39 = vmul.f32 %v6176_v28, %v815_v6  ;;  %v826_v47 = vadd.f32 %v5144_v34, %v6171_v26  ;;  %v5131_v37 = vpop.f32.mrf.mxu0  ;;  %v817_v27 = vpop.f32.mrf.mxu1 }
  0xe5   : > { %1028 = vst.msk [vmem:[#allocation2 + $0x21] sm:$0xff] %vm987_vm0, %v957_v33  ;;  %v955_v40 = vmax.f32 %v923_v35, 0.0  ;;  %v926_v42 = vadd.f32 %v6186_v32, %v887_v22  ;;  %v885_v44 = vmul.f32 %v6176_v28, %v754_v36  ;;  %v775_v29 = vadd.f32 %v5131_v37, %v6171_v26  ;;  %v6214_v48 = vpop.permute.xlu1 %1989  ;;  %v6219_v21 = vpop.permute.xlu0 %1984 }
  0xe6   : > { %8265 = vst [vmem:[#allocation41_spill] sm:$0xff] %v6214_v48  ;;  %v973_v6 = vmax.f32 %v941_v23, 0.0  ;;  %v939_v34 = vadd.f32 %v6186_v32, %v900_v39  ;;  %v903_v20 = vmul.f32 %v6176_v28, %v826_v47  ;;  %v818_v38 = vadd.f32 %v6171_v26, %v817_v27  ;;  %8266 = vst [vmem:[#allocation42_spill] sm:$0xff] %v6219_v21  ;;  %v766_v33 = vpop.f32.mrf.mxu0 }
  0xe7   : > { %1026 = vst.msk [vmem:[#allocation2 + $0x11] sm:$0xff] %vm987_vm0, %v955_v40  ;;  %v958_v22 = vmax.f32 %v926_v42, 0.0  ;;  %v924_v35 = vadd.f32 %v6186_v32, %v885_v44  ;;  %v890_v36 = vmul.f32 %v6176_v28, %v775_v29  ;;  %v5147_v37 = vpop.f32.mrf.mxu1  ;;  %v767_v48 = vadd.f32 %v6171_v26, %v766_v33 }
  0xe8   : > { %1044 = vst.msk [vmem:[#allocation2 + $0xa1] sm:$0xff] %vm987_vm0, %v973_v6  ;;  %v971_v23 = vmax.f32 %v939_v34, 0.0  ;;  %v942_v47 = vadd.f32 %v6186_v32, %v903_v20  ;;  %v901_v27 = vmul.f32 %v6176_v28, %v818_v38  ;;  %v839_v39 = vadd.f32 %v5147_v37, %v6171_v26  ;;  %v5132_v21 = vpop.f32.mrf.mxu0 }
  0xe9   : > { %1029 = vst.msk [vmem:[#allocation2 + $0x29] sm:$0xff] %vm987_vm0, %v958_v22  ;;  %v956_v40 = vmax.f32 %v924_v35, 0.0  ;;  %v929_v42 = vadd.f32 %v6186_v32, %v890_v36  ;;  %v888_v44 = vmul.f32 %v6176_v28, %v767_v48  ;;  %v830_v29 = vpop.f32.mrf.mxu1  ;;  %v778_v33 = vadd.f32 %v5132_v21, %v6171_v26  ;;  %v6233_v13 = vpop.permute.xlu1 %1281 }
  0xea   : > { %8267 = vst [vmem:[#allocation43_spill] sm:$0xff] %v6233_v13  ;;  %1042 = vst.msk [vmem:[#allocation2 + $0x91] sm:$0xff] %vm987_vm0, %v971_v23  ;;  %v974_v20 = vmax.f32 %v942_v47, 0.0  ;;  %v940_v6 = vadd.f32 %v6186_v32, %v901_v27  ;;  %v906_v34 = vmul.f32 %v6176_v28, %v839_v39  ;;  %v831_v38 = vadd.f32 %v6171_v26, %v830_v29  ;;  %v6239_v22 = vpop.permute.xlu0 %1276  ;;  %v769_v35 = vpop.f32.mrf.mxu0 }
  0xeb   : > { %8268 = vst [vmem:[#allocation44_spill] sm:$0xff] %v6239_v22  ;;  %1027 = vst.msk [vmem:[#allocation2 + $0x19] sm:$0xff] %vm987_vm0, %v956_v40  ;;  %v961_v48 = vmax.f32 %v929_v42, 0.0  ;;  %v927_v36 = vadd.f32 %v6186_v32, %v888_v44  ;;  %v891_v21 = vmul.f32 %v6176_v28, %v778_v33  ;;  %v5148_v37 = vpop.f32.mrf.mxu1  ;;  %v770_v23 = vadd.f32 %v6171_v26, %v769_v35 }
  0xec   : > { %1045 = vst.msk [vmem:[#allocation2 + $0xa9] sm:$0xff] %vm987_vm0, %v974_v20  ;;  %v972_v47 = vmax.f32 %v940_v6, 0.0  ;;  %v945_v27 = vadd.f32 %v6186_v32, %v906_v34  ;;  %v904_v39 = vmul.f32 %v6176_v28, %v831_v38  ;;  %v842_v29 = vadd.f32 %v5148_v37, %v6171_v26  ;;  %v5135_v11 = vpop.f32.mrf.mxu0  ;;  %v1368_v14 = vld [vmem:[#allocation2 + $0x21] sm:$0xff] }
  0xed   : > { %1032 = vst.msk [vmem:[#allocation2 + $0x41] sm:$0xff] %vm987_vm0, %v961_v48  ;;  %v959_v40 = vmax.f32 %v927_v36, 0.0  ;;  %v930_v42 = vadd.f32 %v6186_v32, %v891_v21  ;;  %v889_v44 = vmul.f32 %v6176_v28, %v770_v23  ;;  %v833_v33 = vpop.f32.mrf.mxu1  ;;  %v791_v35 = vadd.f32 %v5135_v11, %v6171_v26  ;;  %v6253_v0 = vpop.permute.xlu1 %1291 }
  0xee   : > { %8269 = vst [vmem:[#allocation45_spill] sm:$0xff] %v6253_v0  ;;  %1043 = vst.msk [vmem:[#allocation2 + $0x99] sm:$0xff] %vm987_vm0, %v972_v47  ;;  %v977_v20 = vmax.f32 %v945_v27, 0.0  ;;  %v943_v6 = vadd.f32 %v6186_v32, %v904_v39  ;;  %v907_v34 = vmul.f32 %v6176_v28, %v842_v29  ;;  %v834_v38 = vadd.f32 %v6171_v26, %v833_v33  ;;  %v6259_v48 = vpop.permute.xlu0 %1286  ;;  %v782_v36 = vpop.f32.mrf.mxu0  ;;  %v6314_v15 = vld [vmem:[#allocation2 + $0x10] sm:$0xff] }
  0xef   : > { %8270 = vst [vmem:[#allocation46_spill] sm:$0xff] %v6259_v48  ;;  %1030 = vst.msk [vmem:[#allocation2 + $0x31] sm:$0xff] %vm987_vm0, %v959_v40  ;;  %v962_v21 = vmax.f32 %v930_v42, 0.0  ;;  %v928_v37 = vadd.f32 %v6186_v32, %v889_v44  ;;  %v894_v11 = vmul.f32 %v6176_v28, %v791_v35  ;;  %v5151_v23 = vpop.f32.mrf.mxu1  ;;  %v783_v47 = vadd.f32 %v6171_v26, %v782_v36 }
  0xf0   : > { %1048 = vst.msk [vmem:[#allocation2 + $0xc1] sm:$0xff] %vm987_vm0, %v977_v20  ;;  %v975_v27 = vmax.f32 %v943_v6, 0.0  ;;  %v946_v39 = vadd.f32 %v6186_v32, %v907_v34  ;;  %v905_v29 = vmul.f32 %v6176_v28, %v834_v38  ;;  %v855_v33 = vadd.f32 %v5151_v23, %v6171_v26  ;;  %v5136_v63 = vpop.f32.mrf.mxu0  ;;  %v4827_v20 = vld [vmem:[%s8060_s9 + $0x10] sm:$0xf] }
  0xf1   : > { %1033 = vst.msk [vmem:[#allocation2 + $0x49] sm:$0xff] %vm987_vm0, %v962_v21  ;;  %v960_v40 = vmax.f32 %v928_v37, 0.0  ;;  %v933_v42 = vadd.f32 %v6186_v32, %v894_v11  ;;  %v892_v44 = vmul.f32 %v6176_v28, %v783_v47  ;;  %v846_v35 = vpop.f32.mrf.mxu1  ;;  %v794_v36 = vadd.f32 %v5136_v63, %v6171_v26  ;;  %v6273_v56 = vpop.permute.xlu1 %1999  ;;  %v1369_v46 = vld [vmem:[#allocation2 + $0x29] sm:$0xff] }
  0xf2   : > { %8271 = vst [vmem:[#allocation47_spill] sm:$0xff] %v6273_v56  ;;  %1046 = vst.msk [vmem:[#allocation2 + $0xb1] sm:$0xff] %vm987_vm0, %v975_v27  ;;  %v978_v6 = vmax.f32 %v946_v39, 0.0  ;;  %v944_v34 = vadd.f32 %v6186_v32, %v905_v29  ;;  %v910_v38 = vmul.f32 %v6176_v28, %v855_v33  ;;  %v847_v21 = vadd.f32 %v6171_v26, %v846_v35  ;;  %v6282_v37 = vpop.permute.xlu0 %1994  ;;  %v785_v11 = vpop.f32.mrf.mxu0  ;;  %v1367_v8 = vld [vmem:[#allocation2 + $0x19] sm:$0xff] }
  0xf3   : > { %8272 = vst [vmem:[#allocation48_spill] sm:$0xff] %v6282_v37  ;;  %1031 = vst.msk [vmem:[#allocation2 + $0x39] sm:$0xff] %vm987_vm0, %v960_v40  ;;  %v965_v63 = vmax.f32 %v933_v42, 0.0  ;;  %v931_v23 = vadd.f32 %v6186_v32, %v892_v44  ;;  %v895_v47 = vmul.f32 %v6176_v28, %v794_v36  ;;  %v5152_v56 = vpop.f32.mrf.mxu1  ;;  %v786_v27 = vadd.f32 %v6171_v26, %v785_v11 }
  0xf4   : > { %1049 = vst.msk [vmem:[#allocation2 + $0xc9] sm:$0xff] %vm987_vm0, %v978_v6  ;;  %v976_v39 = vmax.f32 %v944_v34, 0.0  ;;  %v949_v29 = vadd.f32 %v6186_v32, %v910_v38  ;;  %v908_v33 = vmul.f32 %v6176_v28, %v847_v21  ;;  %v5139_v35 = vpop.f32.mrf.mxu0  ;;  %v6291_v55 = vpack.c.bf16 %v4827_v20, %v4827_v20 }
  0xf5   : > { %1036 = vst.msk [vmem:[#allocation2 + $0x61] sm:$0xff] %vm987_vm0, %v965_v63  ;;  %v963_v40 = vmax.f32 %v931_v23, 0.0  ;;  %v934_v42 = vadd.f32 %v6186_v32, %v895_v47  ;;  %v858_v44 = vadd.f32 %v5152_v56, %v6171_v26  ;;  %v893_v36 = vmul.f32 %v6176_v28, %v786_v27  ;;  %v849_v11 = vpop.f32.mrf.mxu1  ;;  %v6297_v6 = vpop.permute.xlu1 %2009  ;;  %v1366_v23 = vld [vmem:[#allocation2 + $0x11] sm:$0xff] }
  0xf6   : > { %8273 = vst [vmem:[#allocation49_spill] sm:$0xff] %v6297_v6  ;;  %1047 = vst.msk [vmem:[#allocation2 + $0xb9] sm:$0xff] %vm987_vm0, %v976_v39  ;;  %v981_v34 = vmax.f32 %v949_v29, 0.0  ;;  %v947_v38 = vadd.f32 %v6186_v32, %v908_v33  ;;  %v850_v20 = vadd.f32 %v6171_v26, %v849_v11  ;;  %v807_v21 = vadd.f32 %v5139_v35, %v6171_v26  ;;  %v6303_v63 = vpop.permute.xlu0 %2004  ;;  %v798_v47 = vpop.f32.mrf.mxu0 }
  0xf7   : > { %8274 = vst [vmem:[#allocation50_spill] sm:$0xff] %v6303_v63  ;;  %1034 = vst.msk [vmem:[#allocation2 + $0x51] sm:$0xff] %vm987_vm0, %v963_v40  ;;  %v966_v56 = vmax.f32 %v934_v42, 0.0  ;;  %v911_v27 = vmul.f32 %v6176_v28, %v858_v44  ;;  %v932_v6 = vadd.f32 %v6186_v32, %v893_v36  ;;  %v5155_v39 = vpop.f32.mrf.mxu1  ;;  %v6308_v29 = vpack.c.bf16 %v1367_v8, %v1366_v23  ;;  %v6316_v40 = vld [vmem:[#allocation2 + $0x18] sm:$0xff] }
  0xf8   : > { %1052 = vst.msk [vmem:[#allocation2 + $0xe1] sm:$0xff] %vm987_vm0, %v981_v34  ;;  %v979_v33 = vmax.f32 %v947_v38, 0.0  ;;  %v909_v35 = vmul.f32 %v6176_v28, %v850_v20  ;;  %v898_v11 = vmul.f32 %v6176_v28, %v807_v21  ;;  %v871_v63 = vadd.f32 %v5155_v39, %v6171_v26  ;;  %v5140_v42 = vpop.f32.mrf.mxu0 }
  0xf9   : > { %8275 = vst [vmem:[#allocation51_spill] sm:$0xff] %v6308_v29  ;;  %1037 = vst.msk [vmem:[#allocation2 + $0x69] sm:$0xff] %vm987_vm0, %v966_v56  ;;  %v950_v8 = vadd.f32 %v6186_v32, %v911_v27  ;;  %v964_v44 = vmax.f32 %v932_v6, 0.0  ;;  %5160 = vmatmul.mubr.msk.bf16.vlgmr.msra.gmra.mxu1 %vm987_vm0, %v6308_v29  ;;  %v799_v36 = vadd.f32 %v6171_v26, %v798_v47  ;;  %v862_v34 = vpop.f32.mrf.mxu1  ;;  %v6325_v20 = vpop.permute.xlu1 %1301 }
  0xfa   : > { %v6323_v38 = vpack.c.bf16 %v1369_v46, %v1368_v14  ;;  %8277 = vst [vmem:[#allocation53_spill] sm:$0xff] %v6325_v20  ;;  %1050 = vst.msk [vmem:[#allocation2 + $0xd1] sm:$0xff] %vm987_vm0, %v979_v33  ;;  %v948_v21 = vadd.f32 %v6186_v32, %v909_v35  ;;  %v937_v23 = vadd.f32 %v6186_v32, %v898_v11  ;;  %5226 = vmatpush3.bf16.msra.mxu1 %v6208_v43  ;;  %v6333_v27 = vpop.permute.xlu0 %1296  ;;  %v6343_v43 = vld [vmem:[#allocation2 + $0x20] sm:$0xff]  ;;  %v6345_v33 = vld [vmem:[#allocation2 + $0x28] sm:$0xff] }
  0xfb   : > { %v914_v56 = vmul.f32 %v6176_v28, %v871_v63  ;;  %v863_v6 = vadd.f32 %v6171_v26, %v862_v34  ;;  %8278 = vst [vmem:[#allocation54_spill] sm:$0xff] %v6333_v27  ;;  %v982_v47 = vmax.f32 %v950_v8, 0.0  ;;  %1035 = vst.msk [vmem:[#allocation2 + $0x59] sm:$0xff] %vm987_vm0, %v964_v44  ;;  %v896_v46 = vmul.f32 %v6176_v28, %v799_v36  ;;  %v5156_v39 = vpop.f32.mrf.mxu1  ;;  %v801_v8 = vpop.f32.mrf.mxu0 }
  0xfc   : > { %8276 = vst [vmem:[#allocation52_spill] sm:$0xff] %v6323_v38  ;;  %5163 = vmatprep.mubr.msk.bf16.mxu1 %vm987_vm0, %v6323_v38  ;;  %v1316_v14 = vmul.f32 %v6073_v41, %v6314_v15  ;;  %v1317_v63 = vmul.f32 %v6079_v45, %v6316_v40  ;;  %8279 = vst [vmem:[#allocation55_spill] sm:$0xff] %v6343_v43  ;;  %5505 = vmatprep.subr.msk.bf16.mxu1 %vm1463_vm3, %v6291_v55  ;;  %v980_v35 = vmax.f32 %v948_v21, 0.0 }
  0xfd   : > { %8280 = vst [vmem:[#allocation56_spill] sm:$0xff] %v6345_v33  ;;  %v969_v11 = vmax.f32 %v937_v23, 0.0  ;;  %v2459_v44 = vsel %vm1463_vm3, %v6132_v7, 0  ;;  %1053 = vst.msk [vmem:[#allocation2 + $0xe9] sm:$0xff] %vm987_vm0, %v982_v47  ;;  %v953_v36 = vadd.f32 %v6186_v32, %v914_v56  ;;  %v935_v34 = vadd.f32 %v6186_v32, %v896_v46  ;;  %v865_v45 = vpop.f32.mrf.mxu1  ;;  %v6355_v41 = vpop.permute.xlu1 %1311 }
  0xfe   : > { %v912_v38 = vmul.f32 %v6176_v28, %v863_v6  ;;  %v1347_v29 = vpack.c.bf16 %v1317_v63, %v1316_v14  ;;  %1051 = vst.msk [vmem:[#allocation2 + $0xd9] sm:$0xff] %vm987_vm0, %v980_v35  ;;  %v810_v21 = vadd.f32 %v5140_v42, %v6171_v26  ;;  %v874_v7 = vadd.f32 %v5156_v39, %v6171_v26  ;;  %v6365_v47 = vpop.permute.xlu0 %1306  ;;  %v1371_v6 = vld [vmem:[#allocation2 + $0x39] sm:$0xff] }
  0xff   : > { %1040 = vst.msk [vmem:[#allocation2 + $0x81] sm:$0xff] %vm987_vm0, %v969_v11  ;;  %v1318_v23 = vmul.f32 %v6095_v4, %v6343_v43  ;;  %v1319_v56 = vmul.f32 %v6093_v52, %v6345_v33  ;;  %v985_v46 = vmax.f32 %v953_v36, 0.0  ;;  %v967_v14 = vmax.f32 %v935_v34, 0.0  ;;  %v1370_v43 = vld [vmem:[#allocation2 + $0x31] sm:$0xff]  ;;  %v1373_v52 = vld [vmem:[#allocation2 + $0x49] sm:$0xff] }
 0x100   : > { %v951_v63 = vadd.f32 %v6186_v32, %v912_v38  ;;  %5194 = vmatmul.mubr.msk.bf16.vlgmr.msra.gmra.mxu0 %vm987_vm0, %v1347_v29  ;;  %v802_v35 = vadd.f32 %v6171_v26, %v801_v8  ;;  %v899_v42 = vmul.f32 %v6176_v28, %v810_v21  ;;  %v915_v39 = vmul.f32 %v6176_v28, %v874_v7  ;;  %v6373_v33 = vld [vmem:[#allocation2 + $0x38] sm:$0xff]  ;;  %v6386_v21 = vld [vmem:[#allocation2 + $0x30] sm:$0xff] }
 0x101   : > { %v1348_v11 = vpack.c.bf16 %v1319_v56, %v1318_v23  ;;  %v866_v4 = vadd.f32 %v6171_v26, %v865_v45  ;;  %5260 = vmatpush3.bf16.msra.mxu0 %v2459_v44  ;;  %1056 = vst.msk [vmem:[#allocation2 + $0x101] sm:$0xff] %vm987_vm0, %v985_v46  ;;  %1038 = vst.msk [vmem:[#allocation2 + $0x71] sm:$0xff] %vm987_vm0, %v967_v14  ;;  %v6378_v8 = vpack.c.bf16 %v1371_v6, %v1370_v43  ;;  %v6380_v36 = vpop.permute.xlu1 %2019  ;;  %v1372_v44 = vld [vmem:[#allocation2 + $0x41] sm:$0xff] }
 0x102   : > { %v983_v38 = vmax.f32 %v951_v63, 0.0  ;;  %v897_v29 = vmul.f32 %v6176_v28, %v802_v35  ;;  %8282 = vst [vmem:[#allocation58_spill] sm:$0xff] %v6380_v36  ;;  %v938_v34 = vadd.f32 %v6186_v32, %v899_v42  ;;  %v954_v45 = vadd.f32 %v6186_v32, %v915_v39  ;;  %v6388_v7 = vpop.permute.xlu0 %2014  ;;  %v6401_v14 = vld [vmem:[#allocation2 + $0x40] sm:$0xff]  ;;  %v6403_v63 = vld [vmem:[#allocation2 + $0x48] sm:$0xff] }
 0x103   : > { %8281 = vst [vmem:[#allocation57_spill] sm:$0xff] %v6378_v8  ;;  %5197 = vmatprep.mubr.msk.bf16.mxu0 %vm987_vm0, %v1348_v11  ;;  %v913_v26 = vmul.f32 %v6176_v28, %v866_v4  ;;  %8283 = vst [vmem:[#allocation59_spill] sm:$0xff] %v6388_v7  ;;  %5164 = vmatmul.mubr.msk.bf16.gmra.mxu1 %vm987_vm0, %v6378_v8  ;;  %v6394_v23 = vpack.c.bf16 %v1373_v52, %v1372_v44  ;;  %v3929_v11 = vld [vmem:[#allocation2 + $0x11a] sm:$0xff] }
 0x104   : > { %1054 = vst.msk [vmem:[#allocation2 + $0xf1] sm:$0xff] %vm987_vm0, %v983_v38  ;;  %v936_v43 = vadd.f32 %v6186_v32, %v897_v29  ;;  %v1321_v56 = vmul.f32 %v6097_v53, %v6373_v33  ;;  %v6398_v6 = vld [vmem:[#allocation2 + $0xe2] sm:$0xff]  ;;  %v970_v4 = vmax.f32 %v938_v34, 0.0  ;;  %v986_v28 = vmax.f32 %v954_v45, 0.0  ;;  %v3928_v38 = vld [vmem:[#allocation2 + $0x112] sm:$0xff] }
 0x105   : > { %8284 = vst [vmem:[#allocation60_spill] sm:$0xff] %v6394_v23  ;;  %v952_v46 = vadd.f32 %v6186_v32, %v913_v26  ;;  %v6407_v35 = vmul.f32 %v6398_v6, %v6282_v37  ;;  %5167 = vmatprep.mubr.msk.bf16.mxu1 %vm987_vm0, %v6394_v23  ;;  %v1320_v52 = vmul.f32 %v6099_v54, %v6386_v21  ;;  %v6413_v39 = vpop.permute.xlu1 %2029  ;;  %v1375_v34 = vld [vmem:[#allocation2 + $0x59] sm:$0xff]  ;;  %v1376_v8 = vld [vmem:[#allocation2 + $0x61] sm:$0xff] }
 0x106   : > { %v968_v42 = vmax.f32 %v936_v43, 0.0  ;;  %8286 = vst [vmem:[#allocation62_spill] sm:$0xff] %v6413_v39  ;;  %1041 = vst.msk [vmem:[#allocation2 + $0x89] sm:$0xff] %vm987_vm0, %v970_v4  ;;  %v6417_v29 = vpop.permute.xlu0 %2024  ;;  %v1322_v26 = vmul.f32 %v6111_v60, %v6401_v14  ;;  %v1323_v44 = vmul.f32 %v6109_v59, %v6403_v63  ;;  %v1377_v43 = vld [vmem:[#allocation2 + $0x69] sm:$0xff]  ;;  %v6426_v23 = vld [vmem:[#allocation2 + $0x60] sm:$0xff]  ;;  %v6430_v4 = vmul.f32 %v3929_v11, %v6413_v39 }
 0x107   : > { %8285 = vst [vmem:[#allocation61_spill] sm:$0xff] %v6407_v35  ;;  %1057 = vst.msk [vmem:[#allocation2 + $0x109] sm:$0xff] %vm987_vm0, %v986_v28  ;;  %v984_v32 = vmax.f32 %v952_v46, 0.0  ;;  %v1349_v45 = vpack.c.bf16 %v1321_v56, %v1320_v52  ;;  %v6424_v35 = vld [vmem:[#allocation2 + $0x58] sm:$0xff]  ;;  %v6433_v28 = vmul.f32 %v3928_v38, %v6417_v29  ;;  %v6435_v46 = vld [vmem:[#allocation2 + $0x50] sm:$0xff]  ;;  %v6444_v11 = vpack.c.bf16 %v1377_v43, %v1376_v8 }
 0x108   : > { %8287 = vst [vmem:[#allocation63_spill] sm:$0xff] %v6417_v29  ;;  %1039 = vst.msk [vmem:[#allocation2 + $0x79] sm:$0xff] %vm987_vm0, %v968_v42  ;;  %v1374_v56 = vld [vmem:[#allocation2 + $0x51] sm:$0xff]  ;;  %v1350_v42 = vpack.c.bf16 %v1323_v44, %v1322_v26  ;;  %v6440_v37 = vld [vmem:[#allocation2 + $0x68] sm:$0xff]  ;;  %v1325_v38 = vmul.f32 %v6113_v61, %v6424_v35  ;;  %v1326_v60 = vmul.f32 %v6127_v5, %v6426_v23 }
 0x109   : > { %8288 = vst [vmem:[#allocation64_spill] sm:$0xff] %v6426_v23  ;;  %1055 = vst.msk [vmem:[#allocation2 + $0xf9] sm:$0xff] %vm987_vm0, %v984_v32  ;;  %5198 = vmatmul.mubr.msk.bf16.gmra.mxu0 %vm987_vm0, %v1349_v45  ;;  %v6438_v52 = vpack.c.bf16 %v1375_v34, %v1374_v56  ;;  %v3307_v59 = vld [vmem:[#allocation2 + $0x118] sm:$0xff]  ;;  %v1324_v34 = vmul.f32 %v6115_v62, %v6435_v46  ;;  %v1327_v8 = vmul.f32 %v6125_v3, %v6440_v37  ;;  %v6471_v5 = vld [vmem:[#allocation2 + $0x70] sm:$0xff] }
 0x10a   : > { %8289 = vst [vmem:[#allocation65_spill] sm:$0xff] %v6430_v4  ;;  %8290 = vst [vmem:[#allocation66_spill] sm:$0xff] %v6433_v28  ;;  %5201 = vmatprep.mubr.msk.bf16.mxu0 %vm987_vm0, %v1350_v42  ;;  %v1378_v45 = vld [vmem:[#allocation2 + $0x71] sm:$0xff]  ;;  %v6460_v44 = vmul.f32 %v3307_v59, %v6355_v41 }
 0x10b   : > { %8291 = vst [vmem:[#allocation67_spill] sm:$0xff] %v6438_v52  ;;  %8292 = vst [vmem:[#allocation68_spill] sm:$0xff] %v6440_v37  ;;  %5168 = vmatmul.mubr.msk.bf16.gmra.mxu1 %vm987_vm0, %v6438_v52  ;;  %v1351_v42 = vpack.c.bf16 %v1325_v38, %v1324_v34  ;;  %v1352_v52 = vpack.c.bf16 %v1327_v8, %v1326_v60 }
 0x10c   : > { %8293 = vst [vmem:[#allocation69_spill] sm:$0xff] %v6444_v11  ;;  %5171 = vmatprep.mubr.msk.bf16.mxu1 %vm987_vm0, %v6444_v11  ;;  %8294 = vst [vmem:[#allocation70_spill] sm:$0xff] %v6460_v44  ;;  %v1382_v44 = vld [vmem:[#allocation2 + $0x91] sm:$0xff] }
 0x10d   : > { %v6511_v37 = vld [vmem:[#allocation2 + $0x88] sm:$0xff] }
 0x10e   : > { %v3305_v26 = vld [vmem:[#allocation2 + $0x108] sm:$0xff]  ;;  %v3306_v43 = vld [vmem:[#allocation2 + $0x110] sm:$0xff] }
 0x10f   : > { %v3927_v56 = vld [vmem:[#allocation2 + $0x10a] sm:$0xff]  ;;  %v6463_v32 = vmul.f32 %v3305_v26, %v6325_v20  ;;  %v6466_v28 = vmul.f32 %v3306_v43, %v6365_v47  ;;  %v3926_v11 = vld [vmem:[#allocation2 + $0x102] sm:$0xff]  ;;  %v1379_v3 = vld [vmem:[#allocation2 + $0x79] sm:$0xff]  ;;  %v6487_v60 = vmul.f32 %v3305_v26, %v6355_v41 }
 0x110   : > { %v6469_v4 = vmul.f32 %v3927_v56, %v6380_v36  ;;  %v2357_v61 = vld [vmem:[#allocation2 + $0x100] sm:$0xff]  ;;  %v6476_v62 = vmul.f32 %v3926_v11, %v6388_v7  ;;  %v6479_v38 = vmul.f32 %v3927_v56, %v6413_v39  ;;  %v6482_v34 = vmul.f32 %v3926_v11, %v6417_v29  ;;  %v6498_v56 = vld [vmem:[#allocation2 + $0xf2] sm:$0xff]  ;;  %v6572_v39 = vld [vmem:[#allocation2 + $0xc8] sm:$0xff] }
 0x111   : > { %8295 = vst [vmem:[#allocation71_spill] sm:$0xff] %v6463_v32  ;;  %8296 = vst [vmem:[#allocation72_spill] sm:$0xff] %v6466_v28  ;;  %v6473_v59 = vld [vmem:[#allocation2 + $0xfa] sm:$0xff]  ;;  %v6484_v43 = vpack.c.bf16 %v1379_v3, %v1378_v45  ;;  %v1381_v32 = vld [vmem:[#allocation2 + $0x89] sm:$0xff]  ;;  %v6490_v8 = vmul.f32 %v2357_v61, %v6365_v47  ;;  %v6506_v45 = vmul.f32 %v6498_v56, %v6388_v7  ;;  %5202 = vmatmul.mubr.msk.bf16.gmra.mxu0 %vm987_vm0, %v1351_v42 }
 0x112   : > { %8297 = vst [vmem:[#allocation73_spill] sm:$0xff] %v6469_v4  ;;  %8298 = vst [vmem:[#allocation74_spill] sm:$0xff] %v6473_v59  ;;  %v6496_v23 = vmul.f32 %v6473_v59, %v6380_v36  ;;  %v6500_v11 = vld [vmem:[#allocation2 + $0x78] sm:$0xff]  ;;  %v6502_v3 = vld [vmem:[#allocation2 + $0x80] sm:$0xff]  ;;  %5205 = vmatprep.mubr.msk.bf16.mxu0 %vm987_vm0, %v1352_v52  ;;  %v1328_v42 = vmul.f32 %v6136_v10, %v6471_v5  ;;  %v1331_v52 = vmul.f32 %v6148_v16, %v6511_v37 }
 0x113   : > { %8299 = vst [vmem:[#allocation75_spill] sm:$0xff] %v6476_v62  ;;  %8300 = vst [vmem:[#allocation76_spill] sm:$0xff] %v6479_v38  ;;  %v1380_v26 = vld [vmem:[#allocation2 + $0x81] sm:$0xff]  ;;  %5172 = vmatmul.mubr.msk.bf16.gmra.mxu1 %vm987_vm0, %v6484_v43  ;;  %v1329_v61 = vmul.f32 %v6134_v9, %v6500_v11  ;;  %v1330_v28 = vmul.f32 %v6150_v17, %v6502_v3  ;;  %v1385_v4 = vld [vmem:[#allocation2 + $0xa9] sm:$0xff] }
 0x114   : > { %8301 = vst [vmem:[#allocation77_spill] sm:$0xff] %v6482_v34  ;;  %8302 = vst [vmem:[#allocation78_spill] sm:$0xff] %v6484_v43  ;;  %v6518_v29 = vpack.c.bf16 %v1381_v32, %v1380_v26  ;;  %v1384_v62 = vld [vmem:[#allocation2 + $0xa1] sm:$0xff]  ;;  %v6534_v34 = vld [vmem:[#allocation2 + $0x90] sm:$0xff] }
 0x115   : > { %8303 = vst [vmem:[#allocation79_spill] sm:$0xff] %v6487_v60  ;;  %8304 = vst [vmem:[#allocation80_spill] sm:$0xff] %v6490_v8  ;;  %v1353_v32 = vpack.c.bf16 %v1329_v61, %v1328_v42  ;;  %v1354_v26 = vpack.c.bf16 %v1331_v52, %v1330_v28  ;;  %v1332_v28 = vmul.f32 %v6154_v19, %v6534_v34  ;;  %v6550_v61 = vld [vmem:[#allocation2 + $0xa8] sm:$0xff]  ;;  %v1387_v42 = vld [vmem:[#allocation2 + $0xb9] sm:$0xff] }
 0x116   : > { %8305 = vst [vmem:[#allocation81_spill] sm:$0xff] %v6496_v23  ;;  %8306 = vst [vmem:[#allocation82_spill] sm:$0xff] %v6498_v56  ;;  %5175 = vmatprep.mubr.msk.bf16.mxu1 %vm987_vm0, %v6518_v29  ;;  %v1383_v56 = vld [vmem:[#allocation2 + $0x99] sm:$0xff]  ;;  %v6542_v23 = vpack.c.bf16 %v1385_v4, %v1384_v62  ;;  %v1335_v4 = vmul.f32 %v6164_v24, %v6550_v61  ;;  %v6570_v59 = vld [vmem:[#allocation2 + $0xb0] sm:$0xff] }
 0x117   : > { %8307 = vst [vmem:[#allocation83_spill] sm:$0xff] %v6506_v45  ;;  %8308 = vst [vmem:[#allocation84_spill] sm:$0xff] %v6518_v29  ;;  %v6537_v38 = vpack.c.bf16 %v1383_v56, %v1382_v44  ;;  %v6539_v45 = vld [vmem:[#allocation2 + $0xa0] sm:$0xff]  ;;  %v6544_v29 = vld [vmem:[#allocation2 + $0x98] sm:$0xff] }
 0x118   : > { %8310 = vst [vmem:[#allocation86_spill] sm:$0xff] %v6542_v23  ;;  %v1334_v44 = vmul.f32 %v6166_v25, %v6539_v45  ;;  %v1333_v62 = vmul.f32 %v6152_v18, %v6544_v29  ;;  %v1386_v56 = vld [vmem:[#allocation2 + $0xb1] sm:$0xff]  ;;  %v6565_v8 = vld [vmem:[#allocation2 + $0xc0] sm:$0xff]  ;;  %8314 = vst [vmem:[#allocation90_spill] sm:$0xff] %v6572_v39 }
 0x119   : > { %5206 = vmatmul.mubr.msk.bf16.gmra.mxu0 %vm987_vm0, %v1353_v32  ;;  %8309 = vst [vmem:[#allocation85_spill] sm:$0xff] %v6537_v38  ;;  %v1388_v32 = vld [vmem:[#allocation2 + $0xc1] sm:$0xff]  ;;  %v6560_v43 = vld [vmem:[#allocation2 + $0xb8] sm:$0xff]  ;;  %8312 = vst [vmem:[#allocation88_spill] sm:$0xff] %v6565_v8 }
 0x11a   : > { %5209 = vmatprep.mubr.msk.bf16.mxu0 %vm987_vm0, %v1354_v26  ;;  %v1355_v52 = vpack.c.bf16 %v1333_v62, %v1332_v28  ;;  %v1389_v26 = vld [vmem:[#allocation2 + $0xc9] sm:$0xff]  ;;  %v1337_v28 = vmul.f32 %v6179_v30, %v6560_v43  ;;  %v1339_v62 = vmul.f32 %v6233_v13, %v6572_v39  ;;  %v6588_v7 = vld [vmem:[#allocation2 + $0xe0] sm:$0xff]  ;;  %v6651_v24 = vld [vmem:[#allocation2 + $0x12] sm:$0xff] }
 0x11b   : > { %5176 = vmatmul.mubr.msk.bf16.gmra.mxu1 %vm987_vm0, %v6537_v38  ;;  %v1356_v38 = vpack.c.bf16 %v1335_v4, %v1334_v44  ;;  %v6568_v60 = vpack.c.bf16 %v1389_v26, %v1388_v32  ;;  %v1338_v44 = vmul.f32 %v6239_v22, %v6565_v8  ;;  %v1390_v4 = vld [vmem:[#allocation2 + $0xd1] sm:$0xff]  ;;  %v1393_v32 = vld [vmem:[#allocation2 + $0xe9] sm:$0xff]  ;;  %8316 = vst [vmem:[#allocation92_spill] sm:$0xff] %v6588_v7  ;;  %8328 = vst [vmem:[#allocation104_spill] sm:$0xff] %v6651_v24 }
 0x11c   : > { %5179 = vmatprep.mubr.msk.bf16.mxu1 %vm987_vm0, %v6542_v23  ;;  %v6563_v23 = vpack.c.bf16 %v1387_v42, %v1386_v56  ;;  %v1391_v56 = vld [vmem:[#allocation2 + $0xd9] sm:$0xff]  ;;  %v4844_v22 = vld [vmem:[%s8060_s9 + $0x14] sm:$0xf]  ;;  %v1840_v30 = vld [vmem:[#allocation2 + $0x2] sm:$0xff] }
 0x11d   : > { %8313 = vst [vmem:[#allocation89_spill] sm:$0xff] %v6568_v60  ;;  %v1358_v26 = vpack.c.bf16 %v1339_v62, %v1338_v44  ;;  %v1845_v44 = vld [vmem:[#allocation2 + $0x2a] sm:$0xff]  ;;  %v6619_v39 = vld [vmem:[#allocation2 + $0x62] sm:$0xff] }
 0x11e   : > { %8311 = vst [vmem:[#allocation87_spill] sm:$0xff] %v6563_v23  ;;  %v6601_v62 = vld [vmem:[#allocation2 + $0xe8] sm:$0xff]  ;;  %8321 = vst [vmem:[#allocation97_spill] sm:$0xff] %v6619_v39 }
 0x11f   : > { %8320 = vst [vmem:[#allocation96_spill] sm:$0xff] %v6601_v62  ;;  %v6638_v8 = vld [vmem:[#allocation2 + $0x8a] sm:$0xff] }
 0x121   : > { %5210 = vmatmul.mubr.msk.bf16.gmra.mxu0 %vm987_vm0, %v1355_v52  ;;  %v1392_v52 = vld [vmem:[#allocation2 + $0xe1] sm:$0xff] }
 0x122   : > { %5213 = vmatprep.mubr.msk.bf16.mxu0 %vm987_vm0, %v1356_v38  ;;  %v1336_v38 = vmul.f32 %v6181_v31, %v6570_v59  ;;  %v6597_v36 = vpack.c.bf16 %v1393_v32, %v1392_v52  ;;  %v6611_v52 = vld [vmem:[#allocation2 + $0x42] sm:$0xff]  ;;  %v6613_v32 = vld [vmem:[#allocation2 + $0x4a] sm:$0xff] }
 0x123   : > { %5180 = vmatmul.mubr.msk.bf16.gmra.mxu1 %vm987_vm0, %v6563_v23  ;;  %v6586_v23 = vld [vmem:[#allocation2 + $0xd8] sm:$0xff] }
 0x124   : > { %5183 = vmatprep.mubr.msk.bf16.mxu1 %vm987_vm0, %v6568_v60  ;;  %v1357_v42 = vpack.c.bf16 %v1337_v28, %v1336_v38  ;;  %8315 = vst [vmem:[#allocation91_spill] sm:$0xff] %v6586_v23  ;;  %v6591_v60 = vpack.c.bf16 %v1391_v56, %v1390_v4  ;;  %8318 = vst [vmem:[#allocation94_spill] sm:$0xff] %v6597_v36  ;;  %v6599_v28 = vld [vmem:[#allocation2 + $0xd0] sm:$0xff]  ;;  %v1844_v38 = vld [vmem:[#allocation2 + $0x22] sm:$0xff]  ;;  %v1341_v4 = vmul.f32 %v6253_v0, %v6586_v23 }
 0x125   : > { %8319 = vst [vmem:[#allocation95_spill] sm:$0xff] %v6599_v28  ;;  %v1841_v56 = vld [vmem:[#allocation2 + $0xa] sm:$0xff]  ;;  %v6624_v13 = vmul.f32 %v6091_v51, %v1844_v38  ;;  %v1395_v23 = vld [vmem:[#allocation2 + $0xf9] sm:$0xff] }
 0x126   : > { %8317 = vst [vmem:[#allocation93_spill] sm:$0xff] %v6591_v60  ;;  %v6621_v0 = vld [vmem:[#allocation2 + $0x6a] sm:$0xff]  ;;  %v2033_v31 = vmul.f32 %v6084_v49, %v1841_v56  ;;  %v2032_v56 = vmul.f32 %v6086_v12, %v1840_v30 }
 0x127   : > { %8322 = vst [vmem:[#allocation98_spill] sm:$0xff] %v6621_v0  ;;  %8323 = vst [vmem:[#allocation99_spill] sm:$0xff] %v6624_v13  ;;  %v6661_v25 = vmul.f32 %v6121_v1, %v6621_v0  ;;  %v6663_v13 = vld [vmem:[#allocation2 + $0xf0] sm:$0xff]  ;;  %v8336_v1 = vld [vmem:[#allocation29_spill] sm:$0xff] }
 0x128   : > { %8332 = vst [vmem:[#allocation108_spill] sm:$0xff] %v6663_v13 }
 0x129   : > { %5214 = vmatmul.mubr.msk.bf16.gmra.mxu0 %vm987_vm0, %v1357_v42  ;;  %v1342_v42 = vmul.f32 %v6333_v27, %v6588_v7  ;;  %v6627_v27 = vmul.f32 %v6089_v50, %v1845_v44  ;;  %v6631_v7 = vld [vmem:[#allocation2 + $0xf8] sm:$0xff]  ;;  %8331 = vst [vmem:[#allocation107_spill] sm:$0xff] %v6661_v25 }
 0x12a   : > { %5217 = vmatprep.mubr.msk.bf16.mxu0 %vm987_vm0, %v1358_v26  ;;  %v6615_v26 = vpack.c.bf16 %v4844_v22, %v4844_v22  ;;  %8325 = vst [vmem:[#allocation101_spill] sm:$0xff] %v6631_v7  ;;  %v1394_v22 = vld [vmem:[#allocation2 + $0xf1] sm:$0xff] }
 0x12b   : > { %5184 = vmatmul.mubr.msk.bf16.gmra.mxu1 %vm987_vm0, %v6591_v60  ;;  %v1340_v60 = vmul.f32 %v6259_v48, %v6599_v28  ;;  %8324 = vst [vmem:[#allocation100_spill] sm:$0xff] %v6627_v27  ;;  %v6636_v28 = vld [vmem:[#allocation2 + $0x82] sm:$0xff]  ;;  %v1345_v27 = vmul.f32 %v6355_v41, %v6631_v7  ;;  %v6668_v30 = vpack.c.bf16 %v1395_v23, %v1394_v22  ;;  %v6725_v7 = vld [vmem:[#allocation2 + $0x3a] sm:$0xff] }
 0x12c   : > { %5187 = vmatprep.mubr.msk.bf16.mxu1 %vm987_vm0, %v6597_v36  ;;  %v1343_v36 = vmul.f32 %v6325_v20, %v6601_v62  ;;  %5506 = vmatprep.subr.msk.bf16.mxu0 %vm1463_vm3, %v6615_v26  ;;  %v6644_v62 = vmul.f32 %v6107_v58, %v6611_v52  ;;  %v6648_v20 = vmul.f32 %v6105_v57, %v6613_v32  ;;  %v8338_v23 = vld [vmem:[#allocation6_spill] sm:$0xff] }
 0x12d   : > { %v1359_v48 = vpack.c.bf16 %v1341_v4, %v1340_v60  ;;  %v6653_v60 = vld [vmem:[#allocation2 + $0x1a] sm:$0xff]  ;;  %v6657_v4 = vmul.f32 %v6123_v2, %v6619_v39  ;;  %8333 = vst [vmem:[#allocation109_spill] sm:$0xff] %v6668_v30  ;;  %v6681_v41 = vmul.f32 %v8336_v1, %v6638_v8 }
 0x12e   : > { %8326 = vst [vmem:[#allocation102_spill] sm:$0xff] %v6644_v62  ;;  %8327 = vst [vmem:[#allocation103_spill] sm:$0xff] %v6648_v20  ;;  %v1360_v49 = vpack.c.bf16 %v1343_v36, %v1342_v42  ;;  %v2064_v42 = vpack.c.bf16 %v2033_v31, %v2032_v56  ;;  %v8334_v39 = vld [vmem:[#allocation30_spill] sm:$0xff]  ;;  %v2034_v31 = vmul.f32 %v6091_v51, %v6651_v24  ;;  %v8339_v56 = vld [vmem:[#allocation13_spill] sm:$0xff] }
 0x12f   : > { %8329 = vst [vmem:[#allocation105_spill] sm:$0xff] %v6653_v60  ;;  %8330 = vst [vmem:[#allocation106_spill] sm:$0xff] %v6657_v4  ;;  %v6677_v0 = vmul.f32 %v8334_v39, %v6636_v28  ;;  %v2035_v22 = vmul.f32 %v6089_v50, %v6653_v60  ;;  %v2037_v12 = vmul.f32 %v8339_v56, %v1845_v44  ;;  %v8341_v51 = vld [vmem:[#allocation14_spill] sm:$0xff]  ;;  %v4861_v44 = vld [vmem:[%s8060_s9 + $0x18] sm:$0xf] }
 0x130   : > { %8337 = vst [vmem:[#allocation111_spill] sm:$0xff] %v6681_v41  ;;  %v1344_v36 = vmul.f32 %v6663_v13, %v6365_v47  ;;  %v8342_v50 = vld [vmem:[#allocation50_spill] sm:$0xff]  ;;  %v8344_v62 = vld [vmem:[#allocation55_spill] sm:$0xff]  ;;  %v8349_v56 = vld [vmem:[#allocation5_spill] sm:$0xff] }
 0x131   : > { %5218 = vmatmul.mubr.msk.bf16.gmra.mxu0 %vm987_vm0, %v1359_v48  ;;  %8335 = vst [vmem:[#allocation110_spill] sm:$0xff] %v6677_v0  ;;  %v6683_v48 = vld [vmem:[#allocation2 + $0xea] sm:$0xff]  ;;  %v6709_v47 = vmul.f32 %v6398_v6, %v8342_v50  ;;  %v8346_v0 = vld [vmem:[#allocation49_spill] sm:$0xff] }
 0x132   : > { %5221 = vmatprep.mubr.msk.bf16.mxu0 %vm987_vm0, %v1360_v49  ;;  %v2360_v49 = vmul.f32 %v8338_v23, %v6316_v40  ;;  %v2754_v40 = vsel %vm1463_vm3, %v6291_v55, 0  ;;  %v2036_v23 = vmul.f32 %v8341_v51, %v1844_v38  ;;  %v8345_v20 = vld [vmem:[#allocation3_spill] sm:$0xff]  ;;  %v2065_v55 = vpack.c.bf16 %v2035_v22, %v2034_v31  ;;  %v8348_v38 = vld [vmem:[#allocation56_spill] sm:$0xff] }
 0x133   : > { %5188 = vmatmul.mubr.msk.bf16.gmra.mxu1 %vm987_vm0, %v6668_v30  ;;  %v8340_v30 = vld [vmem:[#allocation4_spill] sm:$0xff]  ;;  %8343 = vst [vmem:[#allocation50_spill] sm:$0xff] %v6709_v47  ;;  %v2361_v4 = vmul.f32 %v8345_v20, %v8344_v62  ;;  %v2362_v51 = vmul.f32 %v8349_v56, %v8348_v38  ;;  %8352 = vst [vmem:[#allocation3_spill] sm:$0xff] %v6725_v7  ;;  %v6727_v62 = vpack.c.bf16 %v4861_v44, %v4861_v44 }
 0x134   : > { %5227 = vmatprep.mubr.msk.bf16.mxu1 %vm987_vm0, %v2064_v42  ;;  %v2359_v25 = vmul.f32 %v8340_v30, %v6314_v15  ;;  %v1361_v42 = vpack.c.bf16 %v1345_v27, %v1344_v36  ;;  %v6715_v15 = vmul.f32 %v8346_v0, %v6683_v48  ;;  %v2066_v41 = vpack.c.bf16 %v2037_v12, %v2036_v23  ;;  %v6719_v60 = vld [vmem:[#allocation2 + $0x32] sm:$0xff]  ;;  %v8351_v27 = vld [vmem:[#allocation11_spill] sm:$0xff] }
 0x135   : > { %v8350_v24 = vld [vmem:[#allocation12_spill] sm:$0xff]  ;;  %v2364_v36 = vmul.f32 %v8351_v27, %v6373_v33  ;;  %v6734_v12 = vmul.f32 %v8345_v20, %v6386_v21  ;;  %v6738_v23 = vmul.f32 %v8349_v56, %v6373_v33  ;;  %v6746_v31 = vmul.f32 %v8351_v27, %v6403_v63  ;;  %v4878_v20 = vld [vmem:[%s8060_s9 + $0x1c] sm:$0xf] }
 0x136   : > { %8347 = vst [vmem:[#allocation55_spill] sm:$0xff] %v6715_v15  ;;  %v2391_v30 = vpack.c.bf16 %v2360_v49, %v2359_v25  ;;  %v2363_v13 = vmul.f32 %v8350_v24, %v6386_v21  ;;  %v6742_v49 = vmul.f32 %v8350_v24, %v6401_v14  ;;  %v2392_v22 = vpack.c.bf16 %v2362_v51, %v2361_v4  ;;  %v8359_v21 = vld [vmem:[#allocation21_spill] sm:$0xff]  ;;  %v8360_v38 = vld [vmem:[#allocation64_spill] sm:$0xff]  ;;  %v8372_v15 = vld [vmem:[#allocation22_spill] sm:$0xff] }
 0x137   : > { %8353 = vst [vmem:[#allocation56_spill] sm:$0xff] %v6734_v12  ;;  %8354 = vst [vmem:[#allocation5_spill] sm:$0xff] %v6738_v23  ;;  %v2038_v44 = vmul.f32 %v6107_v58, %v6719_v60  ;;  %v6756_v33 = vmul.f32 %v6099_v54, %v6435_v46  ;;  %v6760_v24 = vmul.f32 %v6097_v53, %v6424_v35  ;;  %v8363_v25 = vld [vmem:[#allocation68_spill] sm:$0xff]  ;;  %v8377_v12 = vld [vmem:[#allocation97_spill] sm:$0xff] }
 0x138   : > { %8355 = vst [vmem:[#allocation12_spill] sm:$0xff] %v6742_v49  ;;  %8356 = vst [vmem:[#allocation11_spill] sm:$0xff] %v6746_v31  ;;  %v2039_v51 = vmul.f32 %v6105_v57, %v6725_v7  ;;  %v2041_v4 = vmul.f32 %v8359_v21, %v6613_v32  ;;  %v8364_v57 = vld [vmem:[#allocation17_spill] sm:$0xff]  ;;  %v3081_v32 = vsel %vm1463_vm3, %v6615_v26, 0  ;;  %v6814_v23 = vmul.f32 %v6134_v9, %v6544_v29 }
 0x139   : > { %5222 = vmatmul.mubr.msk.bf16.gmra.mxu0 %vm987_vm0, %v1361_v42  ;;  %8357 = vst [vmem:[#allocation112_spill] sm:$0xff] %v6756_v33  ;;  %8358 = vst [vmem:[#allocation113_spill] sm:$0xff] %v6760_v24  ;;  %v6780_v58 = vmul.f32 %v8364_v57, %v8363_v25  ;;  %v8368_v42 = vld [vmem:[#allocation19_spill] sm:$0xff]  ;;  %v8370_v24 = vld [vmem:[#allocation26_spill] sm:$0xff]  ;;  %v6818_v33 = vmul.f32 %v6150_v17, %v6539_v45  ;;  %v2040_v21 = vmul.f32 %v8372_v15, %v6611_v52 }
 0x13a   : > { %5261 = vmatprep.mubr.msk.bf16.mxu0 %vm987_vm0, %v2391_v30  ;;  %v6794_v30 = vmul.f32 %v8368_v42, %v6500_v11  ;;  %v6800_v49 = vmul.f32 %v8370_v24, %v6502_v3  ;;  %v8371_v26 = vld [vmem:[#allocation25_spill] sm:$0xff]  ;;  %v2067_v47 = vpack.c.bf16 %v2039_v51, %v2038_v44  ;;  %v6835_v7 = vmul.f32 %v6154_v19, %v6570_v59 }
 0x13b   : > { %5228 = vmatmul.mubr.msk.bf16.vlgmr.msra.gmra.mxu1 %vm987_vm0, %v2065_v55  ;;  %v8361_v55 = vld [vmem:[#allocation18_spill] sm:$0xff]  ;;  %v6804_v31 = vmul.f32 %v8371_v26, %v6511_v37  ;;  %v2068_v52 = vpack.c.bf16 %v2041_v4, %v2040_v21  ;;  %v2365_v44 = vmul.f32 %v6099_v54, %v6401_v14  ;;  %v2366_v21 = vmul.f32 %v6097_v53, %v6403_v63  ;;  %v8374_v4 = vld [vmem:[#allocation23_spill] sm:$0xff] }
 0x13c   : > { %5294 = vmatpush3.bf16.msra.mxu1 %v2754_v40  ;;  %5231 = vmatprep.mubr.msk.bf16.mxu1 %vm987_vm0, %v2066_v41  ;;  %v6776_v27 = vmul.f32 %v8361_v55, %v8360_v38  ;;  %8365 = vst [vmem:[#allocation18_spill] sm:$0xff] %v6780_v58  ;;  %v6786_v40 = vpack.c.bf16 %v4878_v20, %v4878_v20  ;;  %v8366_v41 = vld [vmem:[#allocation20_spill] sm:$0xff]  ;;  %8369 = vst [vmem:[#allocation17_spill] sm:$0xff] %v6794_v30  ;;  %v8376_v30 = vld [vmem:[#allocation27_spill] sm:$0xff] }
 0x13d   : > { %5507 = vmatprep.subr.msk.bf16.mxu1 %vm1463_vm3, %v6727_v62  ;;  %v6790_v56 = vmul.f32 %v8366_v41, %v6471_v5  ;;  %v6808_v20 = vmul.f32 %v6136_v10, %v6534_v34  ;;  %v2393_v58 = vpack.c.bf16 %v2364_v36, %v2363_v13  ;;  %8373 = vst [vmem:[#allocation20_spill] sm:$0xff] %v6835_v7  ;;  %v6842_v36 = vld [vmem:[#allocation2 + $0x52] sm:$0xff] }
 0x13e   : > { %8362 = vst [vmem:[#allocation64_spill] sm:$0xff] %v6776_v27  ;;  %v6822_v27 = vmul.f32 %v6148_v16, %v6550_v61  ;;  %v6839_v13 = vmul.f32 %v6152_v18, %v6560_v43  ;;  %v2367_v14 = vmul.f32 %v8361_v55, %v6435_v46  ;;  %v8378_v7 = vld [vmem:[#allocation28_spill] sm:$0xff]  ;;  %v2369_v46 = vmul.f32 %v8366_v41, %v8360_v38  ;;  %v6877_v55 = vld [vmem:[#allocation2 + $0xc2] sm:$0xff] }
 0x13f   : > { %8367 = vst [vmem:[#allocation68_spill] sm:$0xff] %v6790_v56  ;;  %v2394_v56 = vpack.c.bf16 %v2366_v21, %v2365_v44  ;;  %v6879_v44 = vld [vmem:[#allocation2 + $0xca] sm:$0xff]  ;;  %v2371_v21 = vmul.f32 %v8370_v24, %v6471_v5  ;;  %v8385_v5 = vld [vmem:[#allocation42_spill] sm:$0xff] }
 0x141   : > { %5262 = vmatmul.mubr.msk.bf16.vlgmr.msra.gmra.mxu0 %vm987_vm0, %v2392_v22  ;;  %v6844_v22 = vld [vmem:[#allocation2 + $0x5a] sm:$0xff] }
 0x142   : > { %5265 = vmatprep.mubr.msk.bf16.mxu0 %vm987_vm0, %v2393_v58  ;;  %5328 = vmatpush3.bf16.msra.mxu0 %v3081_v32  ;;  %v2368_v58 = vmul.f32 %v8364_v57, %v6424_v35  ;;  %v2043_v54 = vmul.f32 %v8374_v4, %v6844_v22  ;;  %v8375_v32 = vld [vmem:[#allocation98_spill] sm:$0xff]  ;;  %v2044_v57 = vmul.f32 %v8378_v7, %v8377_v12  ;;  %v6870_v35 = vld [vmem:[#allocation2 + $0x72] sm:$0xff] }
 0x143   : > { %5232 = vmatmul.mubr.msk.bf16.gmra.mxu1 %vm987_vm0, %v2067_v47  ;;  %5508 = vmatprep.subr.msk.bf16.mxu0 %vm1463_vm3, %v6786_v40  ;;  %v2042_v47 = vmul.f32 %v6123_v2, %v6842_v36  ;;  %v2045_v51 = vmul.f32 %v8376_v30, %v8375_v32  ;;  %v6872_v4 = vld [vmem:[#allocation2 + $0x7a] sm:$0xff]  ;;  %v6881_v12 = vld [vmem:[#allocation2 + $0xd2] sm:$0xff]  ;;  %v2046_v38 = vmul.f32 %v8334_v39, %v6870_v35 }
 0x144   : > { %5235 = vmatprep.mubr.msk.bf16.mxu1 %vm987_vm0, %v2068_v52  ;;  %v2395_v52 = vpack.c.bf16 %v2368_v58, %v2367_v14  ;;  %v6888_v58 = vld [vmem:[#allocation2 + $0xda] sm:$0xff]  ;;  %v2047_v41 = vmul.f32 %v8336_v1, %v6872_v4  ;;  %v8380_v14 = vld [vmem:[#allocation31_spill] sm:$0xff]  ;;  %v6910_v24 = vmul.f32 %v6881_v12, %v8385_v5  ;;  %v6922_v2 = vld [vmem:[#allocation2 + $0x92] sm:$0xff] }
 0x145   : > { %v2069_v53 = vpack.c.bf16 %v2043_v54, %v2042_v47  ;;  %v2070_v63 = vpack.c.bf16 %v2045_v51, %v2044_v57  ;;  %v2372_v51 = vmul.f32 %v8371_v26, %v6500_v11  ;;  %v8379_v47 = vld [vmem:[#allocation32_spill] sm:$0xff]  ;;  %v8383_v26 = vld [vmem:[#allocation39_spill] sm:$0xff]  ;;  %v8387_v57 = vld [vmem:[#allocation41_spill] sm:$0xff] }
 0x146   : > { %v2048_v54 = vmul.f32 %v8379_v47, %v6636_v28  ;;  %v6906_v32 = vmul.f32 %v6879_v44, %v8383_v26  ;;  %8386 = vst [vmem:[#allocation25_spill] sm:$0xff] %v6910_v24  ;;  %v6949_v1 = vld [vmem:[#allocation2 + $0xba] sm:$0xff] }
 0x147   : > { %v2397_v28 = vpack.c.bf16 %v2372_v51, %v2371_v21  ;;  %v6929_v51 = vld [vmem:[#allocation2 + $0xaa] sm:$0xff]  ;;  %v2375_v21 = vmul.f32 %v6150_v17, %v6534_v34  ;;  %v8396_v24 = vld [vmem:[#allocation38_spill] sm:$0xff] }
 0x148   : > { %8384 = vst [vmem:[#allocation26_spill] sm:$0xff] %v6906_v32 }
 0x149   : > { %5266 = vmatmul.mubr.msk.bf16.gmra.mxu0 %vm987_vm0, %v2394_v56  ;;  %v2370_v56 = vmul.f32 %v8368_v42, %v8363_v25  ;;  %v2049_v25 = vmul.f32 %v8380_v14, %v6638_v8  ;;  %v8381_v42 = vld [vmem:[#allocation40_spill] sm:$0xff] }
 0x14a   : > { %5269 = vmatprep.mubr.msk.bf16.mxu0 %vm987_vm0, %v2395_v52  ;;  %v6902_v11 = vmul.f32 %v6877_v55, %v8381_v42  ;;  %v1865_v8 = vld [vmem:[#allocation2 + $0xca] sm:$0xff] }
 0x14b   : > { %5236 = vmatmul.mubr.msk.bf16.gmra.mxu1 %vm987_vm0, %v2069_v53  ;;  %v2396_v52 = vpack.c.bf16 %v2370_v56, %v2369_v46  ;;  %v6914_v53 = vmul.f32 %v6888_v58, %v8387_v57  ;;  %v2072_v39 = vpack.c.bf16 %v2049_v25, %v2048_v54  ;;  %v6924_v46 = vld [vmem:[#allocation2 + $0x9a] sm:$0xff]  ;;  %v2373_v56 = vmul.f32 %v6136_v10, %v6502_v3 }
 0x14c   : > { %5239 = vmatprep.mubr.msk.bf16.mxu1 %vm987_vm0, %v2070_v63  ;;  %8382 = vst [vmem:[#allocation19_spill] sm:$0xff] %v6902_v11  ;;  %v2071_v63 = vpack.c.bf16 %v2047_v41, %v2046_v38  ;;  %v1860_v38 = vld [vmem:[#allocation2 + $0xa2] sm:$0xff]  ;;  %v2374_v41 = vmul.f32 %v6134_v9, %v6511_v37  ;;  %v2376_v10 = vmul.f32 %v6148_v16, %v6544_v29  ;;  %v6947_v37 = vld [vmem:[#allocation2 + $0xb2] sm:$0xff] }
 0x14d   : > { %8388 = vst [vmem:[#allocation22_spill] sm:$0xff] %v6914_v53  ;;  %v8389_v54 = vld [vmem:[#allocation34_spill] sm:$0xff]  ;;  %v2053_v3 = vmul.f32 %v8383_v26, %v6929_v51  ;;  %v2377_v16 = vmul.f32 %v6154_v19, %v6539_v45  ;;  %v8391_v29 = vld [vmem:[#allocation35_spill] sm:$0xff] }
 0x14e   : > { %v2050_v25 = vmul.f32 %v8389_v54, %v6922_v2  ;;  %v2399_v17 = vpack.c.bf16 %v2376_v10, %v2375_v21  ;;  %v1864_v21 = vld [vmem:[#allocation2 + $0xc2] sm:$0xff] }
 0x14f   : > { %v8404_v11 = vld [vmem:[#allocation59_spill] sm:$0xff] }
 0x151   : > { %5270 = vmatmul.mubr.msk.bf16.gmra.mxu0 %vm987_vm0, %v2396_v52  ;;  %v8390_v52 = vld [vmem:[#allocation33_spill] sm:$0xff] }
 0x152   : > { %5273 = vmatprep.mubr.msk.bf16.mxu0 %vm987_vm0, %v2397_v28  ;;  %v2051_v28 = vmul.f32 %v8390_v52, %v6924_v46 }
 0x153   : > { %5240 = vmatmul.mubr.msk.bf16.gmra.mxu1 %vm987_vm0, %v2071_v63  ;;  %v2052_v63 = vmul.f32 %v8381_v42, %v1860_v38  ;;  %v2378_v38 = vmul.f32 %v6152_v18, %v6550_v61  ;;  %v1867_v18 = vld [vmem:[#allocation2 + $0xda] sm:$0xff]  ;;  %v1866_v61 = vld [vmem:[#allocation2 + $0xd2] sm:$0xff] }
 0x154   : > { %5243 = vmatprep.mubr.msk.bf16.mxu1 %vm987_vm0, %v2072_v39  ;;  %v2398_v39 = vpack.c.bf16 %v2374_v41, %v2373_v56  ;;  %v2073_v34 = vpack.c.bf16 %v2051_v28, %v2050_v25  ;;  %v2380_v56 = vmul.f32 %v8391_v29, %v6560_v43  ;;  %v2054_v41 = vmul.f32 %v8385_v5, %v6947_v37  ;;  %v8392_v28 = vld [vmem:[#allocation47_spill] sm:$0xff] }
 0x155   : > { %v2074_v9 = vpack.c.bf16 %v2053_v3, %v2052_v63  ;;  %v2055_v25 = vmul.f32 %v8387_v57, %v6949_v1  ;;  %v2057_v10 = vmul.f32 %v8392_v28, %v1865_v8  ;;  %v8393_v3 = vld [vmem:[#allocation36_spill] sm:$0xff]  ;;  %v2400_v45 = vpack.c.bf16 %v2378_v38, %v2377_v16  ;;  %v8398_v16 = vld [vmem:[#allocation43_spill] sm:$0xff] }
 0x156   : > { %v2379_v19 = vmul.f32 %v8393_v3, %v6570_v59  ;;  %v8397_v59 = vld [vmem:[#allocation91_spill] sm:$0xff] }
 0x157   : > { %v2075_v43 = vpack.c.bf16 %v2055_v25, %v2054_v41  ;;  %v2384_v38 = vmul.f32 %v8398_v16, %v8397_v59  ;;  %v8399_v41 = vld [vmem:[#allocation90_spill] sm:$0xff]  ;;  %v8400_v25 = vld [vmem:[#allocation37_spill] sm:$0xff] }
 0x158   : > { %v8406_v59 = vld [vmem:[#allocation46_spill] sm:$0xff] }
 0x159   : > { %5274 = vmatmul.mubr.msk.bf16.gmra.mxu0 %vm987_vm0, %v2398_v39  ;;  %v8394_v39 = vld [vmem:[#allocation48_spill] sm:$0xff] }
 0x15a   : > { %5277 = vmatprep.mubr.msk.bf16.mxu0 %vm987_vm0, %v2399_v17  ;;  %v2056_v63 = vmul.f32 %v8394_v39, %v1864_v21  ;;  %v2401_v17 = vpack.c.bf16 %v2380_v56, %v2379_v19  ;;  %v2059_v56 = vmul.f32 %v8346_v0, %v1867_v18  ;;  %v2058_v21 = vmul.f32 %v8342_v50, %v1866_v61  ;;  %v8401_v19 = vld [vmem:[#allocation58_spill] sm:$0xff]  ;;  %v8405_v61 = vld [vmem:[#allocation92_spill] sm:$0xff] }
 0x15b   : > { %5244 = vmatmul.mubr.msk.bf16.gmra.mxu1 %vm987_vm0, %v2073_v34 }
 0x15c   : > { %5247 = vmatprep.mubr.msk.bf16.mxu1 %vm987_vm0, %v2074_v9  ;;  %v2076_v34 = vpack.c.bf16 %v2057_v10, %v2056_v63  ;;  %v8395_v9 = vld [vmem:[#allocation88_spill] sm:$0xff]  ;;  %v2382_v10 = vmul.f32 %v8400_v25, %v8399_v41  ;;  %v8402_v63 = vld [vmem:[#allocation95_spill] sm:$0xff]  ;;  %v2385_v41 = vmul.f32 %v8406_v59, %v8405_v61 }
 0x15d   : > { %v2381_v8 = vmul.f32 %v8396_v24, %v8395_v9  ;;  %v2077_v24 = vpack.c.bf16 %v2059_v56, %v2058_v21  ;;  %v8414_v21 = vld [vmem:[#allocation45_spill] sm:$0xff] }
 0x15f   : > { %v2402_v53 = vpack.c.bf16 %v2382_v10, %v2381_v8  ;;  %v8409_v10 = vld [vmem:[#allocation62_spill] sm:$0xff] }
 0x161   : > { %5278 = vmatmul.mubr.msk.bf16.gmra.mxu0 %vm987_vm0, %v2400_v45  ;;  %v2061_v45 = vmul.f32 %v8401_v19, %v6683_v48  ;;  %v8407_v48 = vld [vmem:[#allocation101_spill] sm:$0xff] }
 0x162   : > { %5281 = vmatprep.mubr.msk.bf16.mxu0 %vm987_vm0, %v2401_v17  ;;  %v8403_v17 = vld [vmem:[#allocation44_spill] sm:$0xff]  ;;  %v8408_v19 = vld [vmem:[#allocation53_spill] sm:$0xff] }
 0x163   : > { %5248 = vmatmul.mubr.msk.bf16.gmra.mxu1 %vm987_vm0, %v2075_v43  ;;  %v2383_v43 = vmul.f32 %v8403_v17, %v8402_v63  ;;  %v2388_v8 = vmul.f32 %v8408_v19, %v8407_v48  ;;  %v8410_v63 = vld [vmem:[#allocation74_spill] sm:$0xff]  ;;  %v8418_v48 = vld [vmem:[#allocation104_spill] sm:$0xff] }
 0x164   : > { %5251 = vmatprep.mubr.msk.bf16.mxu1 %vm987_vm0, %v2076_v34  ;;  %v2060_v34 = vmul.f32 %v6398_v6, %v8404_v11  ;;  %v2063_v6 = vmul.f32 %v8410_v63, %v8409_v10  ;;  %v8411_v11 = vld [vmem:[#allocation63_spill] sm:$0xff]  ;;  %v8419_v19 = vld [vmem:[#allocation8_spill] sm:$0xff]  ;;  %v8420_v63 = vld [vmem:[#allocation105_spill] sm:$0xff] }
 0x165   : > { %v2403_v32 = vpack.c.bf16 %v2384_v38, %v2383_v43  ;;  %v8412_v38 = vld [vmem:[#allocation82_spill] sm:$0xff]  ;;  %v8416_v43 = vld [vmem:[#allocation108_spill] sm:$0xff]  ;;  %v2981_v10 = vmul.f32 %v8419_v19, %v8418_v48  ;;  %v8429_v48 = vld [vmem:[#allocation13_spill] sm:$0xff] }
 0x166   : > { %v2078_v18 = vpack.c.bf16 %v2061_v45, %v2060_v34  ;;  %v2062_v56 = vmul.f32 %v8412_v38, %v8411_v11  ;;  %v8421_v11 = vld [vmem:[#allocation7_spill] sm:$0xff] }
 0x167   : > { %v2982_v38 = vmul.f32 %v8421_v11, %v8420_v63 }
 0x168   : > { %v2079_v61 = vpack.c.bf16 %v2063_v6, %v2062_v56  ;;  %v8422_v6 = vld [vmem:[#allocation79_spill] sm:$0xff]  ;;  %v8423_v56 = vld [vmem:[#allocation80_spill] sm:$0xff] }
 0x169   : > { %5282 = vmatmul.mubr.msk.bf16.gmra.mxu0 %vm987_vm0, %v2402_v53  ;;  %v8413_v53 = vld [vmem:[#allocation96_spill] sm:$0xff] }
 0x16a   : > { %5285 = vmatprep.mubr.msk.bf16.mxu0 %vm987_vm0, %v2403_v32  ;;  %v2386_v45 = vmul.f32 %v8414_v21, %v8413_v53  ;;  %v8415_v32 = vld [vmem:[#allocation54_spill] sm:$0xff]  ;;  %v8424_v53 = vpack.c.bf16 %v8422_v6, %v8423_v56  ;;  %v8433_v6 = vld [vmem:[#allocation60_spill] sm:$0xff]  ;;  %v2989_v56 = vmul.f32 %v8372_v15, %v6842_v36  ;;  %v2993_v36 = vmul.f32 %v8378_v7, %v6870_v35 }
 0x16b   : > { %5252 = vmatmul.mubr.msk.bf16.gmra.mxu1 %vm987_vm0, %v2077_v24  ;;  %v2387_v24 = vmul.f32 %v8416_v43, %v8415_v32  ;;  %v8425_v43 = vld [vmem:[#allocation52_spill] sm:$0xff]  ;;  %v2997_v35 = vmul.f32 %v8379_v47, %v6922_v2  ;;  %v8450_v2 = vld [vmem:[#allocation87_spill] sm:$0xff] }
 0x16c   : > { %5255 = vmatprep.mubr.msk.bf16.mxu1 %vm987_vm0, %v2078_v18  ;;  %v2404_v34 = vpack.c.bf16 %v2386_v45, %v2385_v41  ;;  %v8417_v18 = vld [vmem:[#allocation51_spill] sm:$0xff]  ;;  %v4895_v41 = vld [vmem:[%s8060_s9 + $0x20] sm:$0xf] }
 0x16d   : > { %v2405_v0 = vpack.c.bf16 %v2388_v8, %v2387_v24  ;;  %v3013_v8 = vpack.c.bf16 %v2982_v38, %v2981_v10  ;;  %v7019_v45 = vpack.c.bf16 %v4895_v41, %v4895_v41  ;;  %v8426_v24 = vld [vmem:[#allocation57_spill] sm:$0xff]  ;;  %v8430_v38 = vld [vmem:[#allocation100_spill] sm:$0xff]  ;;  %v8431_v41 = vld [vmem:[#allocation99_spill] sm:$0xff] }
 0x171   : > { %5286 = vmatmul.mubr.msk.bf16.gmra.mxu0 %vm987_vm0, %v2404_v34  ;;  %v8427_v34 = vld [vmem:[#allocation14_spill] sm:$0xff] }
 0x172   : > { %5289 = vmatprep.mubr.msk.bf16.mxu0 %vm987_vm0, %v2405_v0  ;;  %v3408_v0 = vsel %vm1463_vm3, %v6727_v62, 0  ;;  %v3703_v62 = vsel %vm1463_vm3, %v6786_v40, 0  ;;  %v8435_v40 = vld [vmem:[#allocation21_spill] sm:$0xff] }
 0x173   : > { %5256 = vmatmul.mubr.msk.bf16.gmra.mxu1 %vm987_vm0, %v2079_v61  ;;  %v2985_v61 = vmul.f32 %v8427_v34, %v6719_v60  ;;  %v8434_v60 = vld [vmem:[#allocation67_spill] sm:$0xff] }
 0x174   : > { %5295 = vmatprep.mubr.msk.bf16.mxu1 %vm987_vm0, %v8417_v18  ;;  %v8428_v18 = vld [vmem:[#allocation3_spill] sm:$0xff] }
 0x175   : > { %v2986_v10 = vmul.f32 %v8429_v48, %v8428_v18  ;;  %v8439_v18 = vld [vmem:[#allocation69_spill] sm:$0xff] }
 0x177   : > { %v3015_v63 = vpack.c.bf16 %v2986_v10, %v2985_v61  ;;  %v8440_v10 = vld [vmem:[#allocation78_spill] sm:$0xff] }
 0x179   : > { %5290 = vmatmul.mubr.msk.bf16.gmra.mxu0 %vm987_vm0, %v8424_v53  ;;  %v2990_v53 = vmul.f32 %v8435_v40, %v6844_v22  ;;  %v2994_v22 = vmul.f32 %v8376_v30, %v6872_v4  ;;  %v2998_v4 = vmul.f32 %v8380_v14, %v6924_v46  ;;  %v3001_v46 = vmul.f32 %v8381_v42, %v6947_v37 }
 0x17a   : > { %5329 = vmatprep.mubr.msk.bf16.mxu0 %vm987_vm0, %v3013_v8  ;;  %v8432_v8 = vpack.c.bf16 %v8430_v38, %v8431_v41  ;;  %v8442_v38 = vld [vmem:[#allocation106_spill] sm:$0xff]  ;;  %v3006_v42 = vmul.f32 %v6888_v58, %v8392_v28  ;;  %v8455_v58 = vld [vmem:[#allocation4_spill] sm:$0xff] }
 0x17b   : > { %5296 = vmatmul.mubr.msk.bf16.vlgmr.msra.gmra.mxu1 %vm987_vm0, %v8425_v43  ;;  %v8436_v43 = vld [vmem:[#allocation103_spill] sm:$0xff] }
 0x17c   : > { %5362 = vmatpush3.bf16.msra.mxu1 %v3408_v0  ;;  %5299 = vmatprep.mubr.msk.bf16.mxu1 %vm987_vm0, %v8426_v24  ;;  %v3017_v0 = vpack.c.bf16 %v2990_v53, %v2989_v56  ;;  %v8437_v24 = vld [vmem:[#allocation102_spill] sm:$0xff]  ;;  %v3021_v56 = vpack.c.bf16 %v2998_v4, %v2997_v35  ;;  %v8446_v53 = vld [vmem:[#allocation111_spill] sm:$0xff] }
 0x17d   : > { %5509 = vmatprep.subr.msk.bf16.mxu1 %vm1463_vm3, %v7019_v45  ;;  %v8438_v61 = vpack.c.bf16 %v8436_v43, %v8437_v24  ;;  %v7078_v24 = vld [vmem:[#allocation2 + $0xa2] sm:$0xff] }
 0x17e   : > { %v8453_v4 = vld [vmem:[#allocation94_spill] sm:$0xff] }
 0x181   : > { %5330 = vmatmul.mubr.msk.bf16.vlgmr.msra.gmra.mxu0 %vm987_vm0, %v8432_v8  ;;  %v8444_v8 = vld [vmem:[#allocation84_spill] sm:$0xff] }
 0x182   : > { %5333 = vmatprep.mubr.msk.bf16.mxu0 %vm987_vm0, %v3015_v63  ;;  %5396 = vmatpush3.bf16.msra.mxu0 %v3703_v62  ;;  %v3019_v62 = vpack.c.bf16 %v2994_v22, %v2993_v36  ;;  %v8441_v63 = vld [vmem:[#allocation107_spill] sm:$0xff]  ;;  %v3000_v36 = vmul.f32 %v8390_v52, %v6929_v51  ;;  %v3002_v22 = vmul.f32 %v8383_v26, %v6949_v1 }
 0x183   : > { %5300 = vmatmul.mubr.msk.bf16.gmra.mxu1 %vm987_vm0, %v8433_v6  ;;  %v8443_v41 = vpack.c.bf16 %v8441_v63, %v8442_v38  ;;  %v8445_v6 = vld [vmem:[#allocation85_spill] sm:$0xff]  ;;  %v3004_v51 = vmul.f32 %v6879_v44, %v8387_v57  ;;  %v3005_v1 = vmul.f32 %v6881_v12, %v8394_v39  ;;  %v3003_v26 = vmul.f32 %v6877_v55, %v8385_v5  ;;  %v3276_v44 = vld [vmem:[#allocation2 + $0x20] sm:$0xff]  ;;  %v3277_v12 = vld [vmem:[#allocation2 + $0x28] sm:$0xff] }
 0x184   : > { %5303 = vmatprep.mubr.msk.bf16.mxu1 %vm987_vm0, %v8434_v60  ;;  %v3023_v38 = vpack.c.bf16 %v3002_v22, %v3001_v46  ;;  %v8454_v57 = vld [vmem:[#allocation109_spill] sm:$0xff]  ;;  %v2684_v39 = vld [vmem:[#allocation2 + $0x101] sm:$0xff] }
 0x185   : > { %v3024_v37 = vpack.c.bf16 %v3004_v51, %v3003_v26  ;;  %v3025_v35 = vpack.c.bf16 %v3006_v42, %v3005_v1  ;;  %v8457_v5 = vld [vmem:[#allocation55_spill] sm:$0xff]  ;;  %v8463_v51 = vld [vmem:[#allocation76_spill] sm:$0xff]  ;;  %v4030_v26 = vsel %vm1463_vm3, %v7019_v45, 0 }
 0x186   : > { %v8461_v46 = vld [vmem:[#allocation83_spill] sm:$0xff] }
 0x189   : > { %5334 = vmatmul.mubr.msk.bf16.gmra.mxu0 %vm987_vm0, %v8438_v61  ;;  %v8449_v61 = vld [vmem:[#allocation86_spill] sm:$0xff] }
 0x18a   : > { %5337 = vmatprep.mubr.msk.bf16.mxu0 %vm987_vm0, %v3017_v0  ;;  %v8447_v0 = vld [vmem:[#allocation110_spill] sm:$0xff] }
 0x18b   : > { %5304 = vmatmul.mubr.msk.bf16.gmra.mxu1 %vm987_vm0, %v8439_v18  ;;  %v8448_v43 = vpack.c.bf16 %v8446_v53, %v8447_v0  ;;  %v3308_v53 = vmul.f32 %v3276_v44, %v8455_v58  ;;  %v8456_v0 = vld [vmem:[#allocation6_spill] sm:$0xff]  ;;  %v3608_v58 = vld [vmem:[#allocation2 + $0x49] sm:$0xff] }
 0x18c   : > { %5307 = vmatprep.mubr.msk.bf16.mxu1 %vm987_vm0, %v8440_v10  ;;  %v3309_v55 = vmul.f32 %v3277_v12, %v8456_v0  ;;  %v8470_v12 = vld [vmem:[#allocation12_spill] sm:$0xff] }
 0x18d   : > { %v3605_v0 = vld [vmem:[#allocation2 + $0x31] sm:$0xff] }
 0x191   : > { %5338 = vmatmul.mubr.msk.bf16.gmra.mxu0 %vm987_vm0, %v8443_v41  ;;  %v8451_v41 = vld [vmem:[#allocation89_spill] sm:$0xff] }
 0x192   : > { %5341 = vmatprep.mubr.msk.bf16.mxu0 %vm987_vm0, %v3019_v62  ;;  %v2999_v62 = vmul.f32 %v7078_v24, %v8389_v54 }
 0x193   : > { %5308 = vmatmul.mubr.msk.bf16.gmra.mxu1 %vm987_vm0, %v8444_v8 }
 0x194   : > { %5311 = vmatprep.mubr.msk.bf16.mxu1 %vm987_vm0, %v8445_v6  ;;  %v3022_v63 = vpack.c.bf16 %v3000_v36, %v2999_v62  ;;  %v8452_v6 = vld [vmem:[#allocation93_spill] sm:$0xff]  ;;  %v3340_v62 = vpack.c.bf16 %v3309_v55, %v3308_v53 }
 0x199   : > { %5342 = vmatmul.mubr.msk.bf16.gmra.mxu0 %vm987_vm0, %v8448_v43  ;;  %v8458_v43 = vld [vmem:[#allocation50_spill] sm:$0xff] }
 0x19a   : > { %5345 = vmatprep.mubr.msk.bf16.mxu0 %vm987_vm0, %v3021_v56  ;;  %v2685_v56 = vld [vmem:[#allocation2 + $0x109] sm:$0xff] }
 0x19b   : > { %5312 = vmatmul.mubr.msk.bf16.gmra.mxu1 %vm987_vm0, %v8449_v61  ;;  %v8459_v61 = vpack.c.bf16 %v8457_v5, %v8458_v43  ;;  %v7118_v36 = vpack.c.bf16 %v2685_v56, %v2684_v39  ;;  %v3606_v56 = vld [vmem:[#allocation2 + $0x39] sm:$0xff]  ;;  %v3607_v5 = vld [vmem:[#allocation2 + $0x41] sm:$0xff] }
 0x19c   : > { %5315 = vmatprep.mubr.msk.bf16.mxu1 %vm987_vm0, %v8450_v2  ;;  %v8460_v2 = vld [vmem:[#allocation81_spill] sm:$0xff]  ;;  %v3636_v45 = vpack.c.bf16 %v3606_v56, %v3605_v0  ;;  %v8479_v0 = vld [vmem:[#allocation68_spill] sm:$0xff] }
 0x19d   : > { %v8462_v22 = vpack.c.bf16 %v8460_v2, %v8461_v46  ;;  %v3637_v2 = vpack.c.bf16 %v3608_v58, %v3607_v5  ;;  %v8481_v5 = vpack.c.bf16 %v6804_v31, %v6800_v49 }
 0x1a1   : > { %5346 = vmatmul.mubr.msk.bf16.gmra.mxu0 %vm987_vm0, %v3022_v63  ;;  %v3604_v63 = vld [vmem:[#allocation2 + $0x29] sm:$0xff] }
 0x1a2   : > { %5349 = vmatprep.mubr.msk.bf16.mxu0 %vm987_vm0, %v3023_v38  ;;  %v3603_v38 = vld [vmem:[#allocation2 + $0x21] sm:$0xff] }
 0x1a3   : > { %5316 = vmatmul.mubr.msk.bf16.gmra.mxu1 %vm987_vm0, %v8451_v41  ;;  %v3635_v41 = vpack.c.bf16 %v3604_v63, %v3603_v38  ;;  %v8472_v38 = vld [vmem:[#allocation113_spill] sm:$0xff] }
 0x1a4   : > { %5319 = vmatprep.mubr.msk.bf16.mxu1 %vm987_vm0, %v8452_v6  ;;  %v8464_v6 = vld [vmem:[#allocation77_spill] sm:$0xff] }
 0x1a5   : > { %v8465_v1 = vpack.c.bf16 %v8463_v51, %v8464_v6 }
 0x1a9   : > { %5350 = vmatmul.mubr.msk.bf16.gmra.mxu0 %vm987_vm0, %v3024_v37  ;;  %v8466_v37 = vld [vmem:[#allocation5_spill] sm:$0xff] }
 0x1aa   : > { %5353 = vmatprep.mubr.msk.bf16.mxu0 %vm987_vm0, %v3025_v35  ;;  %v8467_v35 = vld [vmem:[#allocation56_spill] sm:$0xff] }
 0x1ab   : > { %5320 = vmatmul.mubr.msk.bf16.gmra.mxu1 %vm987_vm0, %v8453_v4  ;;  %v8468_v4 = vpack.c.bf16 %v8466_v37, %v8467_v35 }
 0x1ac   : > { %5323 = vmatprep.mubr.msk.bf16.mxu1 %vm987_vm0, %v8454_v57  ;;  %v8469_v57 = vld [vmem:[#allocation11_spill] sm:$0xff] }
 0x1ad   : > { %v8471_v39 = vpack.c.bf16 %v8469_v57, %v8470_v12 }
 0x1b1   : > { %5354 = vmatmul.mubr.msk.bf16.gmra.mxu0 %vm987_vm0, %v8459_v61 }
 0x1b2   : > { %5357 = vmatprep.mubr.msk.bf16.mxu0 %vm987_vm0, %v8462_v22 }
 0x1b3   : > { %5324 = vmatmul.mubr.msk.bf16.gmra.mxu1 %vm987_vm0, %v7118_v36 }
 0x1b4   : > { %5363 = vmatprep.mubr.msk.bf16.mxu1 %vm987_vm0, %v3340_v62 }
 0x1b9   : > { %5358 = vmatmul.mubr.msk.bf16.gmra.mxu0 %vm987_vm0, %v8465_v1  ;;  %v5161_v42 = vpop.f32.mrf.mxu1  ;;  %v8475_v1 = vld [vmem:[#allocation18_spill] sm:$0xff] }
 0x1ba   : > { %5397 = vmatprep.mubr.msk.bf16.mxu0 %vm987_vm0, %v3635_v41  ;;  %v8473_v41 = vld [vmem:[#allocation112_spill] sm:$0xff] }
 0x1bb   : > { %5364 = vmatmul.mubr.msk.bf16.vlgmr.msra.gmra.mxu1 %vm987_vm0, %v8468_v4  ;;  %v1501_v44 = vpop.f32.mrf.mxu1  ;;  %v8474_v51 = vpack.c.bf16 %v8472_v38, %v8473_v41 }
 0x1bc   : > { %5430 = vmatpush3.bf16.msra.mxu1 %v4030_v26  ;;  %5367 = vmatprep.mubr.msk.bf16.mxu1 %vm987_vm0, %v8471_v39 }
 0x1bd   : > { %v5162_v53 = vpop.f32.mrf.mxu1 }
 0x1bf   : > { %v1504_v43 = vpop.f32.mrf.mxu1 }
 0x1c0   : > { %v5195_v55 = vpop.f32.mrf.mxu0 }
 0x1c1   : > { %v7142_v61 = vadd.f32 %v5195_v55, %v5161_v42  ;;  %5398 = vmatmul.mubr.msk.bf16.vlgmr.msra.gmra.mxu0 %vm987_vm0, %v3636_v45  ;;  %v8476_v42 = vld [vmem:[#allocation64_spill] sm:$0xff] }
 0x1c2   : > { %v1713_v46 = vpop.f32.mrf.mxu0  ;;  %5401 = vmatprep.mubr.msk.bf16.mxu0 %vm987_vm0, %v3637_v2  ;;  %v8477_v26 = vpack.c.bf16 %v8475_v1, %v8476_v42  ;;  %v8483_v42 = vpack.c.bf16 %v6822_v27, %v6818_v33 }
 0x1c3   : > { %v7146_v22 = vadd.f32 %v1713_v46, %v1501_v44  ;;  %v5165_v63 = vpop.f32.mrf.mxu1  ;;  %5368 = vmatmul.mubr.msk.bf16.gmra.mxu1 %vm987_vm0, %v8474_v51  ;;  %v8482_v51 = vpack.c.bf16 %v6814_v23, %v6808_v20  ;;  %v3328_v23 = vmul.f32 %v8393_v3, %v8395_v9  ;;  %v8484_v9 = vld [vmem:[#allocation20_spill] sm:$0xff] }
 0x1c4   : > { %v5196_v62 = vpop.f32.mrf.mxu0  ;;  %5371 = vmatprep.mubr.msk.bf16.mxu1 %vm987_vm0, %v8477_v26  ;;  %v3618_v26 = vld [vmem:[#allocation2 + $0x99] sm:$0xff] }
 0x1c5   : > { %v7152_v6 = vadd.f32 %v5196_v62, %v5162_v53  ;;  %v1517_v35 = vpop.f32.mrf.mxu1  ;;  %v8478_v53 = vld [vmem:[#allocation17_spill] sm:$0xff] }
 0x1c6   : > { %v1716_v37 = vpop.f32.mrf.mxu0  ;;  %v8480_v55 = vpack.c.bf16 %v8478_v53, %v8479_v0 }
 0x1c7   : > { %v7158_v4 = vadd.f32 %v1716_v37, %v1504_v43  ;;  %v5166_v44 = vpop.f32.mrf.mxu1 }
 0x1c9   : > { %v5199_v57 = vpop.f32.mrf.mxu0  ;;  %5402 = vmatmul.mubr.msk.bf16.gmra.mxu0 %vm987_vm0, %v8434_v60  ;;  %v1520_v12 = vpop.f32.mrf.mxu1 }
 0x1ca   : > { %v7162_v39 = vadd.f32 %v5199_v57, %v5165_v63  ;;  %5405 = vmatprep.mubr.msk.bf16.mxu0 %vm987_vm0, %v8439_v18  ;;  %v3297_v57 = vld [vmem:[#allocation2 + $0xc8] sm:$0xff] }
 0x1cb   : > { %v1729_v56 = vpop.f32.mrf.mxu0  ;;  %v5169_v58 = vpop.f32.mrf.mxu1  ;;  %5372 = vmatmul.mubr.msk.bf16.gmra.mxu1 %vm987_vm0, %v8480_v55  ;;  %v3329_v27 = vmul.f32 %v3297_v57, %v8391_v29  ;;  %v3621_v29 = vld [vmem:[#allocation2 + $0xb1] sm:$0xff] }
 0x1cc   : > { %v7170_v45 = vadd.f32 %v1729_v56, %v1517_v35  ;;  %5375 = vmatprep.mubr.msk.bf16.mxu1 %vm987_vm0, %v8481_v5 }
 0x1cd   : > { %v5200_v60 = vpop.f32.mrf.mxu0  ;;  %v1533_v43 = vpop.f32.mrf.mxu1 }
 0x1ce   : > { %v7176_v2 = vadd.f32 %v5200_v60, %v5166_v44  ;;  %v3619_v44 = vld [vmem:[#allocation2 + $0xa1] sm:$0xff]  ;;  %v3350_v60 = vpack.c.bf16 %v3329_v27, %v3328_v23 }
 0x1cf   : > { %v1732_v46 = vpop.f32.mrf.mxu0  ;;  %v5170_v18 = vpop.f32.mrf.mxu1 }
 0x1d0   : > { %v7178_v62 = vadd.f32 %v1732_v46, %v1520_v12 }
 0x1d1   : > { %v5203_v63 = vpop.f32.mrf.mxu0  ;;  %5406 = vmatmul.mubr.msk.bf16.gmra.mxu0 %vm987_vm0, %v8440_v10  ;;  %v1536_v38 = vpop.f32.mrf.mxu1  ;;  %v3617_v10 = vld [vmem:[#allocation2 + $0x91] sm:$0xff] }
 0x1d2   : > { %v7182_v41 = vadd.f32 %v5203_v63, %v5169_v58  ;;  %5409 = vmatprep.mubr.msk.bf16.mxu0 %vm987_vm0, %v8444_v8  ;;  %v3620_v8 = vld [vmem:[#allocation2 + $0xa9] sm:$0xff]  ;;  %v3642_v56 = vpack.c.bf16 %v3618_v26, %v3617_v10  ;;  %v3300_v63 = vld [vmem:[#allocation2 + $0xe0] sm:$0xff] }
 0x1d3   : > { %v1745_v49 = vpop.f32.mrf.mxu0  ;;  %v5173_v31 = vpop.f32.mrf.mxu1  ;;  %5376 = vmatmul.mubr.msk.bf16.gmra.mxu1 %vm987_vm0, %v8482_v51  ;;  %v3643_v33 = vpack.c.bf16 %v3620_v8, %v3619_v44  ;;  %v3623_v10 = vld [vmem:[#allocation2 + $0xc1] sm:$0xff]  ;;  %v3624_v26 = vld [vmem:[#allocation2 + $0xc9] sm:$0xff] }
 0x1d4   : > { %v7190_v1 = vadd.f32 %v1745_v49, %v1533_v43  ;;  %5379 = vmatprep.mubr.msk.bf16.mxu1 %vm987_vm0, %v8483_v42  ;;  %v3299_v43 = vld [vmem:[#allocation2 + $0xd8] sm:$0xff]  ;;  %v3301_v44 = vld [vmem:[#allocation2 + $0xe8] sm:$0xff]  ;;  %v3645_v27 = vpack.c.bf16 %v3624_v26, %v3623_v10 }
 0x1d5   : > { %v5204_v37 = vpop.f32.mrf.mxu0  ;;  %v1549_v35 = vpop.f32.mrf.mxu1  ;;  %v3622_v49 = vld [vmem:[#allocation2 + $0xb9] sm:$0xff]  ;;  %v3628_v10 = vld [vmem:[#allocation2 + $0xe9] sm:$0xff] }
 0x1d6   : > { %v7196_v12 = vadd.f32 %v5204_v37, %v5170_v18  ;;  %v8485_v18 = vpack.c.bf16 %v6839_v13, %v8484_v9  ;;  %v3331_v37 = vmul.f32 %v3299_v43, %v8400_v25  ;;  %v3332_v13 = vmul.f32 %v3300_v63, %v8403_v17  ;;  %v3303_v43 = vld [vmem:[#allocation2 + $0xf8] sm:$0xff] }
 0x1d7   : > { %v1748_v20 = vpop.f32.mrf.mxu0  ;;  %v5174_v58 = vpop.f32.mrf.mxu1  ;;  %v3644_v23 = vpack.c.bf16 %v3622_v49, %v3621_v29  ;;  %v3626_v29 = vld [vmem:[#allocation2 + $0xd9] sm:$0xff]  ;;  %v3302_v49 = vld [vmem:[#allocation2 + $0xf0] sm:$0xff]  ;;  %v3335_v26 = vmul.f32 %v3303_v43, %v8414_v21  ;;  %v8487_v21 = vld [vmem:[#allocation71_spill] sm:$0xff] }
 0x1d8   : > { %v7200_v53 = vadd.f32 %v1748_v20, %v1536_v38  ;;  %v8486_v20 = vld [vmem:[#allocation38_spill] sm:$0xff] }
 0x1d9   : > { %v5207_v0 = vpop.f32.mrf.mxu0  ;;  %5410 = vmatmul.mubr.msk.bf16.gmra.mxu0 %vm987_vm0, %v3642_v56  ;;  %v1552_v55 = vpop.f32.mrf.mxu1 }
 0x1da   : > { %v7204_v5 = vadd.f32 %v5207_v0, %v5173_v31  ;;  %5413 = vmatprep.mubr.msk.bf16.mxu0 %vm987_vm0, %v3643_v33  ;;  %v3298_v31 = vld [vmem:[#allocation2 + $0xd0] sm:$0xff]  ;;  %v3333_v0 = vmul.f32 %v3301_v44, %v8398_v16 }
 0x1db   : > { %v1761_v46 = vpop.f32.mrf.mxu0  ;;  %v5177_v3 = vpop.f32.mrf.mxu1  ;;  %5380 = vmatmul.mubr.msk.bf16.gmra.mxu1 %vm987_vm0, %v8485_v18  ;;  %v3330_v56 = vmul.f32 %v3298_v31, %v8486_v20  ;;  %v3625_v16 = vld [vmem:[#allocation2 + $0xd1] sm:$0xff] }
 0x1dc   : > { %v7211_v38 = vadd.f32 %v1761_v46, %v1549_v35  ;;  %5383 = vmatprep.mubr.msk.bf16.mxu1 %vm987_vm0, %v3350_v60  ;;  %v3352_v17 = vpack.c.bf16 %v3333_v0, %v3332_v13 }
 0x1dd   : > { %v5208_v51 = vpop.f32.mrf.mxu0  ;;  %v1565_v42 = vpop.f32.mrf.mxu1  ;;  %v3351_v25 = vpack.c.bf16 %v3331_v37, %v3330_v56 }
 0x1de   : > { %v7215_v8 = vadd.f32 %v5208_v51, %v5174_v58 }
 0x1df   : > { %v1764_v57 = vpop.f32.mrf.mxu0  ;;  %v5178_v35 = vpop.f32.mrf.mxu1 }
 0x1e0   : > { %v7219_v33 = vadd.f32 %v1764_v57, %v1552_v55  ;;  %v3304_v55 = vld [vmem:[#allocation2 + $0x100] sm:$0xff]  ;;  %v3646_v57 = vpack.c.bf16 %v3626_v29, %v3625_v16 }
 0x1e1   : > { %v5211_v60 = vpop.f32.mrf.mxu0  ;;  %5414 = vmatmul.mubr.msk.bf16.gmra.mxu0 %vm987_vm0, %v3644_v23  ;;  %v7223_v46 = vpop.f32.mrf.mxu1  ;;  %v3336_v44 = vmul.f32 %v3304_v55, %v8415_v32  ;;  %v3334_v23 = vmul.f32 %v3302_v49, %v8406_v59  ;;  %v3629_v59 = vld [vmem:[#allocation2 + $0xf1] sm:$0xff]  ;;  %v3898_v29 = vld [vmem:[#allocation2 + $0x22] sm:$0xff] }
 0x1e2   : > { %v7225_v58 = vadd.f32 %v5211_v60, %v5177_v3  ;;  %5417 = vmatprep.mubr.msk.bf16.mxu0 %vm987_vm0, %v3645_v27  ;;  %v3627_v3 = vld [vmem:[#allocation2 + $0xe1] sm:$0xff] }
 0x1e3   : > { %v1777_v9 = vpop.f32.mrf.mxu0  ;;  %v5181_v18 = vpop.f32.mrf.mxu1  ;;  %5384 = vmatmul.mubr.msk.bf16.gmra.mxu1 %vm987_vm0, %v3351_v25  ;;  %v3647_v20 = vpack.c.bf16 %v3628_v10, %v3627_v3  ;;  %v3353_v0 = vpack.c.bf16 %v3335_v26, %v3334_v23  ;;  %v3930_v26 = vmul.f32 %v3898_v29, %v8419_v19 }
 0x1e4   : > { %v7229_v63 = vadd.f32 %v1777_v9, %v1565_v42  ;;  %5387 = vmatprep.mubr.msk.bf16.mxu1 %vm987_vm0, %v3352_v17  ;;  %v3899_v17 = vld [vmem:[#allocation2 + $0x2a] sm:$0xff]  ;;  %v3630_v9 = vld [vmem:[#allocation2 + $0xf9] sm:$0xff] }
 0x1e5   : > { %v5212_v31 = vpop.f32.mrf.mxu0  ;;  %v1581_v51 = vpop.f32.mrf.mxu1  ;;  %v3931_v49 = vmul.f32 %v3899_v17, %v8421_v11  ;;  %v3648_v3 = vpack.c.bf16 %v3630_v9, %v3629_v59  ;;  %v3634_v11 = vld [vmem:[#allocation2 + $0x119] sm:$0xff]  ;;  %v3903_v17 = vld [vmem:[#allocation2 + $0x4a] sm:$0xff] }
 0x1e6   : > { %v7233_v37 = vadd.f32 %v5212_v31, %v5178_v35  ;;  %v3354_v35 = vpack.c.bf16 %v8487_v21, %v3336_v44 }
 0x1e7   : > { %v7236_v13 = vpop.f32.mrf.mxu0  ;;  %v5182_v42 = vpop.f32.mrf.mxu1 }
 0x1e9   : > { %v5215_v56 = vpop.f32.mrf.mxu0  ;;  %5418 = vmatmul.mubr.msk.bf16.gmra.mxu0 %vm987_vm0, %v3646_v57  ;;  %v7240_v27 = vpop.f32.mrf.mxu1  ;;  %v3900_v57 = vld [vmem:[#allocation2 + $0x32] sm:$0xff] }
 0x1ea   : > { %v7242_v60 = vadd.f32 %v5215_v56, %v5181_v18  ;;  %5421 = vmatprep.mubr.msk.bf16.mxu0 %vm987_vm0, %v3647_v20  ;;  %v3633_v20 = vld [vmem:[#allocation2 + $0x111] sm:$0xff]  ;;  %v3901_v56 = vld [vmem:[#allocation2 + $0x3a] sm:$0xff] }
 0x1eb   : > { %v1793_v32 = vpop.f32.mrf.mxu0  ;;  %v5185_v25 = vpop.f32.mrf.mxu1  ;;  %5388 = vmatmul.mubr.msk.bf16.gmra.mxu1 %vm987_vm0, %v3353_v0 }
 0x1ec   : > { %v7247_v43 = vadd.f32 %v1793_v32, %v1581_v51  ;;  %5391 = vmatprep.mubr.msk.bf16.mxu1 %vm987_vm0, %v3354_v35  ;;  %v8489_v35 = vld [vmem:[#allocation70_spill] sm:$0xff]  ;;  %v8490_v32 = vld [vmem:[#allocation72_spill] sm:$0xff] }
 0x1ed   : > { %v5216_v55 = vpop.f32.mrf.mxu0  ;;  %v1597_v16 = vpop.f32.mrf.mxu1  ;;  %v8491_v19 = vpack.c.bf16 %v8489_v35, %v8490_v32 }
 0x1ee   : > { %v7250_v18 = vadd.f32 %v5216_v55, %v5182_v42  ;;  %v3962_v42 = vpack.c.bf16 %v3931_v49, %v3930_v26  ;;  %v3650_v55 = vpack.c.bf16 %v3634_v11, %v3633_v20  ;;  %v8493_v49 = vld [vmem:[#allocation9_spill] sm:$0xff]  ;;  %v3902_v26 = vld [vmem:[#allocation2 + $0x42] sm:$0xff] }
 0x1ef   : > { %v7253_v31 = vpop.f32.mrf.mxu0  ;;  %v5186_v10 = vpop.f32.mrf.mxu1 }
 0x1f1   : > { %v5219_v44 = vpop.f32.mrf.mxu0  ;;  %5422 = vmatmul.mubr.msk.bf16.gmra.mxu0 %vm987_vm0, %v3648_v3  ;;  %v7257_v51 = vpop.f32.mrf.mxu1  ;;  %v3933_v3 = vmul.f32 %v3901_v56, %v8493_v49  ;;  %v3904_v56 = vld [vmem:[#allocation2 + $0x52] sm:$0xff] }
 0x1f2   : > { %8488 = vst [vmem:[#allocation98_spill] sm:$0xff] %v7257_v51  ;;  %v7259_v23 = vadd.f32 %v5219_v44, %v5185_v25  ;;  %5425 = vmatprep.mubr.msk.bf16.mxu0 %vm987_vm0, %v7118_v36  ;;  %v8492_v36 = vld [vmem:[#allocation10_spill] sm:$0xff]  ;;  %v3935_v51 = vmul.f32 %v3903_v17, %v8429_v48  ;;  %v3907_v48 = vld [vmem:[#allocation2 + $0x6a] sm:$0xff] }
 0x1f3   : > { %v1809_v0 = vpop.f32.mrf.mxu0  ;;  %v5189_v21 = vpop.f32.mrf.mxu1  ;;  %5392 = vmatmul.mubr.msk.bf16.gmra.mxu1 %vm987_vm0, %v8491_v19  ;;  %v3932_v29 = vmul.f32 %v3900_v57, %v8492_v36  ;;  %v3905_v19 = vld [vmem:[#allocation2 + $0x5a] sm:$0xff]  ;;  %v8495_v49 = vld [vmem:[#allocation16_spill] sm:$0xff] }
 0x1f4   : > { %v7267_v59 = vadd.f32 %v1809_v0, %v1597_v16  ;;  %5431 = vmatprep.mubr.msk.bf16.mxu1 %vm987_vm0, %v3962_v42  ;;  %v3934_v16 = vmul.f32 %v3902_v26, %v8427_v34 }
 0x1f5   : > { %v5220_v25 = vpop.f32.mrf.mxu0  ;;  %v1613_v9 = vpop.f32.mrf.mxu1  ;;  %v3963_v20 = vpack.c.bf16 %v3933_v3, %v3932_v29  ;;  %v3936_v29 = vmul.f32 %v3904_v56, %v8495_v49  ;;  %v3911_v49 = vld [vmem:[#allocation2 + $0x8a] sm:$0xff] }
 0x1f6   : > { %v7272_v44 = vadd.f32 %v5220_v25, %v5186_v10  ;;  %v3964_v57 = vpack.c.bf16 %v3935_v51, %v3934_v16  ;;  %v3906_v51 = vld [vmem:[#allocation2 + $0x62] sm:$0xff] }
 0x1f7   : > { %v7275_v35 = vpop.f32.mrf.mxu0  ;;  %v5190_v32 = vpop.f32.mrf.mxu1 }
 0x1f9   : > { %v5223_v0 = vpop.f32.mrf.mxu0  ;;  %5426 = vmatmul.mubr.msk.bf16.gmra.mxu0 %vm987_vm0, %v3650_v55  ;;  %v7279_v42 = vpop.f32.mrf.mxu1 }
 0x1fa   : > { %8494 = vst [vmem:[#allocation27_spill] sm:$0xff] %v7279_v42  ;;  %v7281_v11 = vadd.f32 %v5223_v0, %v5189_v21  ;;  %v8496_v21 = vld [vmem:[#allocation15_spill] sm:$0xff]  ;;  %v3939_v0 = vmul.f32 %v3907_v48, %v8435_v40 }
 0x1fb   : > { %v1825_v10 = vpop.f32.mrf.mxu0  ;;  %v5229_v25 = vpop.f32.mrf.mxu1  ;;  %5432 = vmatmul.mubr.msk.bf16.vlgmr.msra.gmra.mxu1 %vm987_vm0, %v3963_v20  ;;  %v3937_v3 = vmul.f32 %v3905_v19, %v8496_v21  ;;  %v3910_v48 = vld [vmem:[#allocation2 + $0x82] sm:$0xff]  ;;  %v8497_v21 = vld [vmem:[#allocation24_spill] sm:$0xff] }
 0x1fc   : > { %v7284_v17 = vadd.f32 %v1825_v10, %v1613_v9  ;;  %v2297_v34 = vadd.f32 %v5229_v25, %v7142_v61  ;;  %5435 = vmatprep.mubr.msk.bf16.mxu1 %vm987_vm0, %v3964_v57  ;;  %v3938_v57 = vmul.f32 %v3906_v51, %v8372_v15 }
 0x1fd   : > { %v5224_v55 = vpop.f32.mrf.mxu0  ;;  %v2168_v36 = vpop.f32.mrf.mxu1  ;;  %v3965_v42 = vpack.c.bf16 %v3937_v3, %v3936_v29  ;;  %v8498_v3 = vld [vmem:[#allocation23_spill] sm:$0xff] }
 0x1fe   : > { %v7290_v26 = vadd.f32 %v5224_v55, %v5190_v32  ;;  %v2295_v16 = vadd.f32 %v2168_v36, %v7146_v22  ;;  %v3966_v32 = vpack.c.bf16 %v3939_v0, %v3938_v57  ;;  %v3908_v55 = vld [vmem:[#allocation2 + $0x72] sm:$0xff]  ;;  %v3909_v22 = vld [vmem:[#allocation2 + $0x7a] sm:$0xff]  ;;  %v3943_v57 = vmul.f32 %v3911_v49, %v8376_v30  ;;  %v3915_v30 = vld [vmem:[#allocation2 + $0xaa] sm:$0xff] }
 0x1ff   : > { %v7294_v20 = vpop.f32.mrf.mxu0  ;;  %v5230_v9 = vpop.f32.mrf.mxu1  ;;  %v3941_v51 = vmul.f32 %v3909_v22, %v8498_v3  ;;  %v3912_v22 = vld [vmem:[#allocation2 + $0x92] sm:$0xff] }
 0x200   : > { %v2298_v61 = vadd.f32 %v5230_v9, %v7152_v6 }
 0x201   : > { %v5263_v10 = vpop.f32.mrf.mxu0  ;;  %v2171_v25 = vpop.f32.mrf.mxu1 }
 0x202   : > { %v7298_v56 = vadd.f32 %v5263_v10, %v2297_v34  ;;  %v7301_v19 = vadd.f32 %v2171_v25, %v7158_v4  ;;  %v3940_v4 = vmul.f32 %v3908_v55, %v8497_v21 }
 0x203   : > { %v2495_v36 = vpop.f32.mrf.mxu0  ;;  %v5233_v40 = vpop.f32.mrf.mxu1  ;;  %5436 = vmatmul.mubr.msk.bf16.gmra.mxu1 %vm987_vm0, %v3965_v42  ;;  %v3942_v42 = vmul.f32 %v3910_v48, %v8378_v7 }
 0x204   : > { %v7304_v6 = vadd.f32 %v2495_v36, %v2295_v16  ;;  %v2301_v15 = vadd.f32 %v5233_v40, %v7162_v39  ;;  %5439 = vmatprep.mubr.msk.bf16.mxu1 %vm987_vm0, %v3966_v32  ;;  %v3967_v36 = vpack.c.bf16 %v3941_v51, %v3940_v4 }
 0x205   : > { %v5264_v34 = vpop.f32.mrf.mxu0  ;;  %v2184_v29 = vpop.f32.mrf.mxu1 }
 0x206   : > { %v7310_v0 = vadd.f32 %v5264_v34, %v2298_v61  ;;  %v2299_v9 = vadd.f32 %v2184_v29, %v7170_v45  ;;  %v3968_v61 = vpack.c.bf16 %v3943_v57, %v3942_v42  ;;  %v3913_v45 = vld [vmem:[#allocation2 + $0x9a] sm:$0xff]  ;;  %v3947_v42 = vmul.f32 %v3915_v30, %v8380_v14 }
 0x207   : > { %v7315_v16 = vpop.f32.mrf.mxu0  ;;  %v5234_v10 = vpop.f32.mrf.mxu1  ;;  %v8499_v29 = vld [vmem:[#allocation30_spill] sm:$0xff] }
 0x208   : > { %v2302_v39 = vadd.f32 %v5234_v10, %v7176_v2  ;;  %v3944_v21 = vmul.f32 %v3912_v22, %v8499_v29  ;;  %v4390_v14 = vld [vmem:[%s8064_s13] sm:$0xf] }
 0x209   : > { %v5267_v25 = vpop.f32.mrf.mxu0  ;;  %v2187_v32 = vpop.f32.mrf.mxu1 }
 0x20a   : > { %v7318_v40 = vadd.f32 %v5267_v25, %v2301_v15  ;;  %v7321_v55 = vadd.f32 %v2187_v32, %v7178_v62  ;;  %v8500_v62 = vld [vmem:[#allocation29_spill] sm:$0xff] }
 0x20b   : > { %v2511_v34 = vpop.f32.mrf.mxu0  ;;  %v5237_v7 = vpop.f32.mrf.mxu1  ;;  %5440 = vmatmul.mubr.msk.bf16.gmra.mxu1 %vm987_vm0, %v3967_v36  ;;  %v3945_v4 = vmul.f32 %v3913_v45, %v8500_v62  ;;  %v3917_v45 = vld [vmem:[#allocation2 + $0xba] sm:$0xff] }
 0x20c   : > { %v7324_v48 = vadd.f32 %v2511_v34, %v2299_v9  ;;  %v2305_v2 = vadd.f32 %v5237_v7, %v7182_v41  ;;  %5443 = vmatprep.mubr.msk.bf16.mxu1 %vm987_vm0, %v3968_v61  ;;  %v3946_v41 = vmul.f32 %v7078_v24, %v8379_v47  ;;  %v4391_v47 = vpack.c.bf16 %v4390_v14, %v4390_v14 }
 0x20d   : > { %v5268_v49 = vpop.f32.mrf.mxu0  ;;  %v2200_v15 = vpop.f32.mrf.mxu1  ;;  %v3969_v36 = vpack.c.bf16 %v3945_v4, %v3944_v21 }
 0x20e   : > { %v7330_v3 = vadd.f32 %v5268_v49, %v2302_v39  ;;  %v2303_v51 = vadd.f32 %v2200_v15, %v7190_v1  ;;  %v3970_v22 = vpack.c.bf16 %v3947_v42, %v3946_v41  ;;  %v3916_v1 = vld [vmem:[#allocation2 + $0xb2] sm:$0xff]  ;;  %v3949_v49 = vmul.f32 %v3917_v45, %v8390_v52  ;;  %5510 = vmatprep.subr.msk.bf16.mxu0 %vm1463_vm3, %v4391_v47 }
 0x20f   : > { %v7334_v57 = vpop.f32.mrf.mxu0  ;;  %v5238_v9 = vpop.f32.mrf.mxu1  ;;  %v4448_v15 = vsel %vm1463_vm3, %v4391_v47, 0 }
 0x210   : > { %v2306_v10 = vadd.f32 %v5238_v9, %v7196_v12  ;;  %5464 = vmatpush3.bf16.msra.mxu0 %v4448_v15  ;;  %v8504_v15 = vld [vmem:[#allocation61_spill] sm:$0xff] }
 0x211   : > { %v5271_v25 = vpop.f32.mrf.mxu0  ;;  %v2203_v32 = vpop.f32.mrf.mxu1 }
 0x212   : > { %v7339_v61 = vadd.f32 %v5271_v25, %v2305_v2  ;;  %v7342_v39 = vadd.f32 %v2203_v32, %v7200_v53  ;;  %v3948_v2 = vmul.f32 %v3916_v1, %v8389_v54 }
 0x213   : > { %v2527_v34 = vpop.f32.mrf.mxu0  ;;  %v5241_v12 = vpop.f32.mrf.mxu1  ;;  %5444 = vmatmul.mubr.msk.bf16.gmra.mxu1 %vm987_vm0, %v3969_v36  ;;  %v8501_v36 = vld [vmem:[#allocation26_spill] sm:$0xff] }
 0x214   : > { %v7348_v24 = vadd.f32 %v2527_v34, %v2303_v51  ;;  %v2309_v7 = vadd.f32 %v5241_v12, %v7204_v5  ;;  %5447 = vmatprep.mubr.msk.bf16.mxu1 %vm987_vm0, %v3970_v22  ;;  %v3971_v9 = vpack.c.bf16 %v3949_v49, %v3948_v2  ;;  %v8502_v22 = vld [vmem:[#allocation19_spill] sm:$0xff] }
 0x215   : > { %v5272_v53 = vpop.f32.mrf.mxu0  ;;  %v2216_v30 = vpop.f32.mrf.mxu1 }
 0x216   : > { %v7356_v29 = vadd.f32 %v5272_v53, %v2306_v10  ;;  %v2307_v21 = vadd.f32 %v2216_v30, %v7211_v38  ;;  %v3923_v10 = vld [vmem:[#allocation2 + $0xea] sm:$0xff] }
 0x217   : > { %v7359_v62 = vpop.f32.mrf.mxu0  ;;  %v5242_v5 = vpop.f32.mrf.mxu1  ;;  %v3955_v34 = vmul.f32 %v3923_v10, %v8392_v28  ;;  %v8505_v28 = vld [vmem:[#allocation22_spill] sm:$0xff]  ;;  %v8508_v10 = vld [vmem:[#allocation49_spill] sm:$0xff] }
 0x218   : > { %v2310_v4 = vadd.f32 %v5242_v5, %v7215_v8  ;;  %v8503_v8 = vpack.c.bf16 %v8501_v36, %v8502_v22  ;;  %v3924_v5 = vld [vmem:[#allocation2 + $0xf2] sm:$0xff] }
 0x219   : > { %v5275_v51 = vpop.f32.mrf.mxu0  ;;  %v2219_v42 = vpop.f32.mrf.mxu1 }
 0x21a   : > { %v7362_v54 = vadd.f32 %v5275_v51, %v2309_v7  ;;  %v7365_v52 = vadd.f32 %v2219_v42, %v7219_v33  ;;  %v1781_v7 = vadd.f32 %v7236_v13, %v7223_v46  ;;  %v8506_v42 = vld [vmem:[#allocation25_spill] sm:$0xff] }
 0x21b   : > { %v2543_v41 = vpop.f32.mrf.mxu0  ;;  %v5245_v25 = vpop.f32.mrf.mxu1  ;;  %5448 = vmatmul.mubr.msk.bf16.gmra.mxu1 %vm987_vm0, %v3971_v9  ;;  %v8507_v9 = vpack.c.bf16 %v8505_v28, %v8506_v42  ;;  %v8512_v28 = vld [vmem:[#allocation98_spill] sm:$0xff] }
 0x21c   : > { %v7368_v38 = vadd.f32 %v2543_v41, %v2307_v21  ;;  %v2313_v32 = vadd.f32 %v5245_v25, %v7225_v58  ;;  %5451 = vmatprep.mubr.msk.bf16.mxu1 %vm987_vm0, %v8503_v8  ;;  %v3974_v21 = vpack.c.bf16 %v3955_v34, %v8504_v15  ;;  %v3956_v25 = vmul.f32 %v3924_v5, %v8342_v50 }
 0x21d   : > { %v5276_v1 = vpop.f32.mrf.mxu0  ;;  %v2232_v45 = vpop.f32.mrf.mxu1  ;;  %v1813_v42 = vadd.f32 %v7275_v35, %v8512_v28 }
 0x21e   : > { %v7375_v14 = vadd.f32 %v5276_v1, %v2310_v4  ;;  %v2311_v33 = vadd.f32 %v2232_v45, %v7229_v63  ;;  %v3925_v4 = vld [vmem:[#allocation2 + $0xfa] sm:$0xff]  ;;  %v1797_v45 = vadd.f32 %v7253_v31, %v7240_v27  ;;  %v8510_v27 = vld [vmem:[#allocation75_spill] sm:$0xff] }
 0x21f   : > { %v7379_v12 = vpop.f32.mrf.mxu0  ;;  %v5246_v47 = vpop.f32.mrf.mxu1 }
 0x220   : > { %v2314_v58 = vadd.f32 %v5246_v47, %v7233_v37 }
 0x221   : > { %v5279_v53 = vpop.f32.mrf.mxu0  ;;  %v2235_v30 = vpop.f32.mrf.mxu1 }
 0x222   : > { %v7384_v2 = vadd.f32 %v5279_v53, %v2313_v32  ;;  %v2312_v49 = vadd.f32 %v2235_v30, %v1781_v7  ;;  %v3957_v32 = vmul.f32 %v3925_v4, %v8508_v10 }
 0x223   : > { %v2559_v63 = vpop.f32.mrf.mxu0  ;;  %v5249_v51 = vpop.f32.mrf.mxu1  ;;  %5452 = vmatmul.mubr.msk.bf16.gmra.mxu1 %vm987_vm0, %v8507_v9 }
 0x224   : > { %v7391_v41 = vadd.f32 %v2559_v63, %v2311_v33  ;;  %v2317_v46 = vadd.f32 %v5249_v51, %v7242_v60  ;;  %5455 = vmatprep.mubr.msk.bf16.mxu1 %vm987_vm0, %v3974_v21  ;;  %v3975_v7 = vpack.c.bf16 %v3957_v32, %v3956_v25  ;;  %v8509_v21 = vld [vmem:[#allocation73_spill] sm:$0xff] }
 0x225   : > { %v5280_v37 = vpop.f32.mrf.mxu0  ;;  %v2248_v13 = vpop.f32.mrf.mxu1  ;;  %v8511_v31 = vpack.c.bf16 %v8509_v21, %v8510_v27 }
 0x226   : > { %v7397_v36 = vadd.f32 %v5280_v37, %v2314_v58  ;;  %v2315_v22 = vadd.f32 %v2248_v13, %v7247_v43 }
 0x227   : > { %v2562_v8 = vpop.f32.mrf.mxu0  ;;  %v5250_v1 = vpop.f32.mrf.mxu1 }
 0x228   : > { %v7402_v33 = vadd.f32 %v2562_v8, %v2312_v49  ;;  %v2318_v60 = vadd.f32 %v5250_v1, %v7250_v18  ;;  %v8514_v8 = vld [vmem:[#allocation66_spill] sm:$0xff] }
 0x229   : > { %v5283_v34 = vpop.f32.mrf.mxu0  ;;  %v2251_v47 = vpop.f32.mrf.mxu1 }
 0x22a   : > { %v7405_v53 = vadd.f32 %v5283_v34, %v2317_v46  ;;  %v2316_v50 = vadd.f32 %v2251_v47, %v1797_v45 }
 0x22b   : > { %v2575_v30 = vpop.f32.mrf.mxu0  ;;  %v5253_v58 = vpop.f32.mrf.mxu1  ;;  %5456 = vmatmul.mubr.msk.bf16.gmra.mxu1 %vm987_vm0, %v3975_v7 }
 0x22c   : > { %v7408_v43 = vadd.f32 %v2575_v30, %v2315_v22  ;;  %v2321_v15 = vadd.f32 %v5253_v58, %v7259_v23  ;;  %5459 = vmatprep.mubr.msk.bf16.mxu1 %vm987_vm0, %v8511_v31  ;;  %v8513_v22 = vld [vmem:[#allocation65_spill] sm:$0xff] }
 0x22d   : > { %v5284_v18 = vpop.f32.mrf.mxu0  ;;  %v2264_v49 = vpop.f32.mrf.mxu1  ;;  %v8515_v1 = vpack.c.bf16 %v8513_v22, %v8514_v8 }
 0x22e   : > { %v7415_v5 = vadd.f32 %v5284_v18, %v2318_v60  ;;  %v2319_v4 = vadd.f32 %v2264_v49, %v7267_v59 }
 0x22f   : > { %v2578_v63 = vpop.f32.mrf.mxu0  ;;  %v5254_v51 = vpop.f32.mrf.mxu1 }
 0x230   : > { %v7420_v9 = vadd.f32 %v2578_v63, %v2316_v50  ;;  %v2322_v23 = vadd.f32 %v5254_v51, %v7272_v44  ;;  %v8516_v50 = vld [vmem:[#allocation27_spill] sm:$0xff] }
 0x231   : > { %v5287_v46 = vpop.f32.mrf.mxu0  ;;  %v2267_v37 = vpop.f32.mrf.mxu1  ;;  %v1829_v30 = vadd.f32 %v7294_v20, %v8516_v50 }
 0x232   : > { %v7423_v13 = vadd.f32 %v5287_v46, %v2321_v15  ;;  %v2320_v25 = vadd.f32 %v2267_v37, %v1813_v42 }
 0x233   : > { %v2591_v10 = vpop.f32.mrf.mxu0  ;;  %v5257_v32 = vpop.f32.mrf.mxu1  ;;  %5460 = vmatmul.mubr.msk.bf16.gmra.mxu1 %vm987_vm0, %v8515_v1 }
 0x234   : > { %v7429_v59 = vadd.f32 %v2591_v10, %v2319_v4  ;;  %v2325_v35 = vadd.f32 %v5257_v32, %v7281_v11 }
 0x235   : > { %v5288_v45 = vpop.f32.mrf.mxu0  ;;  %v2280_v60 = vpop.f32.mrf.mxu1 }
 0x236   : > { %v7432_v34 = vadd.f32 %v5288_v45, %v2322_v23  ;;  %v2323_v44 = vadd.f32 %v2280_v60, %v7284_v17  ;;  %v2627_v60 = vadd.f32 %v7334_v57, %v7321_v55 }
 0x237   : > { %v2594_v47 = vpop.f32.mrf.mxu0  ;;  %v5258_v7 = vpop.f32.mrf.mxu1 }
 0x238   : > { %v7437_v58 = vadd.f32 %v2594_v47, %v2320_v25  ;;  %v2326_v15 = vadd.f32 %v5258_v7, %v7290_v26  ;;  %v2623_v26 = vadd.f32 %v7315_v16, %v7301_v19 }
 0x239   : > { %v5291_v21 = vpop.f32.mrf.mxu0  ;;  %v2283_v27 = vpop.f32.mrf.mxu1 }
 0x23a   : > { %v7440_v31 = vadd.f32 %v5291_v21, %v2325_v35  ;;  %v2324_v11 = vadd.f32 %v2283_v27, %v1829_v30 }
 0x23b   : > { %v2607_v18 = vpop.f32.mrf.mxu0  ;;  %v5297_v49 = vpop.f32.mrf.mxu1 }
 0x23c   : > { %v7442_v4 = vadd.f32 %v2607_v18, %v2323_v44  ;;  %v2919_v17 = vadd.f32 %v5297_v49, %v7298_v56  ;;  %v2631_v49 = vadd.f32 %v7359_v62, %v7342_v39 }
 0x23d   : > { %v5292_v63 = vpop.f32.mrf.mxu0  ;;  %v2790_v51 = vpop.f32.mrf.mxu1 }
 0x23e   : > { %v7445_v28 = vadd.f32 %v5292_v63, %v2326_v15  ;;  %v2917_v20 = vadd.f32 %v2790_v51, %v7304_v6 }
 0x23f   : > { %v2610_v42 = vpop.f32.mrf.mxu0  ;;  %v5298_v23 = vpop.f32.mrf.mxu1 }
 0x240   : > { %v7450_v46 = vadd.f32 %v2610_v42, %v2324_v11  ;;  %v7453_v37 = vadd.f32 %v5298_v23, %v7310_v0 }
 0x241   : > { %v5331_v25 = vpop.f32.mrf.mxu0  ;;  %v2793_v10 = vpop.f32.mrf.mxu1 }
 0x242   : > { %v7455_v32 = vadd.f32 %v5331_v25, %v2919_v17  ;;  %v7457_v56 = vadd.f32 %v2793_v10, %v2623_v26 }
 0x243   : > { %v3117_v22 = vpop.f32.mrf.mxu0  ;;  %v5301_v8 = vpop.f32.mrf.mxu1 }
 0x244   : > { %v7459_v1 = vadd.f32 %v3117_v22, %v2917_v20  ;;  %v2923_v6 = vadd.f32 %v5301_v8, %v7318_v40  ;;  %v2635_v8 = vadd.f32 %v7379_v12, %v7365_v52 }
 0x245   : > { %v7462_v35 = vpop.f32.mrf.mxu0  ;;  %v2806_v19 = vpop.f32.mrf.mxu1 }
 0x246   : > { %v2921_v16 = vadd.f32 %v2806_v19, %v7324_v48 }
 0x247   : > { %v7465_v45 = vpop.f32.mrf.mxu0  ;;  %v5302_v0 = vpop.f32.mrf.mxu1 }
 0x248   : > { %v2924_v44 = vadd.f32 %v5302_v0, %v7330_v3 }
 0x249   : > { %v5335_v47 = vpop.f32.mrf.mxu0  ;;  %v2809_v7 = vpop.f32.mrf.mxu1 }
 0x24a   : > { %v7470_v50 = vadd.f32 %v5335_v47, %v2923_v6  ;;  %v7472_v30 = vadd.f32 %v2809_v7, %v2627_v60 }
 0x24b   : > { %v3133_v40 = vpop.f32.mrf.mxu0  ;;  %v5305_v15 = vpop.f32.mrf.mxu1 }
 0x24c   : > { %v7474_v21 = vadd.f32 %v3133_v40, %v2921_v16  ;;  %v2927_v48 = vadd.f32 %v5305_v15, %v7339_v61 }
 0x24d   : > { %v5336_v27 = vpop.f32.mrf.mxu0  ;;  %v2822_v11 = vpop.f32.mrf.mxu1 }
 0x24e   : > { %v7477_v18 = vadd.f32 %v5336_v27, %v2924_v44  ;;  %v2925_v55 = vadd.f32 %v2822_v11, %v7348_v24 }
 0x24f   : > { %v7480_v57 = vpop.f32.mrf.mxu0  ;;  %v5306_v3 = vpop.f32.mrf.mxu1 }
 0x250   : > { %v2928_v17 = vadd.f32 %v5306_v3, %v7356_v29 }
 0x251   : > { %v5339_v63 = vpop.f32.mrf.mxu0  ;;  %v2825_v51 = vpop.f32.mrf.mxu1 }
 0x252   : > { %v7485_v20 = vadd.f32 %v5339_v63, %v2927_v48  ;;  %v7487_v42 = vadd.f32 %v2825_v51, %v2631_v49 }
 0x253   : > { %v3149_v61 = vpop.f32.mrf.mxu0  ;;  %v5309_v23 = vpop.f32.mrf.mxu1 }
 0x254   : > { %v7489_v26 = vadd.f32 %v3149_v61, %v2925_v55  ;;  %v2931_v24 = vadd.f32 %v5309_v23, %v7362_v54 }
 0x255   : > { %v5340_v25 = vpop.f32.mrf.mxu0  ;;  %v2838_v10 = vpop.f32.mrf.mxu1 }
 0x256   : > { %v7492_v22 = vadd.f32 %v5340_v25, %v2928_v17  ;;  %v2929_v39 = vadd.f32 %v2838_v10, %v7368_v38 }
 0x257   : > { %v7495_v62 = vpop.f32.mrf.mxu0  ;;  %v5310_v29 = vpop.f32.mrf.mxu1 }
 0x258   : > { %v2932_v6 = vadd.f32 %v5310_v29, %v7375_v14 }
 0x259   : > { %v5343_v19 = vpop.f32.mrf.mxu0  ;;  %v2841_v16 = vpop.f32.mrf.mxu1 }
 0x25a   : > { %v7500_v0 = vadd.f32 %v5343_v19, %v2931_v24  ;;  %v7502_v60 = vadd.f32 %v2841_v16, %v2635_v8 }
 0x25b   : > { %v3165_v54 = vpop.f32.mrf.mxu0  ;;  %v5313_v44 = vpop.f32.mrf.mxu1 }
 0x25c   : > { %v7504_v47 = vadd.f32 %v3165_v54, %v2929_v39  ;;  %v2935_v38 = vadd.f32 %v5313_v44, %v7384_v2 }
 0x25d   : > { %v5344_v7 = vpop.f32.mrf.mxu0  ;;  %v2854_v40 = vpop.f32.mrf.mxu1 }
 0x25e   : > { %v7507_v15 = vadd.f32 %v5344_v7, %v2932_v6  ;;  %v2933_v52 = vadd.f32 %v2854_v40, %v7391_v41 }
 0x25f   : > { %v7510_v12 = vpop.f32.mrf.mxu0  ;;  %v5314_v14 = vpop.f32.mrf.mxu1 }
 0x260   : > { %v2936_v48 = vadd.f32 %v5314_v14, %v7397_v36 }
 0x261   : > { %v5347_v27 = vpop.f32.mrf.mxu0  ;;  %v2857_v11 = vpop.f32.mrf.mxu1 }
 0x262   : > { %v7513_v55 = vadd.f32 %v5347_v27, %v2935_v38  ;;  %v7516_v3 = vadd.f32 %v2857_v11, %v7402_v33 }
 0x263   : > { %v3181_v49 = vpop.f32.mrf.mxu0  ;;  %v5317_v2 = vpop.f32.mrf.mxu1 }
 0x264   : > { %v7518_v17 = vadd.f32 %v3181_v49, %v2933_v52  ;;  %v2939_v63 = vadd.f32 %v5317_v2, %v7405_v53 }
 0x265   : > { %v5348_v51 = vpop.f32.mrf.mxu0  ;;  %v2870_v41 = vpop.f32.mrf.mxu1 }
 0x266   : > { %v7521_v61 = vadd.f32 %v5348_v51, %v2936_v48  ;;  %v2937_v23 = vadd.f32 %v2870_v41, %v7408_v43 }
 0x267   : > { %v7524_v36 = vpop.f32.mrf.mxu0  ;;  %v5318_v24 = vpop.f32.mrf.mxu1 }
 0x268   : > { %v2940_v25 = vadd.f32 %v5318_v24, %v7415_v5 }
 0x269   : > { %v5351_v10 = vpop.f32.mrf.mxu0  ;;  %v2873_v33 = vpop.f32.mrf.mxu1 }
 0x26a   : > { %v7527_v39 = vadd.f32 %v5351_v10, %v2939_v63  ;;  %v7530_v29 = vadd.f32 %v2873_v33, %v7420_v9 }
 0x26b   : > { %v3197_v8 = vpop.f32.mrf.mxu0  ;;  %v5321_v53 = vpop.f32.mrf.mxu1 }
 0x26c   : > { %v7532_v6 = vadd.f32 %v3197_v8, %v2937_v23  ;;  %v2943_v19 = vadd.f32 %v5321_v53, %v7423_v13 }
 0x26d   : > { %v5352_v16 = vpop.f32.mrf.mxu0  ;;  %v2886_v43 = vpop.f32.mrf.mxu1 }
 0x26e   : > { %v7535_v54 = vadd.f32 %v5352_v16, %v2940_v25  ;;  %v2941_v44 = vadd.f32 %v2886_v43, %v7429_v59 }
 0x26f   : > { %v7538_v5 = vpop.f32.mrf.mxu0  ;;  %v5322_v38 = vpop.f32.mrf.mxu1 }
 0x270   : > { %8517 = vst [vmem:[#allocation97_spill] sm:$0xff] %v7538_v5  ;;  %v2944_v7 = vadd.f32 %v5322_v38, %v7432_v34 }
 0x271   : > { %v5355_v40 = vpop.f32.mrf.mxu0  ;;  %v2889_v9 = vpop.f32.mrf.mxu1 }
 0x272   : > { %v7541_v52 = vadd.f32 %v5355_v40, %v2943_v19  ;;  %v7544_v14 = vadd.f32 %v2889_v9, %v7437_v58 }
 0x273   : > { %v3213_v48 = vpop.f32.mrf.mxu0  ;;  %v5325_v13 = vpop.f32.mrf.mxu1 }
 0x274   : > { %8518 = vst [vmem:[#allocation28_spill] sm:$0xff] %v7544_v14  ;;  %v7546_v27 = vadd.f32 %v3213_v48, %v2941_v44  ;;  %v2947_v11 = vadd.f32 %v5325_v13, %v7440_v31 }
 0x275   : > { %v5356_v49 = vpop.f32.mrf.mxu0  ;;  %v2902_v59 = vpop.f32.mrf.mxu1 }
 0x276   : > { %v7549_v2 = vadd.f32 %v5356_v49, %v2944_v7  ;;  %v2945_v63 = vadd.f32 %v2902_v59, %v7442_v4 }
 0x277   : > { %v7552_v34 = vpop.f32.mrf.mxu0  ;;  %v5326_v51 = vpop.f32.mrf.mxu1 }
 0x278   : > { %8519 = vst [vmem:[#allocation32_spill] sm:$0xff] %v7552_v34  ;;  %v2948_v41 = vadd.f32 %v5326_v51, %v7445_v28 }
 0x279   : > { %v5359_v23 = vpop.f32.mrf.mxu0  ;;  %v2905_v58 = vpop.f32.mrf.mxu1 }
 0x27a   : > { %v7555_v24 = vadd.f32 %v5359_v23, %v2947_v11  ;;  %v7558_v25 = vadd.f32 %v2905_v58, %v7450_v46 }
 0x27b   : > { %v3229_v10 = vpop.f32.mrf.mxu0  ;;  %v5365_v31 = vpop.f32.mrf.mxu1 }
 0x27c   : > { %8520 = vst [vmem:[#allocation31_spill] sm:$0xff] %v7558_v25  ;;  %v7560_v33 = vadd.f32 %v3229_v10, %v2945_v63  ;;  %v7563_v8 = vadd.f32 %v5365_v31, %v7455_v32 }
 0x27d   : > { %v5360_v4 = vpop.f32.mrf.mxu0  ;;  %v3444_v53 = vpop.f32.mrf.mxu1 }
 0x27e   : > { %v7565_v19 = vadd.f32 %v5360_v4, %v2948_v41  ;;  %v7568_v28 = vadd.f32 %v3444_v53, %v7459_v1 }
 0x27f   : > { %v7570_v16 = vpop.f32.mrf.mxu0  ;;  %v7572_v43 = vpop.f32.mrf.mxu1 }
 0x280   : > { %8521 = vst [vmem:[#allocation40_spill] sm:$0xff] %v7570_v16 }
 0x281   : > { %v7574_v46 = vpop.f32.mrf.mxu0  ;;  %v7576_v44 = vpop.f32.mrf.mxu1 }
 0x283   : > { %v7578_v38 = vpop.f32.mrf.mxu0  ;;  %v5369_v7 = vpop.f32.mrf.mxu1 }
 0x284   : > { %v7581_v32 = vadd.f32 %v5369_v7, %v7470_v50 }
 0x285   : > { %v7583_v40 = vpop.f32.mrf.mxu0  ;;  %v3460_v9 = vpop.f32.mrf.mxu1 }
 0x286   : > { %v7586_v1 = vadd.f32 %v3460_v9, %v7474_v21 }
 0x287   : > { %v7588_v48 = vpop.f32.mrf.mxu0  ;;  %v5370_v13 = vpop.f32.mrf.mxu1 }
 0x288   : > { %v7591_v11 = vadd.f32 %v5370_v13, %v7477_v18 }
 0x289   : > { %v7593_v49 = vpop.f32.mrf.mxu1  ;;  %v7595_v59 = vpop.f32.mrf.mxu0 }
 0x28b   : > { %v5373_v63 = vpop.f32.mrf.mxu1  ;;  %v7600_v41 = vpop.f32.mrf.mxu0 }
 0x28c   : > { %v7598_v50 = vadd.f32 %v5373_v63, %v7485_v20 }
 0x28d   : > { %v3476_v51 = vpop.f32.mrf.mxu1  ;;  %v7610_v10 = vpop.f32.mrf.mxu0 }
 0x28e   : > { %v7603_v21 = vadd.f32 %v3476_v51, %v7489_v26 }
 0x28f   : > { %v5374_v23 = vpop.f32.mrf.mxu1  ;;  %v7615_v53 = vpop.f32.mrf.mxu0 }
 0x290   : > { %v7606_v58 = vadd.f32 %v5374_v23, %v7492_v22 }
 0x291   : > { %v7608_v18 = vpop.f32.mrf.mxu1  ;;  %v7625_v13 = vpop.f32.mrf.mxu0 }
 0x293   : > { %v5377_v31 = vpop.f32.mrf.mxu1  ;;  %v7630_v23 = vpop.f32.mrf.mxu0 }
 0x294   : > { %v7613_v4 = vadd.f32 %v5377_v31, %v7500_v0 }
 0x295   : > { %v3492_v20 = vpop.f32.mrf.mxu1 }
 0x296   : > { %v7618_v7 = vadd.f32 %v3492_v20, %v7504_v47 }
 0x297   : > { %v5378_v26 = vpop.f32.mrf.mxu1 }
 0x298   : > { %v7621_v9 = vadd.f32 %v5378_v26, %v7507_v15  ;;  %v7640_v26 = vpop.f32.mrf.mxu0 }
 0x299   : > { %v7623_v22 = vpop.f32.mrf.mxu1 }
 0x29b   : > { %v5381_v63 = vpop.f32.mrf.mxu1 }
 0x29c   : > { %v7628_v51 = vadd.f32 %v5381_v63, %v7513_v55  ;;  %v7645_v63 = vpop.f32.mrf.mxu0 }
 0x29d   : > { %v3508_v0 = vpop.f32.mrf.mxu1 }
 0x29e   : > { %v7633_v31 = vadd.f32 %v3508_v0, %v7518_v17 }
 0x29f   : > { %v5382_v47 = vpop.f32.mrf.mxu1 }
 0x2a0   : > { %v7636_v20 = vadd.f32 %v5382_v47, %v7521_v61  ;;  %v7655_v47 = vpop.f32.mrf.mxu0 }
 0x2a1   : > { %v7638_v15 = vpop.f32.mrf.mxu1 }
 0x2a3   : > { %v5385_v16 = vpop.f32.mrf.mxu1 }
 0x2a4   : > { %v7643_v25 = vadd.f32 %v5385_v16, %v7527_v39  ;;  %v7660_v16 = vpop.f32.mrf.mxu0 }
 0x2a5   : > { %v3524_v55 = vpop.f32.mrf.mxu1 }
 0x2a6   : > { %8522 = vst [vmem:[#allocation39_spill] sm:$0xff] %v7643_v25  ;;  %v7648_v34 = vadd.f32 %v3524_v55, %v7532_v6 }
 0x2a7   : > { %v5386_v17 = vpop.f32.mrf.mxu1 }
 0x2a8   : > { %v7651_v0 = vadd.f32 %v5386_v17, %v7535_v54  ;;  %v7670_v17 = vpop.f32.mrf.mxu0 }
 0x2a9   : > { %v7653_v61 = vpop.f32.mrf.mxu1 }
 0x2aa   : > { %8523 = vst [vmem:[#allocation42_spill] sm:$0xff] %v7651_v0  ;;  %8524 = vst [vmem:[#allocation41_spill] sm:$0xff] %v7653_v61 }
 0x2ab   : > { %v5389_v14 = vpop.f32.mrf.mxu1 }
 0x2ac   : > { %v7658_v5 = vadd.f32 %v5389_v14, %v7541_v52  ;;  %v7675_v14 = vpop.f32.mrf.mxu0 }
 0x2ad   : > { %v3540_v39 = vpop.f32.mrf.mxu1 }
 0x2ae   : > { %8525 = vst [vmem:[#allocation34_spill] sm:$0xff] %v7658_v5  ;;  %v7663_v25 = vadd.f32 %v3540_v39, %v7546_v27  ;;  %v3247_v39 = vadd.f32 %v7462_v35, %v7453_v37  ;;  %v7697_v37 = vld [vmem:[%s8061_s10] ss:$0 sm:$0xff]  ;;  %v3866_v35 = vadd.f32 %v7578_v38, %v7568_v28 }
 0x2af   : > { %v5390_v6 = vpop.f32.mrf.mxu1 }
 0x2b0   : > { %v7666_v55 = vadd.f32 %v5390_v6, %v7549_v2 }
 0x2b1   : > { %v7668_v54 = vpop.f32.mrf.mxu1 }
 0x2b2   : > { %8526 = vst [vmem:[#allocation33_spill] sm:$0xff] %v7666_v55  ;;  %v3245_v55 = vadd.f32 %v7465_v45, %v7457_v56  ;;  %v7705_v56 = vld [vmem:[%s8062_s11] ss:$0 sm:$0xff] }
 0x2b3   : > { %v5393_v0 = vpop.f32.mrf.mxu1 }
 0x2b4   : > { %v7673_v61 = vadd.f32 %v5393_v0, %v7555_v24  ;;  %v3868_v24 = vadd.f32 %v7574_v46, %v7563_v8  ;;  %v3574_v0 = vadd.f32 %v7572_v43, %v3247_v39 }
 0x2b5   : > { %v3556_v52 = vpop.f32.mrf.mxu1 }
 0x2b6   : > { %8527 = vst [vmem:[#allocation35_spill] sm:$0xff] %v7673_v61  ;;  %v7678_v5 = vadd.f32 %v3556_v52, %v7560_v33  ;;  %v7692_v61 = vpop.f32.mrf.mxu0  ;;  %v3869_v8 = vadd.f32 %v7583_v40, %v3574_v0 }
 0x2b7   : > { %v5394_v27 = vpop.f32.mrf.mxu1 }
 0x2b8   : > { %v7683_v2 = vadd.f32 %v5394_v27, %v7565_v19  ;;  %v3572_v19 = vadd.f32 %v7576_v44, %v3245_v55  ;;  %v7708_v43 = vpop.f32.mrf.mxu0  ;;  %v7716_v44 = vld [vmem:[%s8063_s12] ss:$0 sm:$0xff] }
 0x2b9   : > { %v7685_v6 = vpop.f32.mrf.mxu1 }
 0x2ba   : > { %8528 = vst [vmem:[#allocation47_spill] sm:$0xff] %v7683_v2  ;;  %v3867_v2 = vadd.f32 %v7588_v48, %v3572_v19  ;;  %v7719_v40 = vpop.f32.mrf.mxu0  ;;  %v3249_v48 = vadd.f32 %v7480_v57, %v7472_v30  ;;  %v3872_v19 = vadd.f32 %v7595_v59, %v7581_v32  ;;  %v3873_v30 = vadd.f32 %v7610_v10, %v7591_v11 }
 0x2bb   : > { %v5433_v33 = vpop.f32.mrf.mxu1  ;;  %v3876_v11 = vadd.f32 %v7625_v13, %v7598_v50  ;;  %v3874_v50 = vadd.f32 %v7630_v23, %v7603_v21 }
 0x2bc   : > { %v4195_v52 = vadd.f32 %v5433_v33, %v3868_v24  ;;  %v7736_v57 = vpop.f32.mrf.mxu0 }
 0x2bd   : > { %v4066_v45 = vpop.f32.mrf.mxu1 }
 0x2be   : > { %v4234_v46 = vadd.f32 %v7697_v37, %v4195_v52  ;;  %v4193_v27 = vadd.f32 %v4066_v45, %v3866_v35 }
 0x2bf   : > { %v5434_v39 = vpop.f32.mrf.mxu1 }
 0x2c0   : > { %v4273_v28 = vmul.f32 %v7705_v56, %v4234_v46  ;;  %v4232_v38 = vadd.f32 %v7697_v37, %v4193_v27  ;;  %v4196_v55 = vadd.f32 %v5434_v39, %v3869_v8  ;;  %v3870_v8 = vadd.f32 %v7600_v41, %v7586_v1 }
 0x2c1   : > { %v4069_v24 = vpop.f32.mrf.mxu1  ;;  %v3576_v39 = vadd.f32 %v7593_v49, %v3249_v48 }
 0x2c2   : > { %v4271_v0 = vmul.f32 %v7705_v56, %v4232_v38  ;;  %v4235_v33 = vadd.f32 %v7697_v37, %v4196_v55  ;;  %v4194_v35 = vadd.f32 %v4069_v24, %v3867_v2  ;;  %v4312_v52 = vadd.f32 %v7716_v44, %v4273_v28 }
 0x2c3   : > { %v5437_v45 = vpop.f32.mrf.mxu1  ;;  %v3871_v48 = vadd.f32 %v7615_v53, %v3576_v39 }
 0x2c4   : > { %v4274_v46 = vmul.f32 %v7705_v56, %v4235_v33  ;;  %v4233_v27 = vadd.f32 %v7697_v37, %v4194_v35  ;;  %v4310_v2 = vadd.f32 %v7716_v44, %v4271_v0  ;;  %v4199_v38 = vadd.f32 %v5437_v45, %v3872_v19 }
 0x2c5   : > { %v4082_v55 = vpop.f32.mrf.mxu1  ;;  %v4344_v41 = vmax.f32 %v4312_v52, 0.0 }
 0x2c6   : > { %v4313_v32 = vadd.f32 %v7716_v44, %v4274_v46  ;;  %v4272_v59 = vmul.f32 %v7705_v56, %v4233_v27  ;;  %v4197_v1 = vadd.f32 %v4082_v55, %v3870_v8  ;;  %v4238_v28 = vadd.f32 %v7697_v37, %v4199_v38  ;;  %v7747_v8 = vpop.f32.mrf.mxu0 }
 0x2c7   : > { %v5438_v24 = vpop.f32.mrf.mxu1  ;;  %v4342_v10 = vmax.f32 %v4310_v2, 0.0  ;;  %v3253_v55 = vadd.f32 %v7495_v62, %v7487_v42 }
 0x2c8   : > { %v4345_v33 = vmax.f32 %v4313_v32, 0.0  ;;  %v4311_v49 = vadd.f32 %v7716_v44, %v4272_v59  ;;  %v4236_v0 = vadd.f32 %v7697_v37, %v4197_v1  ;;  %v4200_v35 = vadd.f32 %v5438_v24, %v3873_v30  ;;  %v7761_v42 = vpop.f32.mrf.mxu0 }
 0x2c9   : > { %v4277_v19 = vmul.f32 %v7705_v56, %v4238_v28  ;;  %v4085_v45 = vpop.f32.mrf.mxu1  ;;  %v3580_v59 = vadd.f32 %v7608_v18, %v3253_v55  ;;  %v3877_v1 = vadd.f32 %v7640_v26, %v7606_v58 }
 0x2ca   : > { %v4375_v52 = vpack.c.bf16 %v4345_v33, %v4344_v41  ;;  %v4343_v46 = vmax.f32 %v4311_v49, 0.0  ;;  %v4275_v27 = vmul.f32 %v7705_v56, %v4236_v0  ;;  %v4239_v38 = vadd.f32 %v7697_v37, %v4200_v35 }
 0x2cb   : > { %v4316_v53 = vadd.f32 %v7716_v44, %v4277_v19  ;;  %v4198_v39 = vadd.f32 %v4085_v45, %v3871_v48  ;;  %v5441_v30 = vpop.f32.mrf.mxu1  ;;  %v3257_v48 = vadd.f32 %v7510_v12, %v7502_v60  ;;  %v3880_v45 = vadd.f32 %v7655_v47, %v7613_v4 }
 0x2cc   : > { %v4278_v13 = vmul.f32 %v7705_v56, %v4239_v38  ;;  %v4203_v2 = vadd.f32 %v5441_v30, %v3876_v11  ;;  %v4374_v32 = vpack.c.bf16 %v4343_v46, %v4342_v10  ;;  %v4314_v62 = vadd.f32 %v7716_v44, %v4275_v27  ;;  %v7777_v46 = vpop.f32.mrf.mxu0 }
 0x2cd   : > { %v4237_v41 = vadd.f32 %v7697_v37, %v4198_v39  ;;  %v4098_v28 = vpop.f32.mrf.mxu1  ;;  %v4348_v33 = vmax.f32 %v4316_v53, 0.0  ;;  %v3875_v11 = vadd.f32 %v7645_v63, %v3580_v59  ;;  %v3878_v63 = vadd.f32 %v7660_v16, %v7618_v7 }
 0x2ce   : > { %v4317_v24 = vadd.f32 %v7716_v44, %v4278_v13  ;;  %v4242_v21 = vadd.f32 %v7697_v37, %v4203_v2  ;;  %v4201_v23 = vadd.f32 %v4098_v28, %v3874_v50  ;;  %5465 = vmatprep.mubr.msk.bf16.mxu0 %vm987_vm0, %v4374_v32  ;;  %v3584_v4 = vadd.f32 %v7623_v22, %v3257_v48  ;;  %v7789_v59 = vpop.f32.mrf.mxu0 }
 0x2cf   : > { %v4276_v18 = vmul.f32 %v7705_v56, %v4237_v41  ;;  %v5442_v49 = vpop.f32.mrf.mxu1  ;;  %5466 = vmatmul.mubr.msk.bf16.vlgmr.msra.gmra.mxu0 %vm987_vm0, %v4375_v52  ;;  %v4346_v52 = vmax.f32 %v4314_v62, 0.0  ;;  %v3881_v32 = vadd.f32 %v7670_v17, %v7621_v9 }
 0x2d0   : > { %v4349_v58 = vmax.f32 %v4317_v24, 0.0  ;;  %v4281_v26 = vmul.f32 %v7705_v56, %v4242_v21  ;;  %v4240_v0 = vadd.f32 %v7697_v37, %v4201_v23  ;;  %v4204_v35 = vadd.f32 %v5442_v49, %v3877_v1 }
 0x2d1   : > { %v4315_v10 = vadd.f32 %v7716_v44, %v4276_v18  ;;  %v4101_v19 = vpop.f32.mrf.mxu1  ;;  %v3261_v23 = vadd.f32 %v7524_v36, %v7516_v3 }
 0x2d2   : > { %v4377_v27 = vpack.c.bf16 %v4349_v58, %v4348_v33  ;;  %v4243_v38 = vadd.f32 %v7697_v37, %v4204_v35  ;;  %v4320_v53 = vadd.f32 %v7716_v44, %v4281_v26  ;;  %v4279_v39 = vmul.f32 %v7705_v56, %v4240_v0  ;;  %v7805_v26 = vpop.f32.mrf.mxu0 }
 0x2d3   : > { %v4347_v55 = vmax.f32 %v4315_v10, 0.0  ;;  %v4202_v60 = vadd.f32 %v4101_v19, %v3875_v11  ;;  %v5445_v12 = vpop.f32.mrf.mxu1  ;;  %v3879_v33 = vadd.f32 %v7675_v14, %v3584_v4  ;;  %v3884_v58 = vadd.f32 %v7692_v61, %v7628_v51  ;;  %v8529_v4 = vld [vmem:[#allocation97_spill] sm:$0xff] }
 0x2d4   : > { %v4282_v30 = vmul.f32 %v7705_v56, %v4243_v38  ;;  %v4207_v50 = vadd.f32 %v5445_v12, %v3880_v45  ;;  %v4352_v7 = vmax.f32 %v4320_v53, 0.0  ;;  %v4318_v16 = vadd.f32 %v7716_v44, %v4279_v39  ;;  %v7817_v53 = vpop.f32.mrf.mxu0 }
 0x2d5   : > { %v4241_v47 = vadd.f32 %v7697_v37, %v4202_v60  ;;  %v4114_v13 = vpop.f32.mrf.mxu1  ;;  %v4376_v2 = vpack.c.bf16 %v4347_v55, %v4346_v52  ;;  %v3882_v14 = vadd.f32 %v7708_v43, %v7633_v31  ;;  %v3588_v51 = vadd.f32 %v7638_v15, %v3261_v23 }
 0x2d6   : > { %v4321_v1 = vadd.f32 %v7716_v44, %v4282_v30  ;;  %v4246_v41 = vadd.f32 %v7697_v37, %v4207_v50  ;;  %v4205_v28 = vadd.f32 %v4114_v13, %v3878_v63  ;;  %v4350_v11 = vmax.f32 %v4318_v16, 0.0 }
 0x2d7   : > { %v4280_v62 = vmul.f32 %v7705_v56, %v4241_v47  ;;  %5469 = vmatprep.mubr.msk.bf16.mxu0 %vm987_vm0, %v4376_v2  ;;  %v5446_v22 = vpop.f32.mrf.mxu1  ;;  %v3885_v61 = vadd.f32 %v7719_v40, %v7636_v20  ;;  %v3265_v47 = vadd.f32 %v8529_v4, %v7530_v29  ;;  %v3883_v13 = vadd.f32 %v7736_v57, %v3588_v51  ;;  %v8533_v51 = vld [vmem:[#allocation28_spill] sm:$0xff] }
 0x2d8   : > { %v4353_v24 = vmax.f32 %v4321_v1, 0.0  ;;  %v4285_v21 = vmul.f32 %v7705_v56, %v4246_v41  ;;  %v4244_v9 = vadd.f32 %v7697_v37, %v4205_v28  ;;  %v4208_v17 = vadd.f32 %v5446_v22, %v3881_v32  ;;  %5470 = vmatmul.mubr.msk.bf16.gmra.mxu0 %vm987_vm0, %v4377_v27  ;;  %v8530_v1 = vld [vmem:[#allocation39_spill] sm:$0xff]  ;;  %v5424_v28 = vpop.f32.mrf.mxu0 }
 0x2d9   : > { %v4319_v18 = vadd.f32 %v7716_v44, %v4280_v62  ;;  %v4117_v49 = vpop.f32.mrf.mxu1  ;;  %v3888_v41 = vadd.f32 %v7747_v8, %v8530_v1  ;;  %v3886_v57 = vadd.f32 %v7761_v42, %v7648_v34 }
 0x2da   : > { %v4379_v0 = vpack.c.bf16 %v4353_v24, %v4352_v7  ;;  %v4283_v35 = vmul.f32 %v7705_v56, %v4244_v9  ;;  %v4247_v48 = vadd.f32 %v7697_v37, %v4208_v17  ;;  %v4324_v19 = vadd.f32 %v7716_v44, %v4285_v21 }
 0x2db   : > { %v4351_v10 = vmax.f32 %v4319_v18, 0.0  ;;  %v4206_v3 = vadd.f32 %v4117_v49, %v3879_v33  ;;  %v5449_v36 = vpop.f32.mrf.mxu1  ;;  %v8531_v33 = vld [vmem:[#allocation41_spill] sm:$0xff] }
 0x2dc   : > { %v4286_v45 = vmul.f32 %v7705_v56, %v4247_v48  ;;  %v4211_v52 = vadd.f32 %v5449_v36, %v3884_v58  ;;  %v4322_v39 = vadd.f32 %v7716_v44, %v4283_v35  ;;  %v4356_v12 = vmax.f32 %v4324_v19, 0.0  ;;  %v3838_v48 = vpop.f32.mrf.mxu0 }
 0x2dd   : > { %v4245_v27 = vadd.f32 %v7697_v37, %v4206_v3  ;;  %v4130_v38 = vpop.f32.mrf.mxu1  ;;  %v4378_v55 = vpack.c.bf16 %v4351_v10, %v4350_v11  ;;  %v3592_v8 = vadd.f32 %v8531_v33, %v3265_v47 }
 0x2de   : > { %v4325_v60 = vadd.f32 %v7716_v44, %v4286_v45  ;;  %v4250_v31 = vadd.f32 %v7697_v37, %v4211_v52  ;;  %v4209_v43 = vadd.f32 %v4130_v38, %v3882_v14  ;;  %v4354_v7 = vmax.f32 %v4322_v39, 0.0 }
 0x2df   : > { %v4284_v63 = vmul.f32 %v7705_v56, %v4245_v27  ;;  %5473 = vmatprep.mubr.msk.bf16.mxu0 %vm987_vm0, %v4378_v55  ;;  %v5450_v15 = vpop.f32.mrf.mxu1  ;;  %v3887_v38 = vadd.f32 %v7789_v59, %v3592_v8  ;;  %v3890_v59 = vadd.f32 %v7817_v53, %v7663_v25 }
 0x2e0   : > { %v4357_v20 = vmax.f32 %v4325_v60, 0.0  ;;  %v4289_v40 = vmul.f32 %v7705_v56, %v4250_v31  ;;  %v4248_v30 = vadd.f32 %v7697_v37, %v4209_v43  ;;  %v4212_v50 = vadd.f32 %v5450_v15, %v3885_v61  ;;  %5474 = vmatmul.mubr.msk.bf16.gmra.mxu0 %vm987_vm0, %v4379_v0  ;;  %v8532_v0 = vld [vmem:[#allocation42_spill] sm:$0xff]  ;;  %v8534_v61 = vld [vmem:[#allocation32_spill] sm:$0xff]  ;;  %v5427_v43 = vpop.f32.mrf.mxu0 }
 0x2e1   : > { %v4323_v2 = vadd.f32 %v7716_v44, %v4284_v63  ;;  %v4133_v32 = vpop.f32.mrf.mxu1  ;;  %v3889_v35 = vadd.f32 %v7777_v46, %v8532_v0  ;;  %v3269_v27 = vadd.f32 %v8534_v61, %v8533_v51  ;;  %v8535_v60 = vld [vmem:[#allocation34_spill] sm:$0xff] }
 0x2e2   : > { %v4381_v16 = vpack.c.bf16 %v4357_v20, %v4356_v12  ;;  %v4251_v62 = vadd.f32 %v7697_v37, %v4212_v50  ;;  %v4328_v24 = vadd.f32 %v7716_v44, %v4289_v40  ;;  %v4287_v21 = vmul.f32 %v7705_v56, %v4248_v30 }
 0x2e3   : > { %v4355_v22 = vmax.f32 %v4323_v2, 0.0  ;;  %v4210_v9 = vadd.f32 %v4133_v32, %v3883_v13  ;;  %v5453_v29 = vpop.f32.mrf.mxu1  ;;  %v3892_v31 = vadd.f32 %v7805_v26, %v8535_v60  ;;  %v3596_v26 = vadd.f32 %v7668_v54, %v3269_v27  ;;  %v8536_v2 = vld [vmem:[#allocation33_spill] sm:$0xff] }
 0x2e4   : > { %v4290_v17 = vmul.f32 %v7705_v56, %v4251_v62  ;;  %v4215_v23 = vadd.f32 %v5453_v29, %v3888_v41  ;;  %v4360_v3 = vmax.f32 %v4328_v24, 0.0  ;;  %v4326_v34 = vadd.f32 %v7716_v44, %v4287_v21 }
 0x2e5   : > { %v4249_v18 = vadd.f32 %v7697_v37, %v4210_v9  ;;  %v4146_v49 = vpop.f32.mrf.mxu1  ;;  %v4380_v58 = vpack.c.bf16 %v4355_v22, %v4354_v7  ;;  %v3893_v32 = vadd.f32 %v5424_v28, %v8536_v2  ;;  %v3891_v8 = vadd.f32 %v3838_v48, %v3596_v26 }
 0x2e6   : > { %v4329_v11 = vadd.f32 %v7716_v44, %v4290_v17  ;;  %v4254_v10 = vadd.f32 %v7697_v37, %v4215_v23  ;;  %v4213_v19 = vadd.f32 %v4146_v49, %v3886_v57  ;;  %v4358_v20 = vmax.f32 %v4326_v34, 0.0  ;;  %v8537_v17 = vld [vmem:[#allocation31_spill] sm:$0xff]  ;;  %v8538_v23 = vld [vmem:[#allocation40_spill] sm:$0xff] }
 0x2e7   : > { %v4288_v42 = vmul.f32 %v7705_v56, %v4249_v18  ;;  %5477 = vmatprep.mubr.msk.bf16.mxu0 %vm987_vm0, %v4380_v58  ;;  %v5454_v36 = vpop.f32.mrf.mxu1  ;;  %v3273_v33 = vadd.f32 %v8538_v23, %v8537_v17  ;;  %v8539_v58 = vld [vmem:[#allocation35_spill] sm:$0xff]  ;;  %v5523_v23 = vld [vmem:[%s5762_s26 + $0x10] sm:$0xff] }
 0x2e8   : > { %v4361_v14 = vmax.f32 %v4329_v11, 0.0  ;;  %v4293_v45 = vmul.f32 %v7705_v56, %v4254_v10  ;;  %v4252_v52 = vadd.f32 %v7697_v37, %v4213_v19  ;;  %v4216_v46 = vadd.f32 %v5454_v36, %v3889_v35  ;;  %5478 = vmatmul.mubr.msk.bf16.gmra.mxu0 %vm987_vm0, %v4381_v16  ;;  %v3851_v16 = vpop.f32.mrf.mxu0 }
 0x2e9   : > { %v4327_v55 = vadd.f32 %v7716_v44, %v4288_v42  ;;  %v4149_v39 = vpop.f32.mrf.mxu1  ;;  %v3896_v0 = vadd.f32 %v5427_v43, %v8539_v58 }
 0x2ea   : > { %v4383_v12 = vpack.c.bf16 %v4361_v14, %v4360_v3  ;;  %v4291_v63 = vmul.f32 %v7705_v56, %v4252_v52  ;;  %v4255_v15 = vadd.f32 %v7697_v37, %v4216_v46  ;;  %v4332_v30 = vadd.f32 %v7716_v44, %v4293_v45  ;;  %v5428_v35 = vpop.f32.mrf.mxu0 }
 0x2eb   : > { %v4359_v40 = vmax.f32 %v4327_v55, 0.0  ;;  %v4214_v50 = vadd.f32 %v4149_v39, %v3887_v38  ;;  %v5457_v4 = vpop.f32.mrf.mxu1  ;;  %v3894_v45 = vadd.f32 %v3851_v16, %v7678_v5  ;;  %v3600_v46 = vadd.f32 %v7685_v6, %v3273_v33  ;;  %v8540_v38 = vld [vmem:[#allocation47_spill] sm:$0xff] }
 0x2ec   : > { %v4294_v47 = vmul.f32 %v7705_v56, %v4255_v15  ;;  %v4219_v13 = vadd.f32 %v5457_v4, %v3892_v31  ;;  %v4330_v62 = vadd.f32 %v7716_v44, %v4291_v63  ;;  %v4364_v25 = vmax.f32 %v4332_v30, 0.0  ;;  %v3854_v39 = vpop.f32.mrf.mxu0 }
 0x2ed   : > { %v4253_v1 = vadd.f32 %v7697_v37, %v4214_v50  ;;  %v4162_v41 = vpop.f32.mrf.mxu1  ;;  %v4382_v7 = vpack.c.bf16 %v4359_v40, %v4358_v20  ;;  %v3897_v55 = vadd.f32 %v5428_v35, %v8540_v38  ;;  %v3895_v50 = vadd.f32 %v3854_v39, %v3600_v46 }
 0x2ee   : > { %v4333_v22 = vadd.f32 %v7716_v44, %v4294_v47  ;;  %v4258_v24 = vadd.f32 %v7697_v37, %v4219_v13  ;;  %v4217_v21 = vadd.f32 %v4162_v41, %v3890_v59  ;;  %v4362_v11 = vmax.f32 %v4330_v62, 0.0 }
 0x2ef   : > { %v4292_v53 = vmul.f32 %v7705_v56, %v4253_v1  ;;  %5481 = vmatprep.mubr.msk.bf16.mxu0 %vm987_vm0, %v4382_v7  ;;  %v5458_v54 = vpop.f32.mrf.mxu1 }
 0x2f0   : > { %v4365_v9 = vmax.f32 %v4333_v22, 0.0  ;;  %v4297_v28 = vmul.f32 %v7705_v56, %v4258_v24  ;;  %v4256_v29 = vadd.f32 %v7697_v37, %v4217_v21  ;;  %v4220_v57 = vadd.f32 %v5458_v54, %v3893_v32  ;;  %5482 = vmatmul.mubr.msk.bf16.gmra.mxu0 %vm987_vm0, %v4383_v12 }
 0x2f1   : > { %v4331_v18 = vadd.f32 %v7716_v44, %v4292_v53  ;;  %v4165_v49 = vpop.f32.mrf.mxu1 }
 0x2f2   : > { %v4385_v10 = vpack.c.bf16 %v4365_v9, %v4364_v25  ;;  %v4259_v19 = vadd.f32 %v7697_v37, %v4220_v57  ;;  %v4336_v34 = vadd.f32 %v7716_v44, %v4297_v28  ;;  %v4295_v42 = vmul.f32 %v7705_v56, %v4256_v29 }
 0x2f3   : > { %v4363_v3 = vmax.f32 %v4331_v18, 0.0  ;;  %v4218_v36 = vadd.f32 %v4165_v49, %v3891_v8  ;;  %v5461_v14 = vpop.f32.mrf.mxu1  ;;  %v5524_v49 = vld [vmem:[%s5762_s26] sm:$0xff] }
 0x2f4   : > { %v4298_v48 = vmul.f32 %v7705_v56, %v4259_v19  ;;  %v4223_v52 = vadd.f32 %v5461_v14, %v3896_v0  ;;  %v4368_v12 = vmax.f32 %v4336_v34, 0.0  ;;  %v4334_v5 = vadd.f32 %v7716_v44, %v4295_v42 }
 0x2f5   : > { %v4257_v51 = vadd.f32 %v7697_v37, %v4218_v36  ;;  %v4178_v61 = vpop.f32.mrf.mxu1  ;;  %v4384_v27 = vpack.c.bf16 %v4363_v3, %v4362_v11  ;;  %v5525_v11 = vld [vmem:[%s5762_s26 + $0x18] sm:$0xff]  ;;  %v5526_v3 = vld [vmem:[%s5762_s26 + $0x8] sm:$0xff] }
 0x2f6   : > { %v4337_v60 = vadd.f32 %v7716_v44, %v4298_v48  ;;  %v4262_v31 = vadd.f32 %v7697_v37, %v4223_v52  ;;  %v4221_v43 = vadd.f32 %v4178_v61, %v3894_v45  ;;  %v4366_v26 = vmax.f32 %v4334_v5, 0.0  ;;  %v5527_v45 = vld [vmem:[%s5762_s26 + $0x30] sm:$0xff] }
 0x2f7   : > { %v4296_v63 = vmul.f32 %v7705_v56, %v4257_v51  ;;  %5485 = vmatprep.mubr.msk.bf16.mxu0 %vm987_vm0, %v4384_v27  ;;  %v5462_v6 = vpop.f32.mrf.mxu1  ;;  %v5528_v51 = vld [vmem:[%s5762_s26 + $0x20] sm:$0xff] }
 0x2f8   : > { %v4369_v15 = vmax.f32 %v4337_v60, 0.0  ;;  %v4301_v20 = vmul.f32 %v7705_v56, %v4262_v31  ;;  %v4260_v40 = vadd.f32 %v7697_v37, %v4221_v43  ;;  %v4224_v30 = vadd.f32 %v5462_v6, %v3897_v55  ;;  %5486 = vmatmul.mubr.msk.bf16.gmra.mxu0 %vm987_vm0, %v4385_v10  ;;  %v5529_v55 = vld [vmem:[%s5762_s26 + $0x38] sm:$0xff]  ;;  %v5530_v43 = vld [vmem:[%s5762_s26 + $0x28] sm:$0xff]  ;;  %v5531_v6 = vld [vmem:[%s5762_s26 + $0x50] sm:$0xff] }
 0x2f9   : > { %v4335_v4 = vadd.f32 %v7716_v44, %v4296_v63  ;;  %v4181_v59 = vpop.f32.mrf.mxu1 }
 0x2fa   : > { %v4387_v47 = vpack.c.bf16 %v4369_v15, %v4368_v12  ;;  %v4263_v13 = vadd.f32 %v7697_v37, %v4224_v30  ;;  %v4299_v32 = vmul.f32 %v7705_v56, %v4260_v40  ;;  %v4222_v1 = vadd.f32 %v4181_v59, %v3895_v50  ;;  %v5532_v30 = vld [vmem:[%s5762_s26 + $0x40] sm:$0xff] }
 0x2fb   : > { %v4367_v2 = vmax.f32 %v4335_v4, 0.0  ;;  %v4340_v41 = vadd.f32 %v7716_v44, %v4301_v20 }
 0x2fc   : > { %v4302_v7 = vmul.f32 %v7705_v56, %v4263_v13  ;;  %v4261_v16 = vadd.f32 %v7697_v37, %v4222_v1  ;;  %v4338_v24 = vadd.f32 %v7716_v44, %v4299_v32  ;;  %v5534_v32 = vld [vmem:[%s5762_s26 + $0x48] sm:$0xff] }
 0x2fd   : > { %v4386_v62 = vpack.c.bf16 %v4367_v2, %v4366_v26  ;;  %v4372_v25 = vmax.f32 %v4340_v41, 0.0 }
 0x2fe   : > { %v4341_v22 = vadd.f32 %v7716_v44, %v4302_v7  ;;  %v4300_v21 = vmul.f32 %v7705_v56, %v4261_v16  ;;  %v4370_v37 = vmax.f32 %v4338_v24, 0.0  ;;  %v7911_v56 = vld [vmem:[%s8065_s14] ss:$0 sm:$0xff]  ;;  %v5535_v16 = vld [vmem:[%s5762_s26 + $0x70] sm:$0xff] }
 0x2ff   : > { %5489 = vmatprep.mubr.msk.bf16.mxu0 %vm987_vm0, %v4386_v62 }
 0x300   : > { %v4373_v53 = vmax.f32 %v4341_v22, 0.0  ;;  %5490 = vmatmul.mubr.msk.bf16.gmra.mxu0 %vm987_vm0, %v4387_v47  ;;  %v4339_v54 = vadd.f32 %v7716_v44, %v4300_v21  ;;  %v5533_v47 = vld [vmem:[%s5762_s26 + $0x58] sm:$0xff]  ;;  %v5536_v21 = vld [vmem:[%s5762_s26 + $0x60] sm:$0xff] }
 0x302   : > { %v4389_v9 = vpack.c.bf16 %v4373_v53, %v4372_v25  ;;  %v4371_v28 = vmax.f32 %v4339_v54, 0.0 }
 0x304   : > { %v4388_v29 = vpack.c.bf16 %v4371_v28, %v4370_v37 }
 0x306   : > { %5493 = vmatprep.mubr.msk.bf16.mxu0 %vm987_vm0, %v4388_v29 }
 0x308   : > { %5494 = vmatmul.mubr.msk.bf16.gmra.mxu0 %vm987_vm0, %v4389_v9  ;;  %v5537_v9 = vld [vmem:[%s5762_s26 + $0x78] sm:$0xff] }
 0x38f   : > { %v5467_v57 = vpop.f32.mrf.mxu0 }
 0x390   : > { %v4493_v17 = vadd.f32 %v5467_v57, %v7911_v56  ;;  %v5538_v57 = vld [vmem:[%s5762_s26 + $0x68] sm:$0xff] }
 0x391   : > { %v4484_v44 = vpop.f32.mrf.mxu0 }
 0x392   : > { %v4613_v33 = vadd.f32 %v5523_v23, %v4493_v17  ;;  %v4485_v8 = vadd.f32 %v7911_v56, %v4484_v44 }
 0x393   : > { %v5468_v18 = vpop.f32.mrf.mxu0 }
 0x394   : > { %4645 = vst.msk [vmem:[%s7919_s27 + $0x10] sm:$0xff] %vm663_vm2, %v4613_v33  ;;  %v4611_v58 = vadd.f32 %v5524_v49, %v4485_v8  ;;  %v4496_v0 = vadd.f32 %v5468_v18, %v7911_v56  ;;  %v5539_v33 = vld [vmem:[%s5762_s26 + $0x90] sm:$0xff] }
 0x395   : > { %v4487_v35 = vpop.f32.mrf.mxu0 }
 0x396   : > { %4643 = vst.msk [vmem:[%s7919_s27] sm:$0xff] %vm663_vm2, %v4611_v58  ;;  %v4614_v10 = vadd.f32 %v5525_v11, %v4496_v0  ;;  %v4488_v19 = vadd.f32 %v7911_v56, %v4487_v35  ;;  %v5540_v58 = vld [vmem:[%s5762_s26 + $0x80] sm:$0xff] }
 0x398   : > { %4646 = vst.msk [vmem:[%s7919_s27 + $0x18] sm:$0xff] %vm663_vm2, %v4614_v10  ;;  %v4612_v34 = vadd.f32 %v5526_v3, %v4488_v19  ;;  %v5471_v42 = vpop.f32.mrf.mxu0  ;;  %v5541_v10 = vld [vmem:[%s5762_s26 + $0x98] sm:$0xff] }
 0x399   : > { %v4509_v36 = vadd.f32 %v5471_v42, %v7911_v56  ;;  %v5542_v42 = vld [vmem:[%s5762_s26 + $0x88] sm:$0xff] }
 0x39a   : > { %4644 = vst.msk [vmem:[%s7919_s27 + $0x8] sm:$0xff] %vm663_vm2, %v4612_v34  ;;  %v4500_v14 = vpop.f32.mrf.mxu0 }
 0x39b   : > { %v4617_v48 = vadd.f32 %v5527_v45, %v4509_v36  ;;  %v4501_v52 = vadd.f32 %v7911_v56, %v4500_v14 }
 0x39c   : > { %v5472_v46 = vpop.f32.mrf.mxu0 }
 0x39d   : > { %4649 = vst.msk [vmem:[%s7919_s27 + $0x30] sm:$0xff] %vm663_vm2, %v4617_v48  ;;  %v4615_v61 = vadd.f32 %v5528_v51, %v4501_v52  ;;  %v4512_v27 = vadd.f32 %v5472_v46, %v7911_v56  ;;  %v5543_v48 = vld [vmem:[%s5762_s26 + $0xb0] sm:$0xff] }
 0x39e   : > { %v4503_v38 = vpop.f32.mrf.mxu0 }
 0x39f   : > { %4647 = vst.msk [vmem:[%s7919_s27 + $0x20] sm:$0xff] %vm663_vm2, %v4615_v61  ;;  %v4618_v39 = vadd.f32 %v5529_v55, %v4512_v27  ;;  %v4504_v60 = vadd.f32 %v7911_v56, %v4503_v38  ;;  %v5544_v61 = vld [vmem:[%s5762_s26 + $0xa0] sm:$0xff] }
 0x3a0   : > { %v5475_v31 = vpop.f32.mrf.mxu0 }
 0x3a1   : > { %4650 = vst.msk [vmem:[%s7919_s27 + $0x38] sm:$0xff] %vm663_vm2, %v4618_v39  ;;  %v4616_v12 = vadd.f32 %v5530_v43, %v4504_v60  ;;  %v4525_v5 = vadd.f32 %v5475_v31, %v7911_v56  ;;  %v5545_v39 = vld [vmem:[%s5762_s26 + $0xb8] sm:$0xff] }
 0x3a2   : > { %v4516_v63 = vpop.f32.mrf.mxu0 }
 0x3a3   : > { %4648 = vst.msk [vmem:[%s7919_s27 + $0x28] sm:$0xff] %vm663_vm2, %v4616_v12  ;;  %v4621_v15 = vadd.f32 %v5531_v6, %v4525_v5  ;;  %v4517_v20 = vadd.f32 %v7911_v56, %v4516_v63  ;;  %v5546_v12 = vld [vmem:[%s5762_s26 + $0xa8] sm:$0xff] }
 0x3a4   : > { %v5476_v40 = vpop.f32.mrf.mxu0 }
 0x3a5   : > { %4653 = vst.msk [vmem:[%s7919_s27 + $0x50] sm:$0xff] %vm663_vm2, %v4621_v15  ;;  %v4619_v50 = vadd.f32 %v5532_v30, %v4517_v20  ;;  %v4528_v4 = vadd.f32 %v5476_v40, %v7911_v56  ;;  %v5547_v15 = vld [vmem:[%s5762_s26 + $0xd0] sm:$0xff] }
 0x3a6   : > { %v4519_v59 = vpop.f32.mrf.mxu0 }
 0x3a7   : > { %4651 = vst.msk [vmem:[%s7919_s27 + $0x40] sm:$0xff] %vm663_vm2, %v4619_v50  ;;  %v4622_v13 = vadd.f32 %v5533_v47, %v4528_v4  ;;  %v4520_v26 = vadd.f32 %v7911_v56, %v4519_v59  ;;  %v5548_v50 = vld [vmem:[%s5762_s26 + $0xc0] sm:$0xff] }
 0x3a8   : > { %v5479_v2 = vpop.f32.mrf.mxu0 }
 0x3a9   : > { %4654 = vst.msk [vmem:[%s7919_s27 + $0x58] sm:$0xff] %vm663_vm2, %v4622_v13  ;;  %v4620_v1 = vadd.f32 %v5534_v32, %v4520_v26  ;;  %v4541_v41 = vadd.f32 %v5479_v2, %v7911_v56  ;;  %v5549_v13 = vld [vmem:[%s5762_s26 + $0xd8] sm:$0xff] }
 0x3aa   : > { %v4532_v7 = vpop.f32.mrf.mxu0 }
 0x3ab   : > { %4652 = vst.msk [vmem:[%s7919_s27 + $0x48] sm:$0xff] %vm663_vm2, %v4620_v1  ;;  %v4625_v62 = vadd.f32 %v5535_v16, %v4541_v41  ;;  %v4533_v22 = vadd.f32 %v7911_v56, %v4532_v7  ;;  %v5550_v1 = vld [vmem:[%s5762_s26 + $0xc8] sm:$0xff] }
 0x3ac   : > { %v5480_v24 = vpop.f32.mrf.mxu0 }
 0x3ad   : > { %4657 = vst.msk [vmem:[%s7919_s27 + $0x70] sm:$0xff] %vm663_vm2, %v4625_v62  ;;  %v4623_v25 = vadd.f32 %v5536_v21, %v4533_v22  ;;  %v4544_v53 = vadd.f32 %v5480_v24, %v7911_v56  ;;  %v5551_v62 = vld [vmem:[%s5762_s26 + $0xf0] sm:$0xff] }
 0x3ae   : > { %v4535_v54 = vpop.f32.mrf.mxu0 }
 0x3af   : > { %4655 = vst.msk [vmem:[%s7919_s27 + $0x60] sm:$0xff] %vm663_vm2, %v4623_v25  ;;  %v4626_v37 = vadd.f32 %v5537_v9, %v4544_v53  ;;  %v4536_v28 = vadd.f32 %v7911_v56, %v4535_v54  ;;  %v5552_v25 = vld [vmem:[%s5762_s26 + $0xe0] sm:$0xff] }
 0x3b0   : > { %v5483_v29 = vpop.f32.mrf.mxu0 }
 0x3b1   : > { %4658 = vst.msk [vmem:[%s7919_s27 + $0x78] sm:$0xff] %vm663_vm2, %v4626_v37  ;;  %v4624_v17 = vadd.f32 %v5538_v57, %v4536_v28  ;;  %v4557_v44 = vadd.f32 %v5483_v29, %v7911_v56  ;;  %v5553_v37 = vld [vmem:[%s5762_s26 + $0xf8] sm:$0xff]  ;;  %v5554_v57 = vld [vmem:[%s5762_s26 + $0xe8] sm:$0xff] }
 0x3b2   : > { %v4548_v23 = vpop.f32.mrf.mxu0 }
 0x3b3   : > { %4656 = vst.msk [vmem:[%s7919_s27 + $0x68] sm:$0xff] %vm663_vm2, %v4624_v17  ;;  %v4629_v8 = vadd.f32 %v5539_v33, %v4557_v44  ;;  %v4549_v18 = vadd.f32 %v7911_v56, %v4548_v23 }
 0x3b4   : > { %v5484_v49 = vpop.f32.mrf.mxu0 }
 0x3b5   : > { %4661 = vst.msk [vmem:[%s7919_s27 + $0x90] sm:$0xff] %vm663_vm2, %v4629_v8  ;;  %v4627_v0 = vadd.f32 %v5540_v58, %v4549_v18  ;;  %v4560_v35 = vadd.f32 %v5484_v49, %v7911_v56 }
 0x3b6   : > { %v4551_v11 = vpop.f32.mrf.mxu0 }
 0x3b7   : > { %4659 = vst.msk [vmem:[%s7919_s27 + $0x80] sm:$0xff] %vm663_vm2, %v4627_v0  ;;  %v4630_v19 = vadd.f32 %v5541_v10, %v4560_v35  ;;  %v4552_v3 = vadd.f32 %v7911_v56, %v4551_v11 }
 0x3b8   : > { %v5487_v34 = vpop.f32.mrf.mxu0 }
 0x3b9   : > { %4662 = vst.msk [vmem:[%s7919_s27 + $0x98] sm:$0xff] %vm663_vm2, %v4630_v19  ;;  %v4628_v36 = vadd.f32 %v5542_v42, %v4552_v3  ;;  %v4573_v14 = vadd.f32 %v5487_v34, %v7911_v56 }
 0x3ba   : > { %v4564_v45 = vpop.f32.mrf.mxu0 }
 0x3bb   : > { %4660 = vst.msk [vmem:[%s7919_s27 + $0x88] sm:$0xff] %vm663_vm2, %v4628_v36  ;;  %v4633_v52 = vadd.f32 %v5543_v48, %v4573_v14  ;;  %v4565_v46 = vadd.f32 %v7911_v56, %v4564_v45 }
 0x3bc   : > { %v5488_v51 = vpop.f32.mrf.mxu0 }
 0x3bd   : > { %4665 = vst.msk [vmem:[%s7919_s27 + $0xb0] sm:$0xff] %vm663_vm2, %v4633_v52  ;;  %v4631_v27 = vadd.f32 %v5544_v61, %v4565_v46  ;;  %v4576_v38 = vadd.f32 %v5488_v51, %v7911_v56 }
 0x3be   : > { %v4567_v55 = vpop.f32.mrf.mxu0 }
 0x3bf   : > { %4663 = vst.msk [vmem:[%s7919_s27 + $0xa0] sm:$0xff] %vm663_vm2, %v4631_v27  ;;  %v4634_v60 = vadd.f32 %v5545_v39, %v4576_v38  ;;  %v4568_v31 = vadd.f32 %v7911_v56, %v4567_v55 }
 0x3c0   : > { %v5491_v43 = vpop.f32.mrf.mxu0 }
 0x3c1   : > { %4666 = vst.msk [vmem:[%s7919_s27 + $0xb8] sm:$0xff] %vm663_vm2, %v4634_v60  ;;  %v4632_v5 = vadd.f32 %v5546_v12, %v4568_v31  ;;  %v4589_v63 = vadd.f32 %v5491_v43, %v7911_v56 }
 0x3c2   : > { %v4580_v6 = vpop.f32.mrf.mxu0 }
 0x3c3   : > { %4664 = vst.msk [vmem:[%s7919_s27 + $0xa8] sm:$0xff] %vm663_vm2, %v4632_v5  ;;  %v4637_v20 = vadd.f32 %v5547_v15, %v4589_v63  ;;  %v4581_v40 = vadd.f32 %v7911_v56, %v4580_v6 }
 0x3c4   : > { %v5492_v30 = vpop.f32.mrf.mxu0 }
 0x3c5   : > { %4669 = vst.msk [vmem:[%s7919_s27 + $0xd0] sm:$0xff] %vm663_vm2, %v4637_v20  ;;  %v4635_v4 = vadd.f32 %v5548_v50, %v4581_v40  ;;  %v4592_v59 = vadd.f32 %v5492_v30, %v7911_v56 }
 0x3c6   : > { %v4583_v47 = vpop.f32.mrf.mxu0 }
 0x3c7   : > { %4667 = vst.msk [vmem:[%s7919_s27 + $0xc0] sm:$0xff] %vm663_vm2, %v4635_v4  ;;  %v4638_v26 = vadd.f32 %v5549_v13, %v4592_v59  ;;  %v4584_v2 = vadd.f32 %v7911_v56, %v4583_v47 }
 0x3c8   : > { %v5495_v32 = vpop.f32.mrf.mxu0 }
 0x3c9   : > { %4670 = vst.msk [vmem:[%s7919_s27 + $0xd8] sm:$0xff] %vm663_vm2, %v4638_v26  ;;  %v4636_v41 = vadd.f32 %v5550_v1, %v4584_v2  ;;  %v4605_v7 = vadd.f32 %v5495_v32, %v7911_v56 }
 0x3ca   : > { %v4596_v16 = vpop.f32.mrf.mxu0 }
 0x3cb   : > { %4668 = vst.msk [vmem:[%s7919_s27 + $0xc8] sm:$0xff] %vm663_vm2, %v4636_v41  ;;  %v4641_v22 = vadd.f32 %v5551_v62, %v4605_v7  ;;  %v4597_v24 = vadd.f32 %v7911_v56, %v4596_v16 }
 0x3cc   : > { %v5496_v21 = vpop.f32.mrf.mxu0 }
 0x3cd   : > { %4673 = vst.msk [vmem:[%s7919_s27 + $0xf0] sm:$0xff] %vm663_vm2, %v4641_v22  ;;  %v4639_v53 = vadd.f32 %v5552_v25, %v4597_v24  ;;  %v4608_v54 = vadd.f32 %v5496_v21, %v7911_v56 }
 0x3ce   : > { %v4599_v9 = vpop.f32.mrf.mxu0 }
 0x3cf   : > { %4671 = vst.msk [vmem:[%s7919_s27 + $0xe0] sm:$0xff] %vm663_vm2, %v4639_v53  ;;  %v4642_v28 = vadd.f32 %v5553_v37, %v4608_v54  ;;  %v4600_v29 = vadd.f32 %v7911_v56, %v4599_v9 }
 0x3d1   : > { %4674 = vst.msk [vmem:[%s7919_s27 + $0xf8] sm:$0xff] %vm663_vm2, %v4642_v28  ;;  %v4640_v17 = vadd.f32 %v5554_v57, %v4600_v29 }
 0x3d3   : > { %4672 = vst.msk [vmem:[%s7919_s27 + $0xe8] sm:$0xff] %vm663_vm2, %v4640_v17 }
 0x3d4 PF: > { %s25_s18 = sadd.s32 1, %s5561_s18  }
 0x3d5   : > { %p22_p4 = scmp.ge.s32.totalorder %s25_s18, 4  }
 0x3d7   :  { %24 = sbr.rel (!%p22_p4) target bundleno = 1 (0x1), region = 118 }

// kernel: hourglass_forward.12
= control target key start
LH: loop header
LB: loop body
LE: loop exit
PB: predicated region body
PF: predicated region fallthrough
CT: control target
= control target key end

     0   :  { %s8657_s12 = smov 0   ;;  %s9587_s0 = inlined_call_operand.vmem [shape: f32[2,256,8], index: 0, kind: input, shape index: {}]   ;;  %s9588_s1 = inlined_call_operand.vmem [shape: f32[8,16], index: 1, kind: input, shape index: {}]   ;;  %s9589_s2 = inlined_call_operand.vmem [shape: f32[8,16], index: 2, kind: input, shape index: {}]   ;;  %s9590_s3 = inlined_call_operand.vmem [shape: f32[2,64,8], index: 3, kind: output, shape index: {}]  }
   0x1 LB: > { %s7644_s13 = sadd.s32 4294967295, %s8633_s12   ;;  %p7648_p0 = scmp.ge.s32.totalorder %s8633_s12, 1  ;;  %s8633_s12 = sphi %s8657_s12, %s13_s12  }
   0x2   : > { %p137_p1 = scmp.lt.s32.totalorder %s8633_s12, 3 }
   0x4   : > { %p138_p2 = pnand %p7648_p0, %p137_p1 }
   0x5   : > { %p161_p3 = scmp.lt.s32.totalorder (!%p138_p2), %s7644_s13, 1 }
   0x6   : > { %141 = sbr.rel (%p138_p2) target bundleno = 507 (0x1fb), region = 32 }
   0xb   : > { %v171_v0 = vld [vmem:[%s9588_s1] sm:$0xff]  ;;  %vm179_vm0 = vcmask 130048   ;;  %v8635_v1 = vmov 0.0   ;;  %vm8636_vm1 = vmmov 0   ;;  %s9592_s13 = smov (!%p161_p3, %s7644_s13), 1  ;;  %vm1105_vm2 = vcmask 64512  }
   0xc   : > { %7945 = vmatprep.subr.mxu0 %v8635_v1  ;;  %7949 = vmatprep.mubr.msk.f32.mxu0 %vm8636_vm1, %v8635_v1  ;;  %v181_v2 = vsel %vm179_vm0, %v171_v0, 0  ;;  %s7655_s16 = sshll.u32 %s9592_s13, 8  ;;  %v172_v5 = vld [vmem:[%s9589_s2] sm:$0xff]  ;;  %s7656_s22 = sshll.u32 %s9592_s13, 6 }
   0xd   : > { %7952 = vmatprep.subr.mxu1 %v8635_v1  ;;  %v8675_v3 = vand.u32 4294901760, %v181_v2  ;;  %7956 = vmatprep.mubr.msk.f32.mxu1 %vm8636_vm1, %v8635_v1  ;;  %s8686_s19 = scalar_lea.vmem %s9587_s0, %s7655_s16  ;;  %v643_v15 = vsel %vm179_vm0, %v172_v5, 0  ;;  %s9401_s25 = scalar_lea.vmem %s9590_s3, %s7656_s22 }
   0xe   : > { %v174_v6 = vld [vmem:[%s8686_s19 + $0x8] sm:$0xff]  ;;  %v176_v7 = vld [vmem:[%s8686_s19 + $0x18] sm:$0xff]  ;;  %v173_v8 = vld [vmem:[%s8686_s19] sm:$0xff]  ;;  %v8713_v20 = vand.u32 4294901760, %v643_v15 }
   0xf   : > { %v8681_v4 = vsub.f32 %v181_v2, %v8675_v3  ;;  %v178_v10 = vmax.f32 %v174_v6, %v176_v7  ;;  %v175_v11 = vld [vmem:[%s8686_s19 + $0x10] sm:$0xff]  ;;  %v1108_v30 = vld [vmem:[%s8686_s19 + $0x28] sm:$0xff]  ;;  %v1110_v31 = vld [vmem:[%s8686_s19 + $0x38] sm:$0xff] }
  0x10   : > { %v177_v12 = vmax.f32 %v173_v8, %v175_v11  ;;  %v8730_v25 = vsub.f32 %v643_v15, %v8713_v20  ;;  %v1107_v32 = vld [vmem:[%s8686_s19 + $0x20] sm:$0xff]  ;;  %v1109_v33 = vld [vmem:[%s8686_s19 + $0x30] sm:$0xff]  ;;  %v1112_v34 = vmax.f32 %v1108_v30, %v1110_v31  ;;  %v2034_v47 = vld [vmem:[%s8686_s19 + $0x48] sm:$0xff] }
  0x11   : > { %v8695_v9 = vand.u32 4294901760, %v8681_v4  ;;  %v8700_v14 = vand.u32 4294901760, %v178_v10  ;;  %v1111_v36 = vmax.f32 %v1107_v32, %v1109_v33  ;;  %v2036_v48 = vld [vmem:[%s8686_s19 + $0x58] sm:$0xff]  ;;  %v2033_v49 = vld [vmem:[%s8686_s19 + $0x40] sm:$0xff]  ;;  %v2035_v50 = vld [vmem:[%s8686_s19 + $0x50] sm:$0xff] }
  0x12   : > { %v8703_v16 = vand.u32 4294901760, %v177_v12  ;;  %v8739_v28 = vand.u32 4294901760, %v8730_v25  ;;  %v8774_v37 = vand.u32 4294901760, %v1112_v34  ;;  %v2038_v51 = vmax.f32 %v2034_v47, %v2036_v48  ;;  %v2960_v63 = vld [vmem:[%s8686_s19 + $0x68] sm:$0xff]  ;;  %v2962_v0 = vld [vmem:[%s8686_s19 + $0x78] sm:$0xff]  ;;  %v2959_v2 = vld [vmem:[%s8686_s19 + $0x60] sm:$0xff] }
  0x13   : > { %v253_v13 = vsub.f32 %v8681_v4, %v8695_v9  ;;  %7946 = vmatpush3.msra.mxu0 %v8700_v14  ;;  %v290_v18 = vsub.f32 %v178_v10, %v8700_v14  ;;  %v8779_v38 = vand.u32 4294901760, %v1111_v36  ;;  %v2037_v52 = vmax.f32 %v2033_v49, %v2035_v50  ;;  %v2961_v5 = vld [vmem:[%s8686_s19 + $0x70] sm:$0xff] }
  0x14   : > { %7947 = vmatprep.subr.mxu0 %v8635_v1  ;;  %v8711_v19 = vsub.f32 %v177_v12, %v8703_v16  ;;  %v715_v29 = vsub.f32 %v8730_v25, %v8739_v28  ;;  %v8785_v39 = vsub.f32 %v1112_v34, %v8774_v37  ;;  %v8877_v53 = vand.u32 4294901760, %v2038_v51 }
  0x15   : > { %v8705_v17 = vand.u32 4294901760, %v253_v13  ;;  %7948 = vmatpush3.msra.mxu0 %v8703_v16  ;;  %v8716_v21 = vand.u32 4294901760, %v290_v18  ;;  %v8793_v40 = vsub.f32 %v1111_v36, %v8779_v38  ;;  %v8882_v54 = vand.u32 4294901760, %v2037_v52 }
  0x16   : > { %7959 = vmatprep.subr.mxu0 %v8635_v1  ;;  %v8721_v22 = vand.u32 4294901760, %v8711_v19  ;;  %v8764_v35 = vand.u32 4294901760, %v715_v29  ;;  %v8800_v41 = vand.u32 4294901760, %v8785_v39  ;;  %v8889_v55 = vsub.f32 %v2038_v51, %v8877_v53 }
  0x17   : > { %7950 = vmatmul.mubr.f32.vlgmr.msra.gmra.mxu0 %v8705_v17  ;;  %v292_v23 = vsub.f32 %v290_v18, %v8716_v21  ;;  %v8808_v42 = vand.u32 4294901760, %v8793_v40  ;;  %v8897_v56 = vsub.f32 %v2037_v52, %v8882_v54  ;;  %v2964_v6 = vmax.f32 %v2960_v63, %v2962_v0 }
  0x18   : > { %7960 = vmatpush3.msra.mxu0 %v290_v18  ;;  %7963 = vmatprep.mubr.msk.f32.mxu0 %vm8636_vm1, %v8635_v1  ;;  %v299_v24 = vsub.f32 %v8711_v19, %v8721_v22  ;;  %v1222_v43 = vsub.f32 %v8785_v39, %v8800_v41  ;;  %v8904_v57 = vand.u32 4294901760, %v8889_v55  ;;  %v2963_v7 = vmax.f32 %v2959_v2, %v2961_v5 }
  0x19   : > { %7961 = vmatprep.subr.mxu0 %v8635_v1  ;;  %v293_v26 = vand.u32 4294901760, %v292_v23  ;;  %v1229_v44 = vsub.f32 %v8793_v40, %v8808_v42  ;;  %v8912_v58 = vand.u32 4294901760, %v8897_v56  ;;  %v8981_v8 = vand.u32 4294901760, %v2964_v6  ;;  %v3885_v23 = vld [vmem:[%s8686_s19 + $0x80] sm:$0xff] }
  0x1a   : > { %7962 = vmatpush3.msra.mxu0 %v8711_v19  ;;  %v300_v27 = vand.u32 4294901760, %v299_v24  ;;  %v1223_v45 = vand.u32 4294901760, %v1222_v43  ;;  %v2148_v59 = vsub.f32 %v8889_v55, %v8904_v57  ;;  %v8986_v10 = vand.u32 4294901760, %v2963_v7  ;;  %v3887_v24 = vld [vmem:[%s8686_s19 + $0x90] sm:$0xff] }
  0x1b   : > { %7964 = vmatmul.mubr.f32.vlgmr.msra.gmra.mxu0 %v8681_v4  ;;  %7973 = vmatprep.subr.mxu0 %v8635_v1  ;;  %v1230_v46 = vand.u32 4294901760, %v1229_v44  ;;  %v2155_v60 = vsub.f32 %v8897_v56, %v8912_v58  ;;  %v8993_v11 = vsub.f32 %v2964_v6, %v8981_v8  ;;  %v4813_v43 = vld [vmem:[%s8686_s19 + $0xb0] sm:$0xff] }
  0x1c   : > { %7953 = vmatpush3.msra.mxu1 %v293_v26  ;;  %7974 = vmatpush3.msra.mxu0 %v8716_v21  ;;  %v2149_v61 = vand.u32 4294901760, %v2148_v59  ;;  %v9001_v12 = vsub.f32 %v2963_v7, %v8986_v10  ;;  %v5739_v59 = vld [vmem:[%s8686_s19 + $0xd0] sm:$0xff] }
  0x1d   : > { %7954 = vmatprep.subr.mxu1 %v8635_v1  ;;  %7975 = vmatprep.subr.mxu0 %v8635_v1  ;;  %v2156_v62 = vand.u32 4294901760, %v2155_v60  ;;  %v9008_v13 = vand.u32 4294901760, %v8993_v11 }
  0x1e   : > { %7955 = vmatpush3.msra.mxu1 %v300_v27  ;;  %7976 = vmatpush3.msra.mxu0 %v8721_v22 }
  0x1f   : > { %7957 = vmatmul.mubr.f32.vlgmr.msra.gmra.mxu1 %v8675_v3  ;;  %7966 = vmatprep.subr.mxu1 %v8635_v1  ;;  %v3074_v15 = vsub.f32 %v8993_v11, %v9008_v13 }
  0x20   : > { %7967 = vmatpush3.msra.mxu1 %v8700_v14  ;;  %7970 = vmatprep.mubr.msk.f32.mxu1 %vm8636_vm1, %v8635_v1 }
  0x21   : > { %7968 = vmatprep.subr.mxu1 %v8635_v1  ;;  %7977 = vmatprep.mubr.msk.f32.mxu0 %vm8636_vm1, %v8635_v1 }
  0x22   : > { %7969 = vmatpush3.msra.mxu1 %v8703_v16  ;;  %7978 = vmatmul.mubr.f32.vlgmr.msra.gmra.mxu0 %v8675_v3 }
  0x23   : > { %7971 = vmatmul.mubr.f32.vlgmr.msra.gmra.mxu1 %v8695_v9  ;;  %7980 = vmatprep.subr.mxu1 %v8635_v1 }
  0x24   : > { %7981 = vmatpush3.msra.mxu1 %v8700_v14  ;;  %7987 = vmatprep.subr.mxu0 %v8635_v1 }
  0x25   : > { %7982 = vmatprep.subr.mxu1 %v8635_v1  ;;  %7988 = vmatpush3.msra.mxu0 %v8700_v14 }
  0x26   : > { %7983 = vmatpush3.msra.mxu1 %v8703_v16  ;;  %7984 = vmatprep.mubr.msk.f32.mxu1 %vm8636_vm1, %v8635_v1 }
  0x27   : > { %7989 = vmatprep.subr.mxu0 %v8635_v1  ;;  %7985 = vmatmul.mubr.f32.vlgmr.msra.gmra.mxu1 %v8675_v3 }
  0x28   : > { %7990 = vmatpush3.msra.mxu0 %v8703_v16  ;;  %7991 = vmatprep.mubr.msk.f32.mxu0 %vm8636_vm1, %v8635_v1 }
  0x29   : > { %7994 = vmatprep.subr.mxu1 %v8635_v1  ;;  %7992 = vmatmul.mubr.f32.vlgmr.msra.gmra.mxu0 %v8764_v35 }
  0x2a   : > { %7995 = vmatpush3.msra.mxu1 %v293_v26  ;;  %8001 = vmatprep.subr.mxu0 %v8635_v1 }
  0x2b   : > { %7996 = vmatprep.subr.mxu1 %v8635_v1  ;;  %8002 = vmatpush3.msra.mxu0 %v290_v18  ;;  %v3075_v18 = vand.u32 4294901760, %v3074_v15 }
  0x2c   : > { %7997 = vmatpush3.msra.mxu1 %v300_v27  ;;  %7998 = vmatprep.mubr.msk.f32.mxu1 %vm8636_vm1, %v8635_v1  ;;  %v3889_v27 = vmax.f32 %v3885_v23, %v3887_v24 }
  0x2d   : > { %8003 = vmatprep.subr.mxu0 %v8635_v1  ;;  %7999 = vmatmul.mubr.f32.vlgmr.msra.gmra.mxu1 %v8713_v20 }
  0x2e   : > { %8004 = vmatpush3.msra.mxu0 %v8711_v19  ;;  %8005 = vmatprep.mubr.msk.f32.mxu0 %vm8636_vm1, %v8635_v1  ;;  %v9090_v30 = vand.u32 4294901760, %v3889_v27 }
  0x2f   : > { %8008 = vmatprep.subr.mxu1 %v8635_v1  ;;  %8006 = vmatmul.mubr.f32.vlgmr.msra.gmra.mxu0 %v8730_v25 }
  0x30   : > { %8009 = vmatpush3.msra.mxu1 %v8700_v14  ;;  %8015 = vmatprep.subr.mxu0 %v8635_v1  ;;  %v9105_v32 = vsub.f32 %v3889_v27, %v9090_v30 }
  0x31   : > { %8010 = vmatprep.subr.mxu1 %v8635_v1  ;;  %8016 = vmatpush3.msra.mxu0 %v8716_v21  ;;  %v3886_v21 = vld [vmem:[%s8686_s19 + $0x88] sm:$0xff] }
  0x32   : > { %8011 = vmatpush3.msra.mxu1 %v8703_v16  ;;  %8012 = vmatprep.mubr.msk.f32.mxu1 %vm8636_vm1, %v8635_v1  ;;  %v9120_v34 = vand.u32 4294901760, %v9105_v32 }
  0x33   : > { %8017 = vmatprep.subr.mxu0 %v8635_v1  ;;  %8013 = vmatmul.mubr.f32.vlgmr.msra.gmra.mxu1 %v8739_v28 }
  0x34   : > { %8018 = vmatpush3.msra.mxu0 %v8721_v22  ;;  %8019 = vmatprep.mubr.msk.f32.mxu0 %vm8636_vm1, %v8635_v1  ;;  %v3888_v22 = vld [vmem:[%s8686_s19 + $0x98] sm:$0xff] }
  0x35   : > { %8022 = vmatprep.subr.mxu1 %v8635_v1  ;;  %8020 = vmatmul.mubr.f32.vlgmr.msra.gmra.mxu0 %v8713_v20  ;;  %v3890_v26 = vmax.f32 %v3886_v21, %v3888_v22 }
  0x36   : > { %8023 = vmatpush3.msra.mxu1 %v8700_v14  ;;  %8029 = vmatprep.subr.mxu0 %v8635_v1  ;;  %v9016_v14 = vand.u32 4294901760, %v9001_v12 }
  0x37   : > { %8024 = vmatprep.subr.mxu1 %v8635_v1  ;;  %8030 = vmatpush3.msra.mxu0 %v8774_v37  ;;  %v9085_v29 = vand.u32 4294901760, %v3890_v26 }
  0x38   : > { %8025 = vmatpush3.msra.mxu1 %v8703_v16  ;;  %8026 = vmatprep.mubr.msk.f32.mxu1 %vm8636_vm1, %v8635_v1  ;;  %v3081_v16 = vsub.f32 %v9001_v12, %v9016_v14 }
  0x39   : > { %8031 = vmatprep.subr.mxu0 %v8635_v1  ;;  %8027 = vmatmul.mubr.f32.vlgmr.msra.gmra.mxu1 %v8713_v20  ;;  %v9097_v31 = vsub.f32 %v3890_v26, %v9085_v29 }
  0x3a   : > { %8032 = vmatpush3.msra.mxu0 %v8779_v38  ;;  %8033 = vmatprep.mubr.msk.f32.mxu0 %vm8636_vm1, %v8635_v1  ;;  %v3082_v19 = vand.u32 4294901760, %v3081_v16 }
  0x3b   : > { %8036 = vmatprep.subr.mxu1 %v8635_v1  ;;  %8034 = vmatmul.mubr.f32.vlgmr.msra.gmra.mxu0 %v8705_v17  ;;  %v9112_v33 = vand.u32 4294901760, %v9097_v31 }
  0x3c   : > { %8037 = vmatpush3.msra.mxu1 %v1223_v45  ;;  %8043 = vmatprep.subr.mxu0 %v8635_v1 }
  0x3d   : > { %8038 = vmatprep.subr.mxu1 %v8635_v1  ;;  %8044 = vmatpush3.msra.mxu0 %v8785_v39  ;;  %v4000_v36 = vsub.f32 %v9097_v31, %v9112_v33 }
  0x3e   : > { %8039 = vmatpush3.msra.mxu1 %v1230_v46  ;;  %8040 = vmatprep.mubr.msk.f32.mxu1 %vm8636_vm1, %v8635_v1 }
  0x3f   : > { %8045 = vmatprep.subr.mxu0 %v8635_v1  ;;  %8041 = vmatmul.mubr.f32.vlgmr.msra.gmra.mxu1 %v8675_v3 }
  0x40   : > { %8046 = vmatpush3.msra.mxu0 %v8793_v40  ;;  %8047 = vmatprep.mubr.msk.f32.mxu0 %vm8636_vm1, %v8635_v1 }
  0x41   : > { %8050 = vmatprep.subr.mxu1 %v8635_v1  ;;  %8048 = vmatmul.mubr.f32.vlgmr.msra.gmra.mxu0 %v8681_v4 }
  0x42   : > { %8051 = vmatpush3.msra.mxu1 %v8774_v37  ;;  %8057 = vmatprep.subr.mxu0 %v8635_v1 }
  0x43   : > { %8052 = vmatprep.subr.mxu1 %v8635_v1  ;;  %8058 = vmatpush3.msra.mxu0 %v8800_v41 }
  0x44   : > { %8053 = vmatpush3.msra.mxu1 %v8779_v38  ;;  %8054 = vmatprep.mubr.msk.f32.mxu1 %vm8636_vm1, %v8635_v1 }
  0x45   : > { %8059 = vmatprep.subr.mxu0 %v8635_v1  ;;  %8055 = vmatmul.mubr.f32.vlgmr.msra.gmra.mxu1 %v8695_v9 }
  0x46   : > { %8060 = vmatpush3.msra.mxu0 %v8808_v42  ;;  %8061 = vmatprep.mubr.msk.f32.mxu0 %vm8636_vm1, %v8635_v1 }
  0x47   : > { %8064 = vmatprep.subr.mxu1 %v8635_v1  ;;  %8062 = vmatmul.mubr.f32.vlgmr.msra.gmra.mxu0 %v8675_v3 }
  0x48   : > { %8065 = vmatpush3.msra.mxu1 %v8774_v37  ;;  %8071 = vmatprep.subr.mxu0 %v8635_v1 }
  0x49   : > { %8066 = vmatprep.subr.mxu1 %v8635_v1  ;;  %8072 = vmatpush3.msra.mxu0 %v8774_v37 }
  0x4a   : > { %8067 = vmatpush3.msra.mxu1 %v8779_v38  ;;  %8068 = vmatprep.mubr.msk.f32.mxu1 %vm8636_vm1, %v8635_v1 }
  0x4b   : > { %8073 = vmatprep.subr.mxu0 %v8635_v1  ;;  %8069 = vmatmul.mubr.f32.vlgmr.msra.gmra.mxu1 %v8675_v3 }
  0x4c   : > { %8074 = vmatpush3.msra.mxu0 %v8779_v38  ;;  %8075 = vmatprep.mubr.msk.f32.mxu0 %vm8636_vm1, %v8635_v1 }
  0x4d   : > { %8078 = vmatprep.subr.mxu1 %v8635_v1  ;;  %8076 = vmatmul.mubr.f32.vlgmr.msra.gmra.mxu0 %v8764_v35 }
  0x4e   : > { %8079 = vmatpush3.msra.mxu1 %v1223_v45  ;;  %8085 = vmatprep.subr.mxu0 %v8635_v1 }
  0x4f   : > { %8080 = vmatprep.subr.mxu1 %v8635_v1  ;;  %8086 = vmatpush3.msra.mxu0 %v8785_v39 }
  0x50   : > { %8081 = vmatpush3.msra.mxu1 %v1230_v46  ;;  %8082 = vmatprep.mubr.msk.f32.mxu1 %vm8636_vm1, %v8635_v1 }
  0x51   : > { %8087 = vmatprep.subr.mxu0 %v8635_v1  ;;  %8083 = vmatmul.mubr.f32.vlgmr.msra.gmra.mxu1 %v8713_v20 }
  0x52   : > { %8088 = vmatpush3.msra.mxu0 %v8793_v40  ;;  %8089 = vmatprep.mubr.msk.f32.mxu0 %vm8636_vm1, %v8635_v1  ;;  %v4812_v40 = vld [vmem:[%s8686_s19 + $0xa8] sm:$0xff] }
  0x53   : > { %8092 = vmatprep.subr.mxu1 %v8635_v1  ;;  %8090 = vmatmul.mubr.f32.vlgmr.msra.gmra.mxu0 %v8730_v25 }
  0x54   : > { %8093 = vmatpush3.msra.mxu1 %v8774_v37  ;;  %8099 = vmatprep.subr.mxu0 %v8635_v1 }
  0x55   : > { %8094 = vmatprep.subr.mxu1 %v8635_v1  ;;  %8100 = vmatpush3.msra.mxu0 %v8800_v41  ;;  %v4814_v41 = vld [vmem:[%s8686_s19 + $0xb8] sm:$0xff] }
  0x56   : > { %8095 = vmatpush3.msra.mxu1 %v8779_v38  ;;  %8096 = vmatprep.mubr.msk.f32.mxu1 %vm8636_vm1, %v8635_v1  ;;  %v4816_v44 = vmax.f32 %v4812_v40, %v4814_v41 }
  0x57   : > { %8101 = vmatprep.subr.mxu0 %v8635_v1  ;;  %8097 = vmatmul.mubr.f32.vlgmr.msra.gmra.mxu1 %v8739_v28 }
  0x58   : > { %8102 = vmatpush3.msra.mxu0 %v8808_v42  ;;  %8103 = vmatprep.mubr.msk.f32.mxu0 %vm8636_vm1, %v8635_v1  ;;  %v4811_v42 = vld [vmem:[%s8686_s19 + $0xa0] sm:$0xff]  ;;  %v9189_v46 = vand.u32 4294901760, %v4816_v44 }
  0x59   : > { %8106 = vmatprep.subr.mxu1 %v8635_v1  ;;  %8104 = vmatmul.mubr.f32.vlgmr.msra.gmra.mxu0 %v8713_v20  ;;  %v4815_v45 = vmax.f32 %v4811_v42, %v4813_v43 }
  0x5a   : > { %8107 = vmatpush3.msra.mxu1 %v8774_v37  ;;  %8113 = vmatprep.subr.mxu0 %v8635_v1  ;;  %v4007_v37 = vsub.f32 %v9105_v32, %v9120_v34  ;;  %v9201_v48 = vsub.f32 %v4816_v44, %v9189_v46 }
  0x5b   : > { %8108 = vmatprep.subr.mxu1 %v8635_v1  ;;  %8114 = vmatpush3.msra.mxu0 %v8877_v53  ;;  %v9194_v47 = vand.u32 4294901760, %v4815_v45 }
  0x5c   : > { %8109 = vmatpush3.msra.mxu1 %v8779_v38  ;;  %8110 = vmatprep.mubr.msk.f32.mxu1 %vm8636_vm1, %v8635_v1  ;;  %v4001_v38 = vand.u32 4294901760, %v4000_v36  ;;  %v4008_v39 = vand.u32 4294901760, %v4007_v37  ;;  %v9216_v50 = vand.u32 4294901760, %v9201_v48 }
  0x5d   : > { %8115 = vmatprep.subr.mxu0 %v8635_v1  ;;  %8111 = vmatmul.mubr.f32.vlgmr.msra.gmra.mxu1 %v8713_v20  ;;  %v9209_v49 = vsub.f32 %v4815_v45, %v9194_v47 }
  0x5e   : > { %8116 = vmatpush3.msra.mxu0 %v8882_v54  ;;  %8117 = vmatprep.mubr.msk.f32.mxu0 %vm8636_vm1, %v8635_v1  ;;  %v4926_v52 = vsub.f32 %v9201_v48, %v9216_v50 }
  0x5f   : > { %8120 = vmatprep.subr.mxu1 %v8635_v1  ;;  %8118 = vmatmul.mubr.f32.vlgmr.msra.gmra.mxu0 %v8705_v17  ;;  %v9224_v51 = vand.u32 4294901760, %v9209_v49 }
  0x60   : > { %8121 = vmatpush3.msra.mxu1 %v2149_v61  ;;  %8127 = vmatprep.subr.mxu0 %v8635_v1 }
  0x61   : > { %8122 = vmatprep.subr.mxu1 %v8635_v1  ;;  %8128 = vmatpush3.msra.mxu0 %v8889_v55 }
  0x62   : > { %8123 = vmatpush3.msra.mxu1 %v2156_v62  ;;  %8124 = vmatprep.mubr.msk.f32.mxu1 %vm8636_vm1, %v8635_v1 }
  0x63   : > { %8129 = vmatprep.subr.mxu0 %v8635_v1  ;;  %8125 = vmatmul.mubr.f32.vlgmr.msra.gmra.mxu1 %v8675_v3 }
  0x64   : > { %8130 = vmatpush3.msra.mxu0 %v8897_v56  ;;  %8131 = vmatprep.mubr.msk.f32.mxu0 %vm8636_vm1, %v8635_v1 }
  0x65   : > { %8134 = vmatprep.subr.mxu1 %v8635_v1  ;;  %8132 = vmatmul.mubr.f32.vlgmr.msra.gmra.mxu0 %v8681_v4 }
  0x66   : > { %8135 = vmatpush3.msra.mxu1 %v8877_v53  ;;  %8141 = vmatprep.subr.mxu0 %v8635_v1 }
  0x67   : > { %8136 = vmatprep.subr.mxu1 %v8635_v1  ;;  %8142 = vmatpush3.msra.mxu0 %v8904_v57 }
  0x68   : > { %8137 = vmatpush3.msra.mxu1 %v8882_v54  ;;  %8138 = vmatprep.mubr.msk.f32.mxu1 %vm8636_vm1, %v8635_v1 }
  0x69   : > { %8143 = vmatprep.subr.mxu0 %v8635_v1  ;;  %8139 = vmatmul.mubr.f32.vlgmr.msra.gmra.mxu1 %v8695_v9 }
  0x6a   : > { %8144 = vmatpush3.msra.mxu0 %v8912_v58  ;;  %8145 = vmatprep.mubr.msk.f32.mxu0 %vm8636_vm1, %v8635_v1 }
  0x6b   : > { %8148 = vmatprep.subr.mxu1 %v8635_v1  ;;  %8146 = vmatmul.mubr.f32.vlgmr.msra.gmra.mxu0 %v8675_v3 }
  0x6c   : > { %8149 = vmatpush3.msra.mxu1 %v8877_v53  ;;  %8155 = vmatprep.subr.mxu0 %v8635_v1 }
  0x6d   : > { %8150 = vmatprep.subr.mxu1 %v8635_v1  ;;  %8156 = vmatpush3.msra.mxu0 %v8877_v53 }
  0x6e   : > { %8151 = vmatpush3.msra.mxu1 %v8882_v54  ;;  %8152 = vmatprep.mubr.msk.f32.mxu1 %vm8636_vm1, %v8635_v1 }
  0x6f   : > { %8157 = vmatprep.subr.mxu0 %v8635_v1  ;;  %8153 = vmatmul.mubr.f32.vlgmr.msra.gmra.mxu1 %v8675_v3 }
  0x70   : > { %8158 = vmatpush3.msra.mxu0 %v8882_v54  ;;  %8159 = vmatprep.mubr.msk.f32.mxu0 %vm8636_vm1, %v8635_v1 }
  0x71   : > { %8162 = vmatprep.subr.mxu1 %v8635_v1  ;;  %8160 = vmatmul.mubr.f32.vlgmr.msra.gmra.mxu0 %v8764_v35 }
  0x72   : > { %8163 = vmatpush3.msra.mxu1 %v2149_v61  ;;  %8169 = vmatprep.subr.mxu0 %v8635_v1 }
  0x73   : > { %8164 = vmatprep.subr.mxu1 %v8635_v1  ;;  %8170 = vmatpush3.msra.mxu0 %v8889_v55 }
  0x74   : > { %8165 = vmatpush3.msra.mxu1 %v2156_v62  ;;  %8166 = vmatprep.mubr.msk.f32.mxu1 %vm8636_vm1, %v8635_v1 }
  0x75   : > { %8171 = vmatprep.subr.mxu0 %v8635_v1  ;;  %8167 = vmatmul.mubr.f32.vlgmr.msra.gmra.mxu1 %v8713_v20 }
  0x76   : > { %8172 = vmatpush3.msra.mxu0 %v8897_v56  ;;  %8173 = vmatprep.mubr.msk.f32.mxu0 %vm8636_vm1, %v8635_v1  ;;  %v5738_v56 = vld [vmem:[%s8686_s19 + $0xc8] sm:$0xff] }
  0x77   : > { %8176 = vmatprep.subr.mxu1 %v8635_v1  ;;  %8174 = vmatmul.mubr.f32.vlgmr.msra.gmra.mxu0 %v8730_v25 }
  0x78   : > { %8177 = vmatpush3.msra.mxu1 %v8877_v53  ;;  %8183 = vmatprep.subr.mxu0 %v8635_v1 }
  0x79   : > { %8178 = vmatprep.subr.mxu1 %v8635_v1  ;;  %8184 = vmatpush3.msra.mxu0 %v8904_v57  ;;  %v5740_v57 = vld [vmem:[%s8686_s19 + $0xd8] sm:$0xff] }
  0x7a   : > { %8179 = vmatpush3.msra.mxu1 %v8882_v54  ;;  %8180 = vmatprep.mubr.msk.f32.mxu1 %vm8636_vm1, %v8635_v1  ;;  %v5742_v61 = vmax.f32 %v5738_v56, %v5740_v57 }
  0x7b   : > { %8185 = vmatprep.subr.mxu0 %v8635_v1  ;;  %8181 = vmatmul.mubr.f32.vlgmr.msra.gmra.mxu1 %v8739_v28 }
  0x7c   : > { %8186 = vmatpush3.msra.mxu0 %v8912_v58  ;;  %8187 = vmatprep.mubr.msk.f32.mxu0 %vm8636_vm1, %v8635_v1  ;;  %v5737_v58 = vld [vmem:[%s8686_s19 + $0xc0] sm:$0xff]  ;;  %v9293_v2 = vand.u32 4294901760, %v5742_v61 }
  0x7d   : > { %8190 = vmatprep.subr.mxu1 %v8635_v1  ;;  %8188 = vmatmul.mubr.f32.vlgmr.msra.gmra.mxu0 %v8713_v20  ;;  %v5741_v63 = vmax.f32 %v5737_v58, %v5739_v59 }
  0x7e   : > { %8191 = vmatpush3.msra.mxu1 %v8877_v53  ;;  %8197 = vmatprep.subr.mxu0 %v8635_v1  ;;  %v4933_v53 = vsub.f32 %v9209_v49, %v9224_v51 }
  0x7f   : > { %8192 = vmatprep.subr.mxu1 %v8635_v1  ;;  %8198 = vmatpush3.msra.mxu0 %v8981_v8  ;;  %v9298_v6 = vand.u32 4294901760, %v5741_v63 }
  0x80   : > { %8193 = vmatpush3.msra.mxu1 %v8882_v54  ;;  %8194 = vmatprep.mubr.msk.f32.mxu1 %vm8636_vm1, %v8635_v1  ;;  %v4927_v54 = vand.u32 4294901760, %v4926_v52  ;;  %v4934_v55 = vand.u32 4294901760, %v4933_v53  ;;  %v6663_v52 = vld [vmem:[%s8686_s19 + $0xe0] sm:$0xff]  ;;  %v6665_v53 = vld [vmem:[%s8686_s19 + $0xf0] sm:$0xff] }
  0x81   : > { %8199 = vmatprep.subr.mxu0 %v8635_v1  ;;  %8195 = vmatmul.mubr.f32.vlgmr.msra.gmra.mxu1 %v8713_v20  ;;  %v6667_v59 = vmax.f32 %v6663_v52, %v6665_v53 }
  0x82   : > { %8200 = vmatpush3.msra.mxu0 %v8986_v10  ;;  %8201 = vmatprep.mubr.msk.f32.mxu0 %vm8636_vm1, %v8635_v1 }
  0x83   : > { %8204 = vmatprep.subr.mxu1 %v8635_v1  ;;  %8202 = vmatmul.mubr.f32.vlgmr.msra.gmra.mxu0 %v8705_v17 }
  0x84   : > { %8205 = vmatpush3.msra.mxu1 %v3075_v18  ;;  %8211 = vmatprep.subr.mxu0 %v8635_v1 }
  0x85   : > { %8206 = vmatprep.subr.mxu1 %v8635_v1  ;;  %8212 = vmatpush3.msra.mxu0 %v8993_v11 }
  0x86   : > { %8207 = vmatpush3.msra.mxu1 %v3082_v19  ;;  %8208 = vmatprep.mubr.msk.f32.mxu1 %vm8636_vm1, %v8635_v1 }
  0x87   : > { %8213 = vmatprep.subr.mxu0 %v8635_v1  ;;  %8209 = vmatmul.mubr.f32.vlgmr.msra.gmra.mxu1 %v8675_v3 }
  0x88   : > { %8214 = vmatpush3.msra.mxu0 %v9001_v12  ;;  %8215 = vmatprep.mubr.msk.f32.mxu0 %vm8636_vm1, %v8635_v1 }
  0x89   : > { %8218 = vmatprep.subr.mxu1 %v8635_v1  ;;  %8216 = vmatmul.mubr.f32.vlgmr.msra.gmra.mxu0 %v8681_v4 }
  0x8a   : > { %8219 = vmatpush3.msra.mxu1 %v8981_v8  ;;  %8225 = vmatprep.subr.mxu0 %v8635_v1 }
  0x8b   : > { %8220 = vmatprep.subr.mxu1 %v8635_v1  ;;  %8226 = vmatpush3.msra.mxu0 %v9008_v13 }
  0x8c   : > { %8221 = vmatpush3.msra.mxu1 %v8986_v10  ;;  %8222 = vmatprep.mubr.msk.f32.mxu1 %vm8636_vm1, %v8635_v1 }
  0x8d   : > { %8227 = vmatprep.subr.mxu0 %v8635_v1  ;;  %8223 = vmatmul.mubr.f32.vlgmr.msra.gmra.mxu1 %v8695_v9 }
  0x8e   : > { %8228 = vmatpush3.msra.mxu0 %v9016_v14  ;;  %8229 = vmatprep.mubr.msk.f32.mxu0 %vm8636_vm1, %v8635_v1 }
  0x8f   : > { %8232 = vmatprep.subr.mxu1 %v8635_v1  ;;  %8230 = vmatmul.mubr.f32.vlgmr.msra.gmra.mxu0 %v8675_v3 }
  0x90   : > { %8233 = vmatpush3.msra.mxu1 %v8981_v8  ;;  %8239 = vmatprep.subr.mxu0 %v8635_v1 }
  0x91   : > { %8234 = vmatprep.subr.mxu1 %v8635_v1  ;;  %8240 = vmatpush3.msra.mxu0 %v8981_v8 }
  0x92   : > { %8235 = vmatpush3.msra.mxu1 %v8986_v10  ;;  %8236 = vmatprep.mubr.msk.f32.mxu1 %vm8636_vm1, %v8635_v1 }
  0x93   : > { %8241 = vmatprep.subr.mxu0 %v8635_v1  ;;  %8237 = vmatmul.mubr.f32.vlgmr.msra.gmra.mxu1 %v8675_v3 }
  0x94   : > { %8242 = vmatpush3.msra.mxu0 %v8986_v10  ;;  %8243 = vmatprep.mubr.msk.f32.mxu0 %vm8636_vm1, %v8635_v1 }
  0x95   : > { %8246 = vmatprep.subr.mxu1 %v8635_v1  ;;  %8244 = vmatmul.mubr.f32.vlgmr.msra.gmra.mxu0 %v8764_v35 }
  0x96   : > { %8247 = vmatpush3.msra.mxu1 %v3075_v18  ;;  %8253 = vmatprep.subr.mxu0 %v8635_v1 }
  0x97   : > { %8248 = vmatprep.subr.mxu1 %v8635_v1  ;;  %8254 = vmatpush3.msra.mxu0 %v8993_v11  ;;  %v9313_v11 = vsub.f32 %v5741_v63, %v9298_v6 }
  0x98   : > { %8249 = vmatpush3.msra.mxu1 %v3082_v19  ;;  %8250 = vmatprep.mubr.msk.f32.mxu1 %vm8636_vm1, %v8635_v1 }
  0x99   : > { %8255 = vmatprep.subr.mxu0 %v8635_v1  ;;  %8251 = vmatmul.mubr.f32.vlgmr.msra.gmra.mxu1 %v8713_v20  ;;  %v9330_v18 = vand.u32 4294901760, %v9313_v11 }
  0x9a   : > { %8256 = vmatpush3.msra.mxu0 %v9001_v12  ;;  %8257 = vmatprep.mubr.msk.f32.mxu0 %vm8636_vm1, %v8635_v1 }
  0x9b   : > { %8260 = vmatprep.subr.mxu1 %v8635_v1  ;;  %8258 = vmatmul.mubr.f32.vlgmr.msra.gmra.mxu0 %v8730_v25  ;;  %v5859_v24 = vsub.f32 %v9313_v11, %v9330_v18 }
  0x9c   : > { %8261 = vmatpush3.msra.mxu1 %v8981_v8  ;;  %8267 = vmatprep.subr.mxu0 %v8635_v1 }
  0x9d   : > { %8262 = vmatprep.subr.mxu1 %v8635_v1  ;;  %8268 = vmatpush3.msra.mxu0 %v9008_v13 }
  0x9e   : > { %8263 = vmatpush3.msra.mxu1 %v8986_v10  ;;  %8264 = vmatprep.mubr.msk.f32.mxu1 %vm8636_vm1, %v8635_v1 }
  0x9f   : > { %8269 = vmatprep.subr.mxu0 %v8635_v1  ;;  %8265 = vmatmul.mubr.f32.vlgmr.msra.gmra.mxu1 %v8739_v28 }
  0xa0   : > { %8270 = vmatpush3.msra.mxu0 %v9016_v14  ;;  %8271 = vmatprep.mubr.msk.f32.mxu0 %vm8636_vm1, %v8635_v1 }
  0xa1   : > { %8274 = vmatprep.subr.mxu1 %v8635_v1  ;;  %8272 = vmatmul.mubr.f32.vlgmr.msra.gmra.mxu0 %v8713_v20 }
  0xa2   : > { %8275 = vmatpush3.msra.mxu1 %v8981_v8  ;;  %8281 = vmatprep.subr.mxu0 %v8635_v1  ;;  %v9305_v8 = vsub.f32 %v5742_v61, %v9293_v2 }
  0xa3   : > { %8276 = vmatprep.subr.mxu1 %v8635_v1  ;;  %8282 = vmatpush3.msra.mxu0 %v9085_v29 }
  0xa4   : > { %8277 = vmatpush3.msra.mxu1 %v8986_v10  ;;  %8278 = vmatprep.mubr.msk.f32.mxu1 %vm8636_vm1, %v8635_v1  ;;  %v9322_v14 = vand.u32 4294901760, %v9305_v8 }
  0xa5   : > { %8283 = vmatprep.subr.mxu0 %v8635_v1  ;;  %8279 = vmatmul.mubr.f32.vlgmr.msra.gmra.mxu1 %v8713_v20 }
  0xa6   : > { %8284 = vmatpush3.msra.mxu0 %v9090_v30  ;;  %8285 = vmatprep.mubr.msk.f32.mxu0 %vm8636_vm1, %v8635_v1  ;;  %v5852_v21 = vsub.f32 %v9305_v8, %v9322_v14 }
  0xa7   : > { %8288 = vmatprep.subr.mxu1 %v8635_v1  ;;  %8286 = vmatmul.mubr.f32.vlgmr.msra.gmra.mxu0 %v8705_v17 }
  0xa8   : > { %8289 = vmatpush3.msra.mxu1 %v4001_v38  ;;  %8295 = vmatprep.subr.mxu0 %v8635_v1 }
  0xa9   : > { %8290 = vmatprep.subr.mxu1 %v8635_v1  ;;  %8296 = vmatpush3.msra.mxu0 %v9097_v31 }
  0xaa   : > { %8291 = vmatpush3.msra.mxu1 %v4008_v39  ;;  %8292 = vmatprep.mubr.msk.f32.mxu1 %vm8636_vm1, %v8635_v1 }
  0xab   : > { %8297 = vmatprep.subr.mxu0 %v8635_v1  ;;  %8293 = vmatmul.mubr.f32.vlgmr.msra.gmra.mxu1 %v8675_v3 }
  0xac   : > { %8298 = vmatpush3.msra.mxu0 %v9105_v32  ;;  %8299 = vmatprep.mubr.msk.f32.mxu0 %vm8636_vm1, %v8635_v1 }
  0xad   : > { %8302 = vmatprep.subr.mxu1 %v8635_v1  ;;  %8300 = vmatmul.mubr.f32.vlgmr.msra.gmra.mxu0 %v8681_v4 }
  0xae   : > { %8303 = vmatpush3.msra.mxu1 %v9085_v29  ;;  %8309 = vmatprep.subr.mxu0 %v8635_v1 }
  0xaf   : > { %8304 = vmatprep.subr.mxu1 %v8635_v1  ;;  %8310 = vmatpush3.msra.mxu0 %v9112_v33 }
  0xb0   : > { %8305 = vmatpush3.msra.mxu1 %v9090_v30  ;;  %8306 = vmatprep.mubr.msk.f32.mxu1 %vm8636_vm1, %v8635_v1 }
  0xb1   : > { %8311 = vmatprep.subr.mxu0 %v8635_v1  ;;  %8307 = vmatmul.mubr.f32.vlgmr.msra.gmra.mxu1 %v8695_v9 }
  0xb2   : > { %8312 = vmatpush3.msra.mxu0 %v9120_v34  ;;  %8313 = vmatprep.mubr.msk.f32.mxu0 %vm8636_vm1, %v8635_v1 }
  0xb3   : > { %8316 = vmatprep.subr.mxu1 %v8635_v1  ;;  %8314 = vmatmul.mubr.f32.vlgmr.msra.gmra.mxu0 %v8675_v3 }
  0xb4   : > { %8317 = vmatpush3.msra.mxu1 %v9085_v29  ;;  %8323 = vmatprep.subr.mxu0 %v8635_v1 }
  0xb5   : > { %8318 = vmatprep.subr.mxu1 %v8635_v1  ;;  %8324 = vmatpush3.msra.mxu0 %v9085_v29 }
  0xb6   : > { %8319 = vmatpush3.msra.mxu1 %v9090_v30  ;;  %8320 = vmatprep.mubr.msk.f32.mxu1 %vm8636_vm1, %v8635_v1 }
  0xb7   : > { %8325 = vmatprep.subr.mxu0 %v8635_v1  ;;  %8321 = vmatmul.mubr.f32.vlgmr.msra.gmra.mxu1 %v8675_v3 }
  0xb8   : > { %8326 = vmatpush3.msra.mxu0 %v9090_v30  ;;  %8327 = vmatprep.mubr.msk.f32.mxu0 %vm8636_vm1, %v8635_v1 }
  0xb9   : > { %8330 = vmatprep.subr.mxu1 %v8635_v1  ;;  %8328 = vmatmul.mubr.f32.vlgmr.msra.gmra.mxu0 %v8764_v35 }
  0xba   : > { %8331 = vmatpush3.msra.mxu1 %v4001_v38  ;;  %8337 = vmatprep.subr.mxu0 %v8635_v1 }
  0xbb   : > { %8332 = vmatprep.subr.mxu1 %v8635_v1  ;;  %8338 = vmatpush3.msra.mxu0 %v9097_v31  ;;  %v9359_v31 = vand.u32 4294901760, %v5859_v24 }
  0xbc   : > { %8333 = vmatpush3.msra.mxu1 %v4008_v39  ;;  %8334 = vmatprep.mubr.msk.f32.mxu1 %vm8636_vm1, %v8635_v1 }
  0xbd   : > { %8339 = vmatprep.subr.mxu0 %v8635_v1  ;;  %8335 = vmatmul.mubr.f32.vlgmr.msra.gmra.mxu1 %v8713_v20 }
  0xbe   : > { %8340 = vmatpush3.msra.mxu0 %v9105_v32  ;;  %8341 = vmatprep.mubr.msk.f32.mxu0 %vm8636_vm1, %v8635_v1 }
  0xbf   : > { %8344 = vmatprep.subr.mxu1 %v8635_v1  ;;  %8342 = vmatmul.mubr.f32.vlgmr.msra.gmra.mxu0 %v8730_v25 }
  0xc0   : > { %8345 = vmatpush3.msra.mxu1 %v9085_v29  ;;  %8351 = vmatprep.subr.mxu0 %v8635_v1 }
  0xc1   : > { %8346 = vmatprep.subr.mxu1 %v8635_v1  ;;  %8352 = vmatpush3.msra.mxu0 %v9112_v33 }
  0xc2   : > { %8347 = vmatpush3.msra.mxu1 %v9090_v30  ;;  %8348 = vmatprep.mubr.msk.f32.mxu1 %vm8636_vm1, %v8635_v1 }
  0xc3   : > { %8353 = vmatprep.subr.mxu0 %v8635_v1  ;;  %8349 = vmatmul.mubr.f32.vlgmr.msra.gmra.mxu1 %v8739_v28 }
  0xc4   : > { %8354 = vmatpush3.msra.mxu0 %v9120_v34  ;;  %8355 = vmatprep.mubr.msk.f32.mxu0 %vm8636_vm1, %v8635_v1 }
  0xc5   : > { %8358 = vmatprep.subr.mxu1 %v8635_v1  ;;  %8356 = vmatmul.mubr.f32.vlgmr.msra.gmra.mxu0 %v8713_v20 }
  0xc6   : > { %8359 = vmatpush3.msra.mxu1 %v9085_v29  ;;  %8365 = vmatprep.subr.mxu0 %v8635_v1  ;;  %v9352_v29 = vand.u32 4294901760, %v5852_v21 }
  0xc7   : > { %8360 = vmatprep.subr.mxu1 %v8635_v1  ;;  %8366 = vmatpush3.msra.mxu0 %v9189_v46 }
  0xc8   : > { %8361 = vmatpush3.msra.mxu1 %v9090_v30  ;;  %8362 = vmatprep.mubr.msk.f32.mxu1 %vm8636_vm1, %v8635_v1 }
  0xc9   : > { %8367 = vmatprep.subr.mxu0 %v8635_v1  ;;  %8363 = vmatmul.mubr.f32.vlgmr.msra.gmra.mxu1 %v8713_v20 }
  0xca   : > { %8368 = vmatpush3.msra.mxu0 %v9194_v47  ;;  %8369 = vmatprep.mubr.msk.f32.mxu0 %vm8636_vm1, %v8635_v1 }
  0xcb   : > { %8372 = vmatprep.subr.mxu1 %v8635_v1  ;;  %8370 = vmatmul.mubr.f32.vlgmr.msra.gmra.mxu0 %v8705_v17 }
  0xcc   : > { %8373 = vmatpush3.msra.mxu1 %v4927_v54  ;;  %8379 = vmatprep.subr.mxu0 %v8635_v1 }
  0xcd   : > { %8374 = vmatprep.subr.mxu1 %v8635_v1  ;;  %8380 = vmatpush3.msra.mxu0 %v9201_v48 }
  0xce   : > { %8375 = vmatpush3.msra.mxu1 %v4934_v55  ;;  %8376 = vmatprep.mubr.msk.f32.mxu1 %vm8636_vm1, %v8635_v1 }
  0xcf   : > { %8381 = vmatprep.subr.mxu0 %v8635_v1  ;;  %8377 = vmatmul.mubr.f32.vlgmr.msra.gmra.mxu1 %v8675_v3 }
  0xd0   : > { %8382 = vmatpush3.msra.mxu0 %v9209_v49  ;;  %8383 = vmatprep.mubr.msk.f32.mxu0 %vm8636_vm1, %v8635_v1 }
  0xd1   : > { %8386 = vmatprep.subr.mxu1 %v8635_v1  ;;  %8384 = vmatmul.mubr.f32.vlgmr.msra.gmra.mxu0 %v8681_v4 }
  0xd2   : > { %8387 = vmatpush3.msra.mxu1 %v9189_v46  ;;  %8393 = vmatprep.subr.mxu0 %v8635_v1 }
  0xd3   : > { %8388 = vmatprep.subr.mxu1 %v8635_v1  ;;  %8394 = vmatpush3.msra.mxu0 %v9216_v50 }
  0xd4   : > { %8389 = vmatpush3.msra.mxu1 %v9194_v47  ;;  %8390 = vmatprep.mubr.msk.f32.mxu1 %vm8636_vm1, %v8635_v1 }
  0xd5   : > { %8395 = vmatprep.subr.mxu0 %v8635_v1  ;;  %8391 = vmatmul.mubr.f32.vlgmr.msra.gmra.mxu1 %v8695_v9 }
  0xd6   : > { %8396 = vmatpush3.msra.mxu0 %v9224_v51  ;;  %8397 = vmatprep.mubr.msk.f32.mxu0 %vm8636_vm1, %v8635_v1 }
  0xd7   : > { %8400 = vmatprep.subr.mxu1 %v8635_v1  ;;  %8398 = vmatmul.mubr.f32.vlgmr.msra.gmra.mxu0 %v8675_v3  ;;  %v256_v60 = vpop.f32.mrf.mxu0 }
  0xd8   : > { %8401 = vmatpush3.msra.mxu1 %v9189_v46  ;;  %8407 = vmatprep.subr.mxu0 %v8635_v1 }
  0xd9   : > { %8402 = vmatprep.subr.mxu1 %v8635_v1  ;;  %8408 = vmatpush3.msra.mxu0 %v9189_v46  ;;  %v7951_v62 = vpop.f32.mrf.mxu0 }
  0xda   : > { %8403 = vmatpush3.msra.mxu1 %v9194_v47  ;;  %8404 = vmatprep.mubr.msk.f32.mxu1 %vm8636_vm1, %v8635_v1 }
  0xdb   : > { %8409 = vmatprep.subr.mxu0 %v8635_v1  ;;  %8405 = vmatmul.mubr.f32.vlgmr.msra.gmra.mxu1 %v8675_v3  ;;  %v413_v0 = vpop.f32.mrf.mxu0 }
  0xdc   : > { %8410 = vmatpush3.msra.mxu0 %v9194_v47  ;;  %8411 = vmatprep.mubr.msk.f32.mxu0 %vm8636_vm1, %v8635_v1 }
  0xdd   : > { %8414 = vmatprep.subr.mxu1 %v8635_v1  ;;  %8412 = vmatmul.mubr.f32.vlgmr.msra.gmra.mxu0 %v8764_v35  ;;  %v7965_v5 = vpop.f32.mrf.mxu0 }
  0xde   : > { %8415 = vmatpush3.msra.mxu1 %v4927_v54  ;;  %8421 = vmatprep.subr.mxu0 %v8635_v1 }
  0xdf   : > { %8416 = vmatprep.subr.mxu1 %v8635_v1  ;;  %8422 = vmatpush3.msra.mxu0 %v9201_v48  ;;  %v337_v7 = vpop.f32.mrf.mxu1  ;;  %v6666_v48 = vld [vmem:[%s8686_s19 + $0xf8] sm:$0xff] }
  0xe0   : > { %8417 = vmatpush3.msra.mxu1 %v4934_v55  ;;  %8418 = vmatprep.mubr.msk.f32.mxu1 %vm8636_vm1, %v8635_v1  ;;  %v338_v26 = vadd.f32 %v337_v7, %v256_v60 }
  0xe1   : > { %8423 = vmatprep.subr.mxu0 %v8635_v1  ;;  %8419 = vmatmul.mubr.f32.vlgmr.msra.gmra.mxu1 %v8713_v20  ;;  %v7958_v10 = vpop.f32.mrf.mxu1 }
  0xe2   : > { %8424 = vmatpush3.msra.mxu0 %v9209_v49  ;;  %8425 = vmatprep.mubr.msk.f32.mxu0 %vm8636_vm1, %v8635_v1  ;;  %v9315_v12 = vpop.f32.mrf.mxu0  ;;  %v414_v32 = vadd.f32 %v413_v0, %v338_v26  ;;  %v9425_v0 = vand.u32 4294901760, %v6667_v59 }
  0xe3   : > { %8428 = vmatprep.subr.mxu1 %v8635_v1  ;;  %8426 = vmatmul.mubr.f32.vlgmr.msra.gmra.mxu0 %v8730_v25  ;;  %v488_v13 = vpop.f32.mrf.mxu1 }
  0xe4   : > { %8429 = vmatpush3.msra.mxu1 %v9189_v46  ;;  %8435 = vmatprep.subr.mxu0 %v8635_v1  ;;  %v7979_v15 = vpop.f32.mrf.mxu0  ;;  %v489_v39 = vadd.f32 %v488_v13, %v414_v32 }
  0xe5   : > { %8430 = vmatprep.subr.mxu1 %v8635_v1  ;;  %8436 = vmatpush3.msra.mxu0 %v9216_v50  ;;  %v7972_v16 = vpop.f32.mrf.mxu1 }
  0xe6   : > { %8431 = vmatpush3.msra.mxu1 %v9194_v47  ;;  %8432 = vmatprep.mubr.msk.f32.mxu1 %vm8636_vm1, %v8635_v1  ;;  %v566_v44 = vadd.f32 %v9315_v12, %v489_v39 }
  0xe7   : > { %8437 = vmatprep.subr.mxu0 %v8635_v1  ;;  %8433 = vmatmul.mubr.f32.vlgmr.msra.gmra.mxu1 %v8739_v28  ;;  %v9334_v19 = vpop.f32.mrf.mxu1 }
  0xe8   : > { %8438 = vmatpush3.msra.mxu0 %v9224_v51  ;;  %8439 = vmatprep.mubr.msk.f32.mxu0 %vm8636_vm1, %v8635_v1  ;;  %v639_v50 = vadd.f32 %v9334_v19, %v566_v44 }
  0xe9   : > { %8442 = vmatprep.subr.mxu1 %v8635_v1  ;;  %8440 = vmatmul.mubr.f32.vlgmr.msra.gmra.mxu0 %v8713_v20  ;;  %v718_v22 = vpop.f32.mrf.mxu0  ;;  %v7986_v23 = vpop.f32.mrf.mxu1 }
  0xea   : > { %8443 = vmatpush3.msra.mxu1 %v9189_v46  ;;  %8449 = vmatprep.subr.mxu0 %v8635_v1 }
  0xeb   : > { %8444 = vmatprep.subr.mxu1 %v8635_v1  ;;  %8450 = vmatpush3.msra.mxu0 %v9293_v2  ;;  %v7993_v27 = vpop.f32.mrf.mxu0 }
  0xec   : > { %8445 = vmatpush3.msra.mxu1 %v9194_v47  ;;  %8446 = vmatprep.mubr.msk.f32.mxu1 %vm8636_vm1, %v8635_v1  ;;  %v6664_v47 = vld [vmem:[%s8686_s19 + $0xe8] sm:$0xff] }
  0xed   : > { %8451 = vmatprep.subr.mxu0 %v8635_v1  ;;  %8447 = vmatmul.mubr.f32.vlgmr.msra.gmra.mxu1 %v8713_v20  ;;  %v799_v30 = vpop.f32.mrf.mxu1  ;;  %v6668_v56 = vmax.f32 %v6664_v47, %v6666_v48 }
  0xee   : > { %8452 = vmatpush3.msra.mxu0 %v9298_v6  ;;  %8453 = vmatprep.mubr.msk.f32.mxu0 %vm8636_vm1, %v8635_v1  ;;  %v800_v33 = vadd.f32 %v799_v30, %v718_v22 }
  0xef   : > { %8456 = vmatprep.subr.mxu1 %v8635_v1  ;;  %8454 = vmatmul.mubr.f32.vlgmr.msra.gmra.mxu0 %v8705_v17  ;;  %v875_v34 = vpop.f32.mrf.mxu0  ;;  %v8000_v36 = vpop.f32.mrf.mxu1  ;;  %v9419_v61 = vand.u32 4294901760, %v6668_v56 }
  0xf0   : > { %8457 = vmatpush3.msra.mxu1 %v9352_v29  ;;  %8463 = vmatprep.subr.mxu0 %v8635_v1  ;;  %v876_v37 = vadd.f32 %v875_v34, %v800_v33 }
  0xf1   : > { %8458 = vmatprep.subr.mxu1 %v8635_v1  ;;  %8464 = vmatpush3.msra.mxu0 %v9305_v8  ;;  %v8007_v38 = vpop.f32.mrf.mxu0  ;;  %v9433_v7 = vsub.f32 %v6668_v56, %v9419_v61 }
  0xf2   : > { %8459 = vmatpush3.msra.mxu1 %v9359_v31  ;;  %8460 = vmatprep.mubr.msk.f32.mxu1 %vm8636_vm1, %v8635_v1 }
  0xf3   : > { %8465 = vmatprep.subr.mxu0 %v8635_v1  ;;  %8461 = vmatmul.mubr.f32.vlgmr.msra.gmra.mxu1 %v8675_v3  ;;  %v950_v40 = vpop.f32.mrf.mxu1  ;;  %v9450_v15 = vand.u32 4294901760, %v9433_v7 }
  0xf4   : > { %8466 = vmatpush3.msra.mxu0 %v9313_v11  ;;  %8467 = vmatprep.mubr.msk.f32.mxu0 %vm8636_vm1, %v8635_v1  ;;  %v951_v41 = vadd.f32 %v950_v40, %v876_v37 }
  0xf5   : > { %8470 = vmatprep.subr.mxu1 %v8635_v1  ;;  %8468 = vmatmul.mubr.f32.vlgmr.msra.gmra.mxu0 %v8681_v4  ;;  %v1027_v42 = vpop.f32.mrf.mxu0  ;;  %v8014_v43 = vpop.f32.mrf.mxu1 }
  0xf6   : > { %8471 = vmatpush3.msra.mxu1 %v9293_v2  ;;  %8477 = vmatprep.subr.mxu0 %v8635_v1  ;;  %v1028_v45 = vadd.f32 %v1027_v42, %v951_v41 }
  0xf7   : > { %8472 = vmatprep.subr.mxu1 %v8635_v1  ;;  %8478 = vmatpush3.msra.mxu0 %v9322_v14  ;;  %v8021_v46 = vpop.f32.mrf.mxu0 }
  0xf8   : > { %8473 = vmatpush3.msra.mxu1 %v9298_v6  ;;  %8474 = vmatprep.mubr.msk.f32.mxu1 %vm8636_vm1, %v8635_v1 }
  0xf9   : > { %8479 = vmatprep.subr.mxu0 %v8635_v1  ;;  %8475 = vmatmul.mubr.f32.vlgmr.msra.gmra.mxu1 %v8695_v9  ;;  %v1100_v49 = vpop.f32.mrf.mxu1 }
  0xfa   : > { %8480 = vmatpush3.msra.mxu0 %v9330_v18  ;;  %8481 = vmatprep.mubr.msk.f32.mxu0 %vm8636_vm1, %v8635_v1  ;;  %v1101_v51 = vadd.f32 %v1100_v49, %v1028_v45 }
  0xfb   : > { %8484 = vmatprep.subr.mxu1 %v8635_v1  ;;  %8482 = vmatmul.mubr.f32.vlgmr.msra.gmra.mxu0 %v8675_v3  ;;  %v9403_v54 = vpop.f32.mrf.mxu0  ;;  %v8028_v55 = vpop.f32.mrf.mxu1 }
  0xfc   : > { %8485 = vmatpush3.msra.mxu1 %v9293_v2  ;;  %8491 = vmatprep.subr.mxu0 %v8635_v1  ;;  %v1104_v57 = vmax.f32 %v639_v50, %v1101_v51 }
  0xfd   : > { %8486 = vmatprep.subr.mxu1 %v8635_v1  ;;  %8492 = vmatpush3.msra.mxu0 %v9293_v2  ;;  %v8035_v58 = vpop.f32.mrf.mxu0 }
  0xfe   : > { %8487 = vmatpush3.msra.mxu1 %v9298_v6  ;;  %8488 = vmatprep.mubr.msk.f32.mxu1 %vm8636_vm1, %v8635_v1  ;;  %1106 = vst.msk [vmem:[%s9401_s25] sm:$0xff] %vm1105_vm2, %v1104_v57 }
  0xff   : > { %8493 = vmatprep.subr.mxu0 %v8635_v1  ;;  %8489 = vmatmul.mubr.f32.vlgmr.msra.gmra.mxu1 %v8675_v3  ;;  %v1267_v60 = vpop.f32.mrf.mxu1 }
 0x100   : > { %8494 = vmatpush3.msra.mxu0 %v9298_v6  ;;  %8495 = vmatprep.mubr.msk.f32.mxu0 %vm8636_vm1, %v8635_v1 }
 0x101   : > { %8498 = vmatprep.subr.mxu1 %v8635_v1  ;;  %8496 = vmatmul.mubr.f32.vlgmr.msra.gmra.mxu0 %v8764_v35  ;;  %v1343_v62 = vpop.f32.mrf.mxu0  ;;  %v8042_v63 = vpop.f32.mrf.mxu1 }
 0x102   : > { %8499 = vmatpush3.msra.mxu1 %v9352_v29  ;;  %8505 = vmatprep.subr.mxu0 %v8635_v1 }
 0x103   : > { %8500 = vmatprep.subr.mxu1 %v8635_v1  ;;  %8506 = vmatpush3.msra.mxu0 %v9305_v8  ;;  %v8049_v5 = vpop.f32.mrf.mxu0  ;;  %v9441_v8 = vsub.f32 %v6667_v59, %v9425_v0 }
 0x104   : > { %8501 = vmatpush3.msra.mxu1 %v9359_v31  ;;  %8502 = vmatprep.mubr.msk.f32.mxu1 %vm8636_vm1, %v8635_v1 }
 0x105   : > { %8507 = vmatprep.subr.mxu0 %v8635_v1  ;;  %8503 = vmatmul.mubr.f32.vlgmr.msra.gmra.mxu1 %v8713_v20  ;;  %v1418_v10 = vpop.f32.mrf.mxu1  ;;  %v9458_v16 = vand.u32 4294901760, %v9441_v8 }
 0x106   : > { %8508 = vmatpush3.msra.mxu0 %v9313_v11  ;;  %8509 = vmatprep.mubr.msk.f32.mxu0 %vm8636_vm1, %v8635_v1 }
 0x107   : > { %8512 = vmatprep.subr.mxu1 %v8635_v1  ;;  %8510 = vmatmul.mubr.f32.vlgmr.msra.gmra.mxu0 %v8730_v25  ;;  %v9445_v12 = vpop.f32.mrf.mxu0  ;;  %v8056_v13 = vpop.f32.mrf.mxu1  ;;  %v6785_v23 = vsub.f32 %v9441_v8, %v9458_v16 }
 0x108   : > { %8513 = vmatpush3.msra.mxu1 %v9293_v2  ;;  %8519 = vmatprep.subr.mxu0 %v8635_v1 }
 0x109   : > { %8514 = vmatprep.subr.mxu1 %v8635_v1  ;;  %8520 = vmatpush3.msra.mxu0 %v9322_v14  ;;  %v8063_v11 = vpop.f32.mrf.mxu0  ;;  %v6778_v14 = vsub.f32 %v9433_v7, %v9450_v15  ;;  %v9488_v27 = vand.u32 4294901760, %v6785_v23 }
 0x10a   : > { %8515 = vmatpush3.msra.mxu1 %v9298_v6  ;;  %8516 = vmatprep.mubr.msk.f32.mxu1 %vm8636_vm1, %v8635_v1 }
 0x10b   : > { %8521 = vmatprep.subr.mxu0 %v8635_v1  ;;  %8517 = vmatmul.mubr.f32.vlgmr.msra.gmra.mxu1 %v8739_v28  ;;  %v9462_v19 = vpop.f32.mrf.mxu1  ;;  %v9481_v26 = vand.u32 4294901760, %v6778_v14 }
 0x10c   : > { %8522 = vmatpush3.msra.mxu0 %v9330_v18  ;;  %8523 = vmatprep.mubr.msk.f32.mxu0 %vm8636_vm1, %v8635_v1  ;;  %v1268_v18 = vadd.f32 %v1267_v60, %v9403_v54 }
 0x10d   : > { %8526 = vmatprep.subr.mxu1 %v8635_v1  ;;  %8524 = vmatmul.mubr.f32.vlgmr.msra.gmra.mxu0 %v8713_v20  ;;  %v1645_v21 = vpop.f32.mrf.mxu0  ;;  %v8070_v22 = vpop.f32.mrf.mxu1 }
 0x10e   : > { %8527 = vmatpush3.msra.mxu1 %v9293_v2  ;;  %8533 = vmatprep.subr.mxu0 %v8635_v1  ;;  %v1344_v29 = vadd.f32 %v1343_v62, %v1268_v18 }
 0x10f   : > { %8528 = vmatprep.subr.mxu1 %v8635_v1  ;;  %8534 = vmatpush3.msra.mxu0 %v9419_v61  ;;  %v8077_v24 = vpop.f32.mrf.mxu0 }
 0x110   : > { %8529 = vmatpush3.msra.mxu1 %v9298_v6  ;;  %8530 = vmatprep.mubr.msk.f32.mxu1 %vm8636_vm1, %v8635_v1  ;;  %v1419_v34 = vadd.f32 %v1418_v10, %v1344_v29 }
 0x111   : > { %8535 = vmatprep.subr.mxu0 %v8635_v1  ;;  %8531 = vmatmul.mubr.f32.vlgmr.msra.gmra.mxu1 %v8713_v20  ;;  %v1726_v2 = vpop.f32.mrf.mxu1 }
 0x112   : > { %8536 = vmatpush3.msra.mxu0 %v9425_v0  ;;  %8537 = vmatprep.mubr.msk.f32.mxu0 %vm8636_vm1, %v8635_v1  ;;  %v1727_v30 = vadd.f32 %v1726_v2, %v1645_v21  ;;  %v1496_v39 = vadd.f32 %v9445_v12, %v1419_v34 }
 0x113   : > { %8540 = vmatprep.subr.mxu1 %v8635_v1  ;;  %8538 = vmatmul.mubr.f32.vlgmr.msra.gmra.mxu0 %v8705_v17  ;;  %v1802_v6 = vpop.f32.mrf.mxu0  ;;  %v8084_v31 = vpop.f32.mrf.mxu1 }
 0x114   : > { %8541 = vmatpush3.msra.mxu1 %v9481_v26  ;;  %8547 = vmatprep.subr.mxu0 %v8635_v1  ;;  %v1803_v32 = vadd.f32 %v1802_v6, %v1727_v30  ;;  %v1569_v42 = vadd.f32 %v9462_v19, %v1496_v39 }
 0x115   : > { %8542 = vmatprep.subr.mxu1 %v8635_v1  ;;  %8548 = vmatpush3.msra.mxu0 %v9433_v7  ;;  %v8091_v33 = vpop.f32.mrf.mxu0 }
 0x116   : > { %8543 = vmatpush3.msra.mxu1 %v9488_v27  ;;  %8544 = vmatprep.mubr.msk.f32.mxu1 %vm8636_vm1, %v8635_v1 }
 0x117   : > { %8549 = vmatprep.subr.mxu0 %v8635_v1  ;;  %8545 = vmatmul.mubr.f32.vlgmr.msra.gmra.mxu1 %v8675_v3  ;;  %v1877_v17 = vpop.f32.mrf.mxu1 }
 0x118   : > { %8550 = vmatpush3.msra.mxu0 %v9441_v8  ;;  %8551 = vmatprep.mubr.msk.f32.mxu0 %vm8636_vm1, %v8635_v1  ;;  %v1878_v36 = vadd.f32 %v1877_v17, %v1803_v32 }
 0x119   : > { %8554 = vmatprep.subr.mxu1 %v8635_v1  ;;  %8552 = vmatmul.mubr.f32.vlgmr.msra.gmra.mxu0 %v8681_v4  ;;  %v1954_v37 = vpop.f32.mrf.mxu0  ;;  %v8098_v38 = vpop.f32.mrf.mxu1 }
 0x11a   : > { %8555 = vmatpush3.msra.mxu1 %v9419_v61  ;;  %8561 = vmatprep.subr.mxu0 %v8635_v1  ;;  %v1955_v40 = vadd.f32 %v1954_v37, %v1878_v36 }
 0x11b   : > { %8556 = vmatprep.subr.mxu1 %v8635_v1  ;;  %8562 = vmatpush3.msra.mxu0 %v9450_v15  ;;  %v8105_v41 = vpop.f32.mrf.mxu0 }
 0x11c   : > { %8557 = vmatpush3.msra.mxu1 %v9425_v0  ;;  %8558 = vmatprep.mubr.msk.f32.mxu1 %vm8636_vm1, %v8635_v1 }
 0x11d   : > { %8563 = vmatprep.subr.mxu0 %v8635_v1  ;;  %8559 = vmatmul.mubr.f32.vlgmr.msra.gmra.mxu1 %v8695_v9  ;;  %v2027_v4 = vpop.f32.mrf.mxu1 }
 0x11e   : > { %8564 = vmatpush3.msra.mxu0 %v9458_v16  ;;  %8565 = vmatprep.mubr.msk.f32.mxu0 %vm8636_vm1, %v8635_v1  ;;  %v2028_v43 = vadd.f32 %v2027_v4, %v1955_v40 }
 0x11f   : > { %8568 = vmatprep.subr.mxu1 %v8635_v1  ;;  %8566 = vmatmul.mubr.f32.vlgmr.msra.gmra.mxu0 %v8675_v3  ;;  %v2112_v44 = vpop.f32.mrf.mxu0  ;;  %v8112_v45 = vpop.f32.mrf.mxu1 }
 0x120   : > { %8569 = vmatpush3.msra.mxu1 %v9419_v61  ;;  %8575 = vmatprep.subr.mxu0 %v8635_v1  ;;  %v2031_v9 = vmax.f32 %v1569_v42, %v2028_v43 }
 0x121   : > { %8570 = vmatprep.subr.mxu1 %v8635_v1  ;;  %8576 = vmatpush3.msra.mxu0 %v9419_v61  ;;  %v8119_v46 = vpop.f32.mrf.mxu0 }
 0x122   : > { %8571 = vmatpush3.msra.mxu1 %v9425_v0  ;;  %8572 = vmatprep.mubr.msk.f32.mxu1 %vm8636_vm1, %v8635_v1  ;;  %2032 = vst.msk [vmem:[%s9401_s25 + $0x8] sm:$0xff] %vm1105_vm2, %v2031_v9 }
 0x123   : > { %8577 = vmatprep.subr.mxu0 %v8635_v1  ;;  %8573 = vmatmul.mubr.f32.vlgmr.msra.gmra.mxu1 %v8675_v3  ;;  %v2193_v47 = vpop.f32.mrf.mxu1 }
 0x124   : > { %8578 = vmatpush3.msra.mxu0 %v9425_v0  ;;  %8579 = vmatprep.mubr.msk.f32.mxu0 %vm8636_vm1, %v8635_v1  ;;  %v2194_v55 = vadd.f32 %v2193_v47, %v2112_v44 }
 0x125   : > { %8582 = vmatprep.subr.mxu1 %v8635_v1  ;;  %8580 = vmatmul.mubr.f32.vlgmr.msra.gmra.mxu0 %v8764_v35  ;;  %v2269_v48 = vpop.f32.mrf.mxu0  ;;  %v8126_v49 = vpop.f32.mrf.mxu1 }
 0x126   : > { %8583 = vmatpush3.msra.mxu1 %v9481_v26  ;;  %8589 = vmatprep.subr.mxu0 %v8635_v1  ;;  %v2270_v57 = vadd.f32 %v2269_v48, %v2194_v55 }
 0x127   : > { %8584 = vmatprep.subr.mxu1 %v8635_v1  ;;  %8590 = vmatpush3.msra.mxu0 %v9433_v7  ;;  %v8133_v3 = vpop.f32.mrf.mxu0 }
 0x128   : > { %8585 = vmatpush3.msra.mxu1 %v9488_v27  ;;  %8586 = vmatprep.mubr.msk.f32.mxu1 %vm8636_vm1, %v8635_v1 }
 0x129   : > { %8591 = vmatprep.subr.mxu0 %v8635_v1  ;;  %8587 = vmatmul.mubr.f32.vlgmr.msra.gmra.mxu1 %v8713_v20  ;;  %v2344_v35 = vpop.f32.mrf.mxu1 }
 0x12a   : > { %8592 = vmatpush3.msra.mxu0 %v9441_v8  ;;  %8593 = vmatprep.mubr.msk.f32.mxu0 %vm8636_vm1, %v8635_v1 }
 0x12b   : > { %8596 = vmatprep.subr.mxu1 %v8635_v1  ;;  %8594 = vmatmul.mubr.f32.vlgmr.msra.gmra.mxu0 %v8730_v25  ;;  %v2421_v50 = vpop.f32.mrf.mxu0  ;;  %v8140_v51 = vpop.f32.mrf.mxu1 }
 0x12c   : > { %8597 = vmatpush3.msra.mxu1 %v9419_v61  ;;  %8603 = vmatprep.subr.mxu0 %v8635_v1 }
 0x12d   : > { %8598 = vmatprep.subr.mxu1 %v8635_v1  ;;  %8604 = vmatpush3.msra.mxu0 %v9450_v15  ;;  %v8147_v52 = vpop.f32.mrf.mxu0 }
 0x12e   : > { %8599 = vmatpush3.msra.mxu1 %v9425_v0  ;;  %8600 = vmatprep.mubr.msk.f32.mxu1 %vm8636_vm1, %v8635_v1 }
 0x12f   : > { %8605 = vmatprep.subr.mxu0 %v8635_v1  ;;  %8601 = vmatmul.mubr.f32.vlgmr.msra.gmra.mxu1 %v8739_v28  ;;  %v2494_v25 = vpop.f32.mrf.mxu1 }
 0x130   : > { %8606 = vmatpush3.msra.mxu0 %v9458_v16  ;;  %8607 = vmatprep.mubr.msk.f32.mxu0 %vm8636_vm1, %v8635_v1 }
 0x131   : > { %8610 = vmatprep.subr.mxu1 %v8635_v1  ;;  %8608 = vmatmul.mubr.f32.vlgmr.msra.gmra.mxu0 %v8713_v20  ;;  %v2571_v53 = vpop.f32.mrf.mxu0  ;;  %v8154_v54 = vpop.f32.mrf.mxu1 }
 0x132   : > { %8611 = vmatpush3.msra.mxu1 %v9419_v61  ;;  %8614 = vmatprep.mubr.msk.f32.mxu1 %vm8636_vm1, %v8635_v1  ;;  %v2345_v61 = vadd.f32 %v2344_v35, %v2270_v57 }
 0x133   : > { %8612 = vmatprep.subr.mxu1 %v8635_v1  ;;  %v8161_v28 = vpop.f32.mrf.mxu0 }
 0x134   : > { %8613 = vmatpush3.msra.mxu1 %v9425_v0  ;;  %v2422_v12 = vadd.f32 %v2421_v50, %v2345_v61 }
 0x135   : > { %8615 = vmatmul.mubr.f32.vlgmr.msra.gmra.mxu1 %v8713_v20  ;;  %v2652_v56 = vpop.f32.mrf.mxu1 }
 0x136   : > { %v2653_v58 = vadd.f32 %v2652_v56, %v2571_v53  ;;  %v2495_v0 = vadd.f32 %v2494_v25, %v2422_v12 }
 0x137   : > { %v2728_v59 = vpop.f32.mrf.mxu0  ;;  %v8168_v60 = vpop.f32.mrf.mxu1 }
 0x138   : > { %v2729_v62 = vadd.f32 %v2728_v59, %v2653_v58 }
 0x139   : > { %v8175_v63 = vpop.f32.mrf.mxu0 }
 0x13b   : > { %v2803_v5 = vpop.f32.mrf.mxu1 }
 0x13c   : > { %v2804_v7 = vadd.f32 %v2803_v5, %v2729_v62 }
 0x13d   : > { %v2880_v10 = vpop.f32.mrf.mxu0  ;;  %v8182_v8 = vpop.f32.mrf.mxu1 }
 0x13e   : > { %v2881_v1 = vadd.f32 %v2880_v10, %v2804_v7 }
 0x13f   : > { %v8189_v13 = vpop.f32.mrf.mxu0 }
 0x141   : > { %v2953_v15 = vpop.f32.mrf.mxu1 }
 0x142   : > { %v2954_v11 = vadd.f32 %v2953_v15, %v2881_v1 }
 0x143   : > { %v3038_v20 = vpop.f32.mrf.mxu0  ;;  %v8196_v16 = vpop.f32.mrf.mxu1 }
 0x144   : > { %v2957_v19 = vmax.f32 %v2495_v0, %v2954_v11 }
 0x145   : > { %v8203_v14 = vpop.f32.mrf.mxu0 }
 0x146   : > { %2958 = vst.msk [vmem:[%s9401_s25 + $0x10] sm:$0xff] %vm1105_vm2, %v2957_v19 }
 0x147   : > { %v3119_v21 = vpop.f32.mrf.mxu1 }
 0x148   : > { %v3120_v31 = vadd.f32 %v3119_v21, %v3038_v20 }
 0x149   : > { %v3195_v22 = vpop.f32.mrf.mxu0  ;;  %v8210_v23 = vpop.f32.mrf.mxu1 }
 0x14a   : > { %v3196_v34 = vadd.f32 %v3195_v22, %v3120_v31 }
 0x14b   : > { %v8217_v18 = vpop.f32.mrf.mxu0 }
 0x14d   : > { %v3270_v24 = vpop.f32.mrf.mxu1 }
 0x14e   : > { %v3271_v40 = vadd.f32 %v3270_v24, %v3196_v34 }
 0x14f   : > { %v3347_v26 = vpop.f32.mrf.mxu0  ;;  %v8224_v2 = vpop.f32.mrf.mxu1 }
 0x150   : > { %v3348_v44 = vadd.f32 %v3347_v26, %v3271_v40 }
 0x151   : > { %v8231_v27 = vpop.f32.mrf.mxu0 }
 0x153   : > { %v3420_v29 = vpop.f32.mrf.mxu1 }
 0x154   : > { %v3421_v47 = vadd.f32 %v3420_v29, %v3348_v44 }
 0x155   : > { %v3497_v30 = vpop.f32.mrf.mxu0  ;;  %v8238_v6 = vpop.f32.mrf.mxu1 }
 0x157   : > { %v8245_v32 = vpop.f32.mrf.mxu0 }
 0x159   : > { %v3578_v33 = vpop.f32.mrf.mxu1 }
 0x15a   : > { %v3579_v17 = vadd.f32 %v3578_v33, %v3497_v30 }
 0x15b   : > { %v3654_v36 = vpop.f32.mrf.mxu0  ;;  %v8252_v37 = vpop.f32.mrf.mxu1 }
 0x15c   : > { %v3655_v38 = vadd.f32 %v3654_v36, %v3579_v17 }
 0x15d   : > { %v8259_v39 = vpop.f32.mrf.mxu0 }
 0x15f   : > { %v3729_v41 = vpop.f32.mrf.mxu1 }
 0x160   : > { %v3730_v4 = vadd.f32 %v3729_v41, %v3655_v38 }
 0x161   : > { %v3806_v42 = vpop.f32.mrf.mxu0  ;;  %v8266_v43 = vpop.f32.mrf.mxu1 }
 0x162   : > { %v3807_v45 = vadd.f32 %v3806_v42, %v3730_v4 }
 0x163   : > { %v8273_v9 = vpop.f32.mrf.mxu0 }
 0x165   : > { %v3879_v46 = vpop.f32.mrf.mxu1 }
 0x166   : > { %v3880_v48 = vadd.f32 %v3879_v46, %v3807_v45 }
 0x167   : > { %v3964_v49 = vpop.f32.mrf.mxu0  ;;  %v8280_v3 = vpop.f32.mrf.mxu1 }
 0x168   : > { %v3883_v35 = vmax.f32 %v3421_v47, %v3880_v48 }
 0x169   : > { %v8287_v50 = vpop.f32.mrf.mxu0 }
 0x16a   : > { %3884 = vst.msk [vmem:[%s9401_s25 + $0x18] sm:$0xff] %vm1105_vm2, %v3883_v35 }
 0x16b   : > { %v4045_v51 = vpop.f32.mrf.mxu1 }
 0x16c   : > { %v4046_v60 = vadd.f32 %v4045_v51, %v3964_v49 }
 0x16d   : > { %v4121_v52 = vpop.f32.mrf.mxu0  ;;  %v8294_v25 = vpop.f32.mrf.mxu1 }
 0x16e   : > { %v4122_v61 = vadd.f32 %v4121_v52, %v4046_v60 }
 0x16f   : > { %v8301_v53 = vpop.f32.mrf.mxu0 }
 0x171   : > { %v4196_v54 = vpop.f32.mrf.mxu1 }
 0x172   : > { %v4197_v1 = vadd.f32 %v4196_v54, %v4122_v61 }
 0x173   : > { %v4273_v55 = vpop.f32.mrf.mxu0  ;;  %v8308_v28 = vpop.f32.mrf.mxu1 }
 0x174   : > { %v4274_v20 = vadd.f32 %v4273_v55, %v4197_v1 }
 0x175   : > { %v8315_v56 = vpop.f32.mrf.mxu0 }
 0x177   : > { %v4346_v57 = vpop.f32.mrf.mxu1 }
 0x178   : > { %v4347_v21 = vadd.f32 %v4346_v57, %v4274_v20 }
 0x179   : > { %v4423_v58 = vpop.f32.mrf.mxu0  ;;  %v8322_v59 = vpop.f32.mrf.mxu1 }
 0x17b   : > { %v8329_v62 = vpop.f32.mrf.mxu0 }
 0x17d   : > { %v4504_v63 = vpop.f32.mrf.mxu1 }
 0x17e   : > { %v4505_v5 = vadd.f32 %v4504_v63, %v4423_v58 }
 0x17f   : > { %v4580_v7 = vpop.f32.mrf.mxu0  ;;  %v8336_v10 = vpop.f32.mrf.mxu1 }
 0x180   : > { %v4581_v8 = vadd.f32 %v4580_v7, %v4505_v5 }
 0x181   : > { %v8343_v12 = vpop.f32.mrf.mxu0 }
 0x183   : > { %v4655_v13 = vpop.f32.mrf.mxu1 }
 0x184   : > { %v4656_v15 = vadd.f32 %v4655_v13, %v4581_v8 }
 0x185   : > { %v4732_v0 = vpop.f32.mrf.mxu0  ;;  %v8350_v11 = vpop.f32.mrf.mxu1 }
 0x186   : > { %v4733_v16 = vadd.f32 %v4732_v0, %v4656_v15 }
 0x187   : > { %v8357_v19 = vpop.f32.mrf.mxu0 }
 0x189   : > { %v4805_v14 = vpop.f32.mrf.mxu1 }
 0x18a   : > { %v4806_v22 = vadd.f32 %v4805_v14, %v4733_v16 }
 0x18b   : > { %v4890_v23 = vpop.f32.mrf.mxu0  ;;  %v8364_v18 = vpop.f32.mrf.mxu1 }
 0x18c   : > { %v4809_v24 = vmax.f32 %v4347_v21, %v4806_v22 }
 0x18d   : > { %v8371_v26 = vpop.f32.mrf.mxu0 }
 0x18e   : > { %4810 = vst.msk [vmem:[%s9401_s25 + $0x20] sm:$0xff] %vm1105_vm2, %v4809_v24 }
 0x18f   : > { %v4971_v2 = vpop.f32.mrf.mxu1 }
 0x190   : > { %v4972_v37 = vadd.f32 %v4971_v2, %v4890_v23 }
 0x191   : > { %v5047_v27 = vpop.f32.mrf.mxu0  ;;  %v8378_v29 = vpop.f32.mrf.mxu1 }
 0x192   : > { %v5048_v40 = vadd.f32 %v5047_v27, %v4972_v37 }
 0x193   : > { %v8385_v30 = vpop.f32.mrf.mxu0 }
 0x195   : > { %v5122_v6 = vpop.f32.mrf.mxu1 }
 0x196   : > { %v5123_v45 = vadd.f32 %v5122_v6, %v5048_v40 }
 0x197   : > { %v5199_v31 = vpop.f32.mrf.mxu0  ;;  %v8392_v32 = vpop.f32.mrf.mxu1 }
 0x198   : > { %v5200_v49 = vadd.f32 %v5199_v31, %v5123_v45 }
 0x199   : > { %v8399_v33 = vpop.f32.mrf.mxu0 }
 0x19b   : > { %v5272_v34 = vpop.f32.mrf.mxu1 }
 0x19c   : > { %v5273_v51 = vadd.f32 %v5272_v34, %v5200_v49 }
 0x19d   : > { %v5349_v17 = vpop.f32.mrf.mxu0  ;;  %v8406_v36 = vpop.f32.mrf.mxu1 }
 0x19f   : > { %v8413_v38 = vpop.f32.mrf.mxu0 }
 0x1a1   : > { %v5430_v39 = vpop.f32.mrf.mxu1 }
 0x1a2   : > { %v5431_v41 = vadd.f32 %v5430_v39, %v5349_v17 }
 0x1a3   : > { %v5506_v4 = vpop.f32.mrf.mxu0  ;;  %v8420_v42 = vpop.f32.mrf.mxu1 }
 0x1a4   : > { %v5507_v43 = vadd.f32 %v5506_v4, %v5431_v41 }
 0x1a5   : > { %v8427_v44 = vpop.f32.mrf.mxu0 }
 0x1a7   : > { %v5581_v9 = vpop.f32.mrf.mxu1 }
 0x1a8   : > { %v5582_v46 = vadd.f32 %v5581_v9, %v5507_v43 }
 0x1a9   : > { %v5658_v47 = vpop.f32.mrf.mxu0  ;;  %v8434_v48 = vpop.f32.mrf.mxu1 }
 0x1aa   : > { %v5659_v3 = vadd.f32 %v5658_v47, %v5582_v46 }
 0x1ab   : > { %v8441_v35 = vpop.f32.mrf.mxu0 }
 0x1ad   : > { %v5731_v50 = vpop.f32.mrf.mxu1 }
 0x1ae   : > { %v5732_v52 = vadd.f32 %v5731_v50, %v5659_v3 }
 0x1af   : > { %v5816_v25 = vpop.f32.mrf.mxu0  ;;  %v8448_v53 = vpop.f32.mrf.mxu1 }
 0x1b0   : > { %v5735_v54 = vmax.f32 %v5273_v51, %v5732_v52 }
 0x1b1   : > { %v8455_v55 = vpop.f32.mrf.mxu0 }
 0x1b2   : > { %5736 = vst.msk [vmem:[%s9401_s25 + $0x28] sm:$0xff] %vm1105_vm2, %v5735_v54 }
 0x1b3   : > { %v5897_v28 = vpop.f32.mrf.mxu1 }
 0x1b4   : > { %v5898_v10 = vadd.f32 %v5897_v28, %v5816_v25 }
 0x1b5   : > { %v5973_v56 = vpop.f32.mrf.mxu0  ;;  %v8462_v57 = vpop.f32.mrf.mxu1 }
 0x1b6   : > { %v5974_v1 = vadd.f32 %v5973_v56, %v5898_v10 }
 0x1b7   : > { %v8469_v58 = vpop.f32.mrf.mxu0 }
 0x1b9   : > { %v6048_v59 = vpop.f32.mrf.mxu1 }
 0x1ba   : > { %v6049_v16 = vadd.f32 %v6048_v59, %v5974_v1 }
 0x1bb   : > { %v6125_v60 = vpop.f32.mrf.mxu0  ;;  %v8476_v62 = vpop.f32.mrf.mxu1 }
 0x1bc   : > { %v6126_v23 = vadd.f32 %v6125_v60, %v6049_v16 }
 0x1bd   : > { %v8483_v63 = vpop.f32.mrf.mxu0 }
 0x1bf   : > { %v6198_v61 = vpop.f32.mrf.mxu1 }
 0x1c0   : > { %v6199_v2 = vadd.f32 %v6198_v61, %v6126_v23 }
 0x1c1   : > { %v6275_v5 = vpop.f32.mrf.mxu0  ;;  %v8490_v7 = vpop.f32.mrf.mxu1 }
 0x1c3   : > { %v8497_v8 = vpop.f32.mrf.mxu0 }
 0x1c5   : > { %v6356_v12 = vpop.f32.mrf.mxu1 }
 0x1c6   : > { %v6357_v13 = vadd.f32 %v6356_v12, %v6275_v5 }
 0x1c7   : > { %v6432_v15 = vpop.f32.mrf.mxu0  ;;  %v8504_v0 = vpop.f32.mrf.mxu1 }
 0x1c8   : > { %v6433_v11 = vadd.f32 %v6432_v15, %v6357_v13 }
 0x1c9   : > { %v8511_v20 = vpop.f32.mrf.mxu0 }
 0x1cb   : > { %v6507_v19 = vpop.f32.mrf.mxu1 }
 0x1cc   : > { %v6508_v14 = vadd.f32 %v6507_v19, %v6433_v11 }
 0x1cd   : > { %v6584_v21 = vpop.f32.mrf.mxu0  ;;  %v8518_v22 = vpop.f32.mrf.mxu1 }
 0x1ce   : > { %v6585_v18 = vadd.f32 %v6584_v21, %v6508_v14 }
 0x1cf   : > { %v8525_v24 = vpop.f32.mrf.mxu0 }
 0x1d1   : > { %v6657_v26 = vpop.f32.mrf.mxu1 }
 0x1d2   : > { %v6658_v27 = vadd.f32 %v6657_v26, %v6585_v18 }
 0x1d3   : > { %v6742_v29 = vpop.f32.mrf.mxu0  ;;  %v8532_v30 = vpop.f32.mrf.mxu1 }
 0x1d4   : > { %v6661_v6 = vmax.f32 %v6199_v2, %v6658_v27 }
 0x1d5   : > { %v8539_v31 = vpop.f32.mrf.mxu0 }
 0x1d6   : > { %6662 = vst.msk [vmem:[%s9401_s25 + $0x30] sm:$0xff] %vm1105_vm2, %v6661_v6 }
 0x1d7   : > { %v6823_v32 = vpop.f32.mrf.mxu1 }
 0x1d8   : > { %v6824_v42 = vadd.f32 %v6823_v32, %v6742_v29 }
 0x1d9   : > { %v6899_v33 = vpop.f32.mrf.mxu0  ;;  %v8546_v34 = vpop.f32.mrf.mxu1 }
 0x1da   : > { %v6900_v45 = vadd.f32 %v6899_v33, %v6824_v42 }
 0x1db   : > { %v8553_v17 = vpop.f32.mrf.mxu0 }
 0x1dd   : > { %v6974_v36 = vpop.f32.mrf.mxu1 }
 0x1de   : > { %v6975_v3 = vadd.f32 %v6974_v36, %v6900_v45 }
 0x1df   : > { %v7051_v37 = vpop.f32.mrf.mxu0  ;;  %v8560_v38 = vpop.f32.mrf.mxu1 }
 0x1e0   : > { %v7052_v25 = vadd.f32 %v7051_v37, %v6975_v3 }
 0x1e1   : > { %v8567_v39 = vpop.f32.mrf.mxu0 }
 0x1e3   : > { %v7124_v40 = vpop.f32.mrf.mxu1 }
 0x1e4   : > { %v7125_v28 = vadd.f32 %v7124_v40, %v7052_v25 }
 0x1e5   : > { %v7201_v41 = vpop.f32.mrf.mxu0  ;;  %v8574_v4 = vpop.f32.mrf.mxu1 }
 0x1e7   : > { %v8581_v43 = vpop.f32.mrf.mxu0 }
 0x1e9   : > { %v7282_v44 = vpop.f32.mrf.mxu1 }
 0x1ea   : > { %v7283_v9 = vadd.f32 %v7282_v44, %v7201_v41 }
 0x1eb   : > { %v7358_v46 = vpop.f32.mrf.mxu0  ;;  %v8588_v47 = vpop.f32.mrf.mxu1 }
 0x1ec   : > { %v7359_v48 = vadd.f32 %v7358_v46, %v7283_v9 }
 0x1ed   : > { %v8595_v49 = vpop.f32.mrf.mxu0 }
 0x1ef   : > { %v7433_v35 = vpop.f32.mrf.mxu1 }
 0x1f0   : > { %v7434_v50 = vadd.f32 %v7433_v35, %v7359_v48 }
 0x1f1   : > { %v7510_v51 = vpop.f32.mrf.mxu0  ;;  %v8602_v52 = vpop.f32.mrf.mxu1 }
 0x1f2   : > { %v7511_v53 = vadd.f32 %v7510_v51, %v7434_v50 }
 0x1f3   : > { %v8609_v54 = vpop.f32.mrf.mxu0 }
 0x1f5   : > { %v7583_v55 = vpop.f32.mrf.mxu1 }
 0x1f6   : > { %v7584_v56 = vadd.f32 %v7583_v55, %v7511_v53 }
 0x1f7   : > { %v8616_v57 = vpop.f32.mrf.mxu1 }
 0x1f8   : > { %v7587_v58 = vmax.f32 %v7125_v28, %v7584_v56 }
 0x1fa   : > { %7588 = vst.msk [vmem:[%s9401_s25 + $0x38] sm:$0xff] %vm1105_vm2, %v7587_v58 }
 0x1fb PF: > { %s13_s12 = sadd.s32 1, %s8633_s12  }
 0x1fc   : > { %p10_p4 = scmp.ge.s32.totalorder %s13_s12, 4  }
 0x1fe   :  { %12 = sbr.rel (!%p10_p4) target bundleno = 1 (0x1), region = 62 }

// kernel: hourglass_forward.16
= control target key start
LH: loop header
LB: loop body
LE: loop exit
PB: predicated region body
PF: predicated region fallthrough
CT: control target
= control target key end

     0   :  { %s1510_s18 = smov 0   ;;  %s1707_s0 = inlined_call_operand.vmem [shape: f32[2,16,8], index: 0, kind: input, shape index: {}]   ;;  %s1708_s1 = inlined_call_operand.vmem [shape: f32[16,1], index: 1, kind: input, shape index: {}]   ;;  %s1709_s2 = inlined_call_operand.vmem [shape: f32[16,1], index: 2, kind: input, shape index: {}]   ;;  %s1710_s3 = inlined_call_operand.vmem [shape: f32[1,8], index: 3, kind: input, shape index: {}]   ;;  %s1711_s4 = inlined_call_operand.vmem [shape: f32[1,8], index: 4, kind: input, shape index: {}]   ;;  %s1712_s5 = inlined_call_operand.vmem [shape: f32[8,4], index: 5, kind: input, shape index: {}]   ;;  %s1713_s6 = inlined_call_operand.vmem [shape: f32[1,4], index: 6, kind: input, shape index: {}]   ;;  %s1714_s7 = inlined_call_operand.vmem [shape: f32[1,4], index: 7, kind: input, shape index: {}]   ;;  %s1715_s8 = inlined_call_operand.vmem [shape: f32[1,4], index: 8, kind: input, shape index: {}]   ;;  %s1716_s9 = inlined_call_operand.vmem [shape: f32[9,4,4], index: 9, kind: input, shape index: {}]   ;;  %s1717_s10 = inlined_call_operand.vmem [shape: f32[1,4], index: 10, kind: input, shape index: {}]   ;;  %s1718_s11 = inlined_call_operand.vmem [shape: f32[1,4], index: 11, kind: input, shape index: {}]   ;;  %s1719_s12 = inlined_call_operand.vmem [shape: f32[1,4], index: 12, kind: input, shape index: {}]   ;;  %s1720_s13 = inlined_call_operand.vmem [shape: f32[4,8], index: 13, kind: input, shape index: {}]   ;;  %s1721_s14 = inlined_call_operand.vmem [shape: f32[1,8], index: 14, kind: input, shape index: {}]   ;;  %s1722_s15 = inlined_call_operand.vmem [shape: f32[2,16,8], index: 15, kind: output, shape index: {}]  }
   0x1 LB: > { %s1277_s19 = sadd.s32 4294967295, %s1425_s18   ;;  %p1281_p0 = scmp.ge.s32.totalorder %s1425_s18, 1  ;;  %s1425_s18 = sphi %s1510_s18, %s25_s18  }
   0x2   : > { %p437_p1 = scmp.lt.s32.totalorder %s1425_s18, 3 }
   0x4   : > { %p438_p2 = pnand %p1281_p0, %p437_p1 }
   0x5   : > { %p485_p3 = scmp.lt.s32.totalorder (!%p438_p2), %s1277_s19, 1 }
   0x6   : > { %441 = sbr.rel (%p438_p2) target bundleno = 683 (0x2ab), region = 80 }
   0xb   : > { %v519_v0 = vld [vmem:[%s1712_s5] sm:$0xff]  ;;  %vm532_vm0 = vcmask 1043456   ;;  %v1427_v1 = vmov 0.0   ;;  %vm1428_vm1 = vmmov 0   ;;  %s1724_s19 = smov (!%p485_p3, %s1277_s19), 1  ;;  %v1429_v4 = vmov 0  }
   0xc   : > { %1340 = vmatprep.subr.bf16.mxu0 %v1427_v1  ;;  %v520_v2 = vpack.c.bf16 %v519_v0, %v519_v0  ;;  %1342 = vmatprep.mubr.msk.bf16.mxu0 %vm1428_vm1, %v1427_v1  ;;  %v607_v3 = vld [vmem:[%s1709_s2] sm:$0xff]  ;;  %s1316_s26 = sshll.u32 %s1724_s19, 4  ;;  %v608_v8 = vld [vmem:[%s1709_s2 + $0x8] sm:$0xff]  ;;  %vm528_vm2 = vcmask 64512   ;;  %vm597_vm3 = vcmask 31744   ;;  %vm601_vm4 = vcmask 25600  }
   0xd   : > { %1418 = vset.pattern.permute.xlu1 %v1429_v4  ;;  %1417 = vset.pattern.permute.xlu0 %v1429_v4  ;;  %v605_v5 = vld [vmem:[%s1708_s1] sm:$0xff]  ;;  %v606_v9 = vld [vmem:[%s1708_s1 + $0x8] sm:$0xff]  ;;  %s489_s22 = scalar_lea.vmem %s1707_s0, %s1316_s26  ;;  %598 = vst.msk [vmem:[#allocation2] sm:$0xff] %vm597_vm3, %v1427_v1  ;;  %599 = vst.msk [vmem:[#allocation2 + $0x8] sm:$0xff] %vm597_vm3, %v1427_v1  ;;  %vm635_vm5 = vcmask 1041408   ;;  %s494_s25 = scalar_lea.vmem %s1722_s15, %s1316_s26 }
   0xe   : > { %v534_v6 = vsel %vm532_vm0, %v520_v2, 0  ;;  %731 = vperm.xlu1 %1418, %v607_v3   ;;  %613 = vperm.xlu0 %1417, %v605_v5   ;;  %v1286_v7 = vld [vmem:[%s1710_s3] ss:$0 sm:$0xff]  ;;  %v1553_v11 = vld [vmem:[%s489_s22 + $0x8] sm:$0xff]  ;;  %600 = vst.msk [vmem:[#allocation2 + $0x10] sm:$0xff] %vm597_vm3, %v1427_v1 }
   0xf   : > { %1341 = vmatpush3.bf16.msra.mxu0 %v534_v6  ;;  %1346 = vmatprep.subr.bf16.mxu1 %v1427_v1  ;;  %v1551_v10 = vld [vmem:[%s489_s22] sm:$0xff]  ;;  %v506_v14 = vmul.f32 %v1286_v7, %v1553_v11  ;;  %602 = vst.msk [vmem:[#allocation2 + $0x18] sm:$0x3] %vm601_vm4, %v1427_v1  ;;  %v1295_v42 = vld [vmem:[%s1716_s9 + $0x8] sm:$0xf] }
  0x10   : > { %1352 = vmatprep.subr.bf16.mxu0 %v1427_v1  ;;  %1348 = vmatprep.mubr.msk.bf16.mxu1 %vm1428_vm1, %v1427_v1  ;;  %v1287_v12 = vld [vmem:[%s1711_s4] ss:$0 sm:$0xff]  ;;  %v505_v13 = vmul.f32 %v1286_v7, %v1551_v10  ;;  %v1292_v20 = vld [vmem:[%s1716_s9 + $0x4] sm:$0xf]  ;;  %v1297_v43 = vld [vmem:[%s1716_s9 + $0xc] sm:$0xf]  ;;  %v744_v47 = vpack.c.bf16 %v1295_v42, %v1295_v42 }
  0x11   : > { %v515_v16 = vadd.f32 %v1287_v12, %v506_v14  ;;  %v631_v21 = vpack.c.bf16 %v1292_v20, %v1292_v20  ;;  %v624_v23 = vld [vmem:[%s1716_s9] sm:$0xf]  ;;  %v801_v49 = vpack.c.bf16 %v1297_v43, %v1297_v43  ;;  %v1299_v60 = vld [vmem:[%s1716_s9 + $0x10] sm:$0xf]  ;;  %v1301_v62 = vld [vmem:[%s1716_s9 + $0x14] sm:$0xf] }
  0x12   : > { %736 = vperm.xlu1 %1418, %v608_v8   ;;  %618 = vperm.xlu0 %1417, %v606_v9   ;;  %v514_v15 = vadd.f32 %v1287_v12, %v505_v13  ;;  %v625_v24 = vpack.c.bf16 %v624_v23, %v624_v23  ;;  %v1288_v26 = vld [vmem:[%s1713_s6] ss:$0 sm:$0xff]  ;;  %v749_v55 = vsel %vm635_vm5, %v744_v47, 0  ;;  %v856_v3 = vpack.c.bf16 %v1299_v60, %v1299_v60  ;;  %v1303_v14 = vld [vmem:[%s1716_s9 + $0x18] sm:$0xf] }
  0x13   : > { %v517_v18 = vmax.f32 %v515_v16, 0.0  ;;  %v637_v22 = vsel %vm635_vm5, %v631_v21, 0  ;;  %v1290_v28 = vld [vmem:[%s1714_s7] ss:$0 sm:$0xff]  ;;  %v806_v59 = vsel %vm635_vm5, %v801_v49, 0  ;;  %v913_v5 = vpack.c.bf16 %v1301_v62, %v1301_v62 }
  0x14   : > { %v516_v17 = vmax.f32 %v514_v15, 0.0  ;;  %1347 = vmatpush3.bf16.msra.mxu1 %v637_v22  ;;  %v684_v25 = vsel %vm635_vm5, %v625_v24, 0  ;;  %v1291_v30 = vld [vmem:[%s1715_s8] ss:$0 sm:$0xff]  ;;  %v861_v9 = vsel %vm635_vm5, %v856_v3, 0 }
  0x15   : > { %1358 = vmatprep.subr.bf16.mxu1 %v1427_v1  ;;  %v918_v13 = vsel %vm635_vm5, %v913_v5, 0 }
  0x16   : > { %v518_v19 = vpack.c.bf16 %v517_v18, %v516_v17  ;;  %v1305_v17 = vld [vmem:[%s1716_s9 + $0x1c] sm:$0xf]  ;;  %v970_v18 = vpack.c.bf16 %v1303_v14, %v1303_v14 }
  0x17   : > { %v1025_v22 = vpack.c.bf16 %v1305_v17, %v1305_v17 }
  0x18   : > { %1343 = vmatmul.mubr.msk.bf16.vlgmr.msra.gmra.mxu0 %vm528_vm2, %v518_v19 }
  0x19   : > { %1354 = vmatprep.mubr.msk.bf16.mxu0 %vm1428_vm1, %v1427_v1  ;;  %1353 = vmatpush3.bf16.msra.mxu0 %v684_v25  ;;  %v975_v25 = vsel %vm635_vm5, %v970_v18, 0 }
  0x1a   : > { %1364 = vmatprep.subr.bf16.mxu0 %v1427_v1 }
  0x89   : > { %v1591_v41 = vpop.permute.xlu0 %613  ;;  %v1599_v44 = vpop.permute.xlu1 %731 }
  0x8d   : > { %v1601_v46 = vpop.permute.xlu0 %618  ;;  %v1611_v57 = vpop.permute.xlu1 %736 }
  0xd8   : > { %v570_v27 = vpop.f32.mrf.mxu0 }
  0xd9   : > { %v571_v29 = vadd.f32 %v1288_v26, %v570_v27 }
  0xda   : > { %v1344_v31 = vpop.f32.mrf.mxu0 }
  0xdb   : > { %v584_v32 = vmul.f32 %v1290_v28, %v571_v29  ;;  %v1307_v29 = vld [vmem:[%s1716_s9 + $0x20] sm:$0xf] }
  0xdc   : > { %v573_v33 = vpop.f32.mrf.mxu0 }
  0xdd   : > { %v593_v34 = vadd.f32 %v1291_v30, %v584_v32  ;;  %v574_v35 = vadd.f32 %v1288_v26, %v573_v33  ;;  %v1082_v32 = vpack.c.bf16 %v1307_v29, %v1307_v29 }
  0xde   : > { %v1345_v36 = vpop.f32.mrf.mxu0 }
  0xdf   : > { %v595_v37 = vmax.f32 %v593_v34, 0.0  ;;  %v585_v38 = vmul.f32 %v1290_v28, %v574_v35  ;;  %v1030_v28 = vsel %vm635_vm5, %v1025_v22, 0  ;;  %v1087_v35 = vsel %vm635_vm5, %v1082_v32, 0 }
  0xe1   : > { %603 = vst.msk [vmem:[#allocation2 + $0x5] sm:$0xff] %vm597_vm3, %v595_v37  ;;  %v594_v39 = vadd.f32 %v1291_v30, %v585_v38 }
  0xe3   : > { %v596_v40 = vmax.f32 %v594_v39, 0.0 }
  0xe5   : > { %604 = vst.msk [vmem:[#allocation2 + $0xd] sm:$0xff] %vm597_vm3, %v596_v40 }
  0xe8   : > { %v609_v45 = vld [vmem:[#allocation2] sm:$0xff] }
  0xe9   : > { %v621_v50 = vmul.f32 %v1591_v41, %v609_v45  ;;  %v626_v52 = vld [vmem:[#allocation2 + $0x1] sm:$0xff] }
  0xea   : > { %v727_v63 = vld [vmem:[#allocation2 + $0x2] sm:$0xff] }
  0xeb   : > { %v794_v0 = vld [vmem:[#allocation2 + $0x4] sm:$0xff]  ;;  %v739_v6 = vmul.f32 %v1599_v44, %v727_v63 }
  0xec   : > { %v963_v48 = vld [vmem:[#allocation2 + $0x8] sm:$0xff]  ;;  %v796_v7 = vmul.f32 %v794_v0, %v1591_v41  ;;  %v964_v27 = vld [vmem:[#allocation2 + $0x10] sm:$0xff] }
  0xed   : > { %v622_v51 = vmul.f32 %v963_v48, %v1601_v46  ;;  %v1605_v53 = vld [vmem:[#allocation2 + $0x9] sm:$0xff]  ;;  %v965_v30 = vmul.f32 %v963_v48, %v1591_v41  ;;  %v966_v31 = vmul.f32 %v964_v27, %v1601_v46  ;;  %v1021_v33 = vld [vmem:[#allocation2 + $0x11] sm:$0xff]  ;;  %v1162_v41 = vld [vmem:[%s1720_s13] sm:$0xf] }
  0xee   : > { %v628_v54 = vpack.c.bf16 %v1605_v53, %v626_v52  ;;  %v1609_v56 = vld [vmem:[#allocation2 + $0xa] sm:$0xff]  ;;  %v1076_v36 = vld [vmem:[#allocation2 + $0x12] sm:$0xff]  ;;  %v1022_v37 = vpack.c.bf16 %v1021_v33, %v1605_v53  ;;  %v1163_v42 = vpack.c.bf16 %v1162_v41, %v1162_v41 }
  0xef   : > { %v623_v58 = vpack.c.bf16 %v622_v51, %v621_v50  ;;  %v795_v61 = vld [vmem:[#allocation2 + $0xc] sm:$0xff]  ;;  %v740_v2 = vmul.f32 %v1609_v56, %v1611_v57  ;;  %v967_v34 = vpack.c.bf16 %v966_v31, %v965_v30  ;;  %v1077_v38 = vmul.f32 %v1609_v56, %v1599_v44  ;;  %v1310_v30 = vld [vmem:[%s1718_s11] ss:$0 sm:$0xff] }
  0xf0   : > { %1349 = vmatmul.mubr.msk.bf16.vlgmr.msra.gmra.mxu1 %vm597_vm3, %v628_v54  ;;  %v797_v4 = vmul.f32 %v795_v61, %v1601_v46  ;;  %v906_v15 = vld [vmem:[#allocation2 + $0x6] sm:$0xff]  ;;  %v907_v16 = vld [vmem:[#allocation2 + $0xe] sm:$0xff]  ;;  %v1078_v39 = vmul.f32 %v1076_v36, %v1611_v57  ;;  %v1175_v43 = vsel %vm635_vm5, %v1163_v42, 0 }
  0xf1   : > { %1359 = vmatpush3.bf16.msra.mxu1 %v749_v55  ;;  %1355 = vmatmul.mubr.msk.bf16.vlgmr.msra.gmra.mxu0 %vm597_vm3, %v623_v58  ;;  %v741_v8 = vpack.c.bf16 %v740_v2, %v739_v6  ;;  %v908_v19 = vmul.f32 %v906_v15, %v1599_v44  ;;  %v909_v20 = vmul.f32 %v907_v16, %v1611_v57  ;;  %v852_v21 = vld [vmem:[#allocation2 + $0xd] sm:$0xff]  ;;  %v851_v23 = vld [vmem:[#allocation2 + $0x5] sm:$0xff] }
  0xf2   : > { %1365 = vmatpush3.bf16.msra.mxu0 %v806_v59  ;;  %1360 = vmatprep.mubr.msk.bf16.mxu1 %vm1428_vm1, %v1427_v1  ;;  %v798_v12 = vpack.c.bf16 %v797_v4, %v796_v7  ;;  %v853_v24 = vpack.c.bf16 %v852_v21, %v851_v23  ;;  %v1079_v40 = vpack.c.bf16 %v1078_v39, %v1077_v38 }
  0xf3   : > { %1370 = vmatprep.subr.bf16.mxu1 %v1427_v1  ;;  %1366 = vmatprep.mubr.msk.bf16.mxu0 %vm1428_vm1, %v1427_v1  ;;  %v910_v26 = vpack.c.bf16 %v909_v20, %v908_v19 }
  0xf4   : > { %1376 = vmatprep.subr.bf16.mxu0 %v1427_v1 }
  0xf8   : > { %1361 = vmatmul.mubr.msk.bf16.vlgmr.msra.gmra.mxu1 %vm597_vm3, %v741_v8 }
  0xf9   : > { %1371 = vmatpush3.bf16.msra.mxu1 %v861_v9  ;;  %1367 = vmatmul.mubr.msk.bf16.vlgmr.msra.gmra.mxu0 %vm597_vm3, %v798_v12 }
  0xfa   : > { %1377 = vmatpush3.bf16.msra.mxu0 %v918_v13  ;;  %1372 = vmatprep.mubr.msk.bf16.mxu1 %vm1428_vm1, %v1427_v1 }
  0xfb   : > { %1382 = vmatprep.subr.bf16.mxu1 %v1427_v1  ;;  %1378 = vmatprep.mubr.msk.bf16.mxu0 %vm1428_vm1, %v1427_v1 }
  0xfc   : > { %1388 = vmatprep.subr.bf16.mxu0 %v1427_v1 }
 0x100   : > { %1373 = vmatmul.mubr.msk.bf16.vlgmr.msra.gmra.mxu1 %vm597_vm3, %v853_v24 }
 0x101   : > { %1383 = vmatpush3.bf16.msra.mxu1 %v975_v25  ;;  %1379 = vmatmul.mubr.msk.bf16.vlgmr.msra.gmra.mxu0 %vm597_vm3, %v910_v26 }
 0x102   : > { %1389 = vmatpush3.bf16.msra.mxu0 %v1030_v28  ;;  %1384 = vmatprep.mubr.msk.bf16.mxu1 %vm1428_vm1, %v1427_v1  ;;  %v1309_v28 = vld [vmem:[%s1717_s10] ss:$0 sm:$0xff] }
 0x103   : > { %1394 = vmatprep.subr.bf16.mxu1 %v1427_v1  ;;  %1390 = vmatprep.mubr.msk.bf16.mxu0 %vm1428_vm1, %v1427_v1 }
 0x104   : > { %1400 = vmatprep.subr.bf16.mxu0 %v1427_v1 }
 0x108   : > { %1385 = vmatmul.mubr.msk.bf16.vlgmr.msra.gmra.mxu1 %vm597_vm3, %v967_v34 }
 0x109   : > { %1395 = vmatpush3.bf16.msra.mxu1 %v1087_v35  ;;  %1391 = vmatmul.mubr.msk.bf16.vlgmr.msra.gmra.mxu0 %vm597_vm3, %v1022_v37  ;;  %v1311_v37 = vld [vmem:[%s1719_s12] ss:$0 sm:$0xff] }
 0x10a   : > { %1396 = vmatprep.mubr.msk.bf16.mxu1 %vm1428_vm1, %v1427_v1  ;;  %1402 = vmatprep.mubr.msk.bf16.mxu0 %vm1428_vm1, %v1427_v1 }
 0x10b   : > { %1401 = vmatpush3.bf16.msra.mxu0 %v1175_v43 }
 0x110   : > { %1397 = vmatmul.mubr.msk.bf16.vlgmr.msra.gmra.mxu1 %vm597_vm3, %v1079_v40 }
 0x1b0   : > { %v673_v44 = vpop.f32.mrf.mxu1 }
 0x1b1   : > { %v720_v45 = vpop.f32.mrf.mxu0 }
 0x1b2   : > { %v1350_v46 = vpop.f32.mrf.mxu1  ;;  %v721_v56 = vadd.f32 %v720_v45, %v673_v44 }
 0x1b3   : > { %v1356_v47 = vpop.f32.mrf.mxu0  ;;  %v1312_v46 = vld [vmem:[%s1721_s14] ss:$0 sm:$0xff] }
 0x1b4   : > { %v676_v48 = vpop.f32.mrf.mxu1 }
 0x1b5   : > { %v723_v49 = vpop.f32.mrf.mxu0 }
 0x1b6   : > { %v1351_v50 = vpop.f32.mrf.mxu1  ;;  %v724_v62 = vadd.f32 %v723_v49, %v676_v48 }
 0x1b7   : > { %v1357_v51 = vpop.f32.mrf.mxu0 }
 0x1b8   : > { %v785_v1 = vpop.f32.mrf.mxu1 }
 0x1b9   : > { %v842_v52 = vpop.f32.mrf.mxu0  ;;  %v792_v59 = vadd.f32 %v785_v1, %v721_v56 }
 0x1ba   : > { %v1362_v53 = vpop.f32.mrf.mxu1 }
 0x1bb   : > { %v1368_v54 = vpop.f32.mrf.mxu0  ;;  %v849_v2 = vadd.f32 %v842_v52, %v792_v59 }
 0x1bc   : > { %v788_v55 = vpop.f32.mrf.mxu1 }
 0x1bd   : > { %v845_v57 = vpop.f32.mrf.mxu0  ;;  %v793_v3 = vadd.f32 %v788_v55, %v724_v62 }
 0x1be   : > { %v1363_v58 = vpop.f32.mrf.mxu1 }
 0x1bf   : > { %v1369_v60 = vpop.f32.mrf.mxu0  ;;  %v850_v9 = vadd.f32 %v845_v57, %v793_v3 }
 0x1c0   : > { %v897_v61 = vpop.f32.mrf.mxu1 }
 0x1c1   : > { %v954_v63 = vpop.f32.mrf.mxu0  ;;  %v904_v6 = vadd.f32 %v897_v61, %v849_v2 }
 0x1c2   : > { %v1374_v0 = vpop.f32.mrf.mxu1 }
 0x1c3   : > { %v1380_v4 = vpop.f32.mrf.mxu0  ;;  %v961_v14 = vadd.f32 %v954_v63, %v904_v6 }
 0x1c4   : > { %v900_v5 = vpop.f32.mrf.mxu1 }
 0x1c5   : > { %v957_v7 = vpop.f32.mrf.mxu0  ;;  %v905_v15 = vadd.f32 %v900_v5, %v850_v9 }
 0x1c6   : > { %v1375_v8 = vpop.f32.mrf.mxu1 }
 0x1c7   : > { %v1381_v12 = vpop.f32.mrf.mxu0  ;;  %v962_v21 = vadd.f32 %v957_v7, %v905_v15 }
 0x1c8   : > { %v1011_v13 = vpop.f32.mrf.mxu1 }
 0x1c9   : > { %v1066_v16 = vpop.f32.mrf.mxu0  ;;  %v1018_v18 = vadd.f32 %v1011_v13, %v961_v14 }
 0x1ca   : > { %v1386_v17 = vpop.f32.mrf.mxu1 }
 0x1cb   : > { %v1392_v19 = vpop.f32.mrf.mxu0  ;;  %v1073_v24 = vadd.f32 %v1066_v16, %v1018_v18 }
 0x1cc   : > { %v1014_v20 = vpop.f32.mrf.mxu1 }
 0x1cd   : > { %v1069_v22 = vpop.f32.mrf.mxu0  ;;  %v1019_v25 = vadd.f32 %v1014_v20, %v962_v21 }
 0x1ce   : > { %v1387_v23 = vpop.f32.mrf.mxu1 }
 0x1cf   : > { %v1393_v26 = vpop.f32.mrf.mxu0  ;;  %v1074_v32 = vadd.f32 %v1069_v22, %v1019_v25 }
 0x1d0   : > { %v1123_v27 = vpop.f32.mrf.mxu1 }
 0x1d1   : > { %v1130_v29 = vadd.f32 %v1123_v27, %v1073_v24 }
 0x1d2   : > { %v1398_v31 = vpop.f32.mrf.mxu1 }
 0x1d3   : > { %v1139_v33 = vadd.f32 %v1309_v28, %v1130_v29 }
 0x1d4   : > { %v1126_v34 = vpop.f32.mrf.mxu1 }
 0x1d5   : > { %v1148_v35 = vmul.f32 %v1310_v30, %v1139_v33  ;;  %v1131_v36 = vadd.f32 %v1126_v34, %v1074_v32 }
 0x1d6   : > { %v1399_v38 = vpop.f32.mrf.mxu1 }
 0x1d7   : > { %v1140_v39 = vadd.f32 %v1309_v28, %v1131_v36  ;;  %v1157_v40 = vadd.f32 %v1311_v37, %v1148_v35 }
 0x1d9   : > { %v1149_v41 = vmul.f32 %v1310_v30, %v1140_v39  ;;  %v1159_v43 = vmax.f32 %v1157_v40, 0.0 }
 0x1db   : > { %v1158_v42 = vadd.f32 %v1311_v37, %v1149_v41 }
 0x1dd   : > { %v1160_v44 = vmax.f32 %v1158_v42, 0.0 }
 0x1df   : > { %v1161_v45 = vpack.c.bf16 %v1160_v44, %v1159_v43 }
 0x1e1   : > { %1403 = vmatmul.mubr.msk.bf16.vlgmr.msra.gmra.mxu0 %vm597_vm3, %v1161_v45 }
 0x2a1   : > { %v1211_v47 = vpop.f32.mrf.mxu0 }
 0x2a2   : > { %v1212_v48 = vadd.f32 %v1312_v46, %v1211_v47 }
 0x2a3   : > { %v1404_v49 = vpop.f32.mrf.mxu0 }
 0x2a4   : > { %v1218_v50 = vadd.f32 %v1212_v48, %v1551_v10 }
 0x2a5   : > { %v1214_v51 = vpop.f32.mrf.mxu0 }
 0x2a6   : > { %1220 = vst.msk [vmem:[%s494_s25] sm:$0xff] %vm528_vm2, %v1218_v50  ;;  %v1215_v1 = vadd.f32 %v1312_v46, %v1214_v51 }
 0x2a7   : > { %v1405_v52 = vpop.f32.mrf.mxu0 }
 0x2a8   : > { %v1219_v53 = vadd.f32 %v1215_v1, %v1553_v11 }
 0x2aa   : > { %1221 = vst.msk [vmem:[%s494_s25 + $0x8] sm:$0xff] %vm528_vm2, %v1219_v53 }
 0x2ab PF: > { %s25_s18 = sadd.s32 1, %s1425_s18  }
 0x2ac   : > { %p22_p4 = scmp.ge.s32.totalorder %s25_s18, 4  }
 0x2ae   :  { %24 = sbr.rel (!%p22_p4) target bundleno = 1 (0x1), region = 118 }

// kernel: hourglass_forward.19
= control target key start
LH: loop header
LB: loop body
LE: loop exit
PB: predicated region body
PF: predicated region fallthrough
CT: control target
= control target key end

     0   :  { %s2313_s12 = smov 0   ;;  %s2498_s0 = inlined_call_operand.vmem [shape: f32[2,64,8], index: 0, kind: input, shape index: {}]   ;;  %s2499_s1 = inlined_call_operand.vmem [shape: f32[2,16,8], index: 1, kind: input, shape index: {}]   ;;  %s2500_s2 = inlined_call_operand.vmem [shape: f32[8,4], index: 2, kind: input, shape index: {}]   ;;  %s2501_s3 = inlined_call_operand.vmem [shape: f32[2,64,8], index: 3, kind: output, shape index: {}]  }
   0x1 LB: > { %s2089_s13 = sadd.s32 4294967295, %s2289_s12   ;;  %p2093_p0 = scmp.ge.s32.totalorder %s2289_s12, 1  ;;  %s2289_s12 = sphi %s2313_s12, %s13_s12  }
   0x2   : > { %p147_p1 = scmp.lt.s32.totalorder %s2289_s12, 3 }
   0x4   : > { %p148_p2 = pnand %p2093_p0, %p147_p1 }
   0x5   : > { %p176_p3 = scmp.lt.s32.totalorder (!%p148_p2), %s2089_s13, 1 }
   0x6   : > { %151 = sbr.rel (%p148_p2) target bundleno = 271 (0x10f), region = 32 }
   0xb   : > { %v191_v0 = vld [vmem:[%s2500_s2] sm:$0xff]  ;;  %vm193_vm0 = vcmask 31744   ;;  %v2291_v1 = vmov 0.0   ;;  %vm2292_vm1 = vmmov 0   ;;  %s2503_s13 = smov (!%p176_p3, %s2089_s13), 1  ;;  %vm197_vm2 = vcmask 1043456  }
   0xc   : > { %2153 = vmatprep.subr.mxu0 %v2291_v1  ;;  %2155 = vmatprep.mubr.msk.f32.mxu0 %vm2292_vm1, %v2291_v1  ;;  %v195_v2 = vsel %vm193_vm0, %v191_v0, 0  ;;  %s2103_s16 = sshll.u32 %s2503_s13, 4  ;;  %s2102_s20 = sshll.u32 %s2503_s13, 6  ;;  %vm649_vm3 = vcmask 64512  }
   0xd   : > { %v2329_v3 = vand.u32 4294901760, %v195_v2  ;;  %2158 = vmatprep.subr.mxu1 %v2291_v1  ;;  %2160 = vmatprep.mubr.msk.f32.mxu1 %vm2292_vm1, %v2291_v1  ;;  %s2341_s19 = scalar_lea.vmem %s2499_s1, %s2103_s16  ;;  %s2464_s23 = scalar_lea.vmem %s2498_s0, %s2102_s20 }
   0xe   : > { %v192_v5 = vld [vmem:[%s2341_s19] sm:$0xf]  ;;  %v654_v7 = vld [vmem:[%s2341_s19 + $0x4] sm:$0xf]  ;;  %v1110_v18 = vld [vmem:[%s2341_s19 + $0x8] sm:$0xf]  ;;  %s2471_s26 = scalar_lea.vmem %s2501_s3, %s2102_s20 }
   0xf   : > { %v2336_v4 = vsub.f32 %v195_v2, %v2329_v3  ;;  %v199_v8 = vsel %vm197_vm2, %v192_v5, 0  ;;  %v656_v9 = vsel %vm197_vm2, %v654_v7, 0  ;;  %v1112_v21 = vsel %vm197_vm2, %v1110_v18, 0  ;;  %v1566_v26 = vld [vmem:[%s2341_s19 + $0xc] sm:$0xf]  ;;  %v647_v52 = vld [vmem:[%s2464_s23] sm:$0xff] }
  0x10   : > { %v232_v10 = vand.u32 4294901760, %v199_v8  ;;  %v2352_v12 = vand.u32 4294901760, %v656_v9  ;;  %v2372_v23 = vand.u32 4294901760, %v1112_v21  ;;  %v1568_v28 = vsel %vm197_vm2, %v1566_v26, 0  ;;  %v651_v53 = vld [vmem:[%s2464_s23 + $0x8] sm:$0xff] }
  0x11   : > { %v2345_v6 = vand.u32 4294901760, %v2336_v4  ;;  %v1601_v30 = vand.u32 4294901760, %v1568_v28 }
  0x12   : > { %2154 = vmatpush3.msra.mxu0 %v232_v10  ;;  %v309_v14 = vsub.f32 %v199_v8, %v232_v10  ;;  %v766_v16 = vsub.f32 %v656_v9, %v2352_v12  ;;  %v1222_v25 = vsub.f32 %v1112_v21, %v2372_v23  ;;  %v1104_v9 = vld [vmem:[%s2464_s23 + $0x10] sm:$0xff] }
  0x13   : > { %v270_v11 = vsub.f32 %v2336_v4, %v2345_v6  ;;  %2163 = vmatprep.subr.mxu0 %v2291_v1  ;;  %v1678_v32 = vsub.f32 %v1568_v28, %v1601_v30 }
  0x14   : > { %v310_v15 = vand.u32 4294901760, %v309_v14  ;;  %v767_v20 = vand.u32 4294901760, %v766_v16  ;;  %v1223_v27 = vand.u32 4294901760, %v1222_v25 }
  0x15   : > { %v2354_v13 = vand.u32 4294901760, %v270_v11  ;;  %v1679_v33 = vand.u32 4294901760, %v1678_v32 }
  0x16   : > { %v311_v17 = vsub.f32 %v309_v14, %v310_v15  ;;  %v768_v22 = vsub.f32 %v766_v16, %v767_v20  ;;  %v1224_v29 = vsub.f32 %v1222_v25, %v1223_v27 }
  0x17   : > { %2156 = vmatmul.mubr.f32.vlgmr.msra.gmra.mxu0 %v2354_v13  ;;  %v1680_v34 = vsub.f32 %v1678_v32, %v1679_v33 }
  0x18   : > { %2164 = vmatpush3.msra.mxu0 %v309_v14  ;;  %2165 = vmatprep.mubr.msk.f32.mxu0 %vm2292_vm1, %v2291_v1  ;;  %v312_v19 = vand.u32 4294901760, %v311_v17  ;;  %v769_v24 = vand.u32 4294901760, %v768_v22  ;;  %v1225_v31 = vand.u32 4294901760, %v1224_v29 }
  0x19   : > { %2173 = vmatprep.subr.mxu0 %v2291_v1  ;;  %v1681_v35 = vand.u32 4294901760, %v1680_v34 }
  0x1a   : > { %2159 = vmatpush3.msra.mxu1 %v312_v19 }
  0x1b   : > { %2166 = vmatmul.mubr.f32.vlgmr.msra.gmra.mxu0 %v2336_v4  ;;  %2161 = vmatmul.mubr.f32.vlgmr.msra.gmra.mxu1 %v2329_v3 }
  0x1c   : > { %2174 = vmatpush3.msra.mxu0 %v310_v15  ;;  %2175 = vmatprep.mubr.msk.f32.mxu0 %vm2292_vm1, %v2291_v1 }
  0x1d   : > { %2183 = vmatprep.subr.mxu0 %v2291_v1  ;;  %2168 = vmatprep.subr.mxu1 %v2291_v1 }
  0x1e   : > { %2169 = vmatpush3.msra.mxu1 %v232_v10  ;;  %2170 = vmatprep.mubr.msk.f32.mxu1 %vm2292_vm1, %v2291_v1 }
  0x1f   : > { %2178 = vmatprep.subr.mxu1 %v2291_v1  ;;  %2176 = vmatmul.mubr.f32.vlgmr.msra.gmra.mxu0 %v2329_v3 }
  0x20   : > { %2184 = vmatpush3.msra.mxu0 %v2352_v12  ;;  %2185 = vmatprep.mubr.msk.f32.mxu0 %vm2292_vm1, %v2291_v1 }
  0x21   : > { %2171 = vmatmul.mubr.f32.vlgmr.msra.gmra.mxu1 %v2345_v6  ;;  %2193 = vmatprep.subr.mxu0 %v2291_v1 }
  0x22   : > { %2179 = vmatpush3.msra.mxu1 %v232_v10  ;;  %2180 = vmatprep.mubr.msk.f32.mxu1 %vm2292_vm1, %v2291_v1  ;;  %v1107_v10 = vld [vmem:[%s2464_s23 + $0x18] sm:$0xff] }
  0x23   : > { %2188 = vmatprep.subr.mxu1 %v2291_v1  ;;  %2186 = vmatmul.mubr.f32.vlgmr.msra.gmra.mxu0 %v2354_v13 }
  0x24   : > { %2194 = vmatpush3.msra.mxu0 %v766_v16  ;;  %2195 = vmatprep.mubr.msk.f32.mxu0 %vm2292_vm1, %v2291_v1 }
  0x25   : > { %2181 = vmatmul.mubr.f32.vlgmr.msra.gmra.mxu1 %v2329_v3  ;;  %2203 = vmatprep.subr.mxu0 %v2291_v1 }
  0x26   : > { %2189 = vmatpush3.msra.mxu1 %v769_v24  ;;  %2190 = vmatprep.mubr.msk.f32.mxu1 %vm2292_vm1, %v2291_v1 }
  0x27   : > { %2198 = vmatprep.subr.mxu1 %v2291_v1  ;;  %2196 = vmatmul.mubr.f32.vlgmr.msra.gmra.mxu0 %v2336_v4 }
  0x28   : > { %2204 = vmatpush3.msra.mxu0 %v767_v20  ;;  %2205 = vmatprep.mubr.msk.f32.mxu0 %vm2292_vm1, %v2291_v1 }
  0x29   : > { %2191 = vmatmul.mubr.f32.vlgmr.msra.gmra.mxu1 %v2329_v3  ;;  %2213 = vmatprep.subr.mxu0 %v2291_v1 }
  0x2a   : > { %2199 = vmatpush3.msra.mxu1 %v2352_v12  ;;  %2200 = vmatprep.mubr.msk.f32.mxu1 %vm2292_vm1, %v2291_v1 }
  0x2b   : > { %2208 = vmatprep.subr.mxu1 %v2291_v1  ;;  %2206 = vmatmul.mubr.f32.vlgmr.msra.gmra.mxu0 %v2329_v3 }
  0x2c   : > { %2214 = vmatpush3.msra.mxu0 %v2372_v23  ;;  %2215 = vmatprep.mubr.msk.f32.mxu0 %vm2292_vm1, %v2291_v1 }
  0x2d   : > { %2201 = vmatmul.mubr.f32.vlgmr.msra.gmra.mxu1 %v2345_v6  ;;  %2223 = vmatprep.subr.mxu0 %v2291_v1 }
  0x2e   : > { %2209 = vmatpush3.msra.mxu1 %v2352_v12  ;;  %2210 = vmatprep.mubr.msk.f32.mxu1 %vm2292_vm1, %v2291_v1 }
  0x2f   : > { %2218 = vmatprep.subr.mxu1 %v2291_v1  ;;  %2216 = vmatmul.mubr.f32.vlgmr.msra.gmra.mxu0 %v2354_v13 }
  0x30   : > { %2224 = vmatpush3.msra.mxu0 %v1222_v25  ;;  %2225 = vmatprep.mubr.msk.f32.mxu0 %vm2292_vm1, %v2291_v1 }
  0x31   : > { %2211 = vmatmul.mubr.f32.vlgmr.msra.gmra.mxu1 %v2329_v3  ;;  %2233 = vmatprep.subr.mxu0 %v2291_v1 }
  0x32   : > { %2219 = vmatpush3.msra.mxu1 %v1225_v31  ;;  %2220 = vmatprep.mubr.msk.f32.mxu1 %vm2292_vm1, %v2291_v1  ;;  %v1563_v31 = vld [vmem:[%s2464_s23 + $0x28] sm:$0xff] }
  0x33   : > { %2228 = vmatprep.subr.mxu1 %v2291_v1  ;;  %2226 = vmatmul.mubr.f32.vlgmr.msra.gmra.mxu0 %v2336_v4 }
  0x34   : > { %2234 = vmatpush3.msra.mxu0 %v1223_v27  ;;  %2235 = vmatprep.mubr.msk.f32.mxu0 %vm2292_vm1, %v2291_v1 }
  0x35   : > { %2221 = vmatmul.mubr.f32.vlgmr.msra.gmra.mxu1 %v2329_v3  ;;  %2243 = vmatprep.subr.mxu0 %v2291_v1 }
  0x36   : > { %2229 = vmatpush3.msra.mxu1 %v2372_v23  ;;  %2230 = vmatprep.mubr.msk.f32.mxu1 %vm2292_vm1, %v2291_v1 }
  0x37   : > { %2238 = vmatprep.subr.mxu1 %v2291_v1  ;;  %2236 = vmatmul.mubr.f32.vlgmr.msra.gmra.mxu0 %v2329_v3 }
  0x38   : > { %2244 = vmatpush3.msra.mxu0 %v1601_v30  ;;  %2245 = vmatprep.mubr.msk.f32.mxu0 %vm2292_vm1, %v2291_v1 }
  0x39   : > { %2231 = vmatmul.mubr.f32.vlgmr.msra.gmra.mxu1 %v2345_v6  ;;  %2253 = vmatprep.subr.mxu0 %v2291_v1 }
  0x3a   : > { %2239 = vmatpush3.msra.mxu1 %v2372_v23  ;;  %2240 = vmatprep.mubr.msk.f32.mxu1 %vm2292_vm1, %v2291_v1 }
  0x3b   : > { %2248 = vmatprep.subr.mxu1 %v2291_v1  ;;  %2246 = vmatmul.mubr.f32.vlgmr.msra.gmra.mxu0 %v2354_v13 }
  0x3c   : > { %2254 = vmatpush3.msra.mxu0 %v1678_v32  ;;  %2255 = vmatprep.mubr.msk.f32.mxu0 %vm2292_vm1, %v2291_v1 }
  0x3d   : > { %2241 = vmatmul.mubr.f32.vlgmr.msra.gmra.mxu1 %v2329_v3  ;;  %2263 = vmatprep.subr.mxu0 %v2291_v1 }
  0x3e   : > { %2249 = vmatpush3.msra.mxu1 %v1681_v35  ;;  %2250 = vmatprep.mubr.msk.f32.mxu1 %vm2292_vm1, %v2291_v1 }
  0x3f   : > { %2258 = vmatprep.subr.mxu1 %v2291_v1  ;;  %2256 = vmatmul.mubr.f32.vlgmr.msra.gmra.mxu0 %v2336_v4 }
  0x40   : > { %2264 = vmatpush3.msra.mxu0 %v1679_v33  ;;  %2265 = vmatprep.mubr.msk.f32.mxu0 %vm2292_vm1, %v2291_v1 }
  0x41   : > { %2251 = vmatmul.mubr.f32.vlgmr.msra.gmra.mxu1 %v2329_v3 }
  0x42   : > { %2259 = vmatpush3.msra.mxu1 %v1601_v30  ;;  %2260 = vmatprep.mubr.msk.f32.mxu1 %vm2292_vm1, %v2291_v1 }
  0x43   : > { %2268 = vmatprep.subr.mxu1 %v2291_v1  ;;  %2266 = vmatmul.mubr.f32.vlgmr.msra.gmra.mxu0 %v2329_v3 }
  0x45   : > { %2261 = vmatmul.mubr.f32.vlgmr.msra.gmra.mxu1 %v2345_v6 }
  0x46   : > { %2269 = vmatpush3.msra.mxu1 %v1601_v30  ;;  %2270 = vmatprep.mubr.msk.f32.mxu1 %vm2292_vm1, %v2291_v1  ;;  %v1560_v30 = vld [vmem:[%s2464_s23 + $0x20] sm:$0xff] }
  0x49   : > { %2271 = vmatmul.mubr.f32.vlgmr.msra.gmra.mxu1 %v2329_v3 }
  0xd7   : > { %v273_v36 = vpop.f32.mrf.mxu0 }
  0xd9   : > { %v2157_v37 = vpop.f32.mrf.mxu0 }
  0xdb   : > { %v423_v38 = vpop.f32.mrf.mxu0  ;;  %v349_v40 = vpop.f32.mrf.mxu1 }
  0xdc   : > { %v350_v41 = vadd.f32 %v349_v40, %v273_v36 }
  0xdd   : > { %v2167_v39 = vpop.f32.mrf.mxu0  ;;  %v2162_v42 = vpop.f32.mrf.mxu1 }
  0xde   : > { %v424_v44 = vadd.f32 %v423_v38, %v350_v41 }
  0xdf   : > { %v571_v43 = vpop.f32.mrf.mxu0 }
  0xe1   : > { %v497_v45 = vpop.f32.mrf.mxu1  ;;  %v2177_v46 = vpop.f32.mrf.mxu0 }
  0xe2   : > { %v498_v47 = vadd.f32 %v497_v45, %v424_v44 }
  0xe3   : > { %v2172_v48 = vpop.f32.mrf.mxu1  ;;  %v730_v49 = vpop.f32.mrf.mxu0 }
  0xe4   : > { %v572_v50 = vadd.f32 %v571_v43, %v498_v47 }
  0xe5   : > { %v643_v51 = vpop.f32.mrf.mxu1  ;;  %v2187_v54 = vpop.f32.mrf.mxu0 }
  0xe6   : > { %v644_v55 = vadd.f32 %v643_v51, %v572_v50  ;;  %v2016_v50 = vld [vmem:[%s2464_s23 + $0x30] sm:$0xff]  ;;  %v2019_v51 = vld [vmem:[%s2464_s23 + $0x38] sm:$0xff] }
  0xe7   : > { %v2182_v56 = vpop.f32.mrf.mxu1  ;;  %v880_v57 = vpop.f32.mrf.mxu0 }
  0xe8   : > { %v648_v58 = vadd.f32 %v647_v52, %v644_v55  ;;  %v652_v59 = vadd.f32 %v651_v53, %v644_v55 }
  0xe9   : > { %v806_v60 = vpop.f32.mrf.mxu1  ;;  %v2197_v61 = vpop.f32.mrf.mxu0 }
  0xea   : > { %650 = vst.msk [vmem:[%s2471_s26] sm:$0xff] %vm649_vm3, %v648_v58  ;;  %653 = vst.msk [vmem:[%s2471_s26 + $0x8] sm:$0xff] %vm649_vm3, %v652_v59  ;;  %v807_v62 = vadd.f32 %v806_v60, %v730_v49 }
  0xeb   : > { %v2192_v63 = vpop.f32.mrf.mxu1  ;;  %v1028_v0 = vpop.f32.mrf.mxu0 }
  0xec   : > { %v881_v1 = vadd.f32 %v880_v57, %v807_v62 }
  0xed   : > { %v954_v2 = vpop.f32.mrf.mxu1  ;;  %v2207_v3 = vpop.f32.mrf.mxu0 }
  0xee   : > { %v955_v4 = vadd.f32 %v954_v2, %v881_v1 }
  0xef   : > { %v2202_v5 = vpop.f32.mrf.mxu1  ;;  %v1186_v6 = vpop.f32.mrf.mxu0 }
  0xf0   : > { %v1029_v7 = vadd.f32 %v1028_v0, %v955_v4 }
  0xf1   : > { %v1100_v8 = vpop.f32.mrf.mxu1  ;;  %v2217_v11 = vpop.f32.mrf.mxu0 }
  0xf2   : > { %v1101_v12 = vadd.f32 %v1100_v8, %v1029_v7 }
  0xf3   : > { %v2212_v13 = vpop.f32.mrf.mxu1  ;;  %v1336_v14 = vpop.f32.mrf.mxu0 }
  0xf4   : > { %v1105_v15 = vadd.f32 %v1104_v9, %v1101_v12  ;;  %v1108_v16 = vadd.f32 %v1107_v10, %v1101_v12 }
  0xf5   : > { %v1262_v17 = vpop.f32.mrf.mxu1  ;;  %v2227_v18 = vpop.f32.mrf.mxu0 }
  0xf6   : > { %1106 = vst.msk [vmem:[%s2471_s26 + $0x10] sm:$0xff] %vm649_vm3, %v1105_v15  ;;  %1109 = vst.msk [vmem:[%s2471_s26 + $0x18] sm:$0xff] %vm649_vm3, %v1108_v16  ;;  %v1263_v19 = vadd.f32 %v1262_v17, %v1186_v6 }
  0xf7   : > { %v2222_v20 = vpop.f32.mrf.mxu1  ;;  %v1484_v21 = vpop.f32.mrf.mxu0 }
  0xf8   : > { %v1337_v22 = vadd.f32 %v1336_v14, %v1263_v19 }
  0xf9   : > { %v1410_v23 = vpop.f32.mrf.mxu1  ;;  %v2237_v24 = vpop.f32.mrf.mxu0 }
  0xfa   : > { %v1411_v25 = vadd.f32 %v1410_v23, %v1337_v22 }
  0xfb   : > { %v2232_v26 = vpop.f32.mrf.mxu1  ;;  %v1642_v27 = vpop.f32.mrf.mxu0 }
  0xfc   : > { %v1485_v28 = vadd.f32 %v1484_v21, %v1411_v25 }
  0xfd   : > { %v1556_v29 = vpop.f32.mrf.mxu1  ;;  %v2247_v32 = vpop.f32.mrf.mxu0 }
  0xfe   : > { %v1557_v33 = vadd.f32 %v1556_v29, %v1485_v28 }
  0xff   : > { %v2242_v34 = vpop.f32.mrf.mxu1  ;;  %v1792_v35 = vpop.f32.mrf.mxu0 }
 0x100   : > { %v1561_v36 = vadd.f32 %v1560_v30, %v1557_v33  ;;  %v1564_v37 = vadd.f32 %v1563_v31, %v1557_v33 }
 0x101   : > { %v1718_v38 = vpop.f32.mrf.mxu1  ;;  %v2257_v39 = vpop.f32.mrf.mxu0 }
 0x102   : > { %1562 = vst.msk [vmem:[%s2471_s26 + $0x20] sm:$0xff] %vm649_vm3, %v1561_v36  ;;  %1565 = vst.msk [vmem:[%s2471_s26 + $0x28] sm:$0xff] %vm649_vm3, %v1564_v37  ;;  %v1719_v40 = vadd.f32 %v1718_v38, %v1642_v27 }
 0x103   : > { %v2252_v41 = vpop.f32.mrf.mxu1  ;;  %v1940_v42 = vpop.f32.mrf.mxu0 }
 0x104   : > { %v1793_v43 = vadd.f32 %v1792_v35, %v1719_v40 }
 0x105   : > { %v1866_v44 = vpop.f32.mrf.mxu1  ;;  %v2267_v45 = vpop.f32.mrf.mxu0 }
 0x106   : > { %v1867_v46 = vadd.f32 %v1866_v44, %v1793_v43 }
 0x107   : > { %v2262_v47 = vpop.f32.mrf.mxu1 }
 0x108   : > { %v1941_v48 = vadd.f32 %v1940_v42, %v1867_v46 }
 0x109   : > { %v2012_v49 = vpop.f32.mrf.mxu1 }
 0x10a   : > { %v2013_v52 = vadd.f32 %v2012_v49, %v1941_v48 }
 0x10b   : > { %v2272_v53 = vpop.f32.mrf.mxu1 }
 0x10c   : > { %v2017_v54 = vadd.f32 %v2016_v50, %v2013_v52  ;;  %v2020_v55 = vadd.f32 %v2019_v51, %v2013_v52 }
 0x10e   : > { %2018 = vst.msk [vmem:[%s2471_s26 + $0x30] sm:$0xff] %vm649_vm3, %v2017_v54  ;;  %2021 = vst.msk [vmem:[%s2471_s26 + $0x38] sm:$0xff] %vm649_vm3, %v2020_v55 }
 0x10f PF: > { %s13_s12 = sadd.s32 1, %s2289_s12  }
 0x110   : > { %p10_p4 = scmp.ge.s32.totalorder %s13_s12, 4  }
 0x112   :  { %12 = sbr.rel (!%p10_p4) target bundleno = 1 (0x1), region = 65 }

// kernel: hourglass_forward.21
= control target key start
LH: loop header
LB: loop body
LE: loop exit
PB: predicated region body
PF: predicated region fallthrough
CT: control target
= control target key end

     0   :  { %s4719_s12 = smov 0   ;;  %s5044_s0 = inlined_call_operand.vmem [shape: f32[2,256,8], index: 0, kind: input, shape index: {}]   ;;  %s5045_s1 = inlined_call_operand.vmem [shape: f32[2,64,8], index: 1, kind: input, shape index: {}]   ;;  %s5046_s2 = inlined_call_operand.vmem [shape: f32[16,8], index: 2, kind: input, shape index: {}]   ;;  %s5047_s3 = inlined_call_operand.vmem [shape: f32[2,256,8], index: 3, kind: output, shape index: {}]  }
   0x1 LB: > { %s4283_s13 = sadd.s32 4294967295, %s4697_s12   ;;  %p4287_p0 = scmp.ge.s32.totalorder %s4697_s12, 1  ;;  %s4697_s12 = sphi %s4719_s12, %s13_s12  }
   0x2   : > { %p147_p1 = scmp.lt.s32.totalorder %s4697_s12, 3 }
   0x4   : > { %p148_p2 = pnand %p4287_p0, %p147_p1 }
   0x5   : > { %p176_p3 = scmp.lt.s32.totalorder (!%p148_p2), %s4283_s13, 1 }
   0x6   : > { %151 = sbr.rel (%p148_p2) target bundleno = 321 (0x141), region = 32 }
   0xb   : > { %v191_v0 = vld [vmem:[%s5046_s2] sm:$0xff]  ;;  %vm194_vm0 = vcmask 64512   ;;  %v192_v1 = vld [vmem:[%s5046_s2 + $0x8] sm:$0xff]  ;;  %s5049_s13 = smov (!%p176_p3, %s4283_s13), 1 }
   0xc   : > { %v196_v2 = vsel %vm194_vm0, %v191_v0, 0  ;;  %v199_v3 = vsel %vm194_vm0, %v192_v1, 0  ;;  %s4297_s18 = sshll.u32 %s5049_s13, 6  ;;  %s4296_s22 = sshll.u32 %s5049_s13, 8 }
   0xd   : > { %v4737_v4 = vand.u32 4294901760, %v196_v2  ;;  %v4739_v5 = vand.u32 4294901760, %v199_v3  ;;  %s4752_s21 = scalar_lea.vmem %s5045_s1, %s4297_s18  ;;  %s4938_s25 = scalar_lea.vmem %s5044_s0, %s4296_s22 }
   0xe   : > { %v193_v8 = vld [vmem:[%s4752_s21] sm:$0xff]  ;;  %v702_v11 = vld [vmem:[%s4752_s21 + $0x8] sm:$0xff]  ;;  %v1204_v23 = vld [vmem:[%s4752_s21 + $0x10] sm:$0xff]  ;;  %s4945_s28 = scalar_lea.vmem %s5047_s3, %s4296_s22 }
   0xf   : > { %v4743_v6 = vsub.f32 %v196_v2, %v4737_v4  ;;  %v4746_v7 = vsub.f32 %v199_v3, %v4739_v5  ;;  %4450 = vmatprep.mubr.f32.mxu1 %v4737_v4  ;;  %v232_v12 = vand.u32 4294901760, %v193_v8  ;;  %v4762_v13 = vand.u32 4294901760, %v702_v11  ;;  %v1706_v30 = vld [vmem:[%s4752_s21 + $0x18] sm:$0xff]  ;;  %v2208_v36 = vld [vmem:[%s4752_s21 + $0x20] sm:$0xff]  ;;  %v2710_v42 = vld [vmem:[%s4752_s21 + $0x28] sm:$0xff] }
  0x10   : > { %v4778_v26 = vand.u32 4294901760, %v1204_v23  ;;  %v4796_v32 = vand.u32 4294901760, %v1706_v30  ;;  %v4818_v38 = vand.u32 4294901760, %v2208_v36  ;;  %v4840_v44 = vand.u32 4294901760, %v2710_v42  ;;  %v3212_v48 = vld [vmem:[%s4752_s21 + $0x30] sm:$0xff]  ;;  %v3714_v54 = vld [vmem:[%s4752_s21 + $0x38] sm:$0xff] }
  0x11   : > { %v4756_v9 = vand.u32 4294901760, %v4743_v6  ;;  %v4759_v10 = vand.u32 4294901760, %v4746_v7  ;;  %4443 = vmatprep.subr.mxu0 %v232_v12  ;;  %v319_v16 = vsub.f32 %v193_v8, %v232_v12  ;;  %v821_v17 = vsub.f32 %v702_v11, %v4762_v13 }
  0x12   : > { %4444 = vmatpush3.msra.mxu0 %v232_v12  ;;  %v1323_v28 = vsub.f32 %v1204_v23, %v4778_v26  ;;  %v1825_v34 = vsub.f32 %v1706_v30, %v4796_v32  ;;  %v2327_v40 = vsub.f32 %v2208_v36, %v4818_v38  ;;  %v2829_v46 = vsub.f32 %v2710_v42, %v4840_v44  ;;  %v690_v23 = vld [vmem:[%s4938_s25] sm:$0xff] }
  0x13   : > { %v270_v14 = vsub.f32 %v4743_v6, %v4756_v9  ;;  %v280_v15 = vsub.f32 %v4746_v7, %v4759_v10  ;;  %v320_v20 = vand.u32 4294901760, %v319_v16  ;;  %4453 = vmatprep.subr.mxu0 %v319_v16  ;;  %v822_v22 = vand.u32 4294901760, %v821_v17 }
  0x14   : > { %v1324_v29 = vand.u32 4294901760, %v1323_v28  ;;  %v1826_v35 = vand.u32 4294901760, %v1825_v34  ;;  %v2328_v41 = vand.u32 4294901760, %v2327_v40  ;;  %v2830_v47 = vand.u32 4294901760, %v2829_v46 }
  0x15   : > { %v4769_v18 = vand.u32 4294901760, %v270_v14  ;;  %v4771_v19 = vand.u32 4294901760, %v280_v15  ;;  %v321_v21 = vsub.f32 %v319_v16, %v320_v20  ;;  %v823_v25 = vsub.f32 %v821_v17, %v822_v22 }
  0x16   : > { %v1325_v31 = vsub.f32 %v1323_v28, %v1324_v29  ;;  %v1827_v37 = vsub.f32 %v1825_v34, %v1826_v35  ;;  %v2329_v43 = vsub.f32 %v2327_v40, %v2328_v41  ;;  %v2831_v49 = vsub.f32 %v2829_v46, %v2830_v47 }
  0x17   : > { %4445 = vmatprep.mubr.f32.mxu0 %v4769_v18  ;;  %v322_v24 = vand.u32 4294901760, %v321_v21  ;;  %v824_v27 = vand.u32 4294901760, %v823_v25  ;;  %v4862_v50 = vand.u32 4294901760, %v3212_v48  ;;  %v4884_v56 = vand.u32 4294901760, %v3714_v54 }
  0x18   : > { %4446 = vmatmul.mubr.f32.vlgmr.msra.gmra.mxu0 %v4771_v19  ;;  %v1326_v33 = vand.u32 4294901760, %v1325_v31  ;;  %v1828_v39 = vand.u32 4294901760, %v1827_v37  ;;  %v2330_v45 = vand.u32 4294901760, %v2329_v43  ;;  %v2832_v51 = vand.u32 4294901760, %v2831_v49 }
  0x19   : > { %4454 = vmatpush3.msra.mxu0 %v319_v16  ;;  %4455 = vmatprep.mubr.f32.mxu0 %v4743_v6  ;;  %v3331_v52 = vsub.f32 %v3212_v48, %v4862_v50  ;;  %v3833_v58 = vsub.f32 %v3714_v54, %v4884_v56  ;;  %v1199_v48 = vld [vmem:[%s4938_s25 + $0x38] sm:$0xff]  ;;  %v1198_v54 = vld [vmem:[%s4938_s25 + $0x30] sm:$0xff] }
  0x1a   : > { %4463 = vmatprep.subr.mxu0 %v320_v20  ;;  %4448 = vmatprep.subr.mxu1 %v322_v24 }
  0x1b   : > { %4449 = vmatpush3.msra.mxu1 %v322_v24  ;;  %v3332_v53 = vand.u32 4294901760, %v3331_v52  ;;  %v3834_v59 = vand.u32 4294901760, %v3833_v58  ;;  %v696_v24 = vld [vmem:[%s4938_s25 + $0x10] sm:$0xff] }
  0x1c   : > { %4456 = vmatmul.mubr.f32.vlgmr.msra.gmra.mxu0 %v4746_v7  ;;  %4451 = vmatmul.mubr.f32.vlgmr.msra.gmra.mxu1 %v4739_v5 }
  0x1d   : > { %4464 = vmatpush3.msra.mxu0 %v320_v20  ;;  %4458 = vmatprep.subr.mxu1 %v232_v12  ;;  %v3333_v55 = vsub.f32 %v3331_v52, %v3332_v53  ;;  %v3835_v60 = vsub.f32 %v3833_v58, %v3834_v59 }
  0x1e   : > { %4459 = vmatpush3.msra.mxu1 %v232_v12  ;;  %4460 = vmatprep.mubr.f32.mxu1 %v4756_v9 }
  0x1f   : > { %4465 = vmatprep.mubr.f32.mxu0 %v4737_v4  ;;  %4468 = vmatprep.subr.mxu1 %v232_v12  ;;  %v3334_v57 = vand.u32 4294901760, %v3333_v55  ;;  %v3836_v61 = vand.u32 4294901760, %v3835_v60 }
  0x20   : > { %4466 = vmatmul.mubr.f32.vlgmr.msra.gmra.mxu0 %v4739_v5  ;;  %4473 = vmatprep.subr.mxu0 %v4762_v13 }
  0x21   : > { %4461 = vmatmul.mubr.f32.vlgmr.msra.gmra.mxu1 %v4759_v10  ;;  %4474 = vmatpush3.msra.mxu0 %v4762_v13 }
  0x22   : > { %4469 = vmatpush3.msra.mxu1 %v232_v12  ;;  %4470 = vmatprep.mubr.f32.mxu1 %v4737_v4 }
  0x23   : > { %4475 = vmatprep.mubr.f32.mxu0 %v4769_v18  ;;  %4478 = vmatprep.subr.mxu1 %v824_v27 }
  0x24   : > { %4476 = vmatmul.mubr.f32.vlgmr.msra.gmra.mxu0 %v4771_v19  ;;  %4483 = vmatprep.subr.mxu0 %v821_v17 }
  0x25   : > { %4471 = vmatmul.mubr.f32.vlgmr.msra.gmra.mxu1 %v4739_v5  ;;  %4484 = vmatpush3.msra.mxu0 %v821_v17  ;;  %v691_v17 = vld [vmem:[%s4938_s25 + $0x8] sm:$0xff] }
  0x26   : > { %4479 = vmatpush3.msra.mxu1 %v824_v27  ;;  %4480 = vmatprep.mubr.f32.mxu1 %v4737_v4 }
  0x27   : > { %4485 = vmatprep.mubr.f32.mxu0 %v4743_v6  ;;  %4488 = vmatprep.subr.mxu1 %v4762_v13 }
  0x28   : > { %4486 = vmatmul.mubr.f32.vlgmr.msra.gmra.mxu0 %v4746_v7  ;;  %4493 = vmatprep.subr.mxu0 %v822_v22 }
  0x29   : > { %4481 = vmatmul.mubr.f32.vlgmr.msra.gmra.mxu1 %v4739_v5  ;;  %4494 = vmatpush3.msra.mxu0 %v822_v22 }
  0x2a   : > { %4489 = vmatpush3.msra.mxu1 %v4762_v13  ;;  %4490 = vmatprep.mubr.f32.mxu1 %v4756_v9 }
  0x2b   : > { %4495 = vmatprep.mubr.f32.mxu0 %v4737_v4  ;;  %4498 = vmatprep.subr.mxu1 %v4762_v13 }
  0x2c   : > { %4496 = vmatmul.mubr.f32.vlgmr.msra.gmra.mxu0 %v4739_v5  ;;  %4503 = vmatprep.subr.mxu0 %v4778_v26 }
  0x2d   : > { %4491 = vmatmul.mubr.f32.vlgmr.msra.gmra.mxu1 %v4759_v10  ;;  %4504 = vmatpush3.msra.mxu0 %v4778_v26 }
  0x2e   : > { %4499 = vmatpush3.msra.mxu1 %v4762_v13  ;;  %4500 = vmatprep.mubr.f32.mxu1 %v4737_v4 }
  0x2f   : > { %4505 = vmatprep.mubr.f32.mxu0 %v4769_v18  ;;  %4508 = vmatprep.subr.mxu1 %v1326_v33 }
  0x30   : > { %4506 = vmatmul.mubr.f32.vlgmr.msra.gmra.mxu0 %v4771_v19  ;;  %4513 = vmatprep.subr.mxu0 %v1323_v28 }
  0x31   : > { %4501 = vmatmul.mubr.f32.vlgmr.msra.gmra.mxu1 %v4739_v5  ;;  %4514 = vmatpush3.msra.mxu0 %v1323_v28 }
  0x32   : > { %4509 = vmatpush3.msra.mxu1 %v1326_v33  ;;  %4510 = vmatprep.mubr.f32.mxu1 %v4737_v4 }
  0x33   : > { %4515 = vmatprep.mubr.f32.mxu0 %v4743_v6  ;;  %4518 = vmatprep.subr.mxu1 %v4778_v26 }
  0x34   : > { %4516 = vmatmul.mubr.f32.vlgmr.msra.gmra.mxu0 %v4746_v7  ;;  %4523 = vmatprep.subr.mxu0 %v1324_v29 }
  0x35   : > { %4511 = vmatmul.mubr.f32.vlgmr.msra.gmra.mxu1 %v4739_v5  ;;  %4524 = vmatpush3.msra.mxu0 %v1324_v29 }
  0x36   : > { %4519 = vmatpush3.msra.mxu1 %v4778_v26  ;;  %4520 = vmatprep.mubr.f32.mxu1 %v4756_v9 }
  0x37   : > { %4525 = vmatprep.mubr.f32.mxu0 %v4737_v4  ;;  %4528 = vmatprep.subr.mxu1 %v4778_v26 }
  0x38   : > { %4526 = vmatmul.mubr.f32.vlgmr.msra.gmra.mxu0 %v4739_v5  ;;  %4533 = vmatprep.subr.mxu0 %v4796_v32 }
  0x39   : > { %4521 = vmatmul.mubr.f32.vlgmr.msra.gmra.mxu1 %v4759_v10  ;;  %4534 = vmatpush3.msra.mxu0 %v4796_v32 }
  0x3a   : > { %4529 = vmatpush3.msra.mxu1 %v4778_v26  ;;  %4530 = vmatprep.mubr.f32.mxu1 %v4737_v4 }
  0x3b   : > { %4535 = vmatprep.mubr.f32.mxu0 %v4769_v18  ;;  %4538 = vmatprep.subr.mxu1 %v1828_v39 }
  0x3c   : > { %4536 = vmatmul.mubr.f32.vlgmr.msra.gmra.mxu0 %v4771_v19  ;;  %4543 = vmatprep.subr.mxu0 %v1825_v34 }
  0x3d   : > { %4531 = vmatmul.mubr.f32.vlgmr.msra.gmra.mxu1 %v4739_v5  ;;  %4544 = vmatpush3.msra.mxu0 %v1825_v34 }
  0x3e   : > { %4539 = vmatpush3.msra.mxu1 %v1828_v39  ;;  %4540 = vmatprep.mubr.f32.mxu1 %v4737_v4 }
  0x3f   : > { %4545 = vmatprep.mubr.f32.mxu0 %v4743_v6  ;;  %4548 = vmatprep.subr.mxu1 %v4796_v32 }
  0x40   : > { %4546 = vmatmul.mubr.f32.vlgmr.msra.gmra.mxu0 %v4746_v7  ;;  %4553 = vmatprep.subr.mxu0 %v1826_v35 }
  0x41   : > { %4541 = vmatmul.mubr.f32.vlgmr.msra.gmra.mxu1 %v4739_v5  ;;  %4554 = vmatpush3.msra.mxu0 %v1826_v35 }
  0x42   : > { %4549 = vmatpush3.msra.mxu1 %v4796_v32  ;;  %4550 = vmatprep.mubr.f32.mxu1 %v4756_v9 }
  0x43   : > { %4555 = vmatprep.mubr.f32.mxu0 %v4737_v4  ;;  %4558 = vmatprep.subr.mxu1 %v4796_v32 }
  0x44   : > { %4556 = vmatmul.mubr.f32.vlgmr.msra.gmra.mxu0 %v4739_v5  ;;  %4563 = vmatprep.subr.mxu0 %v4818_v38 }
  0x45   : > { %4551 = vmatmul.mubr.f32.vlgmr.msra.gmra.mxu1 %v4759_v10  ;;  %4564 = vmatpush3.msra.mxu0 %v4818_v38 }
  0x46   : > { %4559 = vmatpush3.msra.mxu1 %v4796_v32  ;;  %4560 = vmatprep.mubr.f32.mxu1 %v4737_v4 }
  0x47   : > { %4565 = vmatprep.mubr.f32.mxu0 %v4769_v18  ;;  %4568 = vmatprep.subr.mxu1 %v2330_v45 }
  0x48   : > { %4566 = vmatmul.mubr.f32.vlgmr.msra.gmra.mxu0 %v4771_v19  ;;  %4573 = vmatprep.subr.mxu0 %v2327_v40 }
  0x49   : > { %4561 = vmatmul.mubr.f32.vlgmr.msra.gmra.mxu1 %v4739_v5  ;;  %4574 = vmatpush3.msra.mxu0 %v2327_v40 }
  0x4a   : > { %4569 = vmatpush3.msra.mxu1 %v2330_v45  ;;  %4570 = vmatprep.mubr.f32.mxu1 %v4737_v4 }
  0x4b   : > { %4575 = vmatprep.mubr.f32.mxu0 %v4743_v6  ;;  %4578 = vmatprep.subr.mxu1 %v4818_v38 }
  0x4c   : > { %4576 = vmatmul.mubr.f32.vlgmr.msra.gmra.mxu0 %v4746_v7  ;;  %4583 = vmatprep.subr.mxu0 %v2328_v41 }
  0x4d   : > { %4571 = vmatmul.mubr.f32.vlgmr.msra.gmra.mxu1 %v4739_v5  ;;  %4584 = vmatpush3.msra.mxu0 %v2328_v41 }
  0x4e   : > { %4579 = vmatpush3.msra.mxu1 %v4818_v38  ;;  %4580 = vmatprep.mubr.f32.mxu1 %v4756_v9 }
  0x4f   : > { %4585 = vmatprep.mubr.f32.mxu0 %v4737_v4  ;;  %4588 = vmatprep.subr.mxu1 %v4818_v38 }
  0x50   : > { %4586 = vmatmul.mubr.f32.vlgmr.msra.gmra.mxu0 %v4739_v5  ;;  %4593 = vmatprep.subr.mxu0 %v4840_v44 }
  0x51   : > { %4581 = vmatmul.mubr.f32.vlgmr.msra.gmra.mxu1 %v4759_v10  ;;  %4594 = vmatpush3.msra.mxu0 %v4840_v44 }
  0x52   : > { %4589 = vmatpush3.msra.mxu1 %v4818_v38  ;;  %4590 = vmatprep.mubr.f32.mxu1 %v4737_v4 }
  0x53   : > { %4595 = vmatprep.mubr.f32.mxu0 %v4769_v18  ;;  %4598 = vmatprep.subr.mxu1 %v2832_v51 }
  0x54   : > { %4596 = vmatmul.mubr.f32.vlgmr.msra.gmra.mxu0 %v4771_v19  ;;  %4603 = vmatprep.subr.mxu0 %v2829_v46 }
  0x55   : > { %4591 = vmatmul.mubr.f32.vlgmr.msra.gmra.mxu1 %v4739_v5  ;;  %4604 = vmatpush3.msra.mxu0 %v2829_v46 }
  0x56   : > { %4599 = vmatpush3.msra.mxu1 %v2832_v51  ;;  %4600 = vmatprep.mubr.f32.mxu1 %v4737_v4 }
  0x57   : > { %4605 = vmatprep.mubr.f32.mxu0 %v4743_v6  ;;  %4608 = vmatprep.subr.mxu1 %v4840_v44 }
  0x58   : > { %4606 = vmatmul.mubr.f32.vlgmr.msra.gmra.mxu0 %v4746_v7  ;;  %4613 = vmatprep.subr.mxu0 %v2830_v47 }
  0x59   : > { %4601 = vmatmul.mubr.f32.vlgmr.msra.gmra.mxu1 %v4739_v5  ;;  %4614 = vmatpush3.msra.mxu0 %v2830_v47  ;;  %v1193_v47 = vld [vmem:[%s4938_s25 + $0x28] sm:$0xff] }
  0x5a   : > { %4609 = vmatpush3.msra.mxu1 %v4840_v44  ;;  %4610 = vmatprep.mubr.f32.mxu1 %v4756_v9 }
  0x5b   : > { %4615 = vmatprep.mubr.f32.mxu0 %v4737_v4  ;;  %4618 = vmatprep.subr.mxu1 %v4840_v44 }
  0x5c   : > { %4616 = vmatmul.mubr.f32.vlgmr.msra.gmra.mxu0 %v4739_v5  ;;  %4623 = vmatprep.subr.mxu0 %v4862_v50 }
  0x5d   : > { %4611 = vmatmul.mubr.f32.vlgmr.msra.gmra.mxu1 %v4759_v10  ;;  %4624 = vmatpush3.msra.mxu0 %v4862_v50 }
  0x5e   : > { %4619 = vmatpush3.msra.mxu1 %v4840_v44  ;;  %4620 = vmatprep.mubr.f32.mxu1 %v4737_v4 }
  0x5f   : > { %4625 = vmatprep.mubr.f32.mxu0 %v4769_v18  ;;  %4628 = vmatprep.subr.mxu1 %v3334_v57 }
  0x60   : > { %4626 = vmatmul.mubr.f32.vlgmr.msra.gmra.mxu0 %v4771_v19  ;;  %4633 = vmatprep.subr.mxu0 %v3331_v52 }
  0x61   : > { %4621 = vmatmul.mubr.f32.vlgmr.msra.gmra.mxu1 %v4739_v5  ;;  %4634 = vmatpush3.msra.mxu0 %v3331_v52 }
  0x62   : > { %4629 = vmatpush3.msra.mxu1 %v3334_v57  ;;  %4630 = vmatprep.mubr.f32.mxu1 %v4737_v4 }
  0x63   : > { %4635 = vmatprep.mubr.f32.mxu0 %v4743_v6  ;;  %4638 = vmatprep.subr.mxu1 %v4862_v50 }
  0x64   : > { %4636 = vmatmul.mubr.f32.vlgmr.msra.gmra.mxu0 %v4746_v7  ;;  %4643 = vmatprep.subr.mxu0 %v3332_v53 }
  0x65   : > { %4631 = vmatmul.mubr.f32.vlgmr.msra.gmra.mxu1 %v4739_v5  ;;  %4644 = vmatpush3.msra.mxu0 %v3332_v53  ;;  %v1192_v53 = vld [vmem:[%s4938_s25 + $0x20] sm:$0xff] }
  0x66   : > { %4639 = vmatpush3.msra.mxu1 %v4862_v50  ;;  %4640 = vmatprep.mubr.f32.mxu1 %v4756_v9 }
  0x67   : > { %4645 = vmatprep.mubr.f32.mxu0 %v4737_v4  ;;  %4648 = vmatprep.subr.mxu1 %v4862_v50 }
  0x68   : > { %4646 = vmatmul.mubr.f32.vlgmr.msra.gmra.mxu0 %v4739_v5  ;;  %4653 = vmatprep.subr.mxu0 %v4884_v56 }
  0x69   : > { %4641 = vmatmul.mubr.f32.vlgmr.msra.gmra.mxu1 %v4759_v10  ;;  %4654 = vmatpush3.msra.mxu0 %v4884_v56 }
  0x6a   : > { %4649 = vmatpush3.msra.mxu1 %v4862_v50  ;;  %4650 = vmatprep.mubr.f32.mxu1 %v4737_v4 }
  0x6b   : > { %4655 = vmatprep.mubr.f32.mxu0 %v4769_v18  ;;  %4658 = vmatprep.subr.mxu1 %v3836_v61  ;;  %v697_v18 = vld [vmem:[%s4938_s25 + $0x18] sm:$0xff] }
  0x6c   : > { %4656 = vmatmul.mubr.f32.vlgmr.msra.gmra.mxu0 %v4771_v19  ;;  %4663 = vmatprep.subr.mxu0 %v3833_v58 }
  0x6d   : > { %4651 = vmatmul.mubr.f32.vlgmr.msra.gmra.mxu1 %v4739_v5  ;;  %4664 = vmatpush3.msra.mxu0 %v3833_v58 }
  0x6e   : > { %4659 = vmatpush3.msra.mxu1 %v3836_v61  ;;  %4660 = vmatprep.mubr.f32.mxu1 %v4737_v4 }
  0x6f   : > { %4665 = vmatprep.mubr.f32.mxu0 %v4743_v6  ;;  %4668 = vmatprep.subr.mxu1 %v4884_v56 }
  0x70   : > { %4666 = vmatmul.mubr.f32.vlgmr.msra.gmra.mxu0 %v4746_v7  ;;  %4673 = vmatprep.subr.mxu0 %v3834_v59 }
  0x71   : > { %4661 = vmatmul.mubr.f32.vlgmr.msra.gmra.mxu1 %v4739_v5  ;;  %4674 = vmatpush3.msra.mxu0 %v3834_v59 }
  0x72   : > { %4669 = vmatpush3.msra.mxu1 %v4884_v56  ;;  %4670 = vmatprep.mubr.f32.mxu1 %v4756_v9 }
  0x73   : > { %4675 = vmatprep.mubr.f32.mxu0 %v4737_v4  ;;  %4678 = vmatprep.subr.mxu1 %v4884_v56 }
  0x74   : > { %4676 = vmatmul.mubr.f32.vlgmr.msra.gmra.mxu0 %v4739_v5 }
  0x75   : > { %4671 = vmatmul.mubr.f32.vlgmr.msra.gmra.mxu1 %v4759_v10 }
  0x76   : > { %4679 = vmatpush3.msra.mxu1 %v4884_v56  ;;  %4680 = vmatprep.mubr.f32.mxu1 %v4737_v4 }
  0x79   : > { %4681 = vmatmul.mubr.f32.vlgmr.msra.gmra.mxu1 %v4739_v5 }
  0xd8   : > { %v4447_v62 = vpop.f32.mrf.mxu0 }
  0xda   : > { %v273_v63 = vpop.f32.mrf.mxu0 }
  0xdc   : > { %v4457_v0 = vpop.f32.mrf.mxu0  ;;  %v4452_v1 = vpop.f32.mrf.mxu1 }
  0xdd   : > { %v366_v3 = vadd.f32 %v4452_v1, %v4447_v62 }
  0xde   : > { %v439_v2 = vpop.f32.mrf.mxu0  ;;  %v359_v6 = vpop.f32.mrf.mxu1 }
  0xdf   : > { %v447_v7 = vadd.f32 %v4457_v0, %v366_v3  ;;  %v360_v8 = vadd.f32 %v359_v6, %v273_v63 }
  0xe0   : > { %v4467_v9 = vpop.f32.mrf.mxu0 }
  0xe1   : > { %v4462_v11 = vpop.f32.mrf.mxu1  ;;  %v440_v4 = vadd.f32 %v439_v2, %v360_v8 }
  0xe2   : > { %v529_v5 = vadd.f32 %v4462_v11, %v447_v7  ;;  %v602_v10 = vpop.f32.mrf.mxu0 }
  0xe3   : > { %v520_v12 = vpop.f32.mrf.mxu1 }
  0xe4   : > { %v609_v13 = vadd.f32 %v4467_v9, %v529_v5  ;;  %v521_v14 = vadd.f32 %v520_v12, %v440_v4  ;;  %v4477_v15 = vpop.f32.mrf.mxu0 }
  0xe5   : > { %v4472_v16 = vpop.f32.mrf.mxu1 }
  0xe6   : > { %v603_v19 = vadd.f32 %v602_v10, %v521_v14  ;;  %v687_v20 = vadd.f32 %v4472_v16, %v609_v13  ;;  %v775_v21 = vpop.f32.mrf.mxu0  ;;  %v1695_v13 = vld [vmem:[%s4938_s25 + $0x48] sm:$0xff]  ;;  %v1701_v14 = vld [vmem:[%s4938_s25 + $0x58] sm:$0xff] }
  0xe7   : > { %v680_v22 = vpop.f32.mrf.mxu1 }
  0xe8   : > { %v693_v25 = vadd.f32 %v691_v17, %v687_v20  ;;  %v699_v26 = vadd.f32 %v697_v18, %v687_v20  ;;  %v681_v27 = vadd.f32 %v680_v22, %v603_v19  ;;  %v4487_v28 = vpop.f32.mrf.mxu0  ;;  %v1694_v19 = vld [vmem:[%s4938_s25 + $0x40] sm:$0xff]  ;;  %v1700_v20 = vld [vmem:[%s4938_s25 + $0x50] sm:$0xff] }
  0xe9   : > { %v4482_v29 = vpop.f32.mrf.mxu1 }
  0xea   : > { %695 = vst.msk [vmem:[%s4945_s28 + $0x8] sm:$0xff] %vm194_vm0, %v693_v25  ;;  %701 = vst.msk [vmem:[%s4945_s28 + $0x18] sm:$0xff] %vm194_vm0, %v699_v26  ;;  %v692_v30 = vadd.f32 %v690_v23, %v681_v27  ;;  %v698_v31 = vadd.f32 %v696_v24, %v681_v27  ;;  %v868_v32 = vadd.f32 %v4482_v29, %v4477_v15  ;;  %v941_v33 = vpop.f32.mrf.mxu0 }
  0xeb   : > { %v861_v34 = vpop.f32.mrf.mxu1 }
  0xec   : > { %694 = vst.msk [vmem:[%s4945_s28] sm:$0xff] %vm194_vm0, %v692_v30  ;;  %700 = vst.msk [vmem:[%s4945_s28 + $0x10] sm:$0xff] %vm194_vm0, %v698_v31  ;;  %v949_v35 = vadd.f32 %v4487_v28, %v868_v32  ;;  %v862_v36 = vadd.f32 %v861_v34, %v775_v21  ;;  %v4497_v37 = vpop.f32.mrf.mxu0 }
  0xed   : > { %v4492_v38 = vpop.f32.mrf.mxu1 }
  0xee   : > { %v942_v39 = vadd.f32 %v941_v33, %v862_v36  ;;  %v1031_v40 = vadd.f32 %v4492_v38, %v949_v35  ;;  %v1104_v41 = vpop.f32.mrf.mxu0 }
  0xef   : > { %v1022_v42 = vpop.f32.mrf.mxu1 }
  0xf0   : > { %v1111_v43 = vadd.f32 %v4497_v37, %v1031_v40  ;;  %v1023_v44 = vadd.f32 %v1022_v42, %v942_v39  ;;  %v4507_v45 = vpop.f32.mrf.mxu0 }
  0xf1   : > { %v4502_v46 = vpop.f32.mrf.mxu1 }
  0xf2   : > { %v1105_v49 = vadd.f32 %v1104_v41, %v1023_v44  ;;  %v1189_v50 = vadd.f32 %v4502_v46, %v1111_v43  ;;  %v1277_v51 = vpop.f32.mrf.mxu0  ;;  %v2197_v43 = vld [vmem:[%s4938_s25 + $0x68] sm:$0xff]  ;;  %v2203_v44 = vld [vmem:[%s4938_s25 + $0x78] sm:$0xff] }
  0xf3   : > { %v1182_v52 = vpop.f32.mrf.mxu1 }
  0xf4   : > { %v1195_v55 = vadd.f32 %v1193_v47, %v1189_v50  ;;  %v1201_v56 = vadd.f32 %v1199_v48, %v1189_v50  ;;  %v1183_v57 = vadd.f32 %v1182_v52, %v1105_v49  ;;  %v4517_v58 = vpop.f32.mrf.mxu0  ;;  %v2196_v49 = vld [vmem:[%s4938_s25 + $0x60] sm:$0xff]  ;;  %v2202_v50 = vld [vmem:[%s4938_s25 + $0x70] sm:$0xff] }
  0xf5   : > { %v4512_v59 = vpop.f32.mrf.mxu1 }
  0xf6   : > { %1197 = vst.msk [vmem:[%s4945_s28 + $0x28] sm:$0xff] %vm194_vm0, %v1195_v55  ;;  %1203 = vst.msk [vmem:[%s4945_s28 + $0x38] sm:$0xff] %vm194_vm0, %v1201_v56  ;;  %v1194_v60 = vadd.f32 %v1192_v53, %v1183_v57  ;;  %v1200_v61 = vadd.f32 %v1198_v54, %v1183_v57  ;;  %v1370_v62 = vadd.f32 %v4512_v59, %v4507_v45  ;;  %v1443_v63 = vpop.f32.mrf.mxu0 }
  0xf7   : > { %v1363_v0 = vpop.f32.mrf.mxu1 }
  0xf8   : > { %1196 = vst.msk [vmem:[%s4945_s28 + $0x20] sm:$0xff] %vm194_vm0, %v1194_v60  ;;  %1202 = vst.msk [vmem:[%s4945_s28 + $0x30] sm:$0xff] %vm194_vm0, %v1200_v61  ;;  %v1451_v1 = vadd.f32 %v4517_v58, %v1370_v62  ;;  %v1364_v2 = vadd.f32 %v1363_v0, %v1277_v51  ;;  %v4527_v3 = vpop.f32.mrf.mxu0 }
  0xf9   : > { %v4522_v6 = vpop.f32.mrf.mxu1 }
  0xfa   : > { %v1444_v7 = vadd.f32 %v1443_v63, %v1364_v2  ;;  %v1533_v8 = vadd.f32 %v4522_v6, %v1451_v1  ;;  %v1606_v9 = vpop.f32.mrf.mxu0 }
  0xfb   : > { %v1524_v11 = vpop.f32.mrf.mxu1 }
  0xfc   : > { %v1613_v4 = vadd.f32 %v4527_v3, %v1533_v8  ;;  %v1525_v5 = vadd.f32 %v1524_v11, %v1444_v7  ;;  %v4537_v10 = vpop.f32.mrf.mxu0 }
  0xfd   : > { %v4532_v12 = vpop.f32.mrf.mxu1 }
  0xfe   : > { %v1607_v15 = vadd.f32 %v1606_v9, %v1525_v5  ;;  %v1691_v16 = vadd.f32 %v4532_v12, %v1613_v4  ;;  %v1779_v17 = vpop.f32.mrf.mxu0  ;;  %v2699_v4 = vld [vmem:[%s4938_s25 + $0x88] sm:$0xff]  ;;  %v2705_v5 = vld [vmem:[%s4938_s25 + $0x98] sm:$0xff] }
  0xff   : > { %v1684_v18 = vpop.f32.mrf.mxu1 }
 0x100   : > { %v1697_v21 = vadd.f32 %v1695_v13, %v1691_v16  ;;  %v1703_v22 = vadd.f32 %v1701_v14, %v1691_v16  ;;  %v1685_v23 = vadd.f32 %v1684_v18, %v1607_v15  ;;  %v4547_v24 = vpop.f32.mrf.mxu0  ;;  %v2698_v15 = vld [vmem:[%s4938_s25 + $0x80] sm:$0xff]  ;;  %v2704_v16 = vld [vmem:[%s4938_s25 + $0x90] sm:$0xff] }
 0x101   : > { %v4542_v25 = vpop.f32.mrf.mxu1 }
 0x102   : > { %1699 = vst.msk [vmem:[%s4945_s28 + $0x48] sm:$0xff] %vm194_vm0, %v1697_v21  ;;  %1705 = vst.msk [vmem:[%s4945_s28 + $0x58] sm:$0xff] %vm194_vm0, %v1703_v22  ;;  %v1696_v26 = vadd.f32 %v1694_v19, %v1685_v23  ;;  %v1702_v27 = vadd.f32 %v1700_v20, %v1685_v23  ;;  %v1872_v28 = vadd.f32 %v4542_v25, %v4537_v10  ;;  %v1945_v29 = vpop.f32.mrf.mxu0 }
 0x103   : > { %v1865_v30 = vpop.f32.mrf.mxu1 }
 0x104   : > { %1698 = vst.msk [vmem:[%s4945_s28 + $0x40] sm:$0xff] %vm194_vm0, %v1696_v26  ;;  %1704 = vst.msk [vmem:[%s4945_s28 + $0x50] sm:$0xff] %vm194_vm0, %v1702_v27  ;;  %v1953_v31 = vadd.f32 %v4547_v24, %v1872_v28  ;;  %v1866_v32 = vadd.f32 %v1865_v30, %v1779_v17  ;;  %v4557_v33 = vpop.f32.mrf.mxu0 }
 0x105   : > { %v4552_v34 = vpop.f32.mrf.mxu1 }
 0x106   : > { %v1946_v35 = vadd.f32 %v1945_v29, %v1866_v32  ;;  %v2035_v36 = vadd.f32 %v4552_v34, %v1953_v31  ;;  %v2108_v37 = vpop.f32.mrf.mxu0 }
 0x107   : > { %v2026_v38 = vpop.f32.mrf.mxu1 }
 0x108   : > { %v2115_v39 = vadd.f32 %v4557_v33, %v2035_v36  ;;  %v2027_v40 = vadd.f32 %v2026_v38, %v1946_v35  ;;  %v4567_v41 = vpop.f32.mrf.mxu0 }
 0x109   : > { %v4562_v42 = vpop.f32.mrf.mxu1 }
 0x10a   : > { %v2109_v45 = vadd.f32 %v2108_v37, %v2027_v40  ;;  %v2193_v46 = vadd.f32 %v4562_v42, %v2115_v39  ;;  %v2281_v47 = vpop.f32.mrf.mxu0  ;;  %v3201_v39 = vld [vmem:[%s4938_s25 + $0xa8] sm:$0xff]  ;;  %v3207_v40 = vld [vmem:[%s4938_s25 + $0xb8] sm:$0xff] }
 0x10b   : > { %v2186_v48 = vpop.f32.mrf.mxu1 }
 0x10c   : > { %v2199_v51 = vadd.f32 %v2197_v43, %v2193_v46  ;;  %v2205_v52 = vadd.f32 %v2203_v44, %v2193_v46  ;;  %v2187_v53 = vadd.f32 %v2186_v48, %v2109_v45  ;;  %v4577_v54 = vpop.f32.mrf.mxu0  ;;  %v3200_v45 = vld [vmem:[%s4938_s25 + $0xa0] sm:$0xff]  ;;  %v3206_v46 = vld [vmem:[%s4938_s25 + $0xb0] sm:$0xff] }
 0x10d   : > { %v4572_v55 = vpop.f32.mrf.mxu1 }
 0x10e   : > { %2201 = vst.msk [vmem:[%s4945_s28 + $0x68] sm:$0xff] %vm194_vm0, %v2199_v51  ;;  %2207 = vst.msk [vmem:[%s4945_s28 + $0x78] sm:$0xff] %vm194_vm0, %v2205_v52  ;;  %v2198_v56 = vadd.f32 %v2196_v49, %v2187_v53  ;;  %v2204_v57 = vadd.f32 %v2202_v50, %v2187_v53  ;;  %v2374_v58 = vadd.f32 %v4572_v55, %v4567_v41  ;;  %v2447_v59 = vpop.f32.mrf.mxu0 }
 0x10f   : > { %v2367_v60 = vpop.f32.mrf.mxu1 }
 0x110   : > { %2200 = vst.msk [vmem:[%s4945_s28 + $0x60] sm:$0xff] %vm194_vm0, %v2198_v56  ;;  %2206 = vst.msk [vmem:[%s4945_s28 + $0x70] sm:$0xff] %vm194_vm0, %v2204_v57  ;;  %v2455_v61 = vadd.f32 %v4577_v54, %v2374_v58  ;;  %v2368_v62 = vadd.f32 %v2367_v60, %v2281_v47  ;;  %v4587_v63 = vpop.f32.mrf.mxu0 }
 0x111   : > { %v4582_v0 = vpop.f32.mrf.mxu1 }
 0x112   : > { %v2448_v1 = vadd.f32 %v2447_v59, %v2368_v62  ;;  %v2537_v2 = vadd.f32 %v4582_v0, %v2455_v61  ;;  %v2610_v3 = vpop.f32.mrf.mxu0 }
 0x113   : > { %v2528_v6 = vpop.f32.mrf.mxu1 }
 0x114   : > { %v2617_v7 = vadd.f32 %v4587_v63, %v2537_v2  ;;  %v2529_v8 = vadd.f32 %v2528_v6, %v2448_v1  ;;  %v4597_v9 = vpop.f32.mrf.mxu0 }
 0x115   : > { %v4592_v11 = vpop.f32.mrf.mxu1 }
 0x116   : > { %v2611_v10 = vadd.f32 %v2610_v3, %v2529_v8  ;;  %v2695_v12 = vadd.f32 %v4592_v11, %v2617_v7  ;;  %v2783_v13 = vpop.f32.mrf.mxu0  ;;  %v3703_v7 = vld [vmem:[%s4938_s25 + $0xc8] sm:$0xff]  ;;  %v3709_v8 = vld [vmem:[%s4938_s25 + $0xd8] sm:$0xff] }
 0x117   : > { %v2688_v14 = vpop.f32.mrf.mxu1 }
 0x118   : > { %v2701_v17 = vadd.f32 %v2699_v4, %v2695_v12  ;;  %v2707_v18 = vadd.f32 %v2705_v5, %v2695_v12  ;;  %v2689_v19 = vadd.f32 %v2688_v14, %v2611_v10  ;;  %v4607_v20 = vpop.f32.mrf.mxu0  ;;  %v3702_v10 = vld [vmem:[%s4938_s25 + $0xc0] sm:$0xff]  ;;  %v3708_v12 = vld [vmem:[%s4938_s25 + $0xd0] sm:$0xff] }
 0x119   : > { %v4602_v21 = vpop.f32.mrf.mxu1 }
 0x11a   : > { %2703 = vst.msk [vmem:[%s4945_s28 + $0x88] sm:$0xff] %vm194_vm0, %v2701_v17  ;;  %2709 = vst.msk [vmem:[%s4945_s28 + $0x98] sm:$0xff] %vm194_vm0, %v2707_v18  ;;  %v2700_v22 = vadd.f32 %v2698_v15, %v2689_v19  ;;  %v2706_v23 = vadd.f32 %v2704_v16, %v2689_v19  ;;  %v2876_v24 = vadd.f32 %v4602_v21, %v4597_v9  ;;  %v2949_v25 = vpop.f32.mrf.mxu0 }
 0x11b   : > { %v2869_v26 = vpop.f32.mrf.mxu1 }
 0x11c   : > { %2702 = vst.msk [vmem:[%s4945_s28 + $0x80] sm:$0xff] %vm194_vm0, %v2700_v22  ;;  %2708 = vst.msk [vmem:[%s4945_s28 + $0x90] sm:$0xff] %vm194_vm0, %v2706_v23  ;;  %v2957_v27 = vadd.f32 %v4607_v20, %v2876_v24  ;;  %v2870_v28 = vadd.f32 %v2869_v26, %v2783_v13  ;;  %v4617_v29 = vpop.f32.mrf.mxu0 }
 0x11d   : > { %v4612_v30 = vpop.f32.mrf.mxu1 }
 0x11e   : > { %v2950_v31 = vadd.f32 %v2949_v25, %v2870_v28  ;;  %v3039_v32 = vadd.f32 %v4612_v30, %v2957_v27  ;;  %v3112_v33 = vpop.f32.mrf.mxu0 }
 0x11f   : > { %v3030_v34 = vpop.f32.mrf.mxu1 }
 0x120   : > { %v3119_v35 = vadd.f32 %v4617_v29, %v3039_v32  ;;  %v3031_v36 = vadd.f32 %v3030_v34, %v2950_v31  ;;  %v4627_v37 = vpop.f32.mrf.mxu0  ;;  %v4205_v34 = vld [vmem:[%s4938_s25 + $0xe8] sm:$0xff] }
 0x121   : > { %v4622_v38 = vpop.f32.mrf.mxu1 }
 0x122   : > { %v3113_v41 = vadd.f32 %v3112_v33, %v3031_v36  ;;  %v3197_v42 = vadd.f32 %v4622_v38, %v3119_v35  ;;  %v3285_v43 = vpop.f32.mrf.mxu0  ;;  %v4211_v35 = vld [vmem:[%s4938_s25 + $0xf8] sm:$0xff] }
 0x123   : > { %v3190_v44 = vpop.f32.mrf.mxu1 }
 0x124   : > { %v3203_v47 = vadd.f32 %v3201_v39, %v3197_v42  ;;  %v3209_v48 = vadd.f32 %v3207_v40, %v3197_v42  ;;  %v3191_v49 = vadd.f32 %v3190_v44, %v3113_v41  ;;  %v4637_v50 = vpop.f32.mrf.mxu0  ;;  %v4204_v39 = vld [vmem:[%s4938_s25 + $0xe0] sm:$0xff]  ;;  %v4210_v40 = vld [vmem:[%s4938_s25 + $0xf0] sm:$0xff] }
 0x125   : > { %v4632_v51 = vpop.f32.mrf.mxu1 }
 0x126   : > { %3205 = vst.msk [vmem:[%s4945_s28 + $0xa8] sm:$0xff] %vm194_vm0, %v3203_v47  ;;  %3211 = vst.msk [vmem:[%s4945_s28 + $0xb8] sm:$0xff] %vm194_vm0, %v3209_v48  ;;  %v3202_v52 = vadd.f32 %v3200_v45, %v3191_v49  ;;  %v3208_v53 = vadd.f32 %v3206_v46, %v3191_v49  ;;  %v3378_v54 = vadd.f32 %v4632_v51, %v4627_v37  ;;  %v3451_v55 = vpop.f32.mrf.mxu0 }
 0x127   : > { %v3371_v56 = vpop.f32.mrf.mxu1 }
 0x128   : > { %3204 = vst.msk [vmem:[%s4945_s28 + $0xa0] sm:$0xff] %vm194_vm0, %v3202_v52  ;;  %3210 = vst.msk [vmem:[%s4945_s28 + $0xb0] sm:$0xff] %vm194_vm0, %v3208_v53  ;;  %v3459_v57 = vadd.f32 %v4637_v50, %v3378_v54  ;;  %v3372_v58 = vadd.f32 %v3371_v56, %v3285_v43  ;;  %v4647_v59 = vpop.f32.mrf.mxu0 }
 0x129   : > { %v4642_v60 = vpop.f32.mrf.mxu1 }
 0x12a   : > { %v3452_v61 = vadd.f32 %v3451_v55, %v3372_v58  ;;  %v3541_v62 = vadd.f32 %v4642_v60, %v3459_v57  ;;  %v3614_v63 = vpop.f32.mrf.mxu0 }
 0x12b   : > { %v3532_v0 = vpop.f32.mrf.mxu1 }
 0x12c   : > { %v3621_v1 = vadd.f32 %v4647_v59, %v3541_v62  ;;  %v3533_v2 = vadd.f32 %v3532_v0, %v3452_v61  ;;  %v4657_v3 = vpop.f32.mrf.mxu0 }
 0x12d   : > { %v4652_v6 = vpop.f32.mrf.mxu1 }
 0x12e   : > { %v3615_v9 = vadd.f32 %v3614_v63, %v3533_v2  ;;  %v3699_v11 = vadd.f32 %v4652_v6, %v3621_v1  ;;  %v3787_v4 = vpop.f32.mrf.mxu0 }
 0x12f   : > { %v3692_v5 = vpop.f32.mrf.mxu1 }
 0x130   : > { %v3705_v13 = vadd.f32 %v3703_v7, %v3699_v11  ;;  %v3711_v14 = vadd.f32 %v3709_v8, %v3699_v11  ;;  %v3693_v15 = vadd.f32 %v3692_v5, %v3615_v9  ;;  %v4667_v16 = vpop.f32.mrf.mxu0 }
 0x131   : > { %v4662_v17 = vpop.f32.mrf.mxu1 }
 0x132   : > { %3707 = vst.msk [vmem:[%s4945_s28 + $0xc8] sm:$0xff] %vm194_vm0, %v3705_v13  ;;  %3713 = vst.msk [vmem:[%s4945_s28 + $0xd8] sm:$0xff] %vm194_vm0, %v3711_v14  ;;  %v3704_v18 = vadd.f32 %v3702_v10, %v3693_v15  ;;  %v3710_v19 = vadd.f32 %v3708_v12, %v3693_v15  ;;  %v3880_v20 = vadd.f32 %v4662_v17, %v4657_v3  ;;  %v3953_v21 = vpop.f32.mrf.mxu0 }
 0x133   : > { %v3873_v22 = vpop.f32.mrf.mxu1 }
 0x134   : > { %3706 = vst.msk [vmem:[%s4945_s28 + $0xc0] sm:$0xff] %vm194_vm0, %v3704_v18  ;;  %3712 = vst.msk [vmem:[%s4945_s28 + $0xd0] sm:$0xff] %vm194_vm0, %v3710_v19  ;;  %v3961_v23 = vadd.f32 %v4667_v16, %v3880_v20  ;;  %v3874_v24 = vadd.f32 %v3873_v22, %v3787_v4  ;;  %v4677_v26 = vpop.f32.mrf.mxu0 }
 0x135   : > { %v4672_v25 = vpop.f32.mrf.mxu1 }
 0x136   : > { %v3954_v27 = vadd.f32 %v3953_v21, %v3874_v24  ;;  %v4043_v28 = vadd.f32 %v4672_v25, %v3961_v23  ;;  %v4116_v32 = vpop.f32.mrf.mxu0 }
 0x137   : > { %v4034_v29 = vpop.f32.mrf.mxu1 }
 0x138   : > { %v4123_v30 = vadd.f32 %v4677_v26, %v4043_v28  ;;  %v4035_v31 = vadd.f32 %v4034_v29, %v3954_v27 }
 0x139   : > { %v4682_v33 = vpop.f32.mrf.mxu1 }
 0x13a   : > { %v4117_v36 = vadd.f32 %v4116_v32, %v4035_v31  ;;  %v4201_v37 = vadd.f32 %v4682_v33, %v4123_v30 }
 0x13b   : > { %v4194_v38 = vpop.f32.mrf.mxu1 }
 0x13c   : > { %v4207_v41 = vadd.f32 %v4205_v34, %v4201_v37  ;;  %v4213_v42 = vadd.f32 %v4211_v35, %v4201_v37  ;;  %v4195_v43 = vadd.f32 %v4194_v38, %v4117_v36 }
 0x13e   : > { %4209 = vst.msk [vmem:[%s4945_s28 + $0xe8] sm:$0xff] %vm194_vm0, %v4207_v41  ;;  %4215 = vst.msk [vmem:[%s4945_s28 + $0xf8] sm:$0xff] %vm194_vm0, %v4213_v42  ;;  %v4206_v44 = vadd.f32 %v4204_v39, %v4195_v43  ;;  %v4212_v45 = vadd.f32 %v4210_v40, %v4195_v43 }
 0x140   : > { %4208 = vst.msk [vmem:[%s4945_s28 + $0xe0] sm:$0xff] %vm194_vm0, %v4206_v44  ;;  %4214 = vst.msk [vmem:[%s4945_s28 + $0xf0] sm:$0xff] %vm194_vm0, %v4212_v45 }
 0x141 PF: > { %s13_s12 = sadd.s32 1, %s4697_s12  }
 0x142   : > { %p10_p4 = scmp.ge.s32.totalorder %s13_s12, 4  }
 0x144   :  { %12 = sbr.rel (!%p10_p4) target bundleno = 1 (0x1), region = 65 }

</bundles_post_ra>
